<compile_context>
chip_gen: v7x
topology: tpu7x:2x2x1
jax: 0.10.0
libtpu: 0.0.40
codegen_flags: <defaults>
</compile_context>

<pallas_src>
import functools
import math

import jax
import jax.numpy as jnp
from jax.experimental import pallas as pl
from jax.experimental.pallas import tpu as pltpu


def _round_up(n, m):
    return ((n + m - 1) // m) * m


def _layer_norm_f32(x, w, b, eps=1e-5):
    """fp32 LayerNorm over the last dim (biased variance, like torch.nn.LayerNorm)."""
    mu = jnp.mean(x, axis=-1, keepdims=True)
    var = jnp.mean((x - mu) ** 2, axis=-1, keepdims=True)
    return (x - mu) * jax.lax.rsqrt(var + eps) * w + b


def resblock_kernel(
    x_ref,                      # (L, D)    f32   full (padded) sequence, current batch elem
    ln1_w_ref, ln1_b_ref,       # (1, D)    f32
    w_in_t_ref, b_in_ref,       # (D, 3D)   bf16 / (1, 3D) f32  (q part pre-scaled)
    w_out_t_ref, b_out_ref,     # (D, D)    bf16 / (1, D)  f32
    ln2_w_ref, ln2_b_ref,       # (1, D)    f32
    w_fc_t_ref, b_fc_ref,       # (D, FF)   bf16 / (1, FF) f32
    w_proj_t_ref, b_proj_ref,   # (FF, D)   bf16 / (1, D)  f32
    y_ref,                      # (TL, D)   f32
    attn_ref,                   # (TL, L)   f32  head-averaged attention weights
    q_sc, k_sc, v_sc,           # (H,L,Dh) / (H,Dh,L) / (H,L,Dh)  bf16 scratch
    o_sc,                       # (TL, D)   bf16 scratch (merged heads for out-proj)
    *, n_head, ff_chunk, l_valid, pretranspose_k,
):
    qi = pl.program_id(1)
    L, D = x_ref.shape
    TL = y_ref.shape[0]
    Dh = D // n_head
    FF = w_fc_t_ref.shape[1]

    # ---- ln_1 + QKV projection for the whole sequence, once per batch element ----
    @pl.when(qi == 0)
    def _():
        xf = x_ref[...]
        ln1 = _layer_norm_f32(xf, ln1_w_ref[...], ln1_b_ref[...])
        qkv = jnp.dot(ln1.astype(jnp.bfloat16), w_in_t_ref[...],
                      preferred_element_type=jnp.float32) + b_in_ref[...]
        qkv_b = qkv.astype(jnp.bfloat16)
        if pretranspose_k:
            # One f32 (L, D) -> (D, L) transpose per batch element; the per-q-tile
            # QK^T then contracts (TL,Dh)x(Dh,L) with no per-tile relayout.
            k_sc[...] = qkv[:, D:2 * D].T.reshape(n_head, Dh, L).astype(jnp.bfloat16)
        # NOTE: (H, L, Dh) scratch pads Dh (<128) to full lanes; accounted for in the
        # wrapper's VMEM budget, only the QK^T matmul pays the small-K penalty now.
        for h in range(n_head):
            q_sc[h] = qkv_b[:, h * Dh:(h + 1) * Dh]
            v_sc[h] = qkv_b[:, 2 * D + h * Dh:2 * D + (h + 1) * Dh]
            if not pretranspose_k:
                k_sc[h] = qkv_b[:, D + h * Dh:D + (h + 1) * Dh]

    row0 = pl.multiple_of(qi * TL, TL)
    x_tile = x_ref[pl.ds(row0, TL), :]                            # (TL, D) f32

    # ---- head-batched attention ----
    qh = q_sc[:, pl.ds(row0, TL), :]                              # (H, TL, Dh) bf16
    if pretranspose_k:
        s = jnp.einsum('hqd,hdk->hqk', qh, k_sc[...],
                       preferred_element_type=jnp.float32)        # (H, TL, L) f32
    else:
        s = jnp.einsum('hqd,hkd->hqk', qh, k_sc[...],
                       preferred_element_type=jnp.float32)
    # TODO(synk): an additive attn_mask (None in this instantiation) would be added here.
    if l_valid < L:
        # Mask padded key columns so they receive exactly zero probability.
        kpos = jax.lax.broadcasted_iota(jnp.int32, (1, L), 1)
        s = jnp.where(kpos < l_valid, s, -1e30)

    s = s - jnp.max(s, axis=-1, keepdims=True)
    e = jnp.exp(s)
    # Per-row reciprocal (H*TL values) + multiply instead of a (H,TL,L) f32 divide.
    # Kept exact so the exported attention row sums stay within 1e-5 of 1.
    inv = 1.0 / jnp.sum(e, axis=-1, keepdims=True)
    p = e * inv                                                   # (H, TL, L) f32
    attn_ref[...] = jnp.mean(p, axis=0)                           # average_attn_weights=True

    oh = jnp.einsum('hqk,hkd->hqd', p.astype(jnp.bfloat16), v_sc[...],
                    preferred_element_type=jnp.float32)           # (H, TL, Dh) f32
    # Merge heads into a lane-contiguous (TL, D) layout, then one fused K=D out-proj.
    for h in range(n_head):
        o_sc[:, h * Dh:(h + 1) * Dh] = oh[h].astype(jnp.bfloat16)
    attn_out = jnp.dot(o_sc[...], w_out_t_ref[...],
                       preferred_element_type=jnp.float32) + b_out_ref[...]

    x1 = x_tile + attn_out                                        # first residual

    # ---- ln_2 + MLP (c_fc -> QuickGELU -> c_proj), optionally blocked over FF ----
    ln2 = _layer_norm_f32(x1, ln2_w_ref[...], ln2_b_ref[...]).astype(jnp.bfloat16)
    b_fc = b_fc_ref[...]
    acc = jnp.zeros((TL, D), jnp.float32)
    # Statically-unrolled chunk loop (ff_chunk == FF removes chunking entirely).
    for c in range(FF // ff_chunk):
        c0 = c * ff_chunk
        hfc = jnp.dot(ln2, w_fc_t_ref[:, c0:c0 + ff_chunk],
                      preferred_element_type=jnp.float32) + b_fc[:, c0:c0 + ff_chunk]
        hfc = hfc * jax.nn.sigmoid(1.702 * hfc)                   # QuickGELU (f32)
        acc = acc + jnp.dot(hfc.astype(jnp.bfloat16),
                            w_proj_t_ref[c0:c0 + ff_chunk, :],
                            preferred_element_type=jnp.float32)

    y = x1 + acc + b_proj_ref[...]                                # second residual
    if l_valid < L:
        # Keep padded query rows exactly zero so padding stays inert across layers.
        rpos = jax.lax.broadcasted_iota(jnp.int32, (TL, 1), 0) + row0
        y = jnp.where(rpos < l_valid, y, 0.0)
    y_ref[...] = y


def _tpu_vmem_capacity_bytes():
    try:
        info = pltpu.get_tpu_info()
        for name in ("vmem_capacity_bytes", "vmem_size_bytes", "vmem_bytes"):
            v = getattr(info, name, None)
            if isinstance(v, int) and v > 0:
                return v
    except Exception:
        pass
    return 64 * 1024 * 1024        # conservative (v7x per-TensorCore VMEM)


def _vmem_budget_bytes():
    cap = _tpu_vmem_capacity_bytes()
    # ~100 MiB on v5e/v6e (128 MiB physical), ~54 MiB on v7x (64 MiB physical).
    return int(max(32 * 1024 * 1024, min(int(cap * 0.85), 100 * 1024 * 1024)))


def _pick_seq_tile(L_pad, n_head, budget_bytes):
    """Largest q-tile (512/256/128) whose score intermediates fit the VMEM budget."""
    candidates = [t for t in (512, 256, 128) if L_pad % t == 0]
    if not candidates:
        return L_pad
    for t in candidates:
        score_bytes = n_head * t * L_pad * 10      # s + p (f32) + bf16 copy of p
        if score_bytes <= budget_bytes // 4:
            return t
    return candidates[-1]


def _pick_ff_chunk(FF, TL, budget_bytes):
    if TL * FF * 6 <= budget_bytes // 6:           # hfc f32 + bf16 copy fits: no chunking
        return FF
    for c in (2048, 1024, 512, 256, 128):
        if FF % c == 0 and TL * c * 6 <= budget_bytes // 6:
            return c
    return FF


def residual_attention_block(x_bld, params, n_head, l_valid):
    """x_bld: (B, L_pad, D) fp32 with L_pad a multiple of 128; l_valid = real seq len.

    Returns (y (B, L_pad, D), attn (B, L_pad, L_pad)); padded rows of y are zero."""
    B, L, D = x_bld.shape
    assert D % n_head == 0
    Dh = D // n_head
    FF = params[8].shape[1]                          # w_fc_t is (D, 4D)

    budget = _vmem_budget_bytes()
    TL = _pick_seq_tile(L, n_head, budget)
    assert L % TL == 0, (L, TL)                      # no silent tail-row drop
    CK = _pick_ff_chunk(FF, TL, budget)
    assert FF % CK == 0, (FF, CK)

    out_shape = (
        jax.ShapeDtypeStruct((B, L, D), jnp.float32),
        jax.ShapeDtypeStruct((B, L, L), jnp.float32),
    )
    out_specs = (
        pl.BlockSpec((None, TL, D), lambda b, qi: (b, qi, 0)),
        pl.BlockSpec((None, TL, L), lambda b, qi: (b, qi, 0)),
    )
    # TODO(synk): for D >= 1280 / FF >= 5120 on v7x, stream w_fc_t / w_proj_t from HBM
    # (memory_space=pl.ANY) instead of keeping the full MLP weights VMEM-resident.

    def _run(optimized):
        in_specs = [pl.BlockSpec((None, L, D), lambda b, qi: (b, 0, 0))]
        for p in params:
            zeros = (0,) * p.ndim
            idx = lambda b, qi, z=zeros: z           # constant-index weight blocks
            if optimized and hasattr(pl, "Buffered"):
                # Constant index map => double buffering is pure VMEM waste.
                in_specs.append(pl.BlockSpec(p.shape, idx, pipeline_mode=pl.Buffered(1)))
            else:
                in_specs.append(pl.BlockSpec(p.shape, idx))

        k_shape = (n_head, Dh, L) if optimized else (n_head, L, Dh)
        scratch_shapes = [
            pltpu.VMEM((n_head, L, Dh), jnp.bfloat16),   # Q
            pltpu.VMEM(k_shape, jnp.bfloat16),           # K (pre-transposed if optimized)
            pltpu.VMEM((n_head, L, Dh), jnp.bfloat16),   # V
            pltpu.VMEM((TL, D), jnp.bfloat16),           # merged heads for fused out-proj
        ]
        kernel = functools.partial(
            resblock_kernel, n_head=n_head, ff_chunk=CK,
            l_valid=l_valid, pretranspose_k=optimized)
        return pl.pallas_call(
            kernel,
            out_shape=out_shape,
            grid=(B, L // TL),
            in_specs=in_specs,
            out_specs=out_specs,
            scratch_shapes=scratch_shapes,
            compiler_params=pltpu.CompilerParams(
                dimension_semantics=("parallel", "arbitrary"),
                vmem_limit_bytes=budget,
            ),
        )(x_bld, *params)

    try:
        return _run(True)
    except Exception:
        # Conservative fallback: double-buffered weights + flash-style K layout.
        return _run(False)


def init_transformer_params(key, width, layers, heads):
    """Deterministic synthetic parameters (shapes match the PyTorch module)."""
    D = width
    Dh = D // heads
    scale_q = 1.0 / math.sqrt(Dh)
    params_per_layer = []
    for _ in range(layers):
        keys = jax.random.split(key, 7)
        key = keys[0]
        w_in = 0.02 * jax.random.normal(keys[1], (3 * D, D), jnp.float32)   # attn.in_proj_weight
        b_in = jnp.zeros((3 * D,), jnp.float32)
        w_out = 0.02 * jax.random.normal(keys[2], (D, D), jnp.float32)      # attn.out_proj.weight
        b_out = jnp.zeros((D,), jnp.float32)
        w_fc = 0.02 * jax.random.normal(keys[3], (4 * D, D), jnp.float32)   # mlp.c_fc.weight
        b_fc = 0.01 * jax.random.normal(keys[4], (4 * D,), jnp.float32)
        w_proj = 0.02 * jax.random.normal(keys[5], (D, 4 * D), jnp.float32) # mlp.c_proj.weight
        b_proj = 0.01 * jax.random.normal(keys[6], (D,), jnp.float32)
        ln1_w = jnp.ones((D,), jnp.float32)
        ln1_b = jnp.zeros((D,), jnp.float32)
        ln2_w = jnp.ones((D,), jnp.float32)
        ln2_b = jnp.zeros((D,), jnp.float32)

        # Fold the 1/sqrt(Dh) attention scale into the q third of the in-projection.
        w_in = w_in.at[:D, :].multiply(scale_q)
        b_in = b_in.at[:D].multiply(scale_q)

        # Pre-transpose Linear weights (kernel does x @ W^T as x @ W_t), cast matmul
        # weights to bf16 (f32 accumulation in-kernel), keep the out-projection as a
        # plain (D, D) transposed weight (fused K=D matmul), lift 1-D vectors to (1, N).
        layer = (
            ln1_w.reshape(1, D), ln1_b.reshape(1, D),
            w_in.T.astype(jnp.bfloat16), b_in.reshape(1, 3 * D),
            w_out.T.astype(jnp.bfloat16), b_out.reshape(1, D),
            ln2_w.reshape(1, D), ln2_b.reshape(1, D),
            w_fc.T.astype(jnp.bfloat16), b_fc.reshape(1, 4 * D),
            w_proj.T.astype(jnp.bfloat16), b_proj.reshape(1, D),
        )
        params_per_layer.append(layer)
    return params_per_layer


def transformer_forward(x_lbd, params_per_layer, n_head):
    """x_lbd: (L, B, D) like the PyTorch module (seq-first, batch_first=False).

    Returns (x_out (L, B, D), [attn_weights (B, L, L)] * layers)."""
    L, B, D = x_lbd.shape
    L_pad = _round_up(L, 128)
    x = jnp.transpose(x_lbd.astype(jnp.float32), (1, 0, 2))       # -> (B, L, D), once
    if L_pad != L:
        # Pad the sequence once for lane-dense (multiple-of-128) output stores;
        # padded keys are masked in-kernel and padded rows stay zero across layers.
        x = jnp.pad(x, ((0, 0), (0, L_pad - L), (0, 0)))
    attention_matrices = []
    for layer_params in params_per_layer:
        x, attn = residual_attention_block(x, layer_params, n_head, L)
        attention_matrices.append(attn[:, :L, :L] if L_pad != L else attn)
    y = x[:, :L, :] if L_pad != L else x
    return jnp.transpose(y, (1, 0, 2)), attention_matrices


if __name__ == "__main__":
    # Small shapes consistent with the module: seq=8, batch=2, width=32, heads=4, layers=2.
    WIDTH, LAYERS, HEADS = 32, 2, 4
    SEQ, BATCH = 8, 2

    key = jax.random.PRNGKey(0)
    k_x, k_p = jax.random.split(key)
    x = jax.random.normal(k_x, (SEQ, BATCH, WIDTH), jnp.float32)

    params = init_transformer_params(k_p, WIDTH, LAYERS, HEADS)

    y, attn_mats = transformer_forward(x, params, HEADS)
    y = jax.block_until_ready(y)
    attn_mats = [jax.block_until_ready(a) for a in attn_mats]

    assert y.shape == (SEQ, BATCH, WIDTH)
    assert len(attn_mats) == LAYERS
    assert all(a.shape == (BATCH, SEQ, SEQ) for a in attn_mats)
    # softmax rows of the averaged attention weights must sum to 1 (exact f32 normalization)
    assert bool(jnp.allclose(jnp.sum(attn_mats[0], axis=-1), 1.0, atol=1e-5))
    assert bool(jnp.all(jnp.isfinite(y)))
    print("KERNEL_OK")
</pallas_src>

<mosaic_0001>
module attributes {stable_mosaic.version = 11 : i64} {
  func.func @resblock_kernel(%arg0: i32, %arg1: i32, %arg2: memref<1x128x32xf32, #tpu.memory_space<vmem>>, %arg3: memref<1x32xf32, #tpu.memory_space<vmem>>, %arg4: memref<1x32xf32, #tpu.memory_space<vmem>>, %arg5: memref<32x96xbf16, #tpu.memory_space<vmem>>, %arg6: memref<1x96xf32, #tpu.memory_space<vmem>>, %arg7: memref<32x32xbf16, #tpu.memory_space<vmem>>, %arg8: memref<1x32xf32, #tpu.memory_space<vmem>>, %arg9: memref<1x32xf32, #tpu.memory_space<vmem>>, %arg10: memref<1x32xf32, #tpu.memory_space<vmem>>, %arg11: memref<32x128xbf16, #tpu.memory_space<vmem>>, %arg12: memref<1x128xf32, #tpu.memory_space<vmem>>, %arg13: memref<128x32xbf16, #tpu.memory_space<vmem>>, %arg14: memref<1x32xf32, #tpu.memory_space<vmem>>, %arg15: memref<1x128x32xf32, #tpu.memory_space<vmem>>, %arg16: memref<1x128x128xf32, #tpu.memory_space<vmem>>, %arg17: memref<4x128x8xbf16, #tpu.memory_space<vmem>>, %arg18: memref<4x8x128xbf16, #tpu.memory_space<vmem>>, %arg19: memref<4x128x8xbf16, #tpu.memory_space<vmem>>, %arg20: memref<128x32xbf16, #tpu.memory_space<vmem>>) attributes {dimension_semantics = [#tpu.dimension_semantics<parallel>, #tpu.dimension_semantics<arbitrary>], iteration_bounds = array<i64: 2, 1>, scalar_prefetch = 0 : i64, scratch_operands = 4 : i64, tpu.core_type = #tpu.core_type<tc>, window_params = [{transform_indices = @transform_0, window_bounds = array<i64: 1, 128, 32>}, {pipeline_mode = #tpu.pipeline_mode<synchronous>, transform_indices = @transform_1, window_bounds = array<i64: 1, 32>}, {pipeline_mode = #tpu.pipeline_mode<synchronous>, transform_indices = @transform_2, window_bounds = array<i64: 1, 32>}, {pipeline_mode = #tpu.pipeline_mode<synchronous>, transform_indices = @transform_3, window_bounds = array<i64: 32, 96>}, {pipeline_mode = #tpu.pipeline_mode<synchronous>, transform_indices = @transform_4, window_bounds = array<i64: 1, 96>}, {pipeline_mode = #tpu.pipeline_mode<synchronous>, transform_indices = @transform_5, window_bounds = array<i64: 32, 32>}, {pipeline_mode = #tpu.pipeline_mode<synchronous>, transform_indices = @transform_6, window_bounds = array<i64: 1, 32>}, {pipeline_mode = #tpu.pipeline_mode<synchronous>, transform_indices = @transform_7, window_bounds = array<i64: 1, 32>}, {pipeline_mode = #tpu.pipeline_mode<synchronous>, transform_indices = @transform_8, window_bounds = array<i64: 1, 32>}, {pipeline_mode = #tpu.pipeline_mode<synchronous>, transform_indices = @transform_9, window_bounds = array<i64: 32, 128>}, {pipeline_mode = #tpu.pipeline_mode<synchronous>, transform_indices = @transform_10, window_bounds = array<i64: 1, 128>}, {pipeline_mode = #tpu.pipeline_mode<synchronous>, transform_indices = @transform_11, window_bounds = array<i64: 128, 32>}, {pipeline_mode = #tpu.pipeline_mode<synchronous>, transform_indices = @transform_12, window_bounds = array<i64: 1, 32>}, {transform_indices = @transform_13, window_bounds = array<i64: 1, 128, 32>}, {transform_indices = @transform_14, window_bounds = array<i64: 1, 128, 128>}]} {
    %c0_i32 = arith.constant 0 : i32
    %0 = arith.cmpi eq, %arg1, %c0_i32 : i32
    %1 = arith.extui %0 : i1 to i32
    %c0_i32_0 = arith.constant 0 : i32
    %2 = arith.cmpi ne, %1, %c0_i32_0 : i32
    scf.if %2 {
      %c0_59 = arith.constant 0 : index
      %c0_60 = arith.constant 0 : index
      %c0_61 = arith.constant 0 : index
      %121 = vector.load %arg2[%c0_59, %c0_60, %c0_61] : memref<1x128x32xf32, #tpu.memory_space<vmem>>, vector<1x128x32xf32>
      %122 = vector.shape_cast %121 : vector<1x128x32xf32> to vector<128x32xf32>
      %c0_62 = arith.constant 0 : index
      %c0_63 = arith.constant 0 : index
      %123 = vector.load %arg3[%c0_62, %c0_63] : memref<1x32xf32, #tpu.memory_space<vmem>>, vector<1x32xf32>
      %c0_64 = arith.constant 0 : index
      %c0_65 = arith.constant 0 : index
      %124 = vector.load %arg4[%c0_64, %c0_65] : memref<1x32xf32, #tpu.memory_space<vmem>>, vector<1x32xf32>
      %cst_66 = arith.constant dense<0.000000e+00> : vector<128xf32>
      %125 = vector.multi_reduction <add>, %122, %cst_66 [1] : vector<128x32xf32> to vector<128xf32>
      %126 = vector.shape_cast %125 : vector<128xf32> to vector<128x1xf32>
      %cst_67 = arith.constant 3.200000e+01 : f32
      %127 = vector.broadcast %cst_67 : f32 to vector<128x1xf32>
      %128 = arith.divf %126, %127 : vector<128x1xf32>
      %129 = vector.broadcast %128 : vector<128x1xf32> to vector<128x32xf32>
      %130 = arith.subf %122, %129 : vector<128x32xf32>
      %131 = arith.mulf %130, %130 : vector<128x32xf32>
      %cst_68 = arith.constant dense<0.000000e+00> : vector<128xf32>
      %132 = vector.multi_reduction <add>, %131, %cst_68 [1] : vector<128x32xf32> to vector<128xf32>
      %133 = vector.shape_cast %132 : vector<128xf32> to vector<128x1xf32>
      %cst_69 = arith.constant 3.200000e+01 : f32
      %134 = vector.broadcast %cst_69 : f32 to vector<128x1xf32>
      %135 = arith.divf %133, %134 : vector<128x1xf32>
      %136 = vector.broadcast %128 : vector<128x1xf32> to vector<128x32xf32>
      %137 = arith.subf %122, %136 : vector<128x32xf32>
      %cst_70 = arith.constant 9.99999974E-6 : f32
      %138 = vector.broadcast %cst_70 : f32 to vector<128x1xf32>
      %139 = arith.addf %135, %138 : vector<128x1xf32>
      %140 = math.rsqrt %139 : vector<128x1xf32>
      %141 = vector.broadcast %140 : vector<128x1xf32> to vector<128x32xf32>
      %142 = arith.mulf %137, %141 : vector<128x32xf32>
      %143 = vector.broadcast %123 : vector<1x32xf32> to vector<128x32xf32>
      %144 = arith.mulf %142, %143 : vector<128x32xf32>
      %145 = vector.broadcast %124 : vector<1x32xf32> to vector<128x32xf32>
      %146 = arith.addf %144, %145 : vector<128x32xf32>
      %147 = arith.truncf %146 : vector<128x32xf32> to vector<128x32xbf16>
      %c0_71 = arith.constant 0 : index
      %c0_72 = arith.constant 0 : index
      %148 = vector.load %arg5[%c0_71, %c0_72] : memref<32x96xbf16, #tpu.memory_space<vmem>>, vector<32x96xbf16>
      %cst_73 = arith.constant dense<0.000000e+00> : vector<128x96xf32>
      %149 = tpu.matmul %147, %148, %cst_73 {dimension_numbers = #tpu.dot_dimension_numbers<[1], [0], [0], [1], [0, 0, 1, 1], [], []>} : vector<128x32xbf16>, vector<32x96xbf16>, vector<128x96xf32> -> vector<128x96xf32>
      %c0_74 = arith.constant 0 : index
      %c0_75 = arith.constant 0 : index
      %150 = vector.load %arg6[%c0_74, %c0_75] : memref<1x96xf32, #tpu.memory_space<vmem>>, vector<1x96xf32>
      %151 = vector.broadcast %150 : vector<1x96xf32> to vector<128x96xf32>
      %152 = arith.addf %149, %151 : vector<128x96xf32>
      %153 = arith.truncf %152 : vector<128x96xf32> to vector<128x96xbf16>
      %154 = vector.extract_strided_slice %152 {offsets = [0, 32], sizes = [128, 32], strides = [1, 1]} : vector<128x96xf32> to vector<128x32xf32>
      %155 = tpu.transpose %154, [1, 0] : vector<128x32xf32> -> vector<32x128xf32>
      %156 = vector.shape_cast %155 : vector<32x128xf32> to vector<4x8x128xf32>
      %157 = arith.truncf %156 : vector<4x8x128xf32> to vector<4x8x128xbf16>
      %c0_76 = arith.constant 0 : index
      %c0_77 = arith.constant 0 : index
      %c0_78 = arith.constant 0 : index
      %158 = vector.load %arg18[%c0_76, %c0_77, %c0_78] : memref<4x8x128xbf16, #tpu.memory_space<vmem>>, vector<4x8x128xbf16>
      tpu.vector_store %arg18[%c0_76, %c0_77, %c0_78], %157 {strides = array<i32>} : memref<4x8x128xbf16, #tpu.memory_space<vmem>>, vector<4x8x128xbf16>,
      %159 = vector.extract_strided_slice %153 {offsets = [0, 0], sizes = [128, 8], strides = [1, 1]} : vector<128x96xbf16> to vector<128x8xbf16>
      %c0_79 = arith.constant 0 : index
      %c0_80 = arith.constant 0 : index
      %c0_81 = arith.constant 0 : index
      %160 = vector.load %arg17[%c0_79, %c0_80, %c0_81] : memref<4x128x8xbf16, #tpu.memory_space<vmem>>, vector<1x128x8xbf16>
      %161 = vector.shape_cast %160 : vector<1x128x8xbf16> to vector<128x8xbf16>
      %162 = vector.shape_cast %159 : vector<128x8xbf16> to vector<1x128x8xbf16>
      tpu.vector_store %arg17[%c0_79, %c0_80, %c0_81], %162 {strides = array<i32>} : memref<4x128x8xbf16, #tpu.memory_space<vmem>>, vector<1x128x8xbf16>,
      %163 = vector.extract_strided_slice %153 {offsets = [0, 64], sizes = [128, 8], strides = [1, 1]} : vector<128x96xbf16> to vector<128x8xbf16>
      %c0_82 = arith.constant 0 : index
      %c0_83 = arith.constant 0 : index
      %c0_84 = arith.constant 0 : index
      %164 = vector.load %arg19[%c0_82, %c0_83, %c0_84] : memref<4x128x8xbf16, #tpu.memory_space<vmem>>, vector<1x128x8xbf16>
      %165 = vector.shape_cast %164 : vector<1x128x8xbf16> to vector<128x8xbf16>
      %166 = vector.shape_cast %163 : vector<128x8xbf16> to vector<1x128x8xbf16>
      tpu.vector_store %arg19[%c0_82, %c0_83, %c0_84], %166 {strides = array<i32>} : memref<4x128x8xbf16, #tpu.memory_space<vmem>>, vector<1x128x8xbf16>,
      %167 = vector.extract_strided_slice %153 {offsets = [0, 8], sizes = [128, 8], strides = [1, 1]} : vector<128x96xbf16> to vector<128x8xbf16>
      %c1 = arith.constant 1 : index
      %c0_85 = arith.constant 0 : index
      %c0_86 = arith.constant 0 : index
      %168 = vector.load %arg17[%c1, %c0_85, %c0_86] : memref<4x128x8xbf16, #tpu.memory_space<vmem>>, vector<1x128x8xbf16>
      %169 = vector.shape_cast %168 : vector<1x128x8xbf16> to vector<128x8xbf16>
      %170 = vector.shape_cast %167 : vector<128x8xbf16> to vector<1x128x8xbf16>
      tpu.vector_store %arg17[%c1, %c0_85, %c0_86], %170 {strides = array<i32>} : memref<4x128x8xbf16, #tpu.memory_space<vmem>>, vector<1x128x8xbf16>,
      %171 = vector.extract_strided_slice %153 {offsets = [0, 72], sizes = [128, 8], strides = [1, 1]} : vector<128x96xbf16> to vector<128x8xbf16>
      %c1_87 = arith.constant 1 : index
      %c0_88 = arith.constant 0 : index
      %c0_89 = arith.constant 0 : index
      %172 = vector.load %arg19[%c1_87, %c0_88, %c0_89] : memref<4x128x8xbf16, #tpu.memory_space<vmem>>, vector<1x128x8xbf16>
      %173 = vector.shape_cast %172 : vector<1x128x8xbf16> to vector<128x8xbf16>
      %174 = vector.shape_cast %171 : vector<128x8xbf16> to vector<1x128x8xbf16>
      tpu.vector_store %arg19[%c1_87, %c0_88, %c0_89], %174 {strides = array<i32>} : memref<4x128x8xbf16, #tpu.memory_space<vmem>>, vector<1x128x8xbf16>,
      %175 = vector.extract_strided_slice %153 {offsets = [0, 16], sizes = [128, 8], strides = [1, 1]} : vector<128x96xbf16> to vector<128x8xbf16>
      %c2 = arith.constant 2 : index
      %c0_90 = arith.constant 0 : index
      %c0_91 = arith.constant 0 : index
      %176 = vector.load %arg17[%c2, %c0_90, %c0_91] : memref<4x128x8xbf16, #tpu.memory_space<vmem>>, vector<1x128x8xbf16>
      %177 = vector.shape_cast %176 : vector<1x128x8xbf16> to vector<128x8xbf16>
      %178 = vector.shape_cast %175 : vector<128x8xbf16> to vector<1x128x8xbf16>
      tpu.vector_store %arg17[%c2, %c0_90, %c0_91], %178 {strides = array<i32>} : memref<4x128x8xbf16, #tpu.memory_space<vmem>>, vector<1x128x8xbf16>,
      %179 = vector.extract_strided_slice %153 {offsets = [0, 80], sizes = [128, 8], strides = [1, 1]} : vector<128x96xbf16> to vector<128x8xbf16>
      %c2_92 = arith.constant 2 : index
      %c0_93 = arith.constant 0 : index
      %c0_94 = arith.constant 0 : index
      %180 = vector.load %arg19[%c2_92, %c0_93, %c0_94] : memref<4x128x8xbf16, #tpu.memory_space<vmem>>, vector<1x128x8xbf16>
      %181 = vector.shape_cast %180 : vector<1x128x8xbf16> to vector<128x8xbf16>
      %182 = vector.shape_cast %179 : vector<128x8xbf16> to vector<1x128x8xbf16>
      tpu.vector_store %arg19[%c2_92, %c0_93, %c0_94], %182 {strides = array<i32>} : memref<4x128x8xbf16, #tpu.memory_space<vmem>>, vector<1x128x8xbf16>,
      %183 = vector.extract_strided_slice %153 {offsets = [0, 24], sizes = [128, 8], strides = [1, 1]} : vector<128x96xbf16> to vector<128x8xbf16>
      %c3 = arith.constant 3 : index
      %c0_95 = arith.constant 0 : index
      %c0_96 = arith.constant 0 : index
      %184 = vector.load %arg17[%c3, %c0_95, %c0_96] : memref<4x128x8xbf16, #tpu.memory_space<vmem>>, vector<1x128x8xbf16>
      %185 = vector.shape_cast %184 : vector<1x128x8xbf16> to vector<128x8xbf16>
      %186 = vector.shape_cast %183 : vector<128x8xbf16> to vector<1x128x8xbf16>
      tpu.vector_store %arg17[%c3, %c0_95, %c0_96], %186 {strides = array<i32>} : memref<4x128x8xbf16, #tpu.memory_space<vmem>>, vector<1x128x8xbf16>,
      %187 = vector.extract_strided_slice %153 {offsets = [0, 88], sizes = [128, 8], strides = [1, 1]} : vector<128x96xbf16> to vector<128x8xbf16>
      %c3_97 = arith.constant 3 : index
      %c0_98 = arith.constant 0 : index
      %c0_99 = arith.constant 0 : index
      %188 = vector.load %arg19[%c3_97, %c0_98, %c0_99] : memref<4x128x8xbf16, #tpu.memory_space<vmem>>, vector<1x128x8xbf16>
      %189 = vector.shape_cast %188 : vector<1x128x8xbf16> to vector<128x8xbf16>
      %190 = vector.shape_cast %187 : vector<128x8xbf16> to vector<1x128x8xbf16>
      tpu.vector_store %arg19[%c3_97, %c0_98, %c0_99], %190 {strides = array<i32>} : memref<4x128x8xbf16, #tpu.memory_space<vmem>>, vector<1x128x8xbf16>,
    } else {
    }
    %c128_i32 = arith.constant 128 : i32
    %3 = arith.muli %arg1, %c128_i32 : i32
    %4 = tpu.assume_multiple %3, 128 : i32
    %c0 = arith.constant 0 : index
    %5 = arith.index_cast %4 : i32 to index
    %c0_1 = arith.constant 0 : index
    %6 = vector.load %arg2[%c0, %5, %c0_1] : memref<1x128x32xf32, #tpu.memory_space<vmem>>, vector<1x128x32xf32>
    %7 = vector.shape_cast %6 : vector<1x128x32xf32> to vector<128x32xf32>
    %c0_2 = arith.constant 0 : index
    %8 = arith.index_cast %4 : i32 to index
    %c0_3 = arith.constant 0 : index
    %9 = vector.load %arg17[%c0_2, %8, %c0_3] : memref<4x128x8xbf16, #tpu.memory_space<vmem>>, vector<4x128x8xbf16>
    %c0_4 = arith.constant 0 : index
    %c0_5 = arith.constant 0 : index
    %c0_6 = arith.constant 0 : index
    %10 = vector.load %arg18[%c0_4, %c0_5, %c0_6] : memref<4x8x128xbf16, #tpu.memory_space<vmem>>, vector<4x8x128xbf16>
    "tpu.trace_start"() <{level = 10 : i32, message = "hqd,hdk->hqk"}> : () -> ()
    %cst = arith.constant dense<0.000000e+00> : vector<4x128x128xf32>
    %11 = tpu.matmul %9, %10, %cst {dimension_numbers = #tpu.dot_dimension_numbers<[2], [1], [1], [2], [0, 0, 0, 1, 1, 2], [0], [0]>} : vector<4x128x8xbf16>, vector<4x8x128xbf16>, vector<4x128x128xf32> -> vector<4x128x128xf32>
    "tpu.trace_stop"() : () -> ()
    %12 = tpu.iota {dimensions = array<i32: 1>} : vector<1x128xi32>
    %c8_i32 = arith.constant 8 : i32
    %13 = vector.broadcast %c8_i32 : i32 to vector<1x128xi32>
    %14 = arith.cmpi slt, %12, %13 : vector<1x128xi32>
    %cst_7 = arith.constant -1.000000e+30 : f32
    %15 = vector.shape_cast %14 : vector<1x128xi1> to vector<1x1x128xi1>
    %16 = vector.broadcast %15 : vector<1x1x128xi1> to vector<4x128x128xi1>
    %17 = vector.broadcast %cst_7 : f32 to vector<4x128x128xf32>
    %18 = arith.select %16, %11, %17 : vector<4x128x128xi1>, vector<4x128x128xf32>
    %cst_8 = arith.constant dense<0xFF800000> : vector<4x128xf32>
    %19 = vector.multi_reduction <maximumf>, %18, %cst_8 [2] : vector<4x128x128xf32> to vector<4x128xf32>
    %20 = vector.shape_cast %19 : vector<4x128xf32> to vector<4x128x1xf32>
    %21 = vector.broadcast %20 : vector<4x128x1xf32> to vector<4x128x128xf32>
    %22 = arith.subf %18, %21 : vector<4x128x128xf32>
    %23 = math.exp %22 : vector<4x128x128xf32>
    %cst_9 = arith.constant dense<0.000000e+00> : vector<4x128xf32>
    %24 = vector.multi_reduction <add>, %23, %cst_9 [2] : vector<4x128x128xf32> to vector<4x128xf32>
    %25 = vector.shape_cast %24 : vector<4x128xf32> to vector<4x128x1xf32>
    %cst_10 = arith.constant 1.000000e+00 : f32
    %26 = vector.broadcast %cst_10 : f32 to vector<4x128x1xf32>
    %27 = arith.divf %26, %25 : vector<4x128x1xf32>
    %28 = vector.broadcast %27 : vector<4x128x1xf32> to vector<4x128x128xf32>
    %29 = arith.mulf %23, %28 : vector<4x128x128xf32>
    %cst_11 = arith.constant dense<0.000000e+00> : vector<128x128xf32>
    %30 = vector.multi_reduction <add>, %29, %cst_11 [0] : vector<4x128x128xf32> to vector<128x128xf32>
    %cst_12 = arith.constant 4.000000e+00 : f32
    %31 = vector.broadcast %cst_12 : f32 to vector<128x128xf32>
    %32 = arith.divf %30, %31 : vector<128x128xf32>
    %c0_13 = arith.constant 0 : index
    %c0_14 = arith.constant 0 : index
    %c0_15 = arith.constant 0 : index
    %33 = vector.load %arg16[%c0_13, %c0_14, %c0_15] : memref<1x128x128xf32, #tpu.memory_space<vmem>>, vector<1x128x128xf32>
    %34 = vector.shape_cast %33 : vector<1x128x128xf32> to vector<128x128xf32>
    %35 = vector.shape_cast %32 : vector<128x128xf32> to vector<1x128x128xf32>
    tpu.vector_store %arg16[%c0_13, %c0_14, %c0_15], %35 {strides = array<i32>} : memref<1x128x128xf32, #tpu.memory_space<vmem>>, vector<1x128x128xf32>,
    %36 = arith.truncf %29 : vector<4x128x128xf32> to vector<4x128x128xbf16>
    %c0_16 = arith.constant 0 : index
    %c0_17 = arith.constant 0 : index
    %c0_18 = arith.constant 0 : index
    %37 = vector.load %arg19[%c0_16, %c0_17, %c0_18] : memref<4x128x8xbf16, #tpu.memory_space<vmem>>, vector<4x128x8xbf16>
    "tpu.trace_start"() <{level = 10 : i32, message = "hqk,hkd->hqd"}> : () -> ()
    %cst_19 = arith.constant dense<0.000000e+00> : vector<4x128x8xf32>
    %38 = tpu.matmul %36, %37, %cst_19 {dimension_numbers = #tpu.dot_dimension_numbers<[2], [1], [1], [2], [0, 0, 0, 1, 1, 2], [0], [0]>} : vector<4x128x128xbf16>, vector<4x128x8xbf16>, vector<4x128x8xf32> -> vector<4x128x8xf32>
    "tpu.trace_stop"() : () -> ()
    %39 = vector.extract_strided_slice %38 {offsets = [0, 0, 0], sizes = [1, 128, 8], strides = [1, 1, 1]} : vector<4x128x8xf32> to vector<1x128x8xf32>
    %40 = vector.shape_cast %39 : vector<1x128x8xf32> to vector<128x8xf32>
    %41 = arith.truncf %40 : vector<128x8xf32> to vector<128x8xbf16>
    %c0_20 = arith.constant 0 : index
    %c0_21 = arith.constant 0 : index
    %42 = vector.load %arg20[%c0_20, %c0_21] : memref<128x32xbf16, #tpu.memory_space<vmem>>, vector<128x8xbf16>
    tpu.vector_store %arg20[%c0_20, %c0_21], %41 {strides = array<i32>} : memref<128x32xbf16, #tpu.memory_space<vmem>>, vector<128x8xbf16>,
    %43 = vector.extract_strided_slice %38 {offsets = [1, 0, 0], sizes = [1, 128, 8], strides = [1, 1, 1]} : vector<4x128x8xf32> to vector<1x128x8xf32>
    %44 = vector.shape_cast %43 : vector<1x128x8xf32> to vector<128x8xf32>
    %45 = arith.truncf %44 : vector<128x8xf32> to vector<128x8xbf16>
    %c0_22 = arith.constant 0 : index
    %c8 = arith.constant 8 : index
    %46 = vector.load %arg20[%c0_22, %c8] : memref<128x32xbf16, #tpu.memory_space<vmem>>, vector<128x8xbf16>
    tpu.vector_store %arg20[%c0_22, %c8], %45 {strides = array<i32>} : memref<128x32xbf16, #tpu.memory_space<vmem>>, vector<128x8xbf16>,
    %47 = vector.extract_strided_slice %38 {offsets = [2, 0, 0], sizes = [1, 128, 8], strides = [1, 1, 1]} : vector<4x128x8xf32> to vector<1x128x8xf32>
    %48 = vector.shape_cast %47 : vector<1x128x8xf32> to vector<128x8xf32>
    %49 = arith.truncf %48 : vector<128x8xf32> to vector<128x8xbf16>
    %c0_23 = arith.constant 0 : index
    %c16 = arith.constant 16 : index
    %50 = vector.load %arg20[%c0_23, %c16] : memref<128x32xbf16, #tpu.memory_space<vmem>>, vector<128x8xbf16>
    tpu.vector_store %arg20[%c0_23, %c16], %49 {strides = array<i32>} : memref<128x32xbf16, #tpu.memory_space<vmem>>, vector<128x8xbf16>,
    %51 = vector.extract_strided_slice %38 {offsets = [3, 0, 0], sizes = [1, 128, 8], strides = [1, 1, 1]} : vector<4x128x8xf32> to vector<1x128x8xf32>
    %52 = vector.shape_cast %51 : vector<1x128x8xf32> to vector<128x8xf32>
    %53 = arith.truncf %52 : vector<128x8xf32> to vector<128x8xbf16>
    %c0_24 = arith.constant 0 : index
    %c24 = arith.constant 24 : index
    %54 = vector.load %arg20[%c0_24, %c24] : memref<128x32xbf16, #tpu.memory_space<vmem>>, vector<128x8xbf16>
    tpu.vector_store %arg20[%c0_24, %c24], %53 {strides = array<i32>} : memref<128x32xbf16, #tpu.memory_space<vmem>>, vector<128x8xbf16>,
    %c0_25 = arith.constant 0 : index
    %c0_26 = arith.constant 0 : index
    %55 = vector.load %arg20[%c0_25, %c0_26] : memref<128x32xbf16, #tpu.memory_space<vmem>>, vector<128x32xbf16>
    %c0_27 = arith.constant 0 : index
    %c0_28 = arith.constant 0 : index
    %56 = vector.load %arg7[%c0_27, %c0_28] : memref<32x32xbf16, #tpu.memory_space<vmem>>, vector<32x32xbf16>
    %cst_29 = arith.constant dense<0.000000e+00> : vector<128x32xf32>
    %57 = tpu.matmul %55, %56, %cst_29 {dimension_numbers = #tpu.dot_dimension_numbers<[1], [0], [0], [1], [0, 0, 1, 1], [], []>} : vector<128x32xbf16>, vector<32x32xbf16>, vector<128x32xf32> -> vector<128x32xf32>
    %c0_30 = arith.constant 0 : index
    %c0_31 = arith.constant 0 : index
    %58 = vector.load %arg8[%c0_30, %c0_31] : memref<1x32xf32, #tpu.memory_space<vmem>>, vector<1x32xf32>
    %59 = vector.broadcast %58 : vector<1x32xf32> to vector<128x32xf32>
    %60 = arith.addf %57, %59 : vector<128x32xf32>
    %61 = arith.addf %7, %60 : vector<128x32xf32>
    %c0_32 = arith.constant 0 : index
    %c0_33 = arith.constant 0 : index
    %62 = vector.load %arg9[%c0_32, %c0_33] : memref<1x32xf32, #tpu.memory_space<vmem>>, vector<1x32xf32>
    %c0_34 = arith.constant 0 : index
    %c0_35 = arith.constant 0 : index
    %63 = vector.load %arg10[%c0_34, %c0_35] : memref<1x32xf32, #tpu.memory_space<vmem>>, vector<1x32xf32>
    %cst_36 = arith.constant dense<0.000000e+00> : vector<128xf32>
    %64 = vector.multi_reduction <add>, %61, %cst_36 [1] : vector<128x32xf32> to vector<128xf32>
    %65 = vector.shape_cast %64 : vector<128xf32> to vector<128x1xf32>
    %cst_37 = arith.constant 3.200000e+01 : f32
    %66 = vector.broadcast %cst_37 : f32 to vector<128x1xf32>
    %67 = arith.divf %65, %66 : vector<128x1xf32>
    %68 = vector.broadcast %67 : vector<128x1xf32> to vector<128x32xf32>
    %69 = arith.subf %61, %68 : vector<128x32xf32>
    %70 = arith.mulf %69, %69 : vector<128x32xf32>
    %cst_38 = arith.constant dense<0.000000e+00> : vector<128xf32>
    %71 = vector.multi_reduction <add>, %70, %cst_38 [1] : vector<128x32xf32> to vector<128xf32>
    %72 = vector.shape_cast %71 : vector<128xf32> to vector<128x1xf32>
    %cst_39 = arith.constant 3.200000e+01 : f32
    %73 = vector.broadcast %cst_39 : f32 to vector<128x1xf32>
    %74 = arith.divf %72, %73 : vector<128x1xf32>
    %75 = vector.broadcast %67 : vector<128x1xf32> to vector<128x32xf32>
    %76 = arith.subf %61, %75 : vector<128x32xf32>
    %cst_40 = arith.constant 9.99999974E-6 : f32
    %77 = vector.broadcast %cst_40 : f32 to vector<128x1xf32>
    %78 = arith.addf %74, %77 : vector<128x1xf32>
    %79 = math.rsqrt %78 : vector<128x1xf32>
    %80 = vector.broadcast %79 : vector<128x1xf32> to vector<128x32xf32>
    %81 = arith.mulf %76, %80 : vector<128x32xf32>
    %82 = vector.broadcast %62 : vector<1x32xf32> to vector<128x32xf32>
    %83 = arith.mulf %81, %82 : vector<128x32xf32>
    %84 = vector.broadcast %63 : vector<1x32xf32> to vector<128x32xf32>
    %85 = arith.addf %83, %84 : vector<128x32xf32>
    %86 = arith.truncf %85 : vector<128x32xf32> to vector<128x32xbf16>
    %c0_41 = arith.constant 0 : index
    %c0_42 = arith.constant 0 : index
    %87 = vector.load %arg12[%c0_41, %c0_42] : memref<1x128xf32, #tpu.memory_space<vmem>>, vector<1x128xf32>
    %cst_43 = arith.constant 0.000000e+00 : f32
    %88 = vector.broadcast %cst_43 : f32 to vector<128x32xf32>
    %c0_44 = arith.constant 0 : index
    %c0_45 = arith.constant 0 : index
    %89 = vector.load %arg11[%c0_44, %c0_45] : memref<32x128xbf16, #tpu.memory_space<vmem>>, vector<32x128xbf16>
    %cst_46 = arith.constant dense<0.000000e+00> : vector<128x128xf32>
    %90 = tpu.matmul %86, %89, %cst_46 {dimension_numbers = #tpu.dot_dimension_numbers<[1], [0], [0], [1], [0, 0, 1, 1], [], []>} : vector<128x32xbf16>, vector<32x128xbf16>, vector<128x128xf32> -> vector<128x128xf32>
    %91 = vector.broadcast %87 : vector<1x128xf32> to vector<128x128xf32>
    %92 = arith.addf %90, %91 : vector<128x128xf32>
    %cst_47 = arith.constant 1.702000e+00 : f32
    %93 = vector.broadcast %cst_47 : f32 to vector<128x128xf32>
    %94 = arith.mulf %93, %92 : vector<128x128xf32>
    %95 = arith.negf %94 : vector<128x128xf32>
    %96 = math.exp %95 : vector<128x128xf32>
    %cst_48 = arith.constant 1.000000e+00 : f32
    %97 = vector.broadcast %cst_48 : f32 to vector<128x128xf32>
    %98 = arith.addf %97, %96 : vector<128x128xf32>
    %99 = arith.divf %97, %98 : vector<128x128xf32>
    %100 = arith.mulf %92, %99 : vector<128x128xf32>
    %101 = arith.truncf %100 : vector<128x128xf32> to vector<128x128xbf16>
    %c0_49 = arith.constant 0 : index
    %c0_50 = arith.constant 0 : index
    %102 = vector.load %arg13[%c0_49, %c0_50] : memref<128x32xbf16, #tpu.memory_space<vmem>>, vector<128x32xbf16>
    %cst_51 = arith.constant dense<0.000000e+00> : vector<128x32xf32>
    %103 = tpu.matmul %101, %102, %cst_51 {dimension_numbers = #tpu.dot_dimension_numbers<[1], [0], [0], [1], [0, 0, 1, 1], [], []>} : vector<128x128xbf16>, vector<128x32xbf16>, vector<128x32xf32> -> vector<128x32xf32>
    %104 = arith.addf %88, %103 : vector<128x32xf32>
    %105 = arith.addf %61, %104 : vector<128x32xf32>
    %c0_52 = arith.constant 0 : index
    %c0_53 = arith.constant 0 : index
    %106 = vector.load %arg14[%c0_52, %c0_53] : memref<1x32xf32, #tpu.memory_space<vmem>>, vector<1x32xf32>
    %107 = vector.broadcast %106 : vector<1x32xf32> to vector<128x32xf32>
    %108 = arith.addf %105, %107 : vector<128x32xf32>
    %109 = tpu.iota {dimensions = array<i32: 0>} : vector<128x1xi32>
    %110 = vector.broadcast %4 : i32 to vector<128x1xi32>
    %111 = arith.addi %109, %110 : vector<128x1xi32>
    %c8_i32_54 = arith.constant 8 : i32
    %112 = vector.broadcast %c8_i32_54 : i32 to vector<128x1xi32>
    %113 = arith.cmpi slt, %111, %112 : vector<128x1xi32>
    %cst_55 = arith.constant 0.000000e+00 : f32
    %114 = vector.shape_cast %113 : vector<128x1xi1> to vector<128x1xi1>
    %115 = vector.broadcast %114 : vector<128x1xi1> to vector<128x32xi1>
    %116 = vector.broadcast %cst_55 : f32 to vector<128x32xf32>
    %117 = arith.select %115, %108, %116 : vector<128x32xi1>, vector<128x32xf32>
    %c0_56 = arith.constant 0 : index
    %c0_57 = arith.constant 0 : index
    %c0_58 = arith.constant 0 : index
    %118 = vector.load %arg15[%c0_56, %c0_57, %c0_58] : memref<1x128x32xf32, #tpu.memory_space<vmem>>, vector<1x128x32xf32>
    %119 = vector.shape_cast %118 : vector<1x128x32xf32> to vector<128x32xf32>
    %120 = vector.shape_cast %117 : vector<128x32xf32> to vector<1x128x32xf32>
    tpu.vector_store %arg15[%c0_56, %c0_57, %c0_58], %120 {strides = array<i32>} : memref<1x128x32xf32, #tpu.memory_space<vmem>>, vector<1x128x32xf32>,
    return
  }
  func.func @transform_0(%arg0: i32, %arg1: i32) -> (i32, i32, i32) {
    %c0_i32 = arith.constant 0 : i32
    %c0_i32_0 = arith.constant 0 : i32
    %c0_i32_1 = arith.constant 0 : i32
    return %arg0, %c0_i32, %c0_i32_0 : i32, i32, i32
  }
  func.func @transform_1(%arg0: i32, %arg1: i32) -> (i32, i32) {
    %c0_i32 = arith.constant 0 : i32
    %c0_i32_0 = arith.constant 0 : i32
    %c0_i32_1 = arith.constant 0 : i32
    return %c0_i32, %c0_i32_0 : i32, i32
  }
  func.func @transform_2(%arg0: i32, %arg1: i32) -> (i32, i32) {
    %c0_i32 = arith.constant 0 : i32
    %c0_i32_0 = arith.constant 0 : i32
    %c0_i32_1 = arith.constant 0 : i32
    return %c0_i32, %c0_i32_0 : i32, i32
  }
  func.func @transform_3(%arg0: i32, %arg1: i32) -> (i32, i32) {
    %c0_i32 = arith.constant 0 : i32
    %c0_i32_0 = arith.constant 0 : i32
    %c0_i32_1 = arith.constant 0 : i32
    return %c0_i32, %c0_i32_0 : i32, i32
  }
  func.func @transform_4(%arg0: i32, %arg1: i32) -> (i32, i32) {
    %c0_i32 = arith.constant 0 : i32
    %c0_i32_0 = arith.constant 0 : i32
    %c0_i32_1 = arith.constant 0 : i32
    return %c0_i32, %c0_i32_0 : i32, i32
  }
  func.func @transform_5(%arg0: i32, %arg1: i32) -> (i32, i32) {
    %c0_i32 = arith.constant 0 : i32
    %c0_i32_0 = arith.constant 0 : i32
    %c0_i32_1 = arith.constant 0 : i32
    return %c0_i32, %c0_i32_0 : i32, i32
  }
  func.func @transform_6(%arg0: i32, %arg1: i32) -> (i32, i32) {
    %c0_i32 = arith.constant 0 : i32
    %c0_i32_0 = arith.constant 0 : i32
    %c0_i32_1 = arith.constant 0 : i32
    return %c0_i32, %c0_i32_0 : i32, i32
  }
  func.func @transform_7(%arg0: i32, %arg1: i32) -> (i32, i32) {
    %c0_i32 = arith.constant 0 : i32
    %c0_i32_0 = arith.constant 0 : i32
    %c0_i32_1 = arith.constant 0 : i32
    return %c0_i32, %c0_i32_0 : i32, i32
  }
  func.func @transform_8(%arg0: i32, %arg1: i32) -> (i32, i32) {
    %c0_i32 = arith.constant 0 : i32
    %c0_i32_0 = arith.constant 0 : i32
    %c0_i32_1 = arith.constant 0 : i32
    return %c0_i32, %c0_i32_0 : i32, i32
  }
  func.func @transform_9(%arg0: i32, %arg1: i32) -> (i32, i32) {
    %c0_i32 = arith.constant 0 : i32
    %c0_i32_0 = arith.constant 0 : i32
    %c0_i32_1 = arith.constant 0 : i32
    return %c0_i32, %c0_i32_0 : i32, i32
  }
  func.func @transform_10(%arg0: i32, %arg1: i32) -> (i32, i32) {
    %c0_i32 = arith.constant 0 : i32
    %c0_i32_0 = arith.constant 0 : i32
    %c0_i32_1 = arith.constant 0 : i32
    return %c0_i32, %c0_i32_0 : i32, i32
  }
  func.func @transform_11(%arg0: i32, %arg1: i32) -> (i32, i32) {
    %c0_i32 = arith.constant 0 : i32
    %c0_i32_0 = arith.constant 0 : i32
    %c0_i32_1 = arith.constant 0 : i32
    return %c0_i32, %c0_i32_0 : i32, i32
  }
  func.func @transform_12(%arg0: i32, %arg1: i32) -> (i32, i32) {
    %c0_i32 = arith.constant 0 : i32
    %c0_i32_0 = arith.constant 0 : i32
    %c0_i32_1 = arith.constant 0 : i32
    return %c0_i32, %c0_i32_0 : i32, i32
  }
  func.func @transform_13(%arg0: i32, %arg1: i32) -> (i32, i32, i32) {
    %c0_i32 = arith.constant 0 : i32
    %c0_i32_0 = arith.constant 0 : i32
    return %arg0, %arg1, %c0_i32 : i32, i32, i32
  }
  func.func @transform_14(%arg0: i32, %arg1: i32) -> (i32, i32, i32) {
    %c0_i32 = arith.constant 0 : i32
    %c0_i32_0 = arith.constant 0 : i32
    return %arg0, %arg1, %c0_i32 : i32, i32, i32
  }
}

module attributes {stable_mosaic.version = 11 : i64} {
  func.func @resblock_kernel(%arg0: i32, %arg1: i32, %arg2: memref<1x128x32xf32, #tpu.memory_space<vmem>>, %arg3: memref<1x32xf32, #tpu.memory_space<vmem>>, %arg4: memref<1x32xf32, #tpu.memory_space<vmem>>, %arg5: memref<32x96xbf16, #tpu.memory_space<vmem>>, %arg6: memref<1x96xf32, #tpu.memory_space<vmem>>, %arg7: memref<32x32xbf16, #tpu.memory_space<vmem>>, %arg8: memref<1x32xf32, #tpu.memory_space<vmem>>, %arg9: memref<1x32xf32, #tpu.memory_space<vmem>>, %arg10: memref<1x32xf32, #tpu.memory_space<vmem>>, %arg11: memref<32x128xbf16, #tpu.memory_space<vmem>>, %arg12: memref<1x128xf32, #tpu.memory_space<vmem>>, %arg13: memref<128x32xbf16, #tpu.memory_space<vmem>>, %arg14: memref<1x32xf32, #tpu.memory_space<vmem>>, %arg15: memref<1x128x32xf32, #tpu.memory_space<vmem>>, %arg16: memref<1x128x128xf32, #tpu.memory_space<vmem>>, %arg17: memref<4x128x8xbf16, #tpu.memory_space<vmem>>, %arg18: memref<4x128x8xbf16, #tpu.memory_space<vmem>>, %arg19: memref<4x128x8xbf16, #tpu.memory_space<vmem>>, %arg20: memref<128x32xbf16, #tpu.memory_space<vmem>>) attributes {dimension_semantics = [#tpu.dimension_semantics<parallel>, #tpu.dimension_semantics<arbitrary>], iteration_bounds = array<i64: 2, 1>, scalar_prefetch = 0 : i64, scratch_operands = 4 : i64, tpu.core_type = #tpu.core_type<tc>, window_params = [{transform_indices = @transform_0, window_bounds = array<i64: 1, 128, 32>}, {pipeline_mode = #tpu.pipeline_mode<synchronous>, transform_indices = @transform_1, window_bounds = array<i64: 1, 32>}, {pipeline_mode = #tpu.pipeline_mode<synchronous>, transform_indices = @transform_2, window_bounds = array<i64: 1, 32>}, {pipeline_mode = #tpu.pipeline_mode<synchronous>, transform_indices = @transform_3, window_bounds = array<i64: 32, 96>}, {pipeline_mode = #tpu.pipeline_mode<synchronous>, transform_indices = @transform_4, window_bounds = array<i64: 1, 96>}, {pipeline_mode = #tpu.pipeline_mode<synchronous>, transform_indices = @transform_5, window_bounds = array<i64: 32, 32>}, {pipeline_mode = #tpu.pipeline_mode<synchronous>, transform_indices = @transform_6, window_bounds = array<i64: 1, 32>}, {pipeline_mode = #tpu.pipeline_mode<synchronous>, transform_indices = @transform_7, window_bounds = array<i64: 1, 32>}, {pipeline_mode = #tpu.pipeline_mode<synchronous>, transform_indices = @transform_8, window_bounds = array<i64: 1, 32>}, {pipeline_mode = #tpu.pipeline_mode<synchronous>, transform_indices = @transform_9, window_bounds = array<i64: 32, 128>}, {pipeline_mode = #tpu.pipeline_mode<synchronous>, transform_indices = @transform_10, window_bounds = array<i64: 1, 128>}, {pipeline_mode = #tpu.pipeline_mode<synchronous>, transform_indices = @transform_11, window_bounds = array<i64: 128, 32>}, {pipeline_mode = #tpu.pipeline_mode<synchronous>, transform_indices = @transform_12, window_bounds = array<i64: 1, 32>}, {transform_indices = @transform_13, window_bounds = array<i64: 1, 128, 32>}, {transform_indices = @transform_14, window_bounds = array<i64: 1, 128, 128>}]} {
    %c0_i32 = arith.constant 0 : i32
    %0 = arith.cmpi eq, %arg1, %c0_i32 : i32
    %1 = arith.extui %0 : i1 to i32
    %c0_i32_0 = arith.constant 0 : i32
    %2 = arith.cmpi ne, %1, %c0_i32_0 : i32
    scf.if %2 {
      %c0_59 = arith.constant 0 : index
      %c0_60 = arith.constant 0 : index
      %c0_61 = arith.constant 0 : index
      %121 = vector.load %arg2[%c0_59, %c0_60, %c0_61] : memref<1x128x32xf32, #tpu.memory_space<vmem>>, vector<1x128x32xf32>
      %122 = vector.shape_cast %121 : vector<1x128x32xf32> to vector<128x32xf32>
      %c0_62 = arith.constant 0 : index
      %c0_63 = arith.constant 0 : index
      %123 = vector.load %arg3[%c0_62, %c0_63] : memref<1x32xf32, #tpu.memory_space<vmem>>, vector<1x32xf32>
      %c0_64 = arith.constant 0 : index
      %c0_65 = arith.constant 0 : index
      %124 = vector.load %arg4[%c0_64, %c0_65] : memref<1x32xf32, #tpu.memory_space<vmem>>, vector<1x32xf32>
      %cst_66 = arith.constant dense<0.000000e+00> : vector<128xf32>
      %125 = vector.multi_reduction <add>, %122, %cst_66 [1] : vector<128x32xf32> to vector<128xf32>
      %126 = vector.shape_cast %125 : vector<128xf32> to vector<128x1xf32>
      %cst_67 = arith.constant 3.200000e+01 : f32
      %127 = vector.broadcast %cst_67 : f32 to vector<128x1xf32>
      %128 = arith.divf %126, %127 : vector<128x1xf32>
      %129 = vector.broadcast %128 : vector<128x1xf32> to vector<128x32xf32>
      %130 = arith.subf %122, %129 : vector<128x32xf32>
      %131 = arith.mulf %130, %130 : vector<128x32xf32>
      %cst_68 = arith.constant dense<0.000000e+00> : vector<128xf32>
      %132 = vector.multi_reduction <add>, %131, %cst_68 [1] : vector<128x32xf32> to vector<128xf32>
      %133 = vector.shape_cast %132 : vector<128xf32> to vector<128x1xf32>
      %cst_69 = arith.constant 3.200000e+01 : f32
      %134 = vector.broadcast %cst_69 : f32 to vector<128x1xf32>
      %135 = arith.divf %133, %134 : vector<128x1xf32>
      %136 = vector.broadcast %128 : vector<128x1xf32> to vector<128x32xf32>
      %137 = arith.subf %122, %136 : vector<128x32xf32>
      %cst_70 = arith.constant 9.99999974E-6 : f32
      %138 = vector.broadcast %cst_70 : f32 to vector<128x1xf32>
      %139 = arith.addf %135, %138 : vector<128x1xf32>
      %140 = math.rsqrt %139 : vector<128x1xf32>
      %141 = vector.broadcast %140 : vector<128x1xf32> to vector<128x32xf32>
      %142 = arith.mulf %137, %141 : vector<128x32xf32>
      %143 = vector.broadcast %123 : vector<1x32xf32> to vector<128x32xf32>
      %144 = arith.mulf %142, %143 : vector<128x32xf32>
      %145 = vector.broadcast %124 : vector<1x32xf32> to vector<128x32xf32>
      %146 = arith.addf %144, %145 : vector<128x32xf32>
      %147 = arith.truncf %146 : vector<128x32xf32> to vector<128x32xbf16>
      %c0_71 = arith.constant 0 : index
      %c0_72 = arith.constant 0 : index
      %148 = vector.load %arg5[%c0_71, %c0_72] : memref<32x96xbf16, #tpu.memory_space<vmem>>, vector<32x96xbf16>
      %cst_73 = arith.constant dense<0.000000e+00> : vector<128x96xf32>
      %149 = tpu.matmul %147, %148, %cst_73 {dimension_numbers = #tpu.dot_dimension_numbers<[1], [0], [0], [1], [0, 0, 1, 1], [], []>} : vector<128x32xbf16>, vector<32x96xbf16>, vector<128x96xf32> -> vector<128x96xf32>
      %c0_74 = arith.constant 0 : index
      %c0_75 = arith.constant 0 : index
      %150 = vector.load %arg6[%c0_74, %c0_75] : memref<1x96xf32, #tpu.memory_space<vmem>>, vector<1x96xf32>
      %151 = vector.broadcast %150 : vector<1x96xf32> to vector<128x96xf32>
      %152 = arith.addf %149, %151 : vector<128x96xf32>
      %153 = arith.truncf %152 : vector<128x96xf32> to vector<128x96xbf16>
      %154 = vector.extract_strided_slice %153 {offsets = [0, 0], sizes = [128, 8], strides = [1, 1]} : vector<128x96xbf16> to vector<128x8xbf16>
      %c0_76 = arith.constant 0 : index
      %c0_77 = arith.constant 0 : index
      %c0_78 = arith.constant 0 : index
      %155 = vector.load %arg17[%c0_76, %c0_77, %c0_78] : memref<4x128x8xbf16, #tpu.memory_space<vmem>>, vector<1x128x8xbf16>
      %156 = vector.shape_cast %155 : vector<1x128x8xbf16> to vector<128x8xbf16>
      %157 = vector.shape_cast %154 : vector<128x8xbf16> to vector<1x128x8xbf16>
      tpu.vector_store %arg17[%c0_76, %c0_77, %c0_78], %157 {strides = array<i32>} : memref<4x128x8xbf16, #tpu.memory_space<vmem>>, vector<1x128x8xbf16>,
      %158 = vector.extract_strided_slice %153 {offsets = [0, 64], sizes = [128, 8], strides = [1, 1]} : vector<128x96xbf16> to vector<128x8xbf16>
      %c0_79 = arith.constant 0 : index
      %c0_80 = arith.constant 0 : index
      %c0_81 = arith.constant 0 : index
      %159 = vector.load %arg19[%c0_79, %c0_80, %c0_81] : memref<4x128x8xbf16, #tpu.memory_space<vmem>>, vector<1x128x8xbf16>
      %160 = vector.shape_cast %159 : vector<1x128x8xbf16> to vector<128x8xbf16>
      %161 = vector.shape_cast %158 : vector<128x8xbf16> to vector<1x128x8xbf16>
      tpu.vector_store %arg19[%c0_79, %c0_80, %c0_81], %161 {strides = array<i32>} : memref<4x128x8xbf16, #tpu.memory_space<vmem>>, vector<1x128x8xbf16>,
      %162 = vector.extract_strided_slice %153 {offsets = [0, 32], sizes = [128, 8], strides = [1, 1]} : vector<128x96xbf16> to vector<128x8xbf16>
      %c0_82 = arith.constant 0 : index
      %c0_83 = arith.constant 0 : index
      %c0_84 = arith.constant 0 : index
      %163 = vector.load %arg18[%c0_82, %c0_83, %c0_84] : memref<4x128x8xbf16, #tpu.memory_space<vmem>>, vector<1x128x8xbf16>
      %164 = vector.shape_cast %163 : vector<1x128x8xbf16> to vector<128x8xbf16>
      %165 = vector.shape_cast %162 : vector<128x8xbf16> to vector<1x128x8xbf16>
      tpu.vector_store %arg18[%c0_82, %c0_83, %c0_84], %165 {strides = array<i32>} : memref<4x128x8xbf16, #tpu.memory_space<vmem>>, vector<1x128x8xbf16>,
      %166 = vector.extract_strided_slice %153 {offsets = [0, 8], sizes = [128, 8], strides = [1, 1]} : vector<128x96xbf16> to vector<128x8xbf16>
      %c1 = arith.constant 1 : index
      %c0_85 = arith.constant 0 : index
      %c0_86 = arith.constant 0 : index
      %167 = vector.load %arg17[%c1, %c0_85, %c0_86] : memref<4x128x8xbf16, #tpu.memory_space<vmem>>, vector<1x128x8xbf16>
      %168 = vector.shape_cast %167 : vector<1x128x8xbf16> to vector<128x8xbf16>
      %169 = vector.shape_cast %166 : vector<128x8xbf16> to vector<1x128x8xbf16>
      tpu.vector_store %arg17[%c1, %c0_85, %c0_86], %169 {strides = array<i32>} : memref<4x128x8xbf16, #tpu.memory_space<vmem>>, vector<1x128x8xbf16>,
      %170 = vector.extract_strided_slice %153 {offsets = [0, 72], sizes = [128, 8], strides = [1, 1]} : vector<128x96xbf16> to vector<128x8xbf16>
      %c1_87 = arith.constant 1 : index
      %c0_88 = arith.constant 0 : index
      %c0_89 = arith.constant 0 : index
      %171 = vector.load %arg19[%c1_87, %c0_88, %c0_89] : memref<4x128x8xbf16, #tpu.memory_space<vmem>>, vector<1x128x8xbf16>
      %172 = vector.shape_cast %171 : vector<1x128x8xbf16> to vector<128x8xbf16>
      %173 = vector.shape_cast %170 : vector<128x8xbf16> to vector<1x128x8xbf16>
      tpu.vector_store %arg19[%c1_87, %c0_88, %c0_89], %173 {strides = array<i32>} : memref<4x128x8xbf16, #tpu.memory_space<vmem>>, vector<1x128x8xbf16>,
      %174 = vector.extract_strided_slice %153 {offsets = [0, 40], sizes = [128, 8], strides = [1, 1]} : vector<128x96xbf16> to vector<128x8xbf16>
      %c1_90 = arith.constant 1 : index
      %c0_91 = arith.constant 0 : index
      %c0_92 = arith.constant 0 : index
      %175 = vector.load %arg18[%c1_90, %c0_91, %c0_92] : memref<4x128x8xbf16, #tpu.memory_space<vmem>>, vector<1x128x8xbf16>
      %176 = vector.shape_cast %175 : vector<1x128x8xbf16> to vector<128x8xbf16>
      %177 = vector.shape_cast %174 : vector<128x8xbf16> to vector<1x128x8xbf16>
      tpu.vector_store %arg18[%c1_90, %c0_91, %c0_92], %177 {strides = array<i32>} : memref<4x128x8xbf16, #tpu.memory_space<vmem>>, vector<1x128x8xbf16>,
      %178 = vector.extract_strided_slice %153 {offsets = [0, 16], sizes = [128, 8], strides = [1, 1]} : vector<128x96xbf16> to vector<128x8xbf16>
      %c2 = arith.constant 2 : index
      %c0_93 = arith.constant 0 : index
      %c0_94 = arith.constant 0 : index
      %179 = vector.load %arg17[%c2, %c0_93, %c0_94] : memref<4x128x8xbf16, #tpu.memory_space<vmem>>, vector<1x128x8xbf16>
      %180 = vector.shape_cast %179 : vector<1x128x8xbf16> to vector<128x8xbf16>
      %181 = vector.shape_cast %178 : vector<128x8xbf16> to vector<1x128x8xbf16>
      tpu.vector_store %arg17[%c2, %c0_93, %c0_94], %181 {strides = array<i32>} : memref<4x128x8xbf16, #tpu.memory_space<vmem>>, vector<1x128x8xbf16>,
      %182 = vector.extract_strided_slice %153 {offsets = [0, 80], sizes = [128, 8], strides = [1, 1]} : vector<128x96xbf16> to vector<128x8xbf16>
      %c2_95 = arith.constant 2 : index
      %c0_96 = arith.constant 0 : index
      %c0_97 = arith.constant 0 : index
      %183 = vector.load %arg19[%c2_95, %c0_96, %c0_97] : memref<4x128x8xbf16, #tpu.memory_space<vmem>>, vector<1x128x8xbf16>
      %184 = vector.shape_cast %183 : vector<1x128x8xbf16> to vector<128x8xbf16>
      %185 = vector.shape_cast %182 : vector<128x8xbf16> to vector<1x128x8xbf16>
      tpu.vector_store %arg19[%c2_95, %c0_96, %c0_97], %185 {strides = array<i32>} : memref<4x128x8xbf16, #tpu.memory_space<vmem>>, vector<1x128x8xbf16>,
      %186 = vector.extract_strided_slice %153 {offsets = [0, 48], sizes = [128, 8], strides = [1, 1]} : vector<128x96xbf16> to vector<128x8xbf16>
      %c2_98 = arith.constant 2 : index
      %c0_99 = arith.constant 0 : index
      %c0_100 = arith.constant 0 : index
      %187 = vector.load %arg18[%c2_98, %c0_99, %c0_100] : memref<4x128x8xbf16, #tpu.memory_space<vmem>>, vector<1x128x8xbf16>
      %188 = vector.shape_cast %187 : vector<1x128x8xbf16> to vector<128x8xbf16>
      %189 = vector.shape_cast %186 : vector<128x8xbf16> to vector<1x128x8xbf16>
      tpu.vector_store %arg18[%c2_98, %c0_99, %c0_100], %189 {strides = array<i32>} : memref<4x128x8xbf16, #tpu.memory_space<vmem>>, vector<1x128x8xbf16>,
      %190 = vector.extract_strided_slice %153 {offsets = [0, 24], sizes = [128, 8], strides = [1, 1]} : vector<128x96xbf16> to vector<128x8xbf16>
      %c3 = arith.constant 3 : index
      %c0_101 = arith.constant 0 : index
      %c0_102 = arith.constant 0 : index
      %191 = vector.load %arg17[%c3, %c0_101, %c0_102] : memref<4x128x8xbf16, #tpu.memory_space<vmem>>, vector<1x128x8xbf16>
      %192 = vector.shape_cast %191 : vector<1x128x8xbf16> to vector<128x8xbf16>
      %193 = vector.shape_cast %190 : vector<128x8xbf16> to vector<1x128x8xbf16>
      tpu.vector_store %arg17[%c3, %c0_101, %c0_102], %193 {strides = array<i32>} : memref<4x128x8xbf16, #tpu.memory_space<vmem>>, vector<1x128x8xbf16>,
      %194 = vector.extract_strided_slice %153 {offsets = [0, 88], sizes = [128, 8], strides = [1, 1]} : vector<128x96xbf16> to vector<128x8xbf16>
      %c3_103 = arith.constant 3 : index
      %c0_104 = arith.constant 0 : index
      %c0_105 = arith.constant 0 : index
      %195 = vector.load %arg19[%c3_103, %c0_104, %c0_105] : memref<4x128x8xbf16, #tpu.memory_space<vmem>>, vector<1x128x8xbf16>
      %196 = vector.shape_cast %195 : vector<1x128x8xbf16> to vector<128x8xbf16>
      %197 = vector.shape_cast %194 : vector<128x8xbf16> to vector<1x128x8xbf16>
      tpu.vector_store %arg19[%c3_103, %c0_104, %c0_105], %197 {strides = array<i32>} : memref<4x128x8xbf16, #tpu.memory_space<vmem>>, vector<1x128x8xbf16>,
      %198 = vector.extract_strided_slice %153 {offsets = [0, 56], sizes = [128, 8], strides = [1, 1]} : vector<128x96xbf16> to vector<128x8xbf16>
      %c3_106 = arith.constant 3 : index
      %c0_107 = arith.constant 0 : index
      %c0_108 = arith.constant 0 : index
      %199 = vector.load %arg18[%c3_106, %c0_107, %c0_108] : memref<4x128x8xbf16, #tpu.memory_space<vmem>>, vector<1x128x8xbf16>
      %200 = vector.shape_cast %199 : vector<1x128x8xbf16> to vector<128x8xbf16>
      %201 = vector.shape_cast %198 : vector<128x8xbf16> to vector<1x128x8xbf16>
      tpu.vector_store %arg18[%c3_106, %c0_107, %c0_108], %201 {strides = array<i32>} : memref<4x128x8xbf16, #tpu.memory_space<vmem>>, vector<1x128x8xbf16>,
    } else {
    }
    %c128_i32 = arith.constant 128 : i32
    %3 = arith.muli %arg1, %c128_i32 : i32
    %4 = tpu.assume_multiple %3, 128 : i32
    %c0 = arith.constant 0 : index
    %5 = arith.index_cast %4 : i32 to index
    %c0_1 = arith.constant 0 : index
    %6 = vector.load %arg2[%c0, %5, %c0_1] : memref<1x128x32xf32, #tpu.memory_space<vmem>>, vector<1x128x32xf32>
    %7 = vector.shape_cast %6 : vector<1x128x32xf32> to vector<128x32xf32>
    %c0_2 = arith.constant 0 : index
    %8 = arith.index_cast %4 : i32 to index
    %c0_3 = arith.constant 0 : index
    %9 = vector.load %arg17[%c0_2, %8, %c0_3] : memref<4x128x8xbf16, #tpu.memory_space<vmem>>, vector<4x128x8xbf16>
    %c0_4 = arith.constant 0 : index
    %c0_5 = arith.constant 0 : index
    %c0_6 = arith.constant 0 : index
    %10 = vector.load %arg18[%c0_4, %c0_5, %c0_6] : memref<4x128x8xbf16, #tpu.memory_space<vmem>>, vector<4x128x8xbf16>
    "tpu.trace_start"() <{level = 10 : i32, message = "hqd,hkd->hqk"}> : () -> ()
    %cst = arith.constant dense<0.000000e+00> : vector<4x128x128xf32>
    %11 = tpu.matmul %9, %10, %cst {dimension_numbers = #tpu.dot_dimension_numbers<[2], [2], [1], [1], [0, 0, 0, 1, 1, 1], [0], [0]>} : vector<4x128x8xbf16>, vector<4x128x8xbf16>, vector<4x128x128xf32> -> vector<4x128x128xf32>
    "tpu.trace_stop"() : () -> ()
    %12 = tpu.iota {dimensions = array<i32: 1>} : vector<1x128xi32>
    %c8_i32 = arith.constant 8 : i32
    %13 = vector.broadcast %c8_i32 : i32 to vector<1x128xi32>
    %14 = arith.cmpi slt, %12, %13 : vector<1x128xi32>
    %cst_7 = arith.constant -1.000000e+30 : f32
    %15 = vector.shape_cast %14 : vector<1x128xi1> to vector<1x1x128xi1>
    %16 = vector.broadcast %15 : vector<1x1x128xi1> to vector<4x128x128xi1>
    %17 = vector.broadcast %cst_7 : f32 to vector<4x128x128xf32>
    %18 = arith.select %16, %11, %17 : vector<4x128x128xi1>, vector<4x128x128xf32>
    %cst_8 = arith.constant dense<0xFF800000> : vector<4x128xf32>
    %19 = vector.multi_reduction <maximumf>, %18, %cst_8 [2] : vector<4x128x128xf32> to vector<4x128xf32>
    %20 = vector.shape_cast %19 : vector<4x128xf32> to vector<4x128x1xf32>
    %21 = vector.broadcast %20 : vector<4x128x1xf32> to vector<4x128x128xf32>
    %22 = arith.subf %18, %21 : vector<4x128x128xf32>
    %23 = math.exp %22 : vector<4x128x128xf32>
    %cst_9 = arith.constant dense<0.000000e+00> : vector<4x128xf32>
    %24 = vector.multi_reduction <add>, %23, %cst_9 [2] : vector<4x128x128xf32> to vector<4x128xf32>
    %25 = vector.shape_cast %24 : vector<4x128xf32> to vector<4x128x1xf32>
    %cst_10 = arith.constant 1.000000e+00 : f32
    %26 = vector.broadcast %cst_10 : f32 to vector<4x128x1xf32>
    %27 = arith.divf %26, %25 : vector<4x128x1xf32>
    %28 = vector.broadcast %27 : vector<4x128x1xf32> to vector<4x128x128xf32>
    %29 = arith.mulf %23, %28 : vector<4x128x128xf32>
    %cst_11 = arith.constant dense<0.000000e+00> : vector<128x128xf32>
    %30 = vector.multi_reduction <add>, %29, %cst_11 [0] : vector<4x128x128xf32> to vector<128x128xf32>
    %cst_12 = arith.constant 4.000000e+00 : f32
    %31 = vector.broadcast %cst_12 : f32 to vector<128x128xf32>
    %32 = arith.divf %30, %31 : vector<128x128xf32>
    %c0_13 = arith.constant 0 : index
    %c0_14 = arith.constant 0 : index
    %c0_15 = arith.constant 0 : index
    %33 = vector.load %arg16[%c0_13, %c0_14, %c0_15] : memref<1x128x128xf32, #tpu.memory_space<vmem>>, vector<1x128x128xf32>
    %34 = vector.shape_cast %33 : vector<1x128x128xf32> to vector<128x128xf32>
    %35 = vector.shape_cast %32 : vector<128x128xf32> to vector<1x128x128xf32>
    tpu.vector_store %arg16[%c0_13, %c0_14, %c0_15], %35 {strides = array<i32>} : memref<1x128x128xf32, #tpu.memory_space<vmem>>, vector<1x128x128xf32>,
    %36 = arith.truncf %29 : vector<4x128x128xf32> to vector<4x128x128xbf16>
    %c0_16 = arith.constant 0 : index
    %c0_17 = arith.constant 0 : index
    %c0_18 = arith.constant 0 : index
    %37 = vector.load %arg19[%c0_16, %c0_17, %c0_18] : memref<4x128x8xbf16, #tpu.memory_space<vmem>>, vector<4x128x8xbf16>
    "tpu.trace_start"() <{level = 10 : i32, message = "hqk,hkd->hqd"}> : () -> ()
    %cst_19 = arith.constant dense<0.000000e+00> : vector<4x128x8xf32>
    %38 = tpu.matmul %36, %37, %cst_19 {dimension_numbers = #tpu.dot_dimension_numbers<[2], [1], [1], [2], [0, 0, 0, 1, 1, 2], [0], [0]>} : vector<4x128x128xbf16>, vector<4x128x8xbf16>, vector<4x128x8xf32> -> vector<4x128x8xf32>
    "tpu.trace_stop"() : () -> ()
    %39 = vector.extract_strided_slice %38 {offsets = [0, 0, 0], sizes = [1, 128, 8], strides = [1, 1, 1]} : vector<4x128x8xf32> to vector<1x128x8xf32>
    %40 = vector.shape_cast %39 : vector<1x128x8xf32> to vector<128x8xf32>
    %41 = arith.truncf %40 : vector<128x8xf32> to vector<128x8xbf16>
    %c0_20 = arith.constant 0 : index
    %c0_21 = arith.constant 0 : index
    %42 = vector.load %arg20[%c0_20, %c0_21] : memref<128x32xbf16, #tpu.memory_space<vmem>>, vector<128x8xbf16>
    tpu.vector_store %arg20[%c0_20, %c0_21], %41 {strides = array<i32>} : memref<128x32xbf16, #tpu.memory_space<vmem>>, vector<128x8xbf16>,
    %43 = vector.extract_strided_slice %38 {offsets = [1, 0, 0], sizes = [1, 128, 8], strides = [1, 1, 1]} : vector<4x128x8xf32> to vector<1x128x8xf32>
    %44 = vector.shape_cast %43 : vector<1x128x8xf32> to vector<128x8xf32>
    %45 = arith.truncf %44 : vector<128x8xf32> to vector<128x8xbf16>
    %c0_22 = arith.constant 0 : index
    %c8 = arith.constant 8 : index
    %46 = vector.load %arg20[%c0_22, %c8] : memref<128x32xbf16, #tpu.memory_space<vmem>>, vector<128x8xbf16>
    tpu.vector_store %arg20[%c0_22, %c8], %45 {strides = array<i32>} : memref<128x32xbf16, #tpu.memory_space<vmem>>, vector<128x8xbf16>,
    %47 = vector.extract_strided_slice %38 {offsets = [2, 0, 0], sizes = [1, 128, 8], strides = [1, 1, 1]} : vector<4x128x8xf32> to vector<1x128x8xf32>
    %48 = vector.shape_cast %47 : vector<1x128x8xf32> to vector<128x8xf32>
    %49 = arith.truncf %48 : vector<128x8xf32> to vector<128x8xbf16>
    %c0_23 = arith.constant 0 : index
    %c16 = arith.constant 16 : index
    %50 = vector.load %arg20[%c0_23, %c16] : memref<128x32xbf16, #tpu.memory_space<vmem>>, vector<128x8xbf16>
    tpu.vector_store %arg20[%c0_23, %c16], %49 {strides = array<i32>} : memref<128x32xbf16, #tpu.memory_space<vmem>>, vector<128x8xbf16>,
    %51 = vector.extract_strided_slice %38 {offsets = [3, 0, 0], sizes = [1, 128, 8], strides = [1, 1, 1]} : vector<4x128x8xf32> to vector<1x128x8xf32>
    %52 = vector.shape_cast %51 : vector<1x128x8xf32> to vector<128x8xf32>
    %53 = arith.truncf %52 : vector<128x8xf32> to vector<128x8xbf16>
    %c0_24 = arith.constant 0 : index
    %c24 = arith.constant 24 : index
    %54 = vector.load %arg20[%c0_24, %c24] : memref<128x32xbf16, #tpu.memory_space<vmem>>, vector<128x8xbf16>
    tpu.vector_store %arg20[%c0_24, %c24], %53 {strides = array<i32>} : memref<128x32xbf16, #tpu.memory_space<vmem>>, vector<128x8xbf16>,
    %c0_25 = arith.constant 0 : index
    %c0_26 = arith.constant 0 : index
    %55 = vector.load %arg20[%c0_25, %c0_26] : memref<128x32xbf16, #tpu.memory_space<vmem>>, vector<128x32xbf16>
    %c0_27 = arith.constant 0 : index
    %c0_28 = arith.constant 0 : index
    %56 = vector.load %arg7[%c0_27, %c0_28] : memref<32x32xbf16, #tpu.memory_space<vmem>>, vector<32x32xbf16>
    %cst_29 = arith.constant dense<0.000000e+00> : vector<128x32xf32>
    %57 = tpu.matmul %55, %56, %cst_29 {dimension_numbers = #tpu.dot_dimension_numbers<[1], [0], [0], [1], [0, 0, 1, 1], [], []>} : vector<128x32xbf16>, vector<32x32xbf16>, vector<128x32xf32> -> vector<128x32xf32>
    %c0_30 = arith.constant 0 : index
    %c0_31 = arith.constant 0 : index
    %58 = vector.load %arg8[%c0_30, %c0_31] : memref<1x32xf32, #tpu.memory_space<vmem>>, vector<1x32xf32>
    %59 = vector.broadcast %58 : vector<1x32xf32> to vector<128x32xf32>
    %60 = arith.addf %57, %59 : vector<128x32xf32>
    %61 = arith.addf %7, %60 : vector<128x32xf32>
    %c0_32 = arith.constant 0 : index
    %c0_33 = arith.constant 0 : index
    %62 = vector.load %arg9[%c0_32, %c0_33] : memref<1x32xf32, #tpu.memory_space<vmem>>, vector<1x32xf32>
    %c0_34 = arith.constant 0 : index
    %c0_35 = arith.constant 0 : index
    %63 = vector.load %arg10[%c0_34, %c0_35] : memref<1x32xf32, #tpu.memory_space<vmem>>, vector<1x32xf32>
    %cst_36 = arith.constant dense<0.000000e+00> : vector<128xf32>
    %64 = vector.multi_reduction <add>, %61, %cst_36 [1] : vector<128x32xf32> to vector<128xf32>
    %65 = vector.shape_cast %64 : vector<128xf32> to vector<128x1xf32>
    %cst_37 = arith.constant 3.200000e+01 : f32
    %66 = vector.broadcast %cst_37 : f32 to vector<128x1xf32>
    %67 = arith.divf %65, %66 : vector<128x1xf32>
    %68 = vector.broadcast %67 : vector<128x1xf32> to vector<128x32xf32>
    %69 = arith.subf %61, %68 : vector<128x32xf32>
    %70 = arith.mulf %69, %69 : vector<128x32xf32>
    %cst_38 = arith.constant dense<0.000000e+00> : vector<128xf32>
    %71 = vector.multi_reduction <add>, %70, %cst_38 [1] : vector<128x32xf32> to vector<128xf32>
    %72 = vector.shape_cast %71 : vector<128xf32> to vector<128x1xf32>
    %cst_39 = arith.constant 3.200000e+01 : f32
    %73 = vector.broadcast %cst_39 : f32 to vector<128x1xf32>
    %74 = arith.divf %72, %73 : vector<128x1xf32>
    %75 = vector.broadcast %67 : vector<128x1xf32> to vector<128x32xf32>
    %76 = arith.subf %61, %75 : vector<128x32xf32>
    %cst_40 = arith.constant 9.99999974E-6 : f32
    %77 = vector.broadcast %cst_40 : f32 to vector<128x1xf32>
    %78 = arith.addf %74, %77 : vector<128x1xf32>
    %79 = math.rsqrt %78 : vector<128x1xf32>
    %80 = vector.broadcast %79 : vector<128x1xf32> to vector<128x32xf32>
    %81 = arith.mulf %76, %80 : vector<128x32xf32>
    %82 = vector.broadcast %62 : vector<1x32xf32> to vector<128x32xf32>
    %83 = arith.mulf %81, %82 : vector<128x32xf32>
    %84 = vector.broadcast %63 : vector<1x32xf32> to vector<128x32xf32>
    %85 = arith.addf %83, %84 : vector<128x32xf32>
    %86 = arith.truncf %85 : vector<128x32xf32> to vector<128x32xbf16>
    %c0_41 = arith.constant 0 : index
    %c0_42 = arith.constant 0 : index
    %87 = vector.load %arg12[%c0_41, %c0_42] : memref<1x128xf32, #tpu.memory_space<vmem>>, vector<1x128xf32>
    %cst_43 = arith.constant 0.000000e+00 : f32
    %88 = vector.broadcast %cst_43 : f32 to vector<128x32xf32>
    %c0_44 = arith.constant 0 : index
    %c0_45 = arith.constant 0 : index
    %89 = vector.load %arg11[%c0_44, %c0_45] : memref<32x128xbf16, #tpu.memory_space<vmem>>, vector<32x128xbf16>
    %cst_46 = arith.constant dense<0.000000e+00> : vector<128x128xf32>
    %90 = tpu.matmul %86, %89, %cst_46 {dimension_numbers = #tpu.dot_dimension_numbers<[1], [0], [0], [1], [0, 0, 1, 1], [], []>} : vector<128x32xbf16>, vector<32x128xbf16>, vector<128x128xf32> -> vector<128x128xf32>
    %91 = vector.broadcast %87 : vector<1x128xf32> to vector<128x128xf32>
    %92 = arith.addf %90, %91 : vector<128x128xf32>
    %cst_47 = arith.constant 1.702000e+00 : f32
    %93 = vector.broadcast %cst_47 : f32 to vector<128x128xf32>
    %94 = arith.mulf %93, %92 : vector<128x128xf32>
    %95 = arith.negf %94 : vector<128x128xf32>
    %96 = math.exp %95 : vector<128x128xf32>
    %cst_48 = arith.constant 1.000000e+00 : f32
    %97 = vector.broadcast %cst_48 : f32 to vector<128x128xf32>
    %98 = arith.addf %97, %96 : vector<128x128xf32>
    %99 = arith.divf %97, %98 : vector<128x128xf32>
    %100 = arith.mulf %92, %99 : vector<128x128xf32>
    %101 = arith.truncf %100 : vector<128x128xf32> to vector<128x128xbf16>
    %c0_49 = arith.constant 0 : index
    %c0_50 = arith.constant 0 : index
    %102 = vector.load %arg13[%c0_49, %c0_50] : memref<128x32xbf16, #tpu.memory_space<vmem>>, vector<128x32xbf16>
    %cst_51 = arith.constant dense<0.000000e+00> : vector<128x32xf32>
    %103 = tpu.matmul %101, %102, %cst_51 {dimension_numbers = #tpu.dot_dimension_numbers<[1], [0], [0], [1], [0, 0, 1, 1], [], []>} : vector<128x128xbf16>, vector<128x32xbf16>, vector<128x32xf32> -> vector<128x32xf32>
    %104 = arith.addf %88, %103 : vector<128x32xf32>
    %105 = arith.addf %61, %104 : vector<128x32xf32>
    %c0_52 = arith.constant 0 : index
    %c0_53 = arith.constant 0 : index
    %106 = vector.load %arg14[%c0_52, %c0_53] : memref<1x32xf32, #tpu.memory_space<vmem>>, vector<1x32xf32>
    %107 = vector.broadcast %106 : vector<1x32xf32> to vector<128x32xf32>
    %108 = arith.addf %105, %107 : vector<128x32xf32>
    %109 = tpu.iota {dimensions = array<i32: 0>} : vector<128x1xi32>
    %110 = vector.broadcast %4 : i32 to vector<128x1xi32>
    %111 = arith.addi %109, %110 : vector<128x1xi32>
    %c8_i32_54 = arith.constant 8 : i32
    %112 = vector.broadcast %c8_i32_54 : i32 to vector<128x1xi32>
    %113 = arith.cmpi slt, %111, %112 : vector<128x1xi32>
    %cst_55 = arith.constant 0.000000e+00 : f32
    %114 = vector.shape_cast %113 : vector<128x1xi1> to vector<128x1xi1>
    %115 = vector.broadcast %114 : vector<128x1xi1> to vector<128x32xi1>
    %116 = vector.broadcast %cst_55 : f32 to vector<128x32xf32>
    %117 = arith.select %115, %108, %116 : vector<128x32xi1>, vector<128x32xf32>
    %c0_56 = arith.constant 0 : index
    %c0_57 = arith.constant 0 : index
    %c0_58 = arith.constant 0 : index
    %118 = vector.load %arg15[%c0_56, %c0_57, %c0_58] : memref<1x128x32xf32, #tpu.memory_space<vmem>>, vector<1x128x32xf32>
    %119 = vector.shape_cast %118 : vector<1x128x32xf32> to vector<128x32xf32>
    %120 = vector.shape_cast %117 : vector<128x32xf32> to vector<1x128x32xf32>
    tpu.vector_store %arg15[%c0_56, %c0_57, %c0_58], %120 {strides = array<i32>} : memref<1x128x32xf32, #tpu.memory_space<vmem>>, vector<1x128x32xf32>,
    return
  }
  func.func @transform_0(%arg0: i32, %arg1: i32) -> (i32, i32, i32) {
    %c0_i32 = arith.constant 0 : i32
    %c0_i32_0 = arith.constant 0 : i32
    %c0_i32_1 = arith.constant 0 : i32
    return %arg0, %c0_i32, %c0_i32_0 : i32, i32, i32
  }
  func.func @transform_1(%arg0: i32, %arg1: i32) -> (i32, i32) {
    %c0_i32 = arith.constant 0 : i32
    %c0_i32_0 = arith.constant 0 : i32
    %c0_i32_1 = arith.constant 0 : i32
    return %c0_i32, %c0_i32_0 : i32, i32
  }
  func.func @transform_2(%arg0: i32, %arg1: i32) -> (i32, i32) {
    %c0_i32 = arith.constant 0 : i32
    %c0_i32_0 = arith.constant 0 : i32
    %c0_i32_1 = arith.constant 0 : i32
    return %c0_i32, %c0_i32_0 : i32, i32
  }
  func.func @transform_3(%arg0: i32, %arg1: i32) -> (i32, i32) {
    %c0_i32 = arith.constant 0 : i32
    %c0_i32_0 = arith.constant 0 : i32
    %c0_i32_1 = arith.constant 0 : i32
    return %c0_i32, %c0_i32_0 : i32, i32
  }
  func.func @transform_4(%arg0: i32, %arg1: i32) -> (i32, i32) {
    %c0_i32 = arith.constant 0 : i32
    %c0_i32_0 = arith.constant 0 : i32
    %c0_i32_1 = arith.constant 0 : i32
    return %c0_i32, %c0_i32_0 : i32, i32
  }
  func.func @transform_5(%arg0: i32, %arg1: i32) -> (i32, i32) {
    %c0_i32 = arith.constant 0 : i32
    %c0_i32_0 = arith.constant 0 : i32
    %c0_i32_1 = arith.constant 0 : i32
    return %c0_i32, %c0_i32_0 : i32, i32
  }
  func.func @transform_6(%arg0: i32, %arg1: i32) -> (i32, i32) {
    %c0_i32 = arith.constant 0 : i32
    %c0_i32_0 = arith.constant 0 : i32
    %c0_i32_1 = arith.constant 0 : i32
    return %c0_i32, %c0_i32_0 : i32, i32
  }
  func.func @transform_7(%arg0: i32, %arg1: i32) -> (i32, i32) {
    %c0_i32 = arith.constant 0 : i32
    %c0_i32_0 = arith.constant 0 : i32
    %c0_i32_1 = arith.constant 0 : i32
    return %c0_i32, %c0_i32_0 : i32, i32
  }
  func.func @transform_8(%arg0: i32, %arg1: i32) -> (i32, i32) {
    %c0_i32 = arith.constant 0 : i32
    %c0_i32_0 = arith.constant 0 : i32
    %c0_i32_1 = arith.constant 0 : i32
    return %c0_i32, %c0_i32_0 : i32, i32
  }
  func.func @transform_9(%arg0: i32, %arg1: i32) -> (i32, i32) {
    %c0_i32 = arith.constant 0 : i32
    %c0_i32_0 = arith.constant 0 : i32
    %c0_i32_1 = arith.constant 0 : i32
    return %c0_i32, %c0_i32_0 : i32, i32
  }
  func.func @transform_10(%arg0: i32, %arg1: i32) -> (i32, i32) {
    %c0_i32 = arith.constant 0 : i32
    %c0_i32_0 = arith.constant 0 : i32
    %c0_i32_1 = arith.constant 0 : i32
    return %c0_i32, %c0_i32_0 : i32, i32
  }
  func.func @transform_11(%arg0: i32, %arg1: i32) -> (i32, i32) {
    %c0_i32 = arith.constant 0 : i32
    %c0_i32_0 = arith.constant 0 : i32
    %c0_i32_1 = arith.constant 0 : i32
    return %c0_i32, %c0_i32_0 : i32, i32
  }
  func.func @transform_12(%arg0: i32, %arg1: i32) -> (i32, i32) {
    %c0_i32 = arith.constant 0 : i32
    %c0_i32_0 = arith.constant 0 : i32
    %c0_i32_1 = arith.constant 0 : i32
    return %c0_i32, %c0_i32_0 : i32, i32
  }
  func.func @transform_13(%arg0: i32, %arg1: i32) -> (i32, i32, i32) {
    %c0_i32 = arith.constant 0 : i32
    %c0_i32_0 = arith.constant 0 : i32
    return %arg0, %arg1, %c0_i32 : i32, i32, i32
  }
  func.func @transform_14(%arg0: i32, %arg1: i32) -> (i32, i32, i32) {
    %c0_i32 = arith.constant 0 : i32
    %c0_i32_0 = arith.constant 0 : i32
    return %arg0, %arg1, %c0_i32 : i32, i32, i32
  }
}

</mosaic_0001>

<bundles_post_ra>
// kernel: tpu_custom_call.1
= control target key start
LH: loop header
LB: loop body
LE: loop exit
PB: predicated region body
PF: predicated region fallthrough
CT: control target
= control target key end

     0   :  { %s7685_s0 = inlined_call_operand.vmem [shape: f32[2,128,32], index: 0, kind: input, shape index: {}]   ;;  %s7686_s1 = inlined_call_operand.vmem [shape: f32[1,32], index: 1, kind: input, shape index: {}]   ;;  %s7687_s2 = inlined_call_operand.vmem [shape: f32[1,32], index: 2, kind: input, shape index: {}]   ;;  %s7688_s3 = inlined_call_operand.vmem [shape: bf16[32,96], index: 3, kind: input, shape index: {}]   ;;  %s7689_s4 = inlined_call_operand.vmem [shape: f32[1,96], index: 4, kind: input, shape index: {}]   ;;  %s7690_s5 = inlined_call_operand.vmem [shape: bf16[32,32], index: 5, kind: input, shape index: {}]   ;;  %s7691_s6 = inlined_call_operand.vmem [shape: f32[1,32], index: 6, kind: input, shape index: {}]   ;;  %s7692_s7 = inlined_call_operand.vmem [shape: f32[1,32], index: 7, kind: input, shape index: {}]   ;;  %s7693_s8 = inlined_call_operand.vmem [shape: f32[1,32], index: 8, kind: input, shape index: {}]   ;;  %s7694_s9 = inlined_call_operand.vmem [shape: bf16[32,128], index: 9, kind: input, shape index: {}]   ;;  %s7695_s10 = inlined_call_operand.vmem [shape: f32[1,128], index: 10, kind: input, shape index: {}]   ;;  %s7696_s11 = inlined_call_operand.vmem [shape: bf16[128,32], index: 11, kind: input, shape index: {}]   ;;  %s7697_s12 = inlined_call_operand.vmem [shape: f32[1,32], index: 12, kind: input, shape index: {}]   ;;  %s7698_s13 = inlined_call_operand.vmem [shape: f32[2,128,32], index: 13, kind: output, shape index: {0}]   ;;  %s7699_s14 = inlined_call_operand.hbm [shape: f32[2,128,128], index: 14, kind: output, shape index: {1}]  }
   0x1   :  { %7743 = sst [smem:[#allocation35_spill]] %s7685_s0 }
   0x2   :  { %7744 = sst [smem:[#allocation36_spill]] %s7686_s1 }
   0x3   :  { %7745 = sst [smem:[#allocation37_spill]] %s7687_s2 }
   0x4   :  { %7746 = sst [smem:[#allocation38_spill]] %s7688_s3 }
   0x5   :  { %7747 = sst [smem:[#allocation39_spill]] %s7689_s4 }
   0x6   :  { %7748 = sst [smem:[#allocation40_spill]] %s7690_s5 }
   0x7   :  { %20 = vsyncpa [#allocation7], 0 }
   0x8   :  { %22 = vsyncpa [#allocation7 + $0x1], 0  ;;  %s5665_s29 = smov 0   ;;  %s5667_s30 = smov 0  }
   0x9   :  { %s5669_s15 = smov 0   ;;  %s5671_s16 = smov 0  }
   0xa   :  { %s5673_s17 = smov 0   ;;  %s5675_s18 = smov 0  }
   0xb LB: > { %s4423_s19 = sadd.s32 4294967295, %s5574_s18   ;;  %s4424_s20 = sadd.s32 4294967294, %s5574_s18   ;;  %s5574_s18 = sphi %s5675_s18, %s28_s18   ;;  %s5570_s17 = sphi %s5673_s17, %s7837_s17   ;;  %s5566_s16 = sphi %s5671_s16, %s7836_s16   ;;  %s5562_s15 = sphi %s5669_s15, %s7835_s15   ;;  %s5558_s30 = sphi %s5667_s30, %s7834_s30   ;;  %s5554_s29 = sphi %s5665_s29, %s7833_s29  }
   0xc   : > { %s40_s21 = sadd.s32 1, %s5570_s17  ;;  %s355_s22 = sadd.s32 1, %s5562_s15 }
   0xd   : > { %p42_p0 = scmp.ge.s32.totalorder %s40_s21, 2  ;;  %p365_p1 = scmp.ne.s32.totalorder %s5562_s15, %s5558_s30 }
   0xe   : > { %p366_p2 = scmp.eq.s32.totalorder %s4423_s19, 1  ;;  %p371_p3 = scmp.ne.s32.totalorder %s5558_s30, %s5554_s29 }
   0xf   : > { %s7839_s21 = smov (%p42_p0, %s40_s21), 0  ;;  %p372_p5 = scmp.eq.s32.totalorder %s4424_s20, 1 }
  0x10   : > { %p5705_p4 = por %p366_p2, %p365_p1  ;;  %s350_s24 = ssub.s32 %s5570_s17, %s7839_s21 }
  0x11   : > { %p4427_p6 = scmp.ge.s32.totalorder %s5574_s18, 1  ;;  %p353_p7 = scmp.eq.s32.totalorder %s350_s24, 0 }
  0x12   : > { %p5712_p8 = por %p372_p5, %p371_p3  ;;  %p434_p9 = scmp.lt.s32.totalorder %s5574_s18, 3 }
  0x13   : > { %s5718_s26 = scalar_select %p353_p7, %s5562_s15, %s355_s22  }
  0x14   : > { %p435_p10 = pnand %p4427_p6, %p434_p9 }
  0x16   : > { %438 = sbr.rel (%p435_p10) target bundleno = 2931 (0xb73), region = 72 }
  0x1d   : > { %p489_p11 = scmp.lt.s32.totalorder %s5566_s16, 1  ;;  %vm528_vm0 = vcmask 261120   ;;  %s7751_s0 = sld [smem:[#allocation35_spill]]  ;;  %vm1046_vm1 = vcmask 64512   ;;  %vm1376_vm2 = vcmask 1043456   ;;  %vm3147_vm4 = vcmask 130112  }
  0x1e   : > { %s7752_s3 = sld [smem:[#allocation38_spill]]  ;;  %s7753_s1 = sld [smem:[#allocation36_spill]]  ;;  %vm3196_vm5 = vcmask 195712   ;;  %vm3245_vm6 = vcmask 261312  }
  0x1f   : > { %s5722_s27 = scalar_select %p489_p11, %s5566_s16, 1 }
  0x20   : > { %s7754_s2 = sld [smem:[#allocation37_spill]]  ;;  %s7755_s4 = sld [smem:[#allocation39_spill]] }
  0x21   : > { %s7700_s28 = sshll.u32 %s5722_s27, 7  ;;  %s5576_s19 = smov 96  }
  0x22   : > { %s5577_s20 = smov 120   ;;  %s5579_s22 = smov 104  }
  0x23   : > { %s5730_s24 = scalar_lea.vmem %s7751_s0, %s7700_s28  ;;  %s5578_s28 = smov 112  }
  0x24   : > { %v510_v0 = vld [vmem:[%s5730_s24] sm:$0xff]  ;;  %v512_v1 = vld [vmem:[%s5730_s24 + $0x10] sm:$0xff]  ;;  %v511_v2 = vld [vmem:[%s5730_s24 + $0x8] sm:$0xff]  ;;  %s7828_s5 = sld [smem:[#allocation40_spill]]  ;;  %s7829_s0 = smov 16  }
  0x25   : > { %v529_v3 = vsel %vm528_vm0, %v510_v0, 0.0  ;;  %v535_v4 = vsel %vm528_vm0, %v512_v1, 0.0  ;;  %v513_v5 = vld [vmem:[%s5730_s24 + $0x18] sm:$0xff]  ;;  %v5739_v6 = vld [vmem:[%s5730_s24 + $0x20] sm:$0xff]  ;;  %v532_v7 = vsel %vm528_vm0, %v511_v2, 0.0  ;;  %v515_v9 = vld [vmem:[%s5730_s24 + $0x28] sm:$0xff] }
  0x26   : > { %530 = vadd.xlane.f32.xlu0 %v529_v3  ;;  %536 = vadd.xlane.f32.xlu1 %v535_v4  ;;  %v538_v8 = vsel %vm528_vm0, %v513_v5, 0.0  ;;  %v541_v10 = vsel %vm528_vm0, %v5739_v6, 0.0  ;;  %v544_v11 = vsel %vm528_vm0, %v515_v9, 0.0  ;;  %v5748_v12 = vld [vmem:[%s5730_s24 + $0x30] sm:$0xff]  ;;  %v5751_v13 = vld [vmem:[%s5730_s24 + $0x38] sm:$0xff]  ;;  %v5758_v16 = vld [vmem:[%s5730_s24 + $0x40] sm:$0xff] }
  0x27   : > { %v547_v14 = vsel %vm528_vm0, %v5748_v12, 0.0  ;;  %v550_v15 = vsel %vm528_vm0, %v5751_v13, 0.0  ;;  %v5761_v17 = vld [vmem:[%s5730_s24 + $0x48] sm:$0xff]  ;;  %v553_v18 = vsel %vm528_vm0, %v5758_v16, 0.0  ;;  %v5768_v20 = vld [vmem:[%s5730_s24 + $0x50] sm:$0xff]  ;;  %v5771_v21 = vld [vmem:[%s5730_s24 + $0x58] sm:$0xff] }
  0x28   : > { %v556_v19 = vsel %vm528_vm0, %v5761_v17, 0.0  ;;  %v559_v22 = vsel %vm528_vm0, %v5768_v20, 0.0  ;;  %v562_v23 = vsel %vm528_vm0, %v5771_v21, 0.0  ;;  %v5778_v24 = vld [vmem:[%s5730_s24 + $0x60] sm:$0xff]  ;;  %v5781_v25 = vld [vmem:[%s5730_s24 + $0x68] sm:$0xff]  ;;  %v5788_v28 = vld [vmem:[%s5730_s24 + $0x70] sm:$0xff] }
  0x29   : > { %v565_v26 = vsel %vm528_vm0, %v5778_v24, 0.0  ;;  %v568_v27 = vsel %vm528_vm0, %v5781_v25, 0.0  ;;  %v5791_v29 = vld [vmem:[%s5730_s24 + $0x78] sm:$0xff]  ;;  %v571_v30 = vsel %vm528_vm0, %v5788_v28, 0.0 }
  0x2a   : > { %533 = vadd.xlane.f32.xlu0 %v532_v7  ;;  %539 = vadd.xlane.f32.xlu1 %v538_v8  ;;  %v574_v31 = vsel %vm528_vm0, %v5791_v29, 0.0 }
  0x2e   : > { %542 = vadd.xlane.f32.xlu0 %v541_v10  ;;  %545 = vadd.xlane.f32.xlu1 %v544_v11 }
  0x32   : > { %548 = vadd.xlane.f32.xlu0 %v547_v14  ;;  %551 = vadd.xlane.f32.xlu1 %v550_v15 }
  0x36   : > { %554 = vadd.xlane.f32.xlu0 %v553_v18  ;;  %557 = vadd.xlane.f32.xlu1 %v556_v19 }
  0x3a   : > { %560 = vadd.xlane.f32.xlu0 %v559_v22  ;;  %563 = vadd.xlane.f32.xlu1 %v562_v23 }
  0x3e   : > { %566 = vadd.xlane.f32.xlu0 %v565_v26  ;;  %569 = vadd.xlane.f32.xlu1 %v568_v27 }
  0x42   : > { %572 = vadd.xlane.f32.xlu0 %v571_v30  ;;  %575 = vadd.xlane.f32.xlu1 %v574_v31 }
  0xb3   : > { %v531_v32 = vpop.xlane.xlu0 %530  ;;  %v537_v33 = vpop.xlane.xlu1 %536 }
  0xb4   : > { %v578_v34 = vmul.f32 0.03125, %v531_v32  ;;  %v580_v35 = vmul.f32 0.03125, %v537_v33 }
  0xb6   : > { %v5797_v36 = vsub.f32 %v510_v0, %v578_v34  ;;  %v5799_v37 = vsub.f32 %v512_v1, %v580_v35 }
  0xb7   : > { %v534_v38 = vpop.xlane.xlu0 %533  ;;  %v540_v39 = vpop.xlane.xlu1 %539 }
  0xb8   : > { %v579_v40 = vmul.f32 0.03125, %v534_v38  ;;  %v581_v41 = vmul.f32 0.03125, %v540_v39  ;;  %v610_v42 = vmul.f32 %v5797_v36, %v5797_v36  ;;  %v612_v43 = vmul.f32 %v5799_v37, %v5799_v37 }
  0xba   : > { %v5805_v44 = vsub.f32 %v511_v2, %v579_v40  ;;  %v5807_v45 = vsub.f32 %v513_v5, %v581_v41  ;;  %v626_v46 = vsel %vm528_vm0, %v610_v42, 0.0  ;;  %v632_v49 = vsel %vm528_vm0, %v612_v43, 0.0 }
  0xbb   : > { %627 = vadd.xlane.f32.xlu0 %v626_v46  ;;  %v543_v47 = vpop.xlane.xlu0 %542  ;;  %v546_v48 = vpop.xlane.xlu1 %545 }
  0xbc   : > { %v582_v50 = vmul.f32 0.03125, %v543_v47  ;;  %v583_v51 = vmul.f32 0.03125, %v546_v48  ;;  %v611_v52 = vmul.f32 %v5805_v44, %v5805_v44  ;;  %v613_v53 = vmul.f32 %v5807_v45, %v5807_v45 }
  0xbe   : > { %v5816_v54 = vsub.f32 %v5739_v6, %v582_v50  ;;  %v5818_v55 = vsub.f32 %v515_v9, %v583_v51  ;;  %v629_v56 = vsel %vm528_vm0, %v611_v52, 0.0  ;;  %v635_v59 = vsel %vm528_vm0, %v613_v53, 0.0  ;;  %v5097_v53 = vld [vmem:[%s7752_s3 + $0x8] sm:$0xff]  }
  0xbf   : > { %633 = vadd.xlane.f32.xlu0 %v632_v49  ;;  %630 = vadd.xlane.f32.xlu1 %v629_v56  ;;  %v549_v57 = vpop.xlane.xlu0 %548  ;;  %v552_v58 = vpop.xlane.xlu1 %551 }
  0xc0   : > { %v584_v60 = vmul.f32 0.03125, %v549_v57  ;;  %v585_v61 = vmul.f32 0.03125, %v552_v58  ;;  %v614_v62 = vmul.f32 %v5816_v54, %v5816_v54  ;;  %v615_v63 = vmul.f32 %v5818_v55, %v5818_v55 }
  0xc2   : > { %v5827_v0 = vsub.f32 %v5748_v12, %v584_v60  ;;  %v5830_v1 = vsub.f32 %v5751_v13, %v585_v61  ;;  %v638_v2 = vsel %vm528_vm0, %v614_v62, 0.0  ;;  %v641_v5 = vsel %vm528_vm0, %v615_v63, 0.0 }
  0xc3   : > { %636 = vadd.xlane.f32.xlu1 %v635_v59  ;;  %639 = vadd.xlane.f32.xlu0 %v638_v2  ;;  %v555_v3 = vpop.xlane.xlu0 %554  ;;  %v558_v4 = vpop.xlane.xlu1 %557 }
  0xc4   : > { %v586_v6 = vmul.f32 0.03125, %v555_v3  ;;  %v587_v7 = vmul.f32 0.03125, %v558_v4  ;;  %v616_v8 = vmul.f32 %v5827_v0, %v5827_v0  ;;  %v617_v9 = vmul.f32 %v5830_v1, %v5830_v1 }
  0xc6   : > { %v5839_v10 = vsub.f32 %v5758_v16, %v586_v6  ;;  %v5842_v11 = vsub.f32 %v5761_v17, %v587_v7  ;;  %v644_v12 = vsel %vm528_vm0, %v616_v8, 0.0  ;;  %v647_v15 = vsel %vm528_vm0, %v617_v9, 0.0 }
  0xc7   : > { %642 = vadd.xlane.f32.xlu1 %v641_v5  ;;  %645 = vadd.xlane.f32.xlu0 %v644_v12  ;;  %v561_v13 = vpop.xlane.xlu0 %560  ;;  %v564_v14 = vpop.xlane.xlu1 %563 }
  0xc8   : > { %v588_v18 = vmul.f32 0.03125, %v561_v13  ;;  %v589_v19 = vmul.f32 0.03125, %v564_v14  ;;  %v618_v22 = vmul.f32 %v5839_v10, %v5839_v10  ;;  %v619_v16 = vmul.f32 %v5842_v11, %v5842_v11 }
  0xca   : > { %v5851_v23 = vsub.f32 %v5768_v20, %v588_v18  ;;  %v5854_v17 = vsub.f32 %v5771_v21, %v589_v19  ;;  %v650_v26 = vsel %vm528_vm0, %v618_v22, 0.0  ;;  %v653_v31 = vsel %vm528_vm0, %v619_v16, 0.0 }
  0xcb   : > { %648 = vadd.xlane.f32.xlu1 %v647_v15  ;;  %651 = vadd.xlane.f32.xlu0 %v650_v26  ;;  %v567_v27 = vpop.xlane.xlu0 %566  ;;  %v570_v30 = vpop.xlane.xlu1 %569 }
  0xcc   : > { %v590_v32 = vmul.f32 0.03125, %v567_v27  ;;  %v591_v33 = vmul.f32 0.03125, %v570_v30  ;;  %v620_v34 = vmul.f32 %v5851_v23, %v5851_v23  ;;  %v621_v20 = vmul.f32 %v5854_v17, %v5854_v17 }
  0xce   : > { %v5863_v35 = vsub.f32 %v5778_v24, %v590_v32  ;;  %v5866_v21 = vsub.f32 %v5781_v25, %v591_v33  ;;  %v656_v38 = vsel %vm528_vm0, %v620_v34, 0.0  ;;  %v659_v41 = vsel %vm528_vm0, %v621_v20, 0.0 }
  0xcf   : > { %654 = vadd.xlane.f32.xlu1 %v653_v31  ;;  %657 = vadd.xlane.f32.xlu0 %v656_v38  ;;  %v573_v39 = vpop.xlane.xlu0 %572  ;;  %v576_v40 = vpop.xlane.xlu1 %575  ;;  %v5898_v31 = vld [vmem:[%s7753_s1] ss:$0 sm:$0xff]  ;;  %s7830_s1 = smov 8  }
  0xd0   : > { %v592_v42 = vmul.f32 0.03125, %v573_v39  ;;  %v593_v43 = vmul.f32 0.03125, %v576_v40  ;;  %v622_v46 = vmul.f32 %v5863_v35, %v5863_v35  ;;  %v623_v24 = vmul.f32 %v5866_v21, %v5866_v21 }
  0xd2   : > { %v5875_v47 = vsub.f32 %v5788_v28, %v592_v42  ;;  %v5878_v25 = vsub.f32 %v5791_v29, %v593_v43  ;;  %v662_v48 = vsel %vm528_vm0, %v622_v46, 0.0  ;;  %v665_v49 = vsel %vm528_vm0, %v623_v24, 0.0  ;;  %v5096_v29 = vld [vmem:[%s7752_s3] sm:$0xff]  }
  0xd3   : > { %660 = vadd.xlane.f32.xlu1 %v659_v41  ;;  %663 = vadd.xlane.f32.xlu0 %v662_v48  ;;  %v5905_v43 = vld [vmem:[%s7754_s2] ss:$0 sm:$0xff] }
  0xd4   : > { %v624_v50 = vmul.f32 %v5875_v47, %v5875_v47  ;;  %v625_v51 = vmul.f32 %v5878_v25, %v5878_v25  ;;  %4692 = vmatprep.subr.bf16.mxu0 %v5096_v29 }
  0xd5   : > { %4693 = vmatpush3.bf16.msra.mxu0 %v5096_v29 }
  0xd6   : > { %v668_v52 = vsel %vm528_vm0, %v624_v50, 0.0  ;;  %v671_v28 = vsel %vm528_vm0, %v625_v51, 0.0  ;;  %4694 = vmatprep.subr.bf16.mxu0 %v5097_v53 }
  0xd7   : > { %666 = vadd.xlane.f32.xlu1 %v665_v49  ;;  %669 = vadd.xlane.f32.xlu0 %v668_v52 }
  0xd9   : > { %4695 = vmatpush3.bf16.msra.mxu0 %v5097_v53 }
  0xdb   : > { %672 = vadd.xlane.f32.xlu1 %v671_v28 }
 0x148   : > { %v628_v56 = vpop.xlane.xlu0 %627 }
 0x149   : > { %v674_v57 = vmul.f32 0.03125, %v628_v56 }
 0x14b   : > { %v690_v58 = vadd.f32 1e-05, %v674_v57 }
 0x14c   : > { %v631_v59 = vpop.xlane.xlu1 %630  ;;  %v634_v60 = vpop.xlane.xlu0 %633 }
 0x14d   : > { %5110 = vrsqrt.f32 %v690_v58  ;;  %v675_v61 = vmul.f32 0.03125, %v631_v59  ;;  %v676_v62 = vmul.f32 0.03125, %v634_v60 }
 0x14f   : > { %v691_v63 = vadd.f32 1e-05, %v675_v61  ;;  %v692_v2 = vadd.f32 1e-05, %v676_v62 }
 0x150   : > { %v637_v3 = vpop.xlane.xlu1 %636  ;;  %v640_v4 = vpop.xlane.xlu0 %639 }
 0x151   : > { %5112 = vrsqrt.f32 %v691_v63  ;;  %v677_v5 = vmul.f32 0.03125, %v637_v3  ;;  %v678_v6 = vmul.f32 0.03125, %v640_v4 }
 0x152   : > { %5114 = vrsqrt.f32 %v692_v2 }
 0x153   : > { %v693_v7 = vadd.f32 1e-05, %v677_v5  ;;  %v694_v8 = vadd.f32 1e-05, %v678_v6 }
 0x154   : > { %v643_v9 = vpop.xlane.xlu1 %642  ;;  %v646_v12 = vpop.xlane.xlu0 %645 }
 0x155   : > { %5116 = vrsqrt.f32 %v693_v7  ;;  %v679_v13 = vmul.f32 0.03125, %v643_v9  ;;  %v680_v14 = vmul.f32 0.03125, %v646_v12 }
 0x156   : > { %5118 = vrsqrt.f32 %v694_v8 }
 0x157   : > { %v5111_v15 = vpop.eup %5110  ;;  %v695_v18 = vadd.f32 1e-05, %v679_v13  ;;  %v696_v19 = vadd.f32 1e-05, %v680_v14 }
 0x158   : > { %v649_v22 = vpop.xlane.xlu1 %648  ;;  %v652_v16 = vpop.xlane.xlu0 %651  ;;  %v722_v26 = vmul.f32 %v5111_v15, %v5797_v36 }
 0x159   : > { %5120 = vrsqrt.f32 %v695_v18  ;;  %v681_v27 = vmul.f32 0.03125, %v649_v22  ;;  %v682_v30 = vmul.f32 0.03125, %v652_v16 }
 0x15a   : > { %5122 = vrsqrt.f32 %v696_v19  ;;  %v744_v41 = vmul.f32 %v5898_v31, %v722_v26 }
 0x15b   : > { %v5113_v32 = vpop.eup %5112  ;;  %v697_v33 = vadd.f32 1e-05, %v681_v27  ;;  %v698_v34 = vadd.f32 1e-05, %v682_v30 }
 0x15c   : > { %v5115_v20 = vpop.eup %5114  ;;  %v655_v38 = vpop.xlane.xlu1 %654  ;;  %v723_v40 = vmul.f32 %v5113_v32, %v5805_v44  ;;  %v766_v28 = vadd.f32 %v5905_v43, %v744_v41 }
 0x15d   : > { %v658_v39 = vpop.xlane.xlu0 %657  ;;  %5124 = vrsqrt.f32 %v697_v33  ;;  %v683_v36 = vmul.f32 0.03125, %v655_v38  ;;  %v724_v46 = vmul.f32 %v5115_v20, %v5799_v37 }
 0x15e   : > { %v684_v42 = vmul.f32 0.03125, %v658_v39  ;;  %5126 = vrsqrt.f32 %v698_v34  ;;  %v745_v24 = vmul.f32 %v5898_v31, %v723_v40 }
 0x15f   : > { %v5117_v48 = vpop.eup %5116  ;;  %v699_v49 = vadd.f32 1e-05, %v683_v36  ;;  %v746_v56 = vmul.f32 %v5898_v31, %v724_v46 }
 0x160   : > { %v700_v50 = vadd.f32 1e-05, %v684_v42  ;;  %v5119_v51 = vpop.eup %5118  ;;  %v661_v44 = vpop.xlane.xlu1 %660  ;;  %v767_v29 = vadd.f32 %v5905_v43, %v745_v24  ;;  %v725_v53 = vmul.f32 %v5117_v48, %v5807_v45 }
 0x161   : > { %v664_v52 = vpop.xlane.xlu0 %663  ;;  %5128 = vrsqrt.f32 %v699_v49  ;;  %v685_v57 = vmul.f32 0.03125, %v661_v44  ;;  %v726_v60 = vmul.f32 %v5119_v51, %v5816_v54  ;;  %v768_v45 = vadd.f32 %v5905_v43, %v746_v56 }
 0x162   : > { %v686_v37 = vmul.f32 0.03125, %v664_v52  ;;  %5130 = vrsqrt.f32 %v700_v50  ;;  %v782_v58 = vpack.c.bf16 %v767_v29, %v766_v28  ;;  %v747_v59 = vmul.f32 %v5898_v31, %v725_v53 }
 0x163   : > { %v5121_v61 = vpop.eup %5120  ;;  %v701_v62 = vadd.f32 1e-05, %v685_v57  ;;  %v748_v7 = vmul.f32 %v5898_v31, %v726_v60 }
 0x164   : > { %v702_v63 = vadd.f32 1e-05, %v686_v37  ;;  %v5123_v2 = vpop.eup %5122  ;;  %v667_v3 = vpop.xlane.xlu1 %666  ;;  %4696 = vmatprep.mubr.msk.bf16.mxu0 %vm528_vm0, %v782_v58  ;;  %v769_v5 = vadd.f32 %v5905_v43, %v747_v59  ;;  %v727_v6 = vmul.f32 %v5121_v61, %v5818_v55 }
 0x165   : > { %v670_v4 = vpop.xlane.xlu0 %669  ;;  %5132 = vrsqrt.f32 %v701_v62  ;;  %v687_v8 = vmul.f32 0.03125, %v667_v3  ;;  %v728_v54 = vmul.f32 %v5123_v2, %v5827_v0  ;;  %v770_v55 = vadd.f32 %v5905_v43, %v748_v7 }
 0x166   : > { %v688_v9 = vmul.f32 0.03125, %v670_v4  ;;  %5134 = vrsqrt.f32 %v702_v63  ;;  %v783_v12 = vpack.c.bf16 %v769_v5, %v768_v45  ;;  %v749_v13 = vmul.f32 %v5898_v31, %v727_v6  ;;  %v4435_v45 = vld [vmem:[%s7755_s4] ss:$0 sm:$0xff] }
 0x167   : > { %v5125_v14 = vpop.eup %5124  ;;  %v703_v15 = vadd.f32 1e-05, %v687_v8  ;;  %v750_v27 = vmul.f32 %v5898_v31, %v728_v54 }
 0x168   : > { %v704_v18 = vadd.f32 1e-05, %v688_v9  ;;  %v5127_v19 = vpop.eup %5126  ;;  %v673_v22 = vpop.xlane.xlu1 %672  ;;  %4697 = vmatmul.mubr.msk.bf16.vlgmr.msra.gmra.mrb[0].mxu0 %vm528_vm0, %v783_v12  ;;  %v771_v16 = vadd.f32 %v5905_v43, %v749_v13  ;;  %v729_v26 = vmul.f32 %v5125_v14, %v5830_v1 }
 0x169   : > { %5136 = vrsqrt.f32 %v703_v15  ;;  %v689_v0 = vmul.f32 0.03125, %v673_v22  ;;  %v730_v30 = vmul.f32 %v5127_v19, %v5839_v10  ;;  %v772_v39 = vadd.f32 %v5905_v43, %v750_v27 }
 0x16a   : > { %5138 = vrsqrt.f32 %v704_v18  ;;  %v784_v32 = vpack.c.bf16 %v771_v16, %v770_v55  ;;  %v751_v33 = vmul.f32 %v5898_v31, %v729_v26 }
 0x16b   : > { %v5129_v34 = vpop.eup %5128  ;;  %v705_v20 = vadd.f32 1e-05, %v689_v0  ;;  %v752_v41 = vmul.f32 %v5898_v31, %v730_v30 }
 0x16c   : > { %v5131_v38 = vpop.eup %5130  ;;  %4700 = vmatprep.mubr.msk.bf16.mxu0 %vm528_vm0, %v784_v32  ;;  %v773_v40 = vadd.f32 %v5905_v43, %v751_v33  ;;  %v731_v1 = vmul.f32 %v5129_v34, %v5842_v11 }
 0x16d   : > { %5140 = vrsqrt.f32 %v705_v20  ;;  %v732_v10 = vmul.f32 %v5131_v38, %v5851_v23  ;;  %v774_v48 = vadd.f32 %v5905_v43, %v752_v41 }
 0x16e   : > { %v785_v36 = vpack.c.bf16 %v773_v40, %v772_v39  ;;  %v753_v42 = vmul.f32 %v5898_v31, %v731_v1 }
 0x16f   : > { %v5133_v46 = vpop.eup %5132  ;;  %v754_v11 = vmul.f32 %v5898_v31, %v732_v10 }
 0x170   : > { %v5135_v24 = vpop.eup %5134  ;;  %4701 = vmatmul.mubr.msk.bf16.gmra.mrb[4].mxu0 %vm528_vm0, %v785_v36  ;;  %v775_v49 = vadd.f32 %v5905_v43, %v753_v42  ;;  %v733_v50 = vmul.f32 %v5133_v46, %v5854_v17 }
 0x171   : > { %v734_v51 = vmul.f32 %v5135_v24, %v5863_v35  ;;  %v776_v29 = vadd.f32 %v5905_v43, %v754_v11 }
 0x172   : > { %v786_v44 = vpack.c.bf16 %v775_v49, %v774_v48  ;;  %v755_v23 = vmul.f32 %v5898_v31, %v733_v50 }
 0x173   : > { %v5137_v52 = vpop.eup %5136  ;;  %v756_v57 = vmul.f32 %v5898_v31, %v734_v51 }
 0x174   : > { %v5139_v28 = vpop.eup %5138  ;;  %4704 = vmatprep.mubr.msk.bf16.mxu0 %vm528_vm0, %v786_v44  ;;  %v777_v53 = vadd.f32 %v5905_v43, %v755_v23  ;;  %v735_v56 = vmul.f32 %v5137_v52, %v5866_v21 }
 0x175   : > { %v736_v17 = vmul.f32 %v5139_v28, %v5875_v47  ;;  %v778_v59 = vadd.f32 %v5905_v43, %v756_v57 }
 0x176   : > { %v787_v37 = vpack.c.bf16 %v777_v53, %v776_v29  ;;  %v757_v35 = vmul.f32 %v5898_v31, %v735_v56 }
 0x177   : > { %v5141_v58 = vpop.eup %5140  ;;  %v758_v62 = vmul.f32 %v5898_v31, %v736_v17 }
 0x178   : > { %4705 = vmatmul.mubr.msk.bf16.gmra.mrb[8].mxu0 %vm528_vm0, %v787_v37  ;;  %v779_v60 = vadd.f32 %v5905_v43, %v757_v35  ;;  %v737_v61 = vmul.f32 %v5141_v58, %v5878_v25 }
 0x179   : > { %v780_v47 = vadd.f32 %v5905_v43, %v758_v62 }
 0x17a   : > { %v788_v63 = vpack.c.bf16 %v779_v60, %v778_v59  ;;  %v759_v21 = vmul.f32 %v5898_v31, %v737_v61 }
 0x17c   : > { %4708 = vmatprep.mubr.msk.bf16.mxu0 %vm528_vm0, %v788_v63  ;;  %v781_v2 = vadd.f32 %v5905_v43, %v759_v21 }
 0x17e   : > { %v789_v3 = vpack.c.bf16 %v781_v2, %v780_v47 }
 0x180   : > { %4709 = vmatmul.mubr.msk.bf16.gmra.mrb[12].mxu0 %vm528_vm0, %v789_v3 }
 0x23b   : > { %v4698_v4 = vpop.f32.mrb[0].mxu0 }
 0x23c   : > { %v871_v25 = vpop.f32.mrb[1].mxu0  ;;  %v880_v6 = vadd.f32 %v4698_v4, %v4435_v45 }
 0x23d   : > { %v4699_v5 = vpop.f32.mrb[2].mxu0  ;;  %v872_v31 = vadd.f32 %v4435_v45, %v871_v25 }
 0x23e   : > { %v883_v7 = vadd.f32 %v4699_v5, %v4435_v45  ;;  %v874_v8 = vpop.f32.mrb[3].mxu0 }
 0x23f   : > { %v875_v9 = vadd.f32 %v4435_v45, %v874_v8 }
 0x240   : > { %v5056_v54 = vpack.i.bf16 %v883_v7, %v880_v6  ;;  %v5963_v12 = vpack.c.bf16 %v883_v7, %v880_v6 }
 0x241   : > { %v5061_v43 = vpack.i.bf16 %v875_v9, %v872_v31  ;;  %v5965_v13 = vpack.c.bf16 %v875_v9, %v872_v31 }
 0x242   : > { %1048 = vst.msk [vmem:[#allocation2 + $0x8] sm:$0xff] %vm1046_vm1, %v5963_v12  ;;  %5057 = vrot.lane.b32.xlu1 %v5056_v54, %s5576_s19 }
 0x243   : > { %1047 = vst.msk [vmem:[#allocation2] sm:$0xff] %vm1046_vm1, %v5965_v13  ;;  %5062 = vrot.lane.b32.xlu0 %v5061_v43, %s5576_s19  ;;  %v4702_v14 = vpop.f32.mrb[4].mxu0 }
 0x244   : > { %v887_v15 = vpop.f32.mrb[5].mxu0  ;;  %v896_v19 = vadd.f32 %v4702_v14, %v4435_v45 }
 0x245   : > { %v4703_v18 = vpop.f32.mrb[6].mxu0  ;;  %v888_v16 = vadd.f32 %v4435_v45, %v887_v15 }
 0x246   : > { %v899_v22 = vadd.f32 %v4703_v18, %v4435_v45  ;;  %v890_v55 = vpop.f32.mrb[7].mxu0 }
 0x247   : > { %v891_v26 = vadd.f32 %v4435_v45, %v890_v55 }
 0x248   : > { %v5071_v27 = vpack.i.bf16 %v899_v22, %v896_v19  ;;  %v5973_v0 = vpack.c.bf16 %v899_v22, %v896_v19 }
 0x249   : > { %v5066_v30 = vpack.i.bf16 %v891_v26, %v888_v16  ;;  %v5975_v32 = vpack.c.bf16 %v891_v26, %v888_v16 }
 0x24a   : > { %1050 = vst.msk [vmem:[#allocation2 + $0x18] sm:$0xff] %vm1046_vm1, %v5973_v0  ;;  %v1315_v33 = vld [vmem:[#allocation2] sm:$0xff] }
 0x24b   : > { %1049 = vst.msk [vmem:[#allocation2 + $0x10] sm:$0xff] %vm1046_vm1, %v5975_v32  ;;  %4714 = vmatprep.mubr.msk.bf16.mxu1 %vm1046_vm1, %v1315_v33  ;;  %5067 = vrot.lane.b32.xlu1 %v5066_v30, %s5576_s19  ;;  %v4706_v34 = vpop.f32.mrb[8].mxu0 }
 0x24c   : > { %v903_v20 = vpop.f32.mrb[9].mxu0  ;;  %v912_v39 = vadd.f32 %v4706_v34, %v4435_v45 }
 0x24d   : > { %v4707_v38 = vpop.f32.mrb[10].mxu0  ;;  %v904_v41 = vadd.f32 %v4435_v45, %v903_v20 }
 0x24e   : > { %v915_v40 = vadd.f32 %v4707_v38, %v4435_v45  ;;  %v906_v1 = vpop.f32.mrb[11].mxu0 }
 0x24f   : > { %v907_v10 = vadd.f32 %v4435_v45, %v906_v1  ;;  %5072 = vrot.lane.b32.xlu1 %v5071_v27, %s5576_s19 }
 0x250   : > { %v5076_v36 = vpack.i.bf16 %v915_v40, %v912_v39  ;;  %v5984_v42 = vpack.c.bf16 %v915_v40, %v912_v39 }
 0x251   : > { %v5081_v46 = vpack.i.bf16 %v907_v10, %v904_v41  ;;  %v5986_v24 = vpack.c.bf16 %v907_v10, %v904_v41 }
 0x252   : > { %1052 = vst.msk [vmem:[#allocation2 + $0x28] sm:$0xff] %vm1046_vm1, %v5984_v42 }
 0x253   : > { %1051 = vst.msk [vmem:[#allocation2 + $0x20] sm:$0xff] %vm1046_vm1, %v5986_v24  ;;  %5077 = vrot.lane.b32.xlu1 %v5076_v36, %s5576_s19  ;;  %5082 = vrot.lane.b32.xlu0 %v5081_v46, %s5576_s19  ;;  %v4710_v48 = vpop.f32.mrb[12].mxu0 }
 0x254   : > { %v919_v49 = vpop.f32.mrb[13].mxu0  ;;  %v928_v11 = vadd.f32 %v4710_v48, %v4435_v45 }
 0x255   : > { %v4711_v50 = vpop.f32.mrb[14].mxu0  ;;  %v920_v23 = vadd.f32 %v4435_v45, %v919_v49 }
 0x256   : > { %v931_v51 = vadd.f32 %v4711_v50, %v4435_v45  ;;  %v922_v44 = vpop.f32.mrb[15].mxu0 }
 0x257   : > { %v923_v52 = vadd.f32 %v4435_v45, %v922_v44 }
 0x258   : > { %v5086_v28 = vpack.i.bf16 %v931_v51, %v928_v11  ;;  %v5994_v29 = vpack.c.bf16 %v931_v51, %v928_v11 }
 0x259   : > { %v5091_v53 = vpack.i.bf16 %v923_v52, %v920_v23  ;;  %v5996_v56 = vpack.c.bf16 %v923_v52, %v920_v23 }
 0x25a   : > { %7756 = vst [vmem:[#allocation9_spill] sm:$0xff] %v5994_v29  ;;  %1054 = vst.msk [vmem:[#allocation2 + $0x38] sm:$0xff] %vm1046_vm1, %v5994_v29  ;;  %5087 = vrot.lane.b32.xlu1 %v5086_v28, %s5576_s19 }
 0x25b   : > { %1053 = vst.msk [vmem:[#allocation2 + $0x30] sm:$0xff] %vm1046_vm1, %v5996_v56  ;;  %5092 = vrot.lane.b32.xlu0 %v5091_v53, %s5576_s19  ;;  %s5580_s19 = smov 56  }
 0x25e   : > { %1095 = vrot.lane.b32.xlu1 %v5965_v13, %s5577_s20 }
 0x262   : > { %1097 = vrot.lane.b32.xlu1 %v5963_v12, %s5577_s20 }
 0x266   : > { %1099 = vrot.lane.b32.xlu1 %v5975_v32, %s5577_s20 }
 0x26a   : > { %1101 = vrot.lane.b32.xlu1 %v5973_v0, %s5577_s20 }
 0x26e   : > { %1103 = vrot.lane.b32.xlu1 %v5986_v24, %s5577_s20 }
 0x272   : > { %1105 = vrot.lane.b32.xlu1 %v5984_v42, %s5577_s20 }
 0x276   : > { %1107 = vrot.lane.b32.xlu1 %v5996_v56, %s5577_s20 }
 0x27a   : > { %1109 = vrot.lane.b32.xlu1 %v5994_v29, %s5577_s20  ;;  %s5581_s20 = smov 64  }
 0x27e   : > { %1161 = vrot.lane.b32.xlu1 %v5965_v13, %s5578_s28 }
 0x282   : > { %1163 = vrot.lane.b32.xlu1 %v5963_v12, %s5578_s28 }
 0x286   : > { %1227 = vrot.lane.b32.xlu1 %v5965_v13, %s5579_s22 }
 0x28a   : > { %1229 = vrot.lane.b32.xlu1 %v5963_v12, %s5579_s22 }
 0x28e   : > { %1165 = vrot.lane.b32.xlu1 %v5975_v32, %s5578_s28 }
 0x292   : > { %1167 = vrot.lane.b32.xlu1 %v5973_v0, %s5578_s28 }
 0x296   : > { %1231 = vrot.lane.b32.xlu1 %v5975_v32, %s5579_s22 }
 0x29a   : > { %1233 = vrot.lane.b32.xlu1 %v5973_v0, %s5579_s22 }
 0x29e   : > { %1169 = vrot.lane.b32.xlu1 %v5986_v24, %s5578_s28 }
 0x2a2   : > { %1171 = vrot.lane.b32.xlu1 %v5984_v42, %s5578_s28 }
 0x2a6   : > { %1235 = vrot.lane.b32.xlu1 %v5986_v24, %s5579_s22 }
 0x2aa   : > { %1237 = vrot.lane.b32.xlu1 %v5984_v42, %s5579_s22 }
 0x2ae   : > { %1173 = vrot.lane.b32.xlu1 %v5996_v56, %s5578_s28 }
 0x2b2   : > { %1175 = vrot.lane.b32.xlu1 %v5994_v29, %s5578_s28  ;;  %s5582_s28 = smov 40  }
 0x2b4   : > { %v5058_v37 = vpop.permute.xlu1 %5057 }
 0x2b5   : > { %v5063_v57 = vpop.permute.xlu0 %5062  ;;  %v5059_v59 = vunpack.i.l.bf16 %v5058_v37  ;;  %v5060_v60 = vunpack.i.h.bf16 %v5058_v37 }
 0x2b6   : > { %1241 = vrot.lane.b32.xlu1 %v5994_v29, %s5579_s22  ;;  %v5064_v17 = vunpack.i.l.bf16 %v5063_v57  ;;  %v5065_v35 = vunpack.i.h.bf16 %v5063_v57 }
 0x2b8   : > { %1006 = vxpose.xlu0.b32.start [1/16] (narrow) %v5064_v17, 32 }
 0x2ba   : > { %1128 = vrot.lane.b32.xlu1 %v5965_v13, %s5580_s19 }
 0x2bc   : > { %1007 = vxpose.xlu0.b32.cont [2/16] (narrow) %v5065_v35, 32 }
 0x2bd   : > { %v5068_v58 = vpop.permute.xlu1 %5067 }
 0x2be   : > { %1065 = vrot.lane.b32.xlu1 %v5963_v12, %s5581_s20  ;;  %v5069_v62 = vunpack.i.l.bf16 %v5068_v58  ;;  %v5070_v21 = vunpack.i.h.bf16 %v5068_v58 }
 0x2c0   : > { %1008 = vxpose.xlu0.b32.cont [3/16] (narrow) %v5059_v59, 32 }
 0x2c1   : > { %v5073_v61 = vpop.permute.xlu1 %5072 }
 0x2c2   : > { %1067 = vrot.lane.b32.xlu1 %v5975_v32, %s5581_s20  ;;  %v5074_v2 = vunpack.i.l.bf16 %v5073_v61  ;;  %v5075_v4 = vunpack.i.h.bf16 %v5073_v61 }
 0x2c4   : > { %1009 = vxpose.xlu0.b32.cont [4/16] (narrow) %v5060_v60, 32 }
 0x2c5   : > { %v5078_v63 = vpop.permute.xlu1 %5077  ;;  %v5083_v45 = vpop.permute.xlu0 %5082 }
 0x2c6   : > { %1134 = vrot.lane.b32.xlu1 %v5973_v0, %s5580_s19  ;;  %v5084_v5 = vunpack.i.l.bf16 %v5083_v45  ;;  %v5085_v7 = vunpack.i.h.bf16 %v5083_v45  ;;  %v5079_v31 = vunpack.i.l.bf16 %v5078_v63  ;;  %v5080_v54 = vunpack.i.h.bf16 %v5078_v63  ;;  %v1316_v63 = vld [vmem:[#allocation2 + $0x8] sm:$0xff] }
 0x2c8   : > { %1010 = vxpose.xlu0.b32.cont [5/16] (narrow) %v5069_v62, 32 }
 0x2ca   : > { %1138 = vrot.lane.b32.xlu1 %v5984_v42, %s5580_s19 }
 0x2cc   : > { %v5088_v47 = vpop.permute.xlu1 %5087  ;;  %1011 = vxpose.xlu0.b32.cont [6/16] (narrow) %v5070_v21, 32  ;;  %v1317_v21 = vld [vmem:[#allocation2 + $0x10] sm:$0xff] }
 0x2cd   : > { %v5093_v43 = vpop.permute.xlu0 %5092  ;;  %v5089_v55 = vunpack.i.l.bf16 %v5088_v47  ;;  %v5090_v26 = vunpack.i.h.bf16 %v5088_v47 }
 0x2ce   : > { %1142 = vrot.lane.b32.xlu1 %v5994_v29, %s5580_s19  ;;  %v5094_v15 = vunpack.i.l.bf16 %v5093_v43  ;;  %v5095_v19 = vunpack.i.h.bf16 %v5093_v43 }
 0x2d0   : > { %v1096_v3 = vpop.permute.xlu1 %1095  ;;  %1012 = vxpose.xlu0.b32.cont [7/16] (narrow) %v5074_v2, 32 }
 0x2d1   : > { %1120 = vst.msk [vmem:[#allocation2 + $0x40] sm:$0xff] %vm1046_vm1, %v1096_v3 }
 0x2d2   : > { %1262 = vrot.lane.b32.xlu1 %v5963_v12, %s5582_s28 }
 0x2d4   : > { %v1098_v25 = vpop.permute.xlu1 %1097  ;;  %1013 = vxpose.xlu0.b32.cont [8/16] (narrow) %v5075_v4, 32 }
 0x2d5   : > { %1121 = vst.msk [vmem:[#allocation2 + $0x48] sm:$0xff] %vm1046_vm1, %v1098_v25  ;;  %v1318_v25 = vld [vmem:[#allocation2 + $0x18] sm:$0xff] }
 0x2d6   : > { %1266 = vrot.lane.b32.xlu1 %v5973_v0, %s5582_s28 }
 0x2d8   : > { %v1100_v6 = vpop.permute.xlu1 %1099  ;;  %1014 = vxpose.xlu0.b32.cont [9/16] (narrow) %v5084_v5, 32 }
 0x2d9   : > { %1122 = vst.msk [vmem:[#allocation2 + $0x50] sm:$0xff] %vm1046_vm1, %v1100_v6  ;;  %v1319_v6 = vld [vmem:[#allocation2 + $0x20] sm:$0xff] }
 0x2da   : > { %1270 = vrot.lane.b32.xlu1 %v5984_v42, %s5582_s28 }
 0x2dc   : > { %v1102_v8 = vpop.permute.xlu1 %1101  ;;  %1015 = vxpose.xlu0.b32.cont [10/16] (narrow) %v5085_v7, 32  ;;  %v1320_v7 = vld [vmem:[#allocation2 + $0x28] sm:$0xff] }
 0x2dd   : > { %1123 = vst.msk [vmem:[#allocation2 + $0x58] sm:$0xff] %vm1046_vm1, %v1102_v8  ;;  %v1321_v8 = vld [vmem:[#allocation2 + $0x30] sm:$0xff] }
 0x2e0   : > { %v1104_v9 = vpop.permute.xlu1 %1103  ;;  %1016 = vxpose.xlu0.b32.cont [11/16] (narrow) %v5079_v31, 32 }
 0x2e1   : > { %1124 = vst.msk [vmem:[#allocation2 + $0x60] sm:$0xff] %vm1046_vm1, %v1104_v9  ;;  %v1322_v9 = vld [vmem:[#allocation2 + $0x38] sm:$0xff] }
 0x2e4   : > { %v1106_v14 = vpop.permute.xlu1 %1105  ;;  %1017 = vxpose.xlu0.b32.cont [12/16] (narrow) %v5080_v54, 32  ;;  %v1323_v54 = vld [vmem:[#allocation2 + $0x40] sm:$0xff] }
 0x2e5   : > { %1125 = vst.msk [vmem:[#allocation2 + $0x68] sm:$0xff] %vm1046_vm1, %v1106_v14 }
 0x2e8   : > { %v1108_v18 = vpop.permute.xlu1 %1107  ;;  %1018 = vxpose.xlu0.b32.cont [13/16] (narrow) %v5094_v15, 32 }
 0x2e9   : > { %1126 = vst.msk [vmem:[#allocation2 + $0x70] sm:$0xff] %vm1046_vm1, %v1108_v18  ;;  %v1325_v18 = vld [vmem:[#allocation2 + $0x50] sm:$0xff] }
 0x2ec   : > { %v1110_v22 = vpop.permute.xlu1 %1109  ;;  %1019 = vxpose.xlu0.b32.cont [14/16] (narrow) %v5095_v19, 32 }
 0x2ed   : > { %1127 = vst.msk [vmem:[#allocation2 + $0x78] sm:$0xff] %vm1046_vm1, %v1110_v22  ;;  %v1328_v22 = vld [vmem:[#allocation2 + $0x68] sm:$0xff] }
 0x2f0   : > { %v1162_v16 = vpop.permute.xlu1 %1161  ;;  %1020 = vxpose.xlu0.b32.cont [15/16] (narrow) %v5089_v55, 32  ;;  %v1329_v55 = vld [vmem:[#allocation2 + $0x70] sm:$0xff] }
 0x2f1   : > { %1186 = vst.msk [vmem:[#allocation2 + $0x80] sm:$0xff] %vm1046_vm1, %v1162_v16 }
 0x2f4   : > { %v1164_v27 = vpop.permute.xlu1 %1163  ;;  %1021 = vxpose.xlu0.b32.end [16/16] (narrow) %v5090_v26, 32  ;;  %v1330_v16 = vld [vmem:[#allocation2 + $0x78] sm:$0xff] }
 0x2f5   : > { %1187 = vst.msk [vmem:[#allocation2 + $0x88] sm:$0xff] %vm1046_vm1, %v1164_v27 }
 0x2f8   : > { %v1228_v30 = vpop.permute.xlu1 %1227  ;;  %v1331_v33 = vld [vmem:[#allocation2 + $0x80] sm:$0xff] }
 0x2f9   : > { %1252 = vst.msk [vmem:[#allocation2 + $0xc0] sm:$0xff] %vm1046_vm1, %v1228_v30  ;;  %4750 = vmatprep.mubr.msk.bf16.mxu0 %vm1046_vm1, %v1331_v33 }
 0x2fc   : > { %v1230_v34 = vpop.permute.xlu1 %1229  ;;  %v1332_v5 = vld [vmem:[#allocation2 + $0x88] sm:$0xff] }
 0x2fd   : > { %1253 = vst.msk [vmem:[#allocation2 + $0xc8] sm:$0xff] %vm1046_vm1, %v1230_v34 }
 0x300   : > { %v1166_v20 = vpop.permute.xlu1 %1165  ;;  %v1339_v26 = vld [vmem:[#allocation2 + $0xc0] sm:$0xff] }
 0x301   : > { %1188 = vst.msk [vmem:[#allocation2 + $0x90] sm:$0xff] %vm1046_vm1, %v1166_v20 }
 0x304   : > { %v1168_v38 = vpop.permute.xlu1 %1167  ;;  %v1340_v27 = vld [vmem:[#allocation2 + $0xc8] sm:$0xff] }
 0x305   : > { %1189 = vst.msk [vmem:[#allocation2 + $0x98] sm:$0xff] %vm1046_vm1, %v1168_v38 }
 0x308   : > { %v1232_v39 = vpop.permute.xlu1 %1231 }
 0x309   : > { %1254 = vst.msk [vmem:[#allocation2 + $0xd0] sm:$0xff] %vm1046_vm1, %v1232_v39 }
 0x30c   : > { %v1234_v40 = vpop.permute.xlu1 %1233 }
 0x30d   : > { %1255 = vst.msk [vmem:[#allocation2 + $0xd8] sm:$0xff] %vm1046_vm1, %v1234_v40 }
 0x310   : > { %v1170_v1 = vpop.permute.xlu1 %1169 }
 0x311   : > { %1190 = vst.msk [vmem:[#allocation2 + $0xa0] sm:$0xff] %vm1046_vm1, %v1170_v1 }
 0x314   : > { %v1172_v41 = vpop.permute.xlu1 %1171  ;;  %v1342_v33 = vld [vmem:[#allocation2 + $0xd8] sm:$0xff] }
 0x315   : > { %1191 = vst.msk [vmem:[#allocation2 + $0xa8] sm:$0xff] %vm1046_vm1, %v1172_v41 }
 0x318   : > { %v1236_v10 = vpop.permute.xlu1 %1235  ;;  %v1335_v31 = vld [vmem:[#allocation2 + $0xa0] sm:$0xff] }
 0x319   : > { %1256 = vst.msk [vmem:[#allocation2 + $0xe0] sm:$0xff] %vm1046_vm1, %v1236_v10 }
 0x31c   : > { %v1238_v36 = vpop.permute.xlu1 %1237 }
 0x31d   : > { %1257 = vst.msk [vmem:[#allocation2 + $0xe8] sm:$0xff] %vm1046_vm1, %v1238_v36  ;;  %1239 = vrot.lane.b32.xlu0 %v5996_v56, %s5579_s22  ;;  %s5583_s22 = smov 48  }
 0x320   : > { %v1174_v46 = vpop.permute.xlu1 %1173  ;;  %v1343_v20 = vld [vmem:[#allocation2 + $0xe0] sm:$0xff] }
 0x321   : > { %1192 = vst.msk [vmem:[#allocation2 + $0xb0] sm:$0xff] %vm1046_vm1, %v1174_v46  ;;  %1063 = vrot.lane.b32.xlu0 %v5965_v13, %s5581_s20 }
 0x324   : > { %v1176_v48 = vpop.permute.xlu1 %1175  ;;  %v1344_v39 = vld [vmem:[#allocation2 + $0xe8] sm:$0xff] }
 0x325   : > { %1193 = vst.msk [vmem:[#allocation2 + $0xb8] sm:$0xff] %vm1046_vm1, %v1176_v48  ;;  %1130 = vrot.lane.b32.xlu0 %v5963_v12, %s5580_s19 }
 0x328   : > { %v1242_v49 = vpop.permute.xlu1 %1241  ;;  %v1337_v43 = vld [vmem:[#allocation2 + $0xb0] sm:$0xff] }
 0x329   : > { %1259 = vst.msk [vmem:[#allocation2 + $0xf8] sm:$0xff] %vm1046_vm1, %v1242_v49  ;;  %1132 = vrot.lane.b32.xlu0 %v5975_v32, %s5580_s19 }
 0x32c   : > { %v1129_v50 = vpop.permute.xlu1 %1128  ;;  %v1338_v14 = vld [vmem:[#allocation2 + $0xb8] sm:$0xff] }
 0x32d   : > { %1153 = vst.msk [vmem:[#allocation4 + $0x40] sm:$0xff] %vm1046_vm1, %v1129_v50  ;;  %1069 = vrot.lane.b32.xlu0 %v5973_v0, %s5581_s20 }
 0x330   : > { %v1066_v11 = vpop.permute.xlu1 %1065  ;;  %v1346_v49 = vld [vmem:[#allocation2 + $0xf8] sm:$0xff] }
 0x331   : > { %1088 = vst.msk [vmem:[#allocation4 + $0x8] sm:$0xff] %vm1046_vm1, %v1066_v11  ;;  %1071 = vrot.lane.b32.xlu0 %v5986_v24, %s5581_s20 }
 0x334   : > { %v1068_v51 = vpop.permute.xlu1 %1067  ;;  %v2679_v19 = vld [vmem:[#allocation4 + $0x40] sm:$0xff] }
 0x335   : > { %1089 = vst.msk [vmem:[#allocation4 + $0x10] sm:$0xff] %vm1046_vm1, %v1068_v51  ;;  %1136 = vrot.lane.b32.xlu0 %v5986_v24, %s5580_s19 }
 0x338   : > { %v1135_v44 = vpop.permute.xlu1 %1134  ;;  %v1022_v23 = vpop.trf.xlu0  ;;  %v2672_v10 = vld [vmem:[#allocation4 + $0x8] sm:$0xff] }
 0x339   : > { %1156 = vst.msk [vmem:[#allocation4 + $0x58] sm:$0xff] %vm1046_vm1, %v1135_v44  ;;  %1073 = vrot.lane.b32.xlu0 %v5984_v42, %s5581_s20 }
 0x33c   : > { %v1139_v52 = vpop.permute.xlu1 %1138  ;;  %v1023_v28 = vpop.trf.xlu0  ;;  %v2673_v48 = vld [vmem:[#allocation4 + $0x10] sm:$0xff] }
 0x33d   : > { %1158 = vst.msk [vmem:[#allocation4 + $0x68] sm:$0xff] %vm1046_vm1, %v1139_v52  ;;  %v4538_v53 = vpack.c.bf16 %v1023_v28, %v1022_v23  ;;  %1075 = vrot.lane.b32.xlu0 %v5996_v56, %s5581_s20 }
 0x33f   : > { %4539 = vst [vmem:[#allocation3] sm:$0xff] %v4538_v53  }
 0x340   : > { %v1143_v57 = vpop.permute.xlu1 %1142  ;;  %v1024_v17 = vpop.trf.xlu0  ;;  %v2682_v51 = vld [vmem:[#allocation4 + $0x58] sm:$0xff] }
 0x341   : > { %1160 = vst.msk [vmem:[#allocation4 + $0x78] sm:$0xff] %vm1046_vm1, %v1143_v57  ;;  %1140 = vrot.lane.b32.xlu0 %v5996_v56, %s5580_s19  ;;  %s7738_s19 = sand.u32 1, %s5558_s30  }
 0x344   : > { %v1263_v37 = vpop.permute.xlu1 %1262  ;;  %v1025_v35 = vpop.trf.xlu0 }
 0x345   : > { %1286 = vst.msk [vmem:[#allocation4 + $0xc8] sm:$0xff] %vm1046_vm1, %v1263_v37  ;;  %v4543_v58 = vpack.c.bf16 %v1025_v35, %v1024_v17  ;;  %1077 = vrot.lane.b32.xlu0 %v5994_v29, %s5581_s20  ;;  %v2684_v17 = vld [vmem:[#allocation4 + $0x68] sm:$0xff]  ;;  %s4428_s20 = sshll.u32 %s7738_s19, 7 }
 0x346   : > { %v1347_v59 = vld [vmem:[#allocation3] sm:$0xf]  ;;  %v1348_v62 = vld [vmem:[#allocation3 + $0x4] sm:$0xf] }
 0x347   : > { %4545 = vst [vmem:[#allocation3 + $0x8] sm:$0xff] %v4543_v58   ;;  %4984 = vmatprep.subr.msk.bf16.mxu1 %vm1376_vm2, %v1347_v59  ;;  %v1378_v60 = vsel %vm1376_vm2, %v1347_v59, 0  ;;  %v1502_v47 = vsel %vm1376_vm2, %v1348_v62, 0 }
 0x348   : > { %v1267_v61 = vpop.permute.xlu1 %1266  ;;  %4713 = vmatpush3.bf16.msra.mxu1 %v1378_v60 }
 0x349   : > { %1288 = vst.msk [vmem:[#allocation4 + $0xd8] sm:$0xff] %vm1046_vm1, %v1267_v61  ;;  %1194 = vrot.lane.b32.xlu0 %v5965_v13, %s5583_s22  ;;  %4985 = vmatprep.subr.msk.bf16.mxu1 %vm1376_vm2, %v1348_v62  ;;  %v2686_v62 = vld [vmem:[#allocation4 + $0x78] sm:$0xff] }
 0x34b   : > { %4715 = vmatmul.mubr.msk.bf16.vlgmr.msra.gmra.mrb[0].mxu1 %vm1046_vm1, %v1316_v63 }
 0x34c   : > { %v1271_v2 = vpop.permute.xlu1 %1270  ;;  %4718 = vmatprep.mubr.msk.bf16.mxu1 %vm1046_vm1, %v1317_v21  ;;  %4731 = vmatpush3.bf16.msra.mxu1 %v1502_v47 }
 0x34d   : > { %1290 = vst.msk [vmem:[#allocation4 + $0xe8] sm:$0xff] %vm1046_vm1, %v1271_v2  ;;  %1260 = vrot.lane.b32.xlu0 %v5965_v13, %s5582_s28  ;;  %v1333_v13 = vld [vmem:[#allocation2 + $0x90] sm:$0xff] }
 0x34e   : > { %v1349_v3 = vld [vmem:[#allocation3 + $0x8] sm:$0xf]  ;;  %v1350_v4 = vld [vmem:[#allocation3 + $0xc] sm:$0xf] }
 0x34f   : > { %4986 = vmatprep.subr.msk.bf16.mxu0 %vm1376_vm2, %v1349_v3  ;;  %4987 = vmatprep.subr.msk.bf16.mxu1 %vm1376_vm2, %v1350_v4  ;;  %v1626_v45 = vsel %vm1376_vm2, %v1349_v3, 0  ;;  %v1750_v15 = vsel %vm1376_vm2, %v1350_v4, 0 }
 0x350   : > { %4749 = vmatpush3.bf16.msra.mxu0 %v1626_v45 }
 0x351   : > { %1196 = vrot.lane.b32.xlu0 %v5963_v12, %s5583_s22  ;;  %v1334_v12 = vld [vmem:[#allocation2 + $0x98] sm:$0xff] }
 0x353   : > { %4719 = vmatmul.mubr.msk.bf16.gmra.mrb[4].mxu1 %vm1046_vm1, %v1318_v25  ;;  %4751 = vmatmul.mubr.msk.bf16.vlgmr.msra.gmra.mrb[16].mxu0 %vm1046_vm1, %v1332_v5 }
 0x354   : > { %4722 = vmatprep.mubr.msk.bf16.mxu1 %vm1046_vm1, %v1319_v6  ;;  %4754 = vmatprep.mubr.msk.bf16.mxu0 %vm1046_vm1, %v1333_v13 }
 0x355   : > { %1198 = vrot.lane.b32.xlu0 %v5975_v32, %s5583_s22 }
 0x359   : > { %1264 = vrot.lane.b32.xlu0 %v5975_v32, %s5582_s28  ;;  %v1336_v32 = vld [vmem:[#allocation2 + $0xa8] sm:$0xff] }
 0x35b   : > { %4723 = vmatmul.mubr.msk.bf16.gmra.mrb[8].mxu1 %vm1046_vm1, %v1320_v7  ;;  %4755 = vmatmul.mubr.msk.bf16.gmra.mrb[20].mxu0 %vm1046_vm1, %v1334_v12 }
 0x35c   : > { %4726 = vmatprep.mubr.msk.bf16.mxu1 %vm1046_vm1, %v1321_v8  ;;  %4758 = vmatprep.mubr.msk.bf16.mxu0 %vm1046_vm1, %v1335_v31  ;;  %v1849_v8 = vlaneseq }
 0x35d   : > { %1200 = vrot.lane.b32.xlu0 %v5973_v0, %s5583_s22  ;;  %v1324_v0 = vld [vmem:[#allocation2 + $0x48] sm:$0xff] }
 0x35e   : > { %v6189_v31 = vand.u32 127, %v1849_v8 }
 0x360   : > { %vm1851_vm3 = vcmp.lt.s32.totalorder %v6189_v31, 8 }
 0x361   : > { %1202 = vrot.lane.b32.xlu0 %v5986_v24, %s5583_s22 }
 0x363   : > { %4727 = vmatmul.mubr.msk.bf16.gmra.mrb[12].mxu1 %vm1046_vm1, %v1322_v9  ;;  %4759 = vmatmul.mubr.msk.bf16.gmra.mrb[24].mxu0 %vm1046_vm1, %v1336_v32 }
 0x364   : > { %4732 = vmatprep.mubr.msk.bf16.mxu1 %vm1046_vm1, %v1323_v54  ;;  %4762 = vmatprep.mubr.msk.bf16.mxu0 %vm1046_vm1, %v1337_v43 }
 0x365   : > { %1268 = vrot.lane.b32.xlu0 %v5986_v24, %s5582_s28  ;;  %v1327_v24 = vld [vmem:[#allocation2 + $0x60] sm:$0xff] }
 0x369   : > { %1204 = vrot.lane.b32.xlu0 %v5984_v42, %s5583_s22  ;;  %v1326_v42 = vld [vmem:[#allocation2 + $0x58] sm:$0xff] }
 0x36b   : > { %4733 = vmatmul.mubr.msk.bf16.vlgmr.msra.gmra.mrb[16].mxu1 %vm1046_vm1, %v1324_v0  ;;  %4763 = vmatmul.mubr.msk.bf16.gmra.mrb[28].mxu0 %vm1046_vm1, %v1338_v14 }
 0x36c   : > { %4767 = vmatpush3.bf16.msra.mxu1 %v1750_v15  ;;  %4736 = vmatprep.mubr.msk.bf16.mxu1 %vm1046_vm1, %v1325_v18 }
 0x36d   : > { %4816 = vmatprep.subr.bf16.mxu1 %v2679_v19  ;;  %1206 = vrot.lane.b32.xlu0 %v5996_v56, %s5583_s22 }
 0x371   : > { %1272 = vrot.lane.b32.xlu0 %v5996_v56, %s5582_s28  ;;  %v1341_v56 = vld [vmem:[#allocation2 + $0xd0] sm:$0xff] }
 0x373   : > { %4737 = vmatmul.mubr.msk.bf16.gmra.mrb[20].mxu1 %vm1046_vm1, %v1326_v42 }
 0x374   : > { %4740 = vmatprep.mubr.msk.bf16.mxu1 %vm1046_vm1, %v1327_v24 }
 0x37b   : > { %4741 = vmatmul.mubr.msk.bf16.gmra.mrb[24].mxu1 %vm1046_vm1, %v1328_v22 }
 0x37c   : > { %4744 = vmatprep.mubr.msk.bf16.mxu1 %vm1046_vm1, %v1329_v55 }
 0x383   : > { %4745 = vmatmul.mubr.msk.bf16.gmra.mrb[28].mxu1 %vm1046_vm1, %v1330_v16 }
 0x384   : > { %4768 = vmatprep.mubr.msk.bf16.mxu1 %vm1046_vm1, %v1339_v26 }
 0x38b   : > { %4769 = vmatmul.mubr.msk.bf16.vlgmr.msra.gmra.mrb[32].mxu1 %vm1046_vm1, %v1340_v27 }
 0x38c   : > { %4817 = vmatpush3.bf16.msra.mxu1 %v2679_v19  ;;  %4772 = vmatprep.mubr.msk.bf16.mxu1 %vm1046_vm1, %v1341_v56 }
 0x38f   : > { %v1240_v30 = vpop.permute.xlu0 %1239 }
 0x390   : > { %1258 = vst.msk [vmem:[#allocation2 + $0xf0] sm:$0xff] %vm1046_vm1, %v1240_v30 }
 0x393   : > { %4773 = vmatmul.mubr.msk.bf16.gmra.mrb[36].mxu1 %vm1046_vm1, %v1342_v33  ;;  %v1064_v34 = vpop.permute.xlu0 %1063 }
 0x394   : > { %1087 = vst.msk [vmem:[#allocation4] sm:$0xff] %vm1046_vm1, %v1064_v34  ;;  %4776 = vmatprep.mubr.msk.bf16.mxu1 %vm1046_vm1, %v1343_v20 }
 0x397   : > { %v1131_v38 = vpop.permute.xlu0 %1130  ;;  %v1345_v1 = vld [vmem:[#allocation2 + $0xf0] sm:$0xff] }
 0x398   : > { %1154 = vst.msk [vmem:[#allocation4 + $0x48] sm:$0xff] %vm1046_vm1, %v1131_v38 }
 0x39b   : > { %4777 = vmatmul.mubr.msk.bf16.gmra.mrb[40].mxu1 %vm1046_vm1, %v1344_v39  ;;  %v1133_v40 = vpop.permute.xlu0 %1132  ;;  %v2671_v41 = vld [vmem:[#allocation4] sm:$0xff] }
 0x39c   : > { %1155 = vst.msk [vmem:[#allocation4 + $0x50] sm:$0xff] %vm1046_vm1, %v1133_v40  ;;  %4780 = vmatprep.mubr.msk.bf16.mxu1 %vm1046_vm1, %v1345_v1  ;;  %4784 = vmatprep.subr.bf16.mxu0 %v2671_v41 }
 0x39d   : > { %4785 = vmatpush3.bf16.msra.mxu0 %v2671_v41 }
 0x39e   : > { %4786 = vmatprep.subr.bf16.mxu0 %v2672_v10 }
 0x39f   : > { %v1070_v36 = vpop.permute.xlu0 %1069  ;;  %v2680_v46 = vld [vmem:[#allocation4 + $0x48] sm:$0xff] }
 0x3a0   : > { %1090 = vst.msk [vmem:[#allocation4 + $0x18] sm:$0xff] %vm1046_vm1, %v1070_v36  ;;  %4818 = vmatprep.subr.bf16.mxu1 %v2680_v46 }
 0x3a1   : > { %4787 = vmatpush3.bf16.msra.mxu0 %v2672_v10  ;;  %4819 = vmatpush3.bf16.msra.mxu1 %v2680_v46 }
 0x3a2   : > { %4788 = vmatprep.subr.bf16.mxu0 %v2673_v48 }
 0x3a3   : > { %4781 = vmatmul.mubr.msk.bf16.gmra.mrb[44].mxu1 %vm1046_vm1, %v1346_v49  ;;  %v1072_v50 = vpop.permute.xlu0 %1071  ;;  %v2681_v11 = vld [vmem:[#allocation4 + $0x50] sm:$0xff] }
 0x3a4   : > { %1091 = vst.msk [vmem:[#allocation4 + $0x20] sm:$0xff] %vm1046_vm1, %v1072_v50  ;;  %4820 = vmatprep.subr.bf16.mxu1 %v2681_v11 }
 0x3a5   : > { %4789 = vmatpush3.bf16.msra.mxu0 %v2673_v48  ;;  %4821 = vmatpush3.bf16.msra.mxu1 %v2681_v11 }
 0x3a6   : > { %4822 = vmatprep.subr.bf16.mxu1 %v2682_v51 }
 0x3a7   : > { %v1137_v44 = vpop.permute.xlu0 %1136  ;;  %v2674_v23 = vld [vmem:[#allocation4 + $0x18] sm:$0xff] }
 0x3a8   : > { %1157 = vst.msk [vmem:[#allocation4 + $0x60] sm:$0xff] %vm1046_vm1, %v1137_v44  ;;  %4790 = vmatprep.subr.bf16.mxu0 %v2674_v23 }
 0x3a9   : > { %4791 = vmatpush3.bf16.msra.mxu0 %v2674_v23  ;;  %4823 = vmatpush3.bf16.msra.mxu1 %v2682_v51 }
 0x3ab   : > { %v1074_v52 = vpop.permute.xlu0 %1073  ;;  %v2675_v28 = vld [vmem:[#allocation4 + $0x20] sm:$0xff] }
 0x3ac   : > { %1092 = vst.msk [vmem:[#allocation4 + $0x28] sm:$0xff] %vm1046_vm1, %v1074_v52  ;;  %4792 = vmatprep.subr.bf16.mxu0 %v2675_v28 }
 0x3ad   : > { %4793 = vmatpush3.bf16.msra.mxu0 %v2675_v28 }
 0x3af   : > { %v1076_v53 = vpop.permute.xlu0 %1075  ;;  %v2683_v57 = vld [vmem:[#allocation4 + $0x60] sm:$0xff] }
 0x3b0   : > { %1093 = vst.msk [vmem:[#allocation4 + $0x30] sm:$0xff] %vm1046_vm1, %v1076_v53  ;;  %4824 = vmatprep.subr.bf16.mxu1 %v2683_v57 }
 0x3b1   : > { %4825 = vmatpush3.bf16.msra.mxu1 %v2683_v57 }
 0x3b2   : > { %4826 = vmatprep.subr.bf16.mxu1 %v2684_v17 }
 0x3b3   : > { %v1141_v37 = vpop.permute.xlu0 %1140  ;;  %v2676_v35 = vld [vmem:[#allocation4 + $0x28] sm:$0xff] }
 0x3b4   : > { %1159 = vst.msk [vmem:[#allocation4 + $0x70] sm:$0xff] %vm1046_vm1, %v1141_v37  ;;  %4794 = vmatprep.subr.bf16.mxu0 %v2676_v35 }
 0x3b5   : > { %4795 = vmatpush3.bf16.msra.mxu0 %v2676_v35  ;;  %4827 = vmatpush3.bf16.msra.mxu1 %v2684_v17 }
 0x3b7   : > { %v1078_v58 = vpop.permute.xlu0 %1077  ;;  %v2677_v59 = vld [vmem:[#allocation4 + $0x30] sm:$0xff] }
 0x3b8   : > { %1094 = vst.msk [vmem:[#allocation4 + $0x38] sm:$0xff] %vm1046_vm1, %v1078_v58  ;;  %4796 = vmatprep.subr.bf16.mxu0 %v2677_v59 }
 0x3b9   : > { %4797 = vmatpush3.bf16.msra.mxu0 %v2677_v59 }
 0x3bb   : > { %v1195_v60 = vpop.permute.xlu0 %1194  ;;  %v2685_v61 = vld [vmem:[#allocation4 + $0x70] sm:$0xff] }
 0x3bc   : > { %1219 = vst.msk [vmem:[#allocation4 + $0x80] sm:$0xff] %vm1046_vm1, %v1195_v60  ;;  %4828 = vmatprep.subr.bf16.mxu1 %v2685_v61 }
 0x3bd   : > { %4829 = vmatpush3.bf16.msra.mxu1 %v2685_v61 }
 0x3be   : > { %4830 = vmatprep.subr.bf16.mxu1 %v2686_v62 }
 0x3bf   : > { %v1261_v63 = vpop.permute.xlu0 %1260  ;;  %v2678_v21 = vld [vmem:[#allocation4 + $0x38] sm:$0xff] }
 0x3c0   : > { %1285 = vst.msk [vmem:[#allocation4 + $0xc0] sm:$0xff] %vm1046_vm1, %v1261_v63  ;;  %4798 = vmatprep.subr.bf16.mxu0 %v2678_v21 }
 0x3c1   : > { %4799 = vmatpush3.bf16.msra.mxu0 %v2678_v21  ;;  %4831 = vmatpush3.bf16.msra.mxu1 %v2686_v62 }
 0x3c3   : > { %v1197_v47 = vpop.permute.xlu0 %1196  ;;  %v2687_v2 = vld [vmem:[#allocation4 + $0x80] sm:$0xff] }
 0x3c4   : > { %1220 = vst.msk [vmem:[#allocation4 + $0x88] sm:$0xff] %vm1046_vm1, %v1197_v47  ;;  %4848 = vmatprep.subr.bf16.mxu0 %v2687_v2 }
 0x3c7   : > { %v1199_v3 = vpop.permute.xlu0 %1198  ;;  %v2695_v4 = vld [vmem:[#allocation4 + $0xc0] sm:$0xff] }
 0x3c8   : > { %1221 = vst.msk [vmem:[#allocation4 + $0x90] sm:$0xff] %vm1046_vm1, %v1199_v3  ;;  %4880 = vmatprep.subr.bf16.mxu1 %v2695_v4 }
 0x3cb   : > { %v1265_v45 = vpop.permute.xlu0 %1264 }
 0x3cc   : > { %1287 = vst.msk [vmem:[#allocation4 + $0xd0] sm:$0xff] %vm1046_vm1, %v1265_v45 }
 0x3cf   : > { %v1201_v25 = vpop.permute.xlu0 %1200 }
 0x3d0   : > { %1222 = vst.msk [vmem:[#allocation4 + $0x98] sm:$0xff] %vm1046_vm1, %v1201_v25 }
 0x3d3   : > { %v1203_v5 = vpop.permute.xlu0 %1202 }
 0x3d4   : > { %1223 = vst.msk [vmem:[#allocation4 + $0xa0] sm:$0xff] %vm1046_vm1, %v1203_v5 }
 0x3d7   : > { %v1269_v6 = vpop.permute.xlu0 %1268 }
 0x3d8   : > { %1289 = vst.msk [vmem:[#allocation4 + $0xe0] sm:$0xff] %vm1046_vm1, %v1269_v6 }
 0x3db   : > { %v1205_v13 = vpop.permute.xlu0 %1204 }
 0x3dc   : > { %1224 = vst.msk [vmem:[#allocation4 + $0xa8] sm:$0xff] %vm1046_vm1, %v1205_v13 }
 0x3df   : > { %v1207_v7 = vpop.permute.xlu0 %1206 }
 0x3e0   : > { %1225 = vst.msk [vmem:[#allocation4 + $0xb0] sm:$0xff] %vm1046_vm1, %v1207_v7 }
 0x3e3   : > { %v1273_v12 = vpop.permute.xlu0 %1272 }
 0x3e4   : > { %1291 = vst.msk [vmem:[#allocation4 + $0xf0] sm:$0xff] %vm1046_vm1, %v1273_v12 }
 0x41e   : > { %v4716_v9 = vpop.f32.mrb[0].mxu1 }
 0x41f   : > { %v6194_v32 = vsel %vm1851_vm3, %v4716_v9, -1e+30  ;;  %v1414_v54 = vpop.f32.mrb[1].mxu1 }
 0x420   : > { %1922 = vmax.xlane.f32.xlu1 %v6194_v32  ;;  %v4717_v43 = vpop.f32.mrb[2].mxu1  ;;  %v6203_v15 = vsel %vm1851_vm3, %v1414_v54, -1e+30 }
 0x421   : > { %v1417_v0 = vpop.f32.mrb[3].mxu1  ;;  %v6209_v42 = vsel %vm1851_vm3, %v4717_v43, -1e+30 }
 0x422   : > { %v6199_v14 = vsel %vm1851_vm3, %v1417_v0, -1e+30 }
 0x423   : > { %1920 = vmax.xlane.f32.xlu0 %v6199_v14 }
 0x424   : > { %1918 = vmax.xlane.f32.xlu1 %v6203_v15 }
 0x426   : > { %v4720_v18 = vpop.f32.mrb[4].mxu1  ;;  %v4752_v19 = vpop.f32.mrb[16].mxu0 }
 0x427   : > { %v1430_v24 = vpop.f32.mrb[5].mxu1  ;;  %v1662_v22 = vpop.f32.mrb[17].mxu0  ;;  %v6213_v55 = vsel %vm1851_vm3, %v4720_v18, -1e+30  ;;  %v6223_v33 = vsel %vm1851_vm3, %v4752_v19, -1e+30 }
 0x428   : > { %1924 = vmax.xlane.f32.xlu1 %v6209_v42  ;;  %1930 = vmax.xlane.f32.xlu0 %v6213_v55  ;;  %v4721_v16 = vpop.f32.mrb[6].mxu1  ;;  %v4753_v26 = vpop.f32.mrb[18].mxu0  ;;  %v6219_v30 = vsel %vm1851_vm3, %v1430_v24, -1e+30  ;;  %v6233_v1 = vsel %vm1851_vm3, %v1662_v22, -1e+30 }
 0x429   : > { %v1433_v27 = vpop.f32.mrb[7].mxu1  ;;  %v1665_v56 = vpop.f32.mrb[19].mxu0  ;;  %v6229_v38 = vsel %vm1851_vm3, %v4721_v16, -1e+30  ;;  %v6239_v48 = vsel %vm1851_vm3, %v4753_v26, -1e+30 }
 0x42a   : > { %v6249_v51 = vsel %vm1851_vm3, %v1433_v27, -1e+30  ;;  %v6259_v37 = vsel %vm1851_vm3, %v1665_v56, -1e+30 }
 0x42c   : > { %1926 = vmax.xlane.f32.xlu1 %v6219_v30  ;;  %1986 = vmax.xlane.f32.xlu0 %v6223_v33 }
 0x42e   : > { %v4724_v34 = vpop.f32.mrb[8].mxu1  ;;  %v4756_v20 = vpop.f32.mrb[20].mxu0 }
 0x42f   : > { %v1446_v39 = vpop.f32.mrb[9].mxu1  ;;  %v1678_v40 = vpop.f32.mrb[21].mxu0  ;;  %v6243_v49 = vsel %vm1851_vm3, %v4724_v34, -1e+30  ;;  %v6253_v44 = vsel %vm1851_vm3, %v4756_v20, -1e+30 }
 0x430   : > { %1932 = vmax.xlane.f32.xlu1 %v6229_v38  ;;  %v4725_v41 = vpop.f32.mrb[10].mxu1  ;;  %1982 = vmax.xlane.f32.xlu0 %v6233_v1  ;;  %v4757_v10 = vpop.f32.mrb[22].mxu0  ;;  %v6263_v35 = vsel %vm1851_vm3, %v1446_v39, -1e+30  ;;  %v6269_v60 = vsel %vm1851_vm3, %v1678_v40, -1e+30 }
 0x431   : > { %v1449_v36 = vpop.f32.mrb[11].mxu1  ;;  %v1681_v46 = vpop.f32.mrb[23].mxu0  ;;  %v6273_v61 = vsel %vm1851_vm3, %v4725_v41, -1e+30  ;;  %v6285_v4 = vsel %vm1851_vm3, %v4757_v10, -1e+30 }
 0x432   : > { %v6295_v5 = vsel %vm1851_vm3, %v1449_v36, -1e+30  ;;  %v6309_v8 = vsel %vm1851_vm3, %v1681_v46, -1e+30 }
 0x434   : > { %1938 = vmax.xlane.f32.xlu0 %v6243_v49  ;;  %1988 = vmax.xlane.f32.xlu1 %v6239_v48 }
 0x436   : > { %v4728_v50 = vpop.f32.mrb[12].mxu1  ;;  %v4760_v11 = vpop.f32.mrb[24].mxu0 }
 0x437   : > { %v1462_v23 = vpop.f32.mrb[13].mxu1  ;;  %v1694_v52 = vpop.f32.mrb[25].mxu0  ;;  %v6289_v45 = vsel %vm1851_vm3, %v4728_v50, -1e+30  ;;  %v6299_v6 = vsel %vm1851_vm3, %v4760_v11, -1e+30 }
 0x438   : > { %v4729_v28 = vpop.f32.mrb[14].mxu1  ;;  %1928 = vmax.xlane.f32.xlu1 %v6249_v51  ;;  %1994 = vmax.xlane.f32.xlu0 %v6253_v44  ;;  %v4761_v53 = vpop.f32.mrb[26].mxu0  ;;  %v6313_v9 = vsel %vm1851_vm3, %v1462_v23, -1e+30  ;;  %v6319_v43 = vsel %vm1851_vm3, %v1694_v52, -1e+30 }
 0x439   : > { %v1465_v57 = vpop.f32.mrb[15].mxu1  ;;  %v1697_v17 = vpop.f32.mrb[27].mxu0  ;;  %v6323_v0 = vsel %vm1851_vm3, %v4729_v28, -1e+30  ;;  %v6333_v22 = vsel %vm1851_vm3, %v4761_v53, -1e+30 }
 0x43a   : > { %v6343_v27 = vsel %vm1851_vm3, %v1465_v57, -1e+30  ;;  %v6357_v40 = vsel %vm1851_vm3, %v1697_v17, -1e+30 }
 0x43c   : > { %1984 = vmax.xlane.f32.xlu1 %v6259_v37  ;;  %1934 = vmax.xlane.f32.xlu0 %v6263_v35 }
 0x43e   : > { %v4734_v58 = vpop.f32.mrb[16].mxu1  ;;  %v4764_v59 = vpop.f32.mrb[28].mxu0 }
 0x43f   : > { %v1538_v62 = vpop.f32.mrb[17].mxu1  ;;  %v1710_v63 = vpop.f32.mrb[29].mxu0  ;;  %v6337_v16 = vsel %vm1851_vm3, %v4764_v59, -1e+30  ;;  %v6367_v36 = vsel %vm1851_vm3, %v4734_v58, -1e+30 }
 0x440   : > { %v4735_v21 = vpop.f32.mrb[18].mxu1  ;;  %1940 = vmax.xlane.f32.xlu1 %v6273_v61  ;;  %1990 = vmax.xlane.f32.xlu0 %v6269_v60  ;;  %v6277_v47 = vpop.f32.mrb[30].mxu0  ;;  %7757 = vst [vmem:[#allocation10_spill] sm:$0xff] %v6337_v16  ;;  %v6347_v56 = vsel %vm1851_vm3, %v1710_v63, -1e+30 }
 0x441   : > { %v6279_v2 = vpop.f32.mrb[19].mxu1  ;;  %v6281_v3 = vpop.f32.mrb[31].mxu0  ;;  %7758 = vst [vmem:[#allocation11_spill] sm:$0xff] %v6347_v56  ;;  %v6377_v52 = vsel %vm1851_vm3, %v1538_v62, -1e+30 }
 0x442   : > { %v6387_v57 = vsel %vm1851_vm3, %v4735_v21, -1e+30  ;;  %v6398_v63 = vsel %vm1851_vm3, %v6277_v47, -1e+30 }
 0x443   : > { %7759 = vst [vmem:[#allocation12_spill] sm:$0xff] %v6398_v63 }
 0x444   : > { %1946 = vmax.xlane.f32.xlu0 %v6289_v45  ;;  %1996 = vmax.xlane.f32.xlu1 %v6285_v4 }
 0x446   : > { %v4738_v25 = vpop.f32.mrb[20].mxu1 }
 0x447   : > { %v1554_v13 = vpop.f32.mrb[21].mxu1  ;;  %v6361_v41 = vsel %vm1851_vm3, %v4738_v25, -1e+30 }
 0x448   : > { %v6301_v7 = vpop.f32.mrb[22].mxu1  ;;  %1936 = vmax.xlane.f32.xlu1 %v6295_v5  ;;  %2002 = vmax.xlane.f32.xlu0 %v6299_v6  ;;  %v6371_v46 = vsel %vm1851_vm3, %v1554_v13, -1e+30  ;;  %v6409_v13 = vsel %vm1851_vm3, %v6279_v2, -1e+30 }
 0x449   : > { %v6305_v12 = vpop.f32.mrb[23].mxu1 }
 0x44c   : > { %1992 = vmax.xlane.f32.xlu1 %v6309_v8  ;;  %1942 = vmax.xlane.f32.xlu0 %v6313_v9 }
 0x44e   : > { %v4742_v54 = vpop.f32.mrb[24].mxu1 }
 0x44f   : > { %v1570_v18 = vpop.f32.mrb[25].mxu1  ;;  %v6381_v28 = vsel %vm1851_vm3, %v4742_v54, -1e+30 }
 0x450   : > { %v6325_v19 = vpop.f32.mrb[26].mxu1  ;;  %1948 = vmax.xlane.f32.xlu1 %v6323_v0  ;;  %1998 = vmax.xlane.f32.xlu0 %v6319_v43  ;;  %v6391_v17 = vsel %vm1851_vm3, %v1570_v18, -1e+30 }
 0x451   : > { %v6329_v24 = vpop.f32.mrb[27].mxu1 }
 0x454   : > { %2004 = vmax.xlane.f32.xlu1 %v6333_v22  ;;  %2010 = vmax.xlane.f32.xlu0 %v6337_v16  ;;  %v6431_v16 = vsel %vm1851_vm3, %v6301_v7, -1e+30 }
 0x456   : > { %v4746_v26 = vpop.f32.mrb[28].mxu1 }
 0x457   : > { %v1586_v34 = vpop.f32.mrb[29].mxu1  ;;  %v6402_v21 = vsel %vm1851_vm3, %v4746_v26, -1e+30 }
 0x458   : > { %v6349_v20 = vpop.f32.mrb[30].mxu1  ;;  %1944 = vmax.xlane.f32.xlu1 %v6343_v27  ;;  %2006 = vmax.xlane.f32.xlu0 %v6347_v56  ;;  %v6413_v54 = vsel %vm1851_vm3, %v1586_v34, -1e+30 }
 0x459   : > { %v6353_v39 = vpop.f32.mrb[31].mxu1 }
 0x45c   : > { %2000 = vmax.xlane.f32.xlu1 %v6357_v40  ;;  %1962 = vmax.xlane.f32.xlu0 %v6361_v41 }
 0x45e   : > { %v4770_v10 = vpop.f32.mrb[32].mxu1 }
 0x45f   : > { %v1786_v50 = vpop.f32.mrb[33].mxu1  ;;  %v6424_v2 = vsel %vm1851_vm3, %v4770_v10, -1e+30 }
 0x460   : > { %v4771_v11 = vpop.f32.mrb[34].mxu1  ;;  %1954 = vmax.xlane.f32.xlu1 %v6367_v36  ;;  %1958 = vmax.xlane.f32.xlu0 %v6371_v46  ;;  %7761 = vst [vmem:[#allocation14_spill] sm:$0xff] %v6424_v2  ;;  %v6435_v56 = vsel %vm1851_vm3, %v1786_v50, -1e+30  ;;  %v6453_v50 = vsel %vm1851_vm3, %v6325_v19, -1e+30 }
 0x461   : > { %v1789_v23 = vpop.f32.mrb[35].mxu1  ;;  %v6475_v19 = vsel %vm1851_vm3, %v6349_v20, -1e+30  ;;  %v6496_v20 = vsel %vm1851_vm3, %v4771_v11, -1e+30 }
 0x464   : > { %1950 = vmax.xlane.f32.xlu1 %v6377_v52  ;;  %1970 = vmax.xlane.f32.xlu0 %v6381_v28 }
 0x466   : > { %v4774_v53 = vpop.f32.mrb[36].mxu1 }
 0x467   : > { %v1802_v58 = vpop.f32.mrb[37].mxu1  ;;  %v6446_v7 = vsel %vm1851_vm3, %v4774_v53, -1e+30 }
 0x468   : > { %v4775_v59 = vpop.f32.mrb[38].mxu1  ;;  %1956 = vmax.xlane.f32.xlu1 %v6387_v57  ;;  %1966 = vmax.xlane.f32.xlu0 %v6391_v17  ;;  %7762 = vst [vmem:[#allocation15_spill] sm:$0xff] %v6446_v7 }
 0x469   : > { %v1805_v62 = vpop.f32.mrb[39].mxu1 }
 0x46a   : > { %v6516_v11 = vsel %vm1851_vm3, %v1805_v62, -1e+30 }
 0x46b   : > { %7766 = vst [vmem:[#allocation19_spill] sm:$0xff] %v6516_v11 }
 0x46c   : > { %1978 = vmax.xlane.f32.xlu0 %v6402_v21  ;;  %2012 = vmax.xlane.f32.xlu1 %v6398_v63  ;;  %v6420_v63 = vsel %vm1851_vm3, %v6281_v3, -1e+30 }
 0x46d   : > { %7760 = vst [vmem:[#allocation13_spill] sm:$0xff] %v6420_v63 }
 0x46e   : > { %v4778_v25 = vpop.f32.mrb[40].mxu1 }
 0x46f   : > { %v1818_v47 = vpop.f32.mrb[41].mxu1  ;;  %v6468_v53 = vsel %vm1851_vm3, %v4778_v25, -1e+30 }
 0x470   : > { %v4779_v18 = vpop.f32.mrb[42].mxu1  ;;  %1974 = vmax.xlane.f32.xlu0 %v6413_v54  ;;  %1952 = vmax.xlane.f32.xlu1 %v6409_v13  ;;  %7763 = vst [vmem:[#allocation16_spill] sm:$0xff] %v6468_v53 }
 0x471   : > { %v1821_v26 = vpop.f32.mrb[43].mxu1 }
 0x474   : > { %2018 = vmax.xlane.f32.xlu0 %v6424_v2  ;;  %2008 = vmax.xlane.f32.xlu1 %v6420_v63  ;;  %v6442_v63 = vsel %vm1851_vm3, %v6305_v12, -1e+30  ;;  %v6457_v2 = vsel %vm1851_vm3, %v1802_v58, -1e+30  ;;  %v6464_v12 = vsel %vm1851_vm3, %v6329_v24, -1e+30 }
 0x475   : > { %v6479_v58 = vsel %vm1851_vm3, %v1818_v47, -1e+30  ;;  %v6486_v24 = vsel %vm1851_vm3, %v6353_v39, -1e+30  ;;  %v6506_v39 = vsel %vm1851_vm3, %v1789_v23, -1e+30 }
 0x476   : > { %v4782_v34 = vpop.f32.mrb[44].mxu1  ;;  %7764 = vst [vmem:[#allocation17_spill] sm:$0xff] %v6506_v39  ;;  %v6526_v23 = vsel %vm1851_vm3, %v1821_v26, -1e+30 }
 0x477   : > { %v1834_v3 = vpop.f32.mrb[45].mxu1  ;;  %v6490_v25 = vsel %vm1851_vm3, %v4782_v34, -1e+30  ;;  %v6511_v34 = vsel %vm1851_vm3, %v4775_v59, -1e+30  ;;  %7768 = vst [vmem:[#allocation21_spill] sm:$0xff] %v6526_v23 }
 0x478   : > { %2014 = vmax.xlane.f32.xlu0 %v6435_v56  ;;  %1964 = vmax.xlane.f32.xlu1 %v6431_v16  ;;  %v4783_v10 = vpop.f32.mrb[46].mxu1  ;;  %v6500_v47 = vsel %vm1851_vm3, %v1834_v3, -1e+30  ;;  %7765 = vst [vmem:[#allocation18_spill] sm:$0xff] %v6511_v34  ;;  %v6521_v3 = vsel %vm1851_vm3, %v4779_v18, -1e+30 }
 0x479   : > { %v1837_v29 = vpop.f32.mrb[47].mxu1  ;;  %7767 = vst [vmem:[#allocation20_spill] sm:$0xff] %v6521_v3  ;;  %v6531_v59 = vsel %vm1851_vm3, %v4783_v10, -1e+30 }
 0x47a   : > { %7769 = vst [vmem:[#allocation22_spill] sm:$0xff] %v6531_v59  ;;  %v6536_v62 = vsel %vm1851_vm3, %v1837_v29, -1e+30 }
 0x47b   : > { %7770 = vst [vmem:[#allocation23_spill] sm:$0xff] %v6536_v62 }
 0x47c   : > { %2026 = vmax.xlane.f32.xlu0 %v6446_v7  ;;  %1960 = vmax.xlane.f32.xlu1 %v6442_v63 }
 0x480   : > { %2022 = vmax.xlane.f32.xlu0 %v6457_v2  ;;  %1972 = vmax.xlane.f32.xlu1 %v6453_v50 }
 0x484   : > { %2034 = vmax.xlane.f32.xlu0 %v6468_v53  ;;  %1968 = vmax.xlane.f32.xlu1 %v6464_v12 }
 0x488   : > { %2030 = vmax.xlane.f32.xlu0 %v6479_v58  ;;  %1980 = vmax.xlane.f32.xlu1 %v6475_v19 }
 0x48c   : > { %1976 = vmax.xlane.f32.xlu1 %v6486_v24  ;;  %2042 = vmax.xlane.f32.xlu0 %v6490_v25 }
 0x490   : > { %2020 = vmax.xlane.f32.xlu1 %v6496_v20  ;;  %2038 = vmax.xlane.f32.xlu0 %v6500_v47 }
 0x494   : > { %2016 = vmax.xlane.f32.xlu1 %v6506_v39 }
 0x498   : > { %2028 = vmax.xlane.f32.xlu1 %v6511_v34 }
 0x49c   : > { %2024 = vmax.xlane.f32.xlu1 %v6516_v11 }
 0x4a0   : > { %2036 = vmax.xlane.f32.xlu1 %v6521_v3 }
 0x4a4   : > { %2032 = vmax.xlane.f32.xlu1 %v6526_v23 }
 0x4a8   : > { %2044 = vmax.xlane.f32.xlu1 %v6531_v59 }
 0x4ac   : > { %2040 = vmax.xlane.f32.xlu1 %v6536_v62 }
 0x4ad   : > { %v1923_v18 = vpop.xlane.xlu1 %1922 }
 0x4ae   : > { %v2048_v3 = vsub.f32 %v6194_v32, %v1923_v18 }
 0x4b0   : > { %v2114_v11 = vmul.f32 1.442695, %v2048_v3  ;;  %v1921_v26 = vpop.xlane.xlu0 %1920 }
 0x4b1   : > { %v2047_v53 = vsub.f32 %v6199_v14, %v1921_v26  ;;  %v1919_v23 = vpop.xlane.xlu1 %1918 }
 0x4b2   : > { %5142 = vpow2.f32 %v2114_v11  ;;  %v2046_v10 = vsub.f32 %v6203_v15, %v1919_v23 }
 0x4b3   : > { %v2112_v34 = vmul.f32 1.442695, %v2047_v53 }
 0x4b4   : > { %v2110_v7 = vmul.f32 1.442695, %v2046_v10 }
 0x4b5   : > { %5144 = vpow2.f32 %v2112_v34  ;;  %v1925_v59 = vpop.xlane.xlu1 %1924  ;;  %v1931_v31 = vpop.xlane.xlu0 %1930 }
 0x4b6   : > { %5146 = vpow2.f32 %v2110_v7  ;;  %v2049_v29 = vsub.f32 %v6209_v42, %v1925_v59  ;;  %v2052_v62 = vsub.f32 %v6213_v55, %v1931_v31 }
 0x4b8   : > { %v2116_v39 = vmul.f32 1.442695, %v2049_v29  ;;  %v2122_v32 = vmul.f32 1.442695, %v2052_v62 }
 0x4b9   : > { %v1927_v3 = vpop.xlane.xlu1 %1926  ;;  %v1987_v18 = vpop.xlane.xlu0 %1986 }
 0x4ba   : > { %5148 = vpow2.f32 %v2116_v39  ;;  %v2050_v14 = vsub.f32 %v6219_v30, %v1927_v3  ;;  %v2080_v11 = vsub.f32 %v6223_v33, %v1987_v18 }
 0x4bb   : > { %5150 = vpow2.f32 %v2122_v32 }
 0x4bc   : > { %v6546_v15 = vpop.eup %5142  ;;  %v2118_v53 = vmul.f32 1.442695, %v2050_v14  ;;  %v2178_v34 = vmul.f32 1.442695, %v2080_v11 }
 0x4bd   : > { %v1933_v23 = vpop.xlane.xlu1 %1932  ;;  %2242 = vadd.xlane.f32.xlu0 %v6546_v15  ;;  %v1983_v42 = vpop.xlane.xlu0 %1982 }
 0x4be   : > { %5152 = vpow2.f32 %v2118_v53  ;;  %v2078_v55 = vsub.f32 %v6233_v1, %v1983_v42  ;;  %v2053_v39 = vsub.f32 %v6229_v38, %v1933_v23 }
 0x4bf   : > { %v6550_v7 = vpop.eup %5144  ;;  %5154 = vpow2.f32 %v2178_v34 }
 0x4c0   : > { %v6553_v30 = vpop.eup %5146  ;;  %v2174_v33 = vmul.f32 1.442695, %v2078_v55  ;;  %v2124_v26 = vmul.f32 1.442695, %v2053_v39 }
 0x4c1   : > { %v1989_v59 = vpop.xlane.xlu1 %1988  ;;  %2238 = vadd.xlane.f32.xlu1 %v6553_v30  ;;  %2240 = vadd.xlane.f32.xlu0 %v6550_v7  ;;  %v1939_v62 = vpop.xlane.xlu0 %1938 }
 0x4c2   : > { %5156 = vpow2.f32 %v2174_v33  ;;  %v2081_v10 = vsub.f32 %v6239_v48, %v1989_v59  ;;  %v2056_v34 = vsub.f32 %v6243_v49, %v1939_v62 }
 0x4c3   : > { %5158 = vpow2.f32 %v2124_v26 }
 0x4c4   : > { %v6558_v31 = vpop.eup %5148  ;;  %v2180_v3 = vmul.f32 1.442695, %v2081_v10  ;;  %v2130_v26 = vmul.f32 1.442695, %v2056_v34 }
 0x4c5   : > { %v6560_v1 = vpop.eup %5150  ;;  %v1929_v29 = vpop.xlane.xlu1 %1928  ;;  %2244 = vadd.xlane.f32.xlu1 %v6558_v31 }
 0x4c6   : > { %v1995_v38 = vpop.xlane.xlu0 %1994  ;;  %v2051_v32 = vsub.f32 %v6249_v51, %v1929_v29  ;;  %2250 = vadd.xlane.f32.xlu0 %v6560_v1 }
 0x4c7   : > { %v2084_v10 = vsub.f32 %v6253_v44, %v1995_v38 }
 0x4c8   : > { %v6565_v18 = vpop.eup %5152  ;;  %v2120_v14 = vmul.f32 1.442695, %v2051_v32 }
 0x4c9   : > { %v6567_v11 = vpop.eup %5154  ;;  %v1985_v48 = vpop.xlane.xlu1 %1984  ;;  %2246 = vadd.xlane.f32.xlu1 %v6565_v18 }
 0x4ca   : > { %v1935_v53 = vpop.xlane.xlu0 %1934  ;;  %5160 = vpow2.f32 %v2120_v14  ;;  %v2079_v23 = vsub.f32 %v6259_v37, %v1985_v48  ;;  %2306 = vadd.xlane.f32.xlu0 %v6567_v11 }
 0x4cb   : > { %v2054_v51 = vsub.f32 %v6263_v35, %v1935_v53  ;;  %5162 = vpow2.f32 %v2180_v3  ;;  %v2186_v3 = vmul.f32 1.442695, %v2084_v10 }
 0x4cc   : > { %v2176_v42 = vmul.f32 1.442695, %v2079_v23  ;;  %v6574_v39 = vpop.eup %5156 }
 0x4cd   : > { %v2126_v55 = vmul.f32 1.442695, %v2054_v51  ;;  %v1941_v33 = vpop.xlane.xlu1 %1940  ;;  %2302 = vadd.xlane.f32.xlu1 %v6574_v39  ;;  %v6580_v35 = vpop.eup %5158 }
 0x4ce   : > { %v1991_v59 = vpop.xlane.xlu0 %1990  ;;  %5164 = vpow2.f32 %v2176_v42  ;;  %v2057_v37 = vsub.f32 %v6273_v61, %v1941_v33 }
 0x4cf   : > { %v2082_v49 = vsub.f32 %v6269_v60, %v1991_v59  ;;  %5166 = vpow2.f32 %v2126_v55 }
 0x4d0   : > { %5168 = vpow2.f32 %v2130_v26  ;;  %v2132_v14 = vmul.f32 1.442695, %v2057_v37 }
 0x4d1   : > { %v2182_v62 = vmul.f32 1.442695, %v2082_v49  ;;  %v1997_v29 = vpop.xlane.xlu1 %1996  ;;  %2252 = vadd.xlane.f32.xlu1 %v6580_v35 }
 0x4d2   : > { %v1947_v32 = vpop.xlane.xlu0 %1946  ;;  %v2085_v44 = vsub.f32 %v6285_v4, %v1997_v29 }
 0x4d3   : > { %5170 = vpow2.f32 %v2182_v62  ;;  %v2060_v33 = vsub.f32 %v6289_v45, %v1947_v32 }
 0x4d4   : > { %v6584_v38 = vpop.eup %5160  ;;  %5172 = vpow2.f32 %v2186_v3  ;;  %v2188_v34 = vmul.f32 1.442695, %v2085_v44 }
 0x4d5   : > { %v6586_v48 = vpop.eup %5162  ;;  %v1937_v60 = vpop.xlane.xlu1 %1936  ;;  %2248 = vadd.xlane.f32.xlu0 %v6584_v38  ;;  %5174 = vpow2.f32 %v2132_v14  ;;  %v2138_v3 = vmul.f32 1.442695, %v2060_v33 }
 0x4d6   : > { %v2003_v61 = vpop.xlane.xlu0 %2002  ;;  %v2055_v53 = vsub.f32 %v6295_v5, %v1937_v60  ;;  %2308 = vadd.xlane.f32.xlu1 %v6586_v48 }
 0x4d7   : > { %v2088_v45 = vsub.f32 %v6299_v6, %v2003_v61 }
 0x4d8   : > { %v6591_v23 = vpop.eup %5164  ;;  %v2128_v51 = vmul.f32 1.442695, %v2055_v53 }
 0x4d9   : > { %v6593_v42 = vpop.eup %5166  ;;  %v1993_v4 = vpop.xlane.xlu1 %1992  ;;  %2304 = vadd.xlane.f32.xlu0 %v6591_v23  ;;  %v2194_v6 = vmul.f32 1.442695, %v2088_v45 }
 0x4da   : > { %v1943_v55 = vpop.xlane.xlu0 %1942  ;;  %5176 = vpow2.f32 %v2128_v51  ;;  %v2083_v59 = vsub.f32 %v6309_v8, %v1993_v4  ;;  %2254 = vadd.xlane.f32.xlu1 %v6593_v42  ;;  %v6600_v26 = vpop.eup %5168 }
 0x4db   : > { %v2058_v5 = vsub.f32 %v6313_v9, %v1943_v55  ;;  %5178 = vpow2.f32 %v2188_v34 }
 0x4dc   : > { %v2184_v10 = vmul.f32 1.442695, %v2083_v59 }
 0x4dd   : > { %v2134_v49 = vmul.f32 1.442695, %v2058_v5  ;;  %v6602_v37 = vpop.eup %5170  ;;  %v1949_v62 = vpop.xlane.xlu1 %1948  ;;  %2258 = vadd.xlane.f32.xlu0 %v6600_v26 }
 0x4de   : > { %v1999_v29 = vpop.xlane.xlu0 %1998  ;;  %5180 = vpow2.f32 %v2184_v10  ;;  %2310 = vadd.xlane.f32.xlu1 %v6602_v37  ;;  %v2061_v9 = vsub.f32 %v6323_v0, %v1949_v62  ;;  %v6609_v32 = vpop.eup %5172 }
 0x4df   : > { %v2086_v8 = vsub.f32 %v6319_v43, %v1999_v29  ;;  %5182 = vpow2.f32 %v2134_v49  ;;  %v6611_v44 = vpop.eup %5174 }
 0x4e0   : > { %5184 = vpow2.f32 %v2138_v3  ;;  %v2140_v61 = vmul.f32 1.442695, %v2061_v9 }
 0x4e1   : > { %v2190_v14 = vmul.f32 1.442695, %v2086_v8  ;;  %v2005_v60 = vpop.xlane.xlu1 %2004  ;;  %2314 = vadd.xlane.f32.xlu0 %v6609_v32 }
 0x4e2   : > { %v6614_v53 = vpop.xlane.xlu0 %2010  ;;  %2260 = vadd.xlane.f32.xlu1 %v6611_v44  ;;  %v2089_v43 = vsub.f32 %v6333_v22, %v2005_v60 }
 0x4e3   : > { %5186 = vpow2.f32 %v2190_v14 }
 0x4e4   : > { %v6618_v34 = vpop.eup %5176  ;;  %5188 = vpow2.f32 %v2194_v6  ;;  %v2196_v33 = vmul.f32 1.442695, %v2089_v43 }
 0x4e5   : > { %v6620_v0 = vpop.eup %5178  ;;  %v1945_v51 = vpop.xlane.xlu1 %1944  ;;  %2256 = vadd.xlane.f32.xlu0 %v6618_v34  ;;  %5190 = vpow2.f32 %v2140_v61 }
 0x4e6   : > { %v6623_v4 = vpop.xlane.xlu0 %2006  ;;  %v2059_v55 = vsub.f32 %v6343_v27, %v1945_v51  ;;  %2316 = vadd.xlane.f32.xlu1 %v6620_v0 }
 0x4e8   : > { %v6627_v59 = vpop.eup %5180  ;;  %v2136_v5 = vmul.f32 1.442695, %v2059_v55 }
 0x4e9   : > { %v6629_v22 = vpop.eup %5182  ;;  %v2001_v10 = vpop.xlane.xlu1 %2000  ;;  %2312 = vadd.xlane.f32.xlu0 %v6627_v59 }
 0x4ea   : > { %v1963_v49 = vpop.xlane.xlu0 %1962  ;;  %5192 = vpow2.f32 %v2136_v5  ;;  %v2087_v62 = vsub.f32 %v6357_v40, %v2001_v10  ;;  %2262 = vadd.xlane.f32.xlu1 %v6629_v22  ;;  %v6634_v27 = vpop.eup %5184 }
 0x4eb   : > { %5194 = vpow2.f32 %v2196_v33 }
 0x4ec   : > { %v2192_v29 = vmul.f32 1.442695, %v2087_v62 }
 0x4ed   : > { %v6636_v3 = vpop.eup %5186  ;;  %v1955_v45 = vpop.xlane.xlu1 %1954  ;;  %2266 = vadd.xlane.f32.xlu0 %v6634_v27 }
 0x4ee   : > { %7771 = vst [vmem:[#allocation24_spill] sm:$0xff] %v6636_v3  ;;  %v1959_v8 = vpop.xlane.xlu0 %1958  ;;  %5196 = vpow2.f32 %v2192_v29  ;;  %v2064_v9 = vsub.f32 %v6367_v36, %v1955_v45  ;;  %2318 = vadd.xlane.f32.xlu1 %v6636_v3  ;;  %v6641_v14 = vpop.eup %5188 }
 0x4ef   : > { %7772 = vst [vmem:[#allocation25_spill] sm:$0xff] %v6641_v14  ;;  %v6643_v60 = vpop.eup %5190  ;;  %v2066_v6 = vsub.f32 %v6371_v46, %v1959_v8 }
 0x4f0   : > { %v2146_v40 = vmul.f32 1.442695, %v2064_v9 }
 0x4f1   : > { %v1951_v61 = vpop.xlane.xlu1 %1950  ;;  %2322 = vadd.xlane.f32.xlu0 %v6641_v14  ;;  %v2150_v5 = vmul.f32 1.442695, %v2066_v6 }
 0x4f2   : > { %v1971_v43 = vpop.xlane.xlu0 %1970  ;;  %5198 = vpow2.f32 %v2146_v40  ;;  %v2062_v51 = vsub.f32 %v6377_v52, %v1951_v61  ;;  %2268 = vadd.xlane.f32.xlu1 %v6643_v60 }
 0x4f4   : > { %v6649_v55 = vpop.eup %5192  ;;  %v2142_v36 = vmul.f32 1.442695, %v2062_v51  ;;  %v2068_v51 = vsub.f32 %v6361_v41, %v1963_v49 }
 0x4f5   : > { %v6651_v33 = vpop.eup %5194  ;;  %v1957_v10 = vpop.xlane.xlu1 %1956  ;;  %2264 = vadd.xlane.f32.xlu0 %v6649_v55 }
 0x4f6   : > { %7773 = vst [vmem:[#allocation26_spill] sm:$0xff] %v6651_v33  ;;  %v1967_v62 = vpop.xlane.xlu0 %1966  ;;  %5200 = vpow2.f32 %v2142_v36  ;;  %v2065_v46 = vsub.f32 %v6387_v57, %v1957_v10  ;;  %2324 = vadd.xlane.f32.xlu1 %v6651_v33 }
 0x4f7   : > { %v2070_v29 = vsub.f32 %v6391_v17, %v1967_v62  ;;  %5202 = vpow2.f32 %v2150_v5 }
 0x4f8   : > { %v6657_v52 = vpop.eup %5196  ;;  %v2148_v45 = vmul.f32 1.442695, %v2065_v46 }
 0x4f9   : > { %7774 = vst [vmem:[#allocation27_spill] sm:$0xff] %v6657_v52  ;;  %v6659_v8 = vpop.xlane.xlu1 %2012  ;;  %2320 = vadd.xlane.f32.xlu0 %v6657_v52  ;;  %v2158_v40 = vmul.f32 1.442695, %v2070_v29  ;;  %v2154_v29 = vmul.f32 1.442695, %v2068_v51 }
 0x4fa   : > { %v1979_v9 = vpop.xlane.xlu0 %1978  ;;  %5204 = vpow2.f32 %v2148_v45 }
 0x4fb   : > { %5206 = vpow2.f32 %v2158_v40 }
 0x4fc   : > { %v6662_v6 = vpop.eup %5198 }
 0x4fd   : > { %v1953_v61 = vpop.xlane.xlu1 %1952  ;;  %2274 = vadd.xlane.f32.xlu1 %v6662_v6 }
 0x4fe   : > { %v1975_v57 = vpop.xlane.xlu0 %1974  ;;  %v2063_v17 = vsub.f32 %v6409_v13, %v1953_v61  ;;  %v2072_v61 = vsub.f32 %v6381_v28, %v1971_v43 }
 0x4ff   : > { %v2074_v36 = vsub.f32 %v6413_v54, %v1975_v57 }
 0x500   : > { %v6668_v5 = vpop.eup %5200  ;;  %v2144_v10 = vmul.f32 1.442695, %v2063_v17 }
 0x501   : > { %v2166_v62 = vmul.f32 1.442695, %v2074_v36  ;;  %v6670_v46 = vpop.xlane.xlu1 %2008  ;;  %2270 = vadd.xlane.f32.xlu0 %v6668_v5  ;;  %v6673_v45 = vpop.eup %5202 }
 0x502   : > { %5208 = vpow2.f32 %v2144_v10  ;;  %7775 = vst [vmem:[#allocation28_spill] sm:$0xff] %v6673_v45 }
 0x503   : > { %5210 = vpow2.f32 %v2166_v62 }
 0x504   : > { %v6675_v14 = vpop.eup %5204  ;;  %5212 = vpow2.f32 %v2154_v29 }
 0x505   : > { %v1965_v41 = vpop.xlane.xlu1 %1964  ;;  %2276 = vadd.xlane.f32.xlu1 %v6675_v14  ;;  %2278 = vadd.xlane.f32.xlu0 %v6673_v45  ;;  %v6680_v54 = vpop.eup %5206 }
 0x506   : > { %v2069_v13 = vsub.f32 %v6431_v16, %v1965_v41  ;;  %7776 = vst [vmem:[#allocation29_spill] sm:$0xff] %v6680_v54  ;;  %v2162_v16 = vmul.f32 1.442695, %v2072_v61  ;;  %v6704_v61 = vpop.xlane.xlu0 %2018 }
 0x508   : > { %v2156_v49 = vmul.f32 1.442695, %v2069_v13 }
 0x509   : > { %v1961_v40 = vpop.xlane.xlu1 %1960  ;;  %2286 = vadd.xlane.f32.xlu0 %v6680_v54 }
 0x50a   : > { %5214 = vpow2.f32 %v2156_v49  ;;  %v2067_v57 = vsub.f32 %v6442_v63, %v1961_v40  ;;  %v2076_v49 = vsub.f32 %v6402_v21, %v1979_v9 }
 0x50c   : > { %v6685_v51 = vpop.eup %5208  ;;  %v2152_v17 = vmul.f32 1.442695, %v2067_v57  ;;  %v2170_v57 = vmul.f32 1.442695, %v2076_v49 }
 0x50d   : > { %v6687_v36 = vpop.eup %5210  ;;  %v1973_v10 = vpop.xlane.xlu1 %1972  ;;  %2272 = vadd.xlane.f32.xlu1 %v6685_v51 }
 0x50e   : > { %5216 = vpow2.f32 %v2152_v17  ;;  %v2073_v62 = vsub.f32 %v6453_v50, %v1973_v10  ;;  %2294 = vadd.xlane.f32.xlu0 %v6687_v36  ;;  %v6692_v29 = vpop.eup %5212  ;;  %v2015_v10 = vpop.xlane.xlu0 %2014 }
 0x50f   : > { %5218 = vpow2.f32 %v2162_v16 }
 0x510   : > { %v2164_v63 = vmul.f32 1.442695, %v2073_v62  ;;  %v7782_v62 = vld [vmem:[#allocation9_spill] sm:$0xff] }
 0x511   : > { %v1969_v28 = vpop.xlane.xlu1 %1968  ;;  %2282 = vadd.xlane.f32.xlu1 %v6692_v29 }
 0x512   : > { %v2071_v43 = vsub.f32 %v6464_v12, %v1969_v28  ;;  %5220 = vpow2.f32 %v2164_v63  ;;  %v6721_v28 = vpop.xlane.xlu0 %2026 }
 0x514   : > { %v6696_v41 = vpop.eup %5214  ;;  %v2160_v50 = vmul.f32 1.442695, %v2071_v43 }
 0x515   : > { %7777 = vst [vmem:[#allocation30_spill] sm:$0xff] %v6696_v41  ;;  %v6698_v13 = vpop.xlane.xlu1 %1980  ;;  %2284 = vadd.xlane.f32.xlu1 %v6696_v41 }
 0x516   : > { %5222 = vpow2.f32 %v2160_v50  ;;  %v2023_v49 = vpop.xlane.xlu0 %2022 }
 0x517   : > { %5224 = vpow2.f32 %v2170_v57  ;;  %v2094_v57 = vsub.f32 %v6435_v56, %v2015_v10  ;;  %v2098_v3 = vsub.f32 %v6457_v2, %v2023_v49 }
 0x518   : > { %v6702_v40 = vpop.eup %5216 }
 0x519   : > { %7778 = vst [vmem:[#allocation31_spill] sm:$0xff] %v6702_v40  ;;  %2280 = vadd.xlane.f32.xlu1 %v6702_v40  ;;  %v6707_v17 = vpop.xlane.xlu1 %1976  ;;  %v6709_v12 = vpop.eup %5218  ;;  %v2206_v40 = vmul.f32 1.442695, %v2094_v57  ;;  %v2214_v56 = vmul.f32 1.442695, %v2098_v3 }
 0x51a   : > { %7779 = vst [vmem:[#allocation32_spill] sm:$0xff] %v6709_v12  ;;  %v6732_v54 = vpop.xlane.xlu0 %2034 }
 0x51b   : > { %5226 = vpow2.f32 %v2206_v40 }
 0x51c   : > { %v6712_v16 = vpop.eup %5220 }
 0x51d   : > { %2290 = vadd.xlane.f32.xlu1 %v6709_v12  ;;  %7780 = vst [vmem:[#allocation33_spill] sm:$0xff] %v6712_v16  ;;  %v6714_v21 = vpop.xlane.xlu1 %2020  ;;  %v7784_v12 = vld [vmem:[#allocation11_spill] sm:$0xff] }
 0x51e   : > { %v2090_v33 = vsub.f32 %v7784_v12, %v6623_v4  ;;  %v7785_v4 = vld [vmem:[#allocation10_spill] sm:$0xff] }
 0x51f   : > { %v2092_v12 = vsub.f32 %v7785_v4, %v6614_v53 }
 0x520   : > { %v6717_v9 = vpop.eup %5222  ;;  %v2198_v45 = vmul.f32 1.442695, %v2090_v33 }
 0x521   : > { %2292 = vadd.xlane.f32.xlu1 %v6712_v16  ;;  %7781 = vst [vmem:[#allocation34_spill] sm:$0xff] %v6717_v9  ;;  %v6724_v63 = vpop.xlane.xlu1 %2016  ;;  %v6726_v43 = vpop.eup %5224  ;;  %v2202_v49 = vmul.f32 1.442695, %v2092_v12 }
 0x522   : > { %7783 = vst [vmem:[#allocation9_spill] sm:$0xff] %v6726_v43  ;;  %5228 = vpow2.f32 %v2198_v45 }
 0x523   : > { %5230 = vpow2.f32 %v2214_v56  ;;  %v2077_v56 = vsub.f32 %v6475_v19, %v6698_v13 }
 0x524   : > { %1208 = vrot.lane.b32.xlu0 %v7782_v62, %s5583_s22  ;;  %s7741_s22 = smov 8  }
 0x525   : > { %2288 = vadd.xlane.f32.xlu1 %v6717_v9  ;;  %v6729_v50 = vpop.xlane.xlu1 %2028  ;;  %v2031_v9 = vpop.xlane.xlu0 %2030 }
 0x526   : > { %v2102_v10 = vsub.f32 %v6479_v58, %v2031_v9  ;;  %v6748_v40 = vpop.eup %5226 }
 0x528   : > { %v2222_v33 = vmul.f32 1.442695, %v2102_v10 }
 0x529   : > { %2298 = vadd.xlane.f32.xlu1 %v6726_v43  ;;  %v6734_v16 = vpop.xlane.xlu1 %2024  ;;  %v2043_v43 = vpop.xlane.xlu0 %2042 }
 0x52a   : > { %5232 = vpow2.f32 %v2222_v33  ;;  %v2108_v12 = vsub.f32 %v6490_v25, %v2043_v43  ;;  %v7787_v25 = vld [vmem:[#allocation14_spill] sm:$0xff] }
 0x52b   : > { %5234 = vpow2.f32 %v2202_v49  ;;  %v2096_v43 = vsub.f32 %v7787_v25, %v6704_v61 }
 0x52c   : > { %v6755_v58 = vpop.eup %5228  ;;  %v2234_v19 = vmul.f32 1.442695, %v2108_v12 }
 0x52d   : > { %v6739_v52 = vpop.xlane.xlu1 %2036  ;;  %v2039_v2 = vpop.xlane.xlu0 %2038 }
 0x52e   : > { %v2106_v9 = vsub.f32 %v6500_v47, %v2039_v2  ;;  %v6759_v57 = vpop.eup %5230  ;;  %v2172_v47 = vmul.f32 1.442695, %v2077_v56  ;;  %v2210_v56 = vmul.f32 1.442695, %v2096_v43 }
 0x530   : > { %v2230_v10 = vmul.f32 1.442695, %v2106_v9 }
 0x531   : > { %v6744_v41 = vpop.xlane.xlu1 %2032 }
 0x534   : > { %v6767_v33 = vpop.eup %5232 }
 0x535   : > { %v6753_v3 = vpop.xlane.xlu1 %2044  ;;  %v6772_v13 = vpop.eup %5234 }
 0x539   : > { %v6763_v4 = vpop.xlane.xlu1 %2040 }
 0x53a   : > { %1274 = vrot.lane.b32.xlu1 %v7782_v62, %s5582_s28  ;;  %v7786_v62 = vld [vmem:[#allocation12_spill] sm:$0xff]  ;;  %s7042_s28 = scalar_lea.vmem [#allocation6], %s4428_s20  ;;  %s7739_s20 = smov 16  }
 0x53b   : > { %v2093_v45 = vsub.f32 %v7786_v62, %v6659_v8  ;;  %v2075_v62 = vsub.f32 %v6486_v24, %v6707_v17  ;;  %v2097_v24 = vsub.f32 %v6496_v20, %v6714_v21  ;;  %s4309_s3 = sshll.u32 %s7042_s28, 4  ;;  %s7628_s3 = int_to_ptr.vmem [resolvable:$true] %s4309_s3 }
 0x53c   : > { %s5496_s2 = scalar_lea.vmem %s7628_s3, 2048 }
 0x53d   : > { %v2204_v53 = vmul.f32 1.442695, %v2093_v45  ;;  %v2168_v9 = vmul.f32 1.442695, %v2075_v62  ;;  %p5497_p12 = scmp.ne.s32.totalorder %s7628_s3, %s5496_s2 }
 0x53f   : > { %5236 = vpow2.f32 %v2204_v53  ;;  %p5498_p13 = pnand %p5497_p12, %p5705_p4 }
 0x540   : > { %5238 = vpow2.f32 %v2230_v10  ;;  %v7789_v10 = vld [vmem:[#allocation17_spill] sm:$0xff] }
 0x541   : > { %p5499_p0 = pneg %p5498_p13 }
 0x543   : > { %2334 = vadd.xlane.f32.xlu0 %v6748_v40 }
 0x547   : > { %2326 = vadd.xlane.f32.xlu0 %v6755_v58 }
 0x549   : > { %v6777_v53 = vpop.eup %5236 }
 0x54a   : > { %v2243_v8 = vpop.xlane.xlu0 %2242  ;;  %7788 = vst [vmem:[#allocation11_spill] sm:$0xff] %v6777_v53  ;;  %v6784_v12 = vpop.eup %5238 }
 0x54b   : > { %2342 = vadd.xlane.f32.xlu0 %v6759_v57 }
 0x54e   : > { %v2239_v2 = vpop.xlane.xlu1 %2238  ;;  %v2241_v49 = vpop.xlane.xlu0 %2240 }
 0x54f   : > { %5240 = vrcp.f32 %v2239_v2  ;;  %2350 = vadd.xlane.f32.xlu0 %v6767_v33 }
 0x550   : > { %5242 = vrcp.f32 %v2241_v49  ;;  %v2212_v49 = vmul.f32 1.442695, %v2097_v24 }
 0x551   : > { %5244 = vrcp.f32 %v2243_v8  ;;  %v2095_v8 = vsub.f32 %v7789_v10, %v6724_v63 }
 0x552   : > { %5246 = vpow2.f32 %v2172_v47  ;;  %v2245_v45 = vpop.xlane.xlu1 %2244 }
 0x553   : > { %5248 = vrcp.f32 %v2245_v45  ;;  %2330 = vadd.xlane.f32.xlu0 %v6772_v13  ;;  %v2251_v61 = vpop.xlane.xlu0 %2250  ;;  %v2208_v20 = vmul.f32 1.442695, %v2095_v8 }
 0x554   : > { %5250 = vpow2.f32 %v2234_v19 }
 0x555   : > { %5252 = vpow2.f32 %v2168_v9 }
 0x556   : > { %v2247_v17 = vpop.xlane.xlu1 %2246  ;;  %5254 = vpow2.f32 %v2210_v56 }
 0x557   : > { %2332 = vadd.xlane.f32.xlu0 %v6777_v53  ;;  %5256 = vpow2.f32 %v2212_v49  ;;  %v6807_v56 = vpop.xlane.xlu0 %2306 }
 0x558   : > { %5258 = vpow2.f32 %v2208_v20  ;;  %v5494_v20 = vld [vmem:[#allocation4 + $0x80] sm:$0xff] }
 0x559   : > { %v5241_v47 = vpop.eup %5240  ;;  %5260 = vrcp.f32 %v2247_v17  ;;  %v2688_v17 = vld [vmem:[#allocation4 + $0x88] sm:$0xff] }
 0x55a   : > { %v5243_v2 = vpop.eup %5242  ;;  %v6787_v62 = vmul.f32 %v5241_v47, %v6553_v30  ;;  %v6789_v21 = vpop.xlane.xlu1 %2302 }
 0x55b   : > { %v5245_v19 = vpop.eup %5244  ;;  %2358 = vadd.xlane.f32.xlu0 %v6784_v12  ;;  %v6793_v63 = vmul.f32 %v5243_v2, %v6550_v7  ;;  %v7791_v7 = vld [vmem:[#allocation15_spill] sm:$0xff] }
 0x55c   : > { %v6795_v45 = vpop.eup %5246  ;;  %v6802_v30 = vmul.f32 %v5245_v19, %v6546_v15  ;;  %v2100_v10 = vsub.f32 %v7791_v7, %v6721_v28  ;;  %v7793_v28 = vld [vmem:[#allocation18_spill] sm:$0xff] }
 0x55d   : > { %7790 = vst [vmem:[#allocation10_spill] sm:$0xff] %v6795_v45  ;;  %v5249_v25 = vpop.eup %5248  ;;  %v2639_v43 = vpack.c.bf16 %v6793_v63, %v6787_v62  ;;  %v2101_v49 = vsub.f32 %v7793_v28, %v6729_v50  ;;  %v7796_v50 = vld [vmem:[#allocation19_spill] sm:$0xff] }
 0x55e   : > { %v6799_v9 = vpop.eup %5250  ;;  %v6805_v24 = vmul.f32 %v5249_v25, %v6558_v31  ;;  %2300 = vadd.xlane.f32.xlu1 %v6795_v45  ;;  %v2253_v8 = vpop.xlane.xlu1 %2252  ;;  %v2218_v2 = vmul.f32 1.442695, %v2100_v10  ;;  %v2689_v28 = vld [vmem:[#allocation4 + $0x90] sm:$0xff] }
 0x55f   : > { %2362 = vadd.xlane.f32.xlu0 %v6799_v9  ;;  %4800 = vmatprep.mubr.bf16.mxu0 %v2639_v43  ;;  %v6815_v47 = vpop.eup %5252  ;;  %5262 = vrcp.f32 %v2253_v8  ;;  %v7795_v43 = vld [vmem:[#allocation16_spill] sm:$0xff]  ;;  %v2220_v10 = vmul.f32 1.442695, %v2101_v49  ;;  %v2099_v8 = vsub.f32 %v7796_v50, %v6734_v16 }
 0x560   : > { %v2640_v15 = vpack.c.bf16 %v6805_v24, %v6802_v30  ;;  %7792 = vst [vmem:[#allocation12_spill] sm:$0xff] %v6815_v47  ;;  %5264 = vrcp.f32 %v2251_v61  ;;  %v6822_v25 = vpop.eup %5254  ;;  %v2104_v61 = vsub.f32 %v7795_v43, %v6732_v54  ;;  %v2690_v16 = vld [vmem:[#allocation4 + $0x98] sm:$0xff] }
 0x561   : > { %7794 = vst [vmem:[#allocation14_spill] sm:$0xff] %v6822_v25 }
 0x562   : > { %2296 = vadd.xlane.f32.xlu1 %v6815_v47  ;;  %4801 = vmatmul.mubr.bf16.vlgmr.msra.gmra.mrb[32].mxu0 %v2640_v15  ;;  %v2249_v31 = vpop.xlane.xlu0 %2248  ;;  %v2226_v47 = vmul.f32 1.442695, %v2104_v61 }
 0x563   : > { %v6820_v19 = vpop.xlane.xlu1 %2308  ;;  %4849 = vmatpush3.bf16.msra.mxu0 %v5494_v20  ;;  %5266 = vrcp.f32 %v2249_v31  ;;  %v6831_v31 = vpop.eup %5256 }
 0x564   : > { %4850 = vmatprep.subr.bf16.mxu0 %v2688_v17  ;;  %5268 = vpow2.f32 %v2218_v2  ;;  %7797 = vst [vmem:[#allocation17_spill] sm:$0xff] %v6831_v31  ;;  %v6833_v20 = vpop.eup %5258  ;;  %v2216_v2 = vmul.f32 1.442695, %v2099_v8  ;;  %v7799_v8 = vld [vmem:[#allocation20_spill] sm:$0xff] }
 0x565   : > { %7798 = vst [vmem:[#allocation15_spill] sm:$0xff] %v6833_v20  ;;  %v5261_v53 = vpop.eup %5260  ;;  %5270 = vpow2.f32 %v2220_v10 }
 0x566   : > { %2338 = vadd.xlane.f32.xlu1 %v6822_v25  ;;  %v6827_v7 = vpop.xlane.xlu0 %2304  ;;  %5272 = vpow2.f32 %v2226_v47  ;;  %v6842_v61 = vmul.f32 %v5261_v53, %v6565_v18  ;;  %v2691_v47 = vld [vmem:[#allocation4 + $0xa0] sm:$0xff] }
 0x567   : > { %v2255_v15 = vpop.xlane.xlu1 %2254  ;;  %4851 = vmatpush3.bf16.msra.mxu0 %v2688_v17  ;;  %5274 = vpow2.f32 %v2216_v2 }
 0x568   : > { %4852 = vmatprep.subr.bf16.mxu0 %v2689_v28 }
 0x569   : > { %v5263_v43 = vpop.eup %5262 }
 0x56a   : > { %2340 = vadd.xlane.f32.xlu1 %v6831_v31  ;;  %v2259_v54 = vpop.xlane.xlu0 %2258  ;;  %v5265_v50 = vpop.eup %5264  ;;  %v6848_v10 = vmul.f32 %v5263_v43, %v6580_v35 }
 0x56b   : > { %v6836_v49 = vpop.xlane.xlu1 %2310  ;;  %4853 = vmatpush3.bf16.msra.mxu0 %v2689_v28  ;;  %v2105_v28 = vsub.f32 %v7799_v8, %v6739_v52  ;;  %v6855_v18 = vmul.f32 %v5265_v50, %v6560_v1  ;;  %v2692_v1 = vld [vmem:[#allocation4 + $0xa8] sm:$0xff] }
 0x56c   : > { %4854 = vmatprep.subr.bf16.mxu0 %v2690_v16 }
 0x56d   : > { %v5267_v17 = vpop.eup %5266  ;;  %v2642_v52 = vpack.c.bf16 %v6848_v10, %v6855_v18  ;;  %v2228_v53 = vmul.f32 1.442695, %v2105_v28  ;;  %v2693_v28 = vld [vmem:[#allocation4 + $0xb0] sm:$0xff] }
 0x56e   : > { %2336 = vadd.xlane.f32.xlu1 %v6833_v20  ;;  %v6839_v25 = vpop.xlane.xlu0 %2314  ;;  %v6845_v31 = vmul.f32 %v5267_v17, %v6584_v38  ;;  %v6857_v38 = vpop.eup %5268 }
 0x56f   : > { %v2261_v45 = vpop.xlane.xlu1 %2260  ;;  %4855 = vmatpush3.bf16.msra.mxu0 %v2690_v16  ;;  %v7801_v16 = vld [vmem:[#allocation13_spill] sm:$0xff] }
 0x570   : > { %5276 = vrcp.f32 %v2261_v45  ;;  %4856 = vmatprep.subr.bf16.mxu0 %v2691_v47  ;;  %v2641_v20 = vpack.c.bf16 %v6845_v31, %v6842_v61  ;;  %v7800_v45 = vld [vmem:[#allocation21_spill] sm:$0xff] }
 0x571   : > { %5278 = vrcp.f32 %v2255_v15  ;;  %v2103_v43 = vsub.f32 %v7800_v45, %v6744_v41  ;;  %v2091_v15 = vsub.f32 %v7801_v16, %v6670_v46 }
 0x572   : > { %5280 = vrcp.f32 %v2259_v54  ;;  %2346 = vadd.xlane.f32.xlu1 %v6857_v38  ;;  %4804 = vmatprep.mubr.bf16.mxu0 %v2641_v20  ;;  %v2257_v35 = vpop.xlane.xlu0 %2256  ;;  %v6868_v54 = vpop.eup %5270  ;;  %v7802_v20 = vld [vmem:[#allocation23_spill] sm:$0xff] }
 0x573   : > { %v6864_v2 = vpop.xlane.xlu1 %2316  ;;  %4857 = vmatpush3.bf16.msra.mxu0 %v2691_v47  ;;  %5282 = vrcp.f32 %v2257_v35  ;;  %v2107_v50 = vsub.f32 %v7802_v20, %v6763_v4  ;;  %v2224_v41 = vmul.f32 1.442695, %v2103_v43  ;;  %v6875_v47 = vpop.eup %5272  ;;  %v2200_v35 = vmul.f32 1.442695, %v2091_v15 }
 0x574   : > { %4805 = vmatmul.mubr.bf16.gmra.mrb[36].mxu0 %v2642_v52  ;;  %4858 = vmatprep.subr.bf16.mxu0 %v2692_v1  ;;  %5284 = vpow2.f32 %v2228_v53  ;;  %v6877_v46 = vpop.eup %5274 }
 0x575   : > { %v2232_v52 = vmul.f32 1.442695, %v2107_v50  ;;  %5286 = vpow2.f32 %v2224_v41 }
 0x576   : > { %2348 = vadd.xlane.f32.xlu1 %v6868_v54  ;;  %v6873_v17 = vpop.xlane.xlu0 %2312  ;;  %5288 = vpow2.f32 %v2200_v35 }
 0x577   : > { %v2263_v8 = vpop.xlane.xlu1 %2262  ;;  %4859 = vmatpush3.bf16.msra.mxu0 %v2692_v1  ;;  %5290 = vpow2.f32 %v2232_v52 }
 0x578   : > { %4860 = vmatprep.subr.bf16.mxu0 %v2693_v28  ;;  %5292 = vrcp.f32 %v6789_v21 }
 0x579   : > { %5294 = vrcp.f32 %v6827_v7 }
 0x57a   : > { %v5277_v45 = vpop.eup %5276  ;;  %2344 = vadd.xlane.f32.xlu1 %v6877_v46  ;;  %v2267_v4 = vpop.xlane.xlu0 %2266 }
 0x57b   : > { %v5279_v16 = vpop.eup %5278  ;;  %v6880_v20 = vpop.xlane.xlu1 %2318  ;;  %4861 = vmatpush3.bf16.msra.mxu0 %v2693_v28  ;;  %v6883_v1 = vmul.f32 %v5277_v45, %v6611_v44  ;;  %v7803_v28 = vld [vmem:[#allocation22_spill] sm:$0xff] }
 0x57c   : > { %v5281_v53 = vpop.eup %5280  ;;  %v6890_v50 = vmul.f32 %v5279_v16, %v6593_v42  ;;  %v2109_v35 = vsub.f32 %v7803_v28, %v6753_v3 }
 0x57d   : > { %v5283_v43 = vpop.eup %5282  ;;  %v6899_v44 = vmul.f32 %v5281_v53, %v6600_v26 }
 0x57e   : > { %2354 = vadd.xlane.f32.xlu1 %v6875_v47  ;;  %v6887_v15 = vpop.xlane.xlu0 %2322  ;;  %v6893_v41 = vmul.f32 %v5283_v43, %v6618_v34  ;;  %v6903_v45 = vpop.eup %5284  ;;  %v2236_v3 = vmul.f32 1.442695, %v2109_v35 }
 0x57f   : > { %v2269_v52 = vpop.xlane.xlu1 %2268  ;;  %7804 = vst [vmem:[#allocation18_spill] sm:$0xff] %v6903_v45  ;;  %v2644_v42 = vpack.c.bf16 %v6883_v1, %v6899_v44  ;;  %v6908_v26 = vpop.eup %5286 }
 0x580   : > { %5296 = vrcp.f32 %v2269_v52  ;;  %v2643_v21 = vpack.c.bf16 %v6893_v41, %v6890_v50  ;;  %7805 = vst [vmem:[#allocation16_spill] sm:$0xff] %v6908_v26  ;;  %v6910_v7 = vpop.eup %5288 }
 0x581   : > { %5298 = vrcp.f32 %v2263_v8  ;;  %v6915_v8 = vpop.eup %5290 }
 0x582   : > { %5300 = vrcp.f32 %v2267_v4  ;;  %2356 = vadd.xlane.f32.xlu1 %v6903_v45  ;;  %4808 = vmatprep.mubr.bf16.mxu0 %v2643_v21  ;;  %v2265_v34 = vpop.xlane.xlu0 %2264  ;;  %7806 = vst [vmem:[#allocation19_spill] sm:$0xff] %v6915_v8  ;;  %v5293_v53 = vpop.eup %5292 }
 0x583   : > { %5302 = vrcp.f32 %v2265_v34  ;;  %4809 = vmatmul.mubr.bf16.gmra.mrb[40].mxu0 %v2644_v42  ;;  %v6912_v16 = vpop.xlane.xlu1 %2324  ;;  %v5295_v4 = vpop.eup %5294 }
 0x584   : > { %5304 = vpow2.f32 %v2236_v3 }
 0x585   : > { %5306 = vrcp.f32 %v6807_v56  ;;  %v6930_v56 = vmul.f32 %v5295_v4, %v6591_v23 }
 0x586   : > { %2352 = vadd.xlane.f32.xlu1 %v6908_v26  ;;  %v2321_v28 = vpop.xlane.xlu0 %2320 }
 0x58a   : > { %v5297_v43 = vpop.eup %5296  ;;  %v2275_v35 = vpop.xlane.xlu1 %2274  ;;  %2328 = vadd.xlane.f32.xlu1 %v6910_v7 }
 0x58b   : > { %v5299_v52 = vpop.eup %5298  ;;  %5308 = vrcp.f32 %v2275_v35  ;;  %v6920_v34 = vmul.f32 %v5297_v43, %v6643_v60  ;;  %v2526_v43 = vmul.f32 %v5293_v53, %v6574_v39 }
 0x58c   : > { %v5301_v21 = vpop.eup %5300  ;;  %v6924_v3 = vmul.f32 %v5299_v52, %v6629_v22 }
 0x58d   : > { %v5303_v42 = vpop.eup %5302  ;;  %v6933_v35 = vmul.f32 %v5301_v21, %v6634_v27  ;;  %v2655_v27 = vpack.c.bf16 %v6930_v56, %v2526_v43 }
 0x58e   : > { %2360 = vadd.xlane.f32.xlu1 %v6915_v8  ;;  %v2271_v26 = vpop.xlane.xlu0 %2270  ;;  %v6927_v45 = vmul.f32 %v5303_v42, %v6649_v55  ;;  %v6938_v8 = vpop.eup %5304 }
 0x58f   : > { %5310 = vrcp.f32 %v2271_v26  ;;  %v2646_v22 = vpack.c.bf16 %v6920_v34, %v6933_v35  ;;  %v5307_v26 = vpop.eup %5306 }
 0x590   : > { %v2645_v60 = vpack.c.bf16 %v6927_v45, %v6924_v3  ;;  %5312 = vrcp.f32 %v6820_v19  ;;  %v2528_v52 = vmul.f32 %v5307_v26, %v6567_v11 }
 0x592   : > { %v2277_v55 = vpop.xlane.xlu1 %2276  ;;  %2364 = vadd.xlane.f32.xlu1 %v6938_v8  ;;  %4812 = vmatprep.mubr.bf16.mxu0 %v2645_v60  ;;  %v2279_v23 = vpop.xlane.xlu0 %2278 }
 0x593   : > { %5314 = vrcp.f32 %v2277_v55  ;;  %4813 = vmatmul.mubr.bf16.gmra.mrb[44].mxu0 %v2646_v22 }
 0x594   : > { %4864 = vmatprep.mubr.bf16.mxu0 %v2655_v27  ;;  %5316 = vrcp.f32 %v6836_v49 }
 0x595   : > { %v5309_v4 = vpop.eup %5308  ;;  %5318 = vrcp.f32 %v6873_v17 }
 0x596   : > { %v2512_v39 = vmul.f32 %v5309_v4, %v6662_v6  ;;  %v6946_v53 = vpop.xlane.xlu0 %2286 }
 0x598   : > { %v2564_v19 = vadd.f32 %v2512_v39, %v6802_v30 }
 0x599   : > { %v5311_v21 = vpop.eup %5310 }
 0x59a   : > { %v2273_v42 = vpop.xlane.xlu1 %2272  ;;  %v2510_v60 = vmul.f32 %v5311_v21, %v6668_v5  ;;  %v6953_v22 = vadd.f32 %v2564_v19, %v2528_v52  ;;  %v5313_v27 = vpop.eup %5312 }
 0x59b   : > { %5320 = vrcp.f32 %v2273_v42  ;;  %v2295_v55 = vpop.xlane.xlu0 %2294  ;;  %v2529_v5 = vmul.f32 %v5313_v27, %v6586_v48 }
 0x59c   : > { %5322 = vrcp.f32 %v2295_v55  ;;  %v2558_v6 = vadd.f32 %v2510_v60, %v6787_v62 }
 0x59d   : > { %v5315_v4 = vpop.eup %5314  ;;  %5324 = vrcp.f32 %v6839_v25 }
 0x59e   : > { %v2513_v11 = vmul.f32 %v5315_v4, %v6675_v14  ;;  %v2283_v30 = vpop.xlane.xlu1 %2282  ;;  %v6958_v49 = vadd.f32 %v2558_v6, %v2526_v43  ;;  %v5317_v25 = vpop.eup %5316  ;;  %v2656_v4 = vpack.c.bf16 %v2529_v5, %v2528_v52 }
 0x59f   : > { %5326 = vrcp.f32 %v2283_v30  ;;  %v1209_v17 = vpop.permute.xlu0 %1208  ;;  %v5319_v14 = vpop.eup %5318 }
 0x5a0   : > { %v2567_v26 = vadd.f32 %v2513_v11, %v6805_v24  ;;  %1226 = vst.msk [vmem:[#allocation4 + $0xb8] sm:$0xff] %vm1046_vm1, %v1209_v17  ;;  %5328 = vrcp.f32 %v6864_v2  ;;  %v6969_v55 = vmul.f32 %v5319_v14, %v6627_v59  ;;  %v7808_v14 = vld [vmem:[#allocation27_spill] sm:$0xff] }
 0x5a1   : > { %5330 = vrcp.f32 %v2321_v28 }
 0x5a2   : > { %v2285_v62 = vpop.xlane.xlu1 %2284  ;;  %v6964_v19 = vadd.f32 %v2567_v26, %v2529_v5  ;;  %v7807_v5 = vld [vmem:[#allocation30_spill] sm:$0xff] }
 0x5a3   : > { %5332 = vrcp.f32 %v2285_v62 }
 0x5a4   : > { %5334 = vrcp.f32 %v6880_v20 }
 0x5a5   : > { %v5321_v43 = vpop.eup %5320  ;;  %5336 = vrcp.f32 %v2279_v23  ;;  %v2648_v23 = vpack.c.bf16 %v2513_v11, %v2512_v39  ;;  %v2696_v11 = vld [vmem:[#allocation4 + $0xc8] sm:$0xff] }
 0x5a6   : > { %v5323_v21 = vpop.eup %5322  ;;  %v2281_v42 = vpop.xlane.xlu1 %2280  ;;  %v2511_v48 = vmul.f32 %v5321_v43, %v6685_v51  ;;  %v6977_v51 = vmul.f32 %v5317_v25, %v6602_v37 }
 0x5a7   : > { %5338 = vrcp.f32 %v2281_v42  ;;  %v2694_v24 = vld [vmem:[#allocation4 + $0xb8] sm:$0xff]  ;;  %v6972_v2 = vmul.f32 %v5323_v21, %v6687_v36  ;;  %v5325_v28 = vpop.eup %5324  ;;  %v2697_v21 = vld [vmem:[#allocation4 + $0xd0] sm:$0xff] }
 0x5a8   : > { %4862 = vmatprep.subr.bf16.mxu0 %v2694_v24  ;;  %v2561_v27 = vadd.f32 %v2511_v48, %v6793_v63  ;;  %v2647_v6 = vpack.c.bf16 %v2511_v48, %v2510_v60  ;;  %5340 = vrcp.f32 %v6912_v16  ;;  %v2657_v37 = vpack.c.bf16 %v6969_v55, %v6977_v51  ;;  %v7809_v42 = vld [vmem:[#allocation24_spill] sm:$0xff] }
 0x5a9   : > { %v5327_v20 = vpop.eup %5326  ;;  %4863 = vmatpush3.bf16.msra.mxu0 %v2694_v24  ;;  %v6981_v59 = vadd.f32 %v6972_v2, %v6924_v3  ;;  %5342 = vrcp.f32 %v6887_v15  ;;  %v5495_v3 = vld [vmem:[#allocation4 + $0xc0] sm:$0xff]  ;;  %v2532_v15 = vmul.f32 %v5325_v28, %v6609_v32  ;;  %v7810_v28 = vld [vmem:[#allocation28_spill] sm:$0xff] }
 0x5aa   : > { %v2291_v36 = vpop.xlane.xlu1 %2290  ;;  %4832 = vmatprep.mubr.bf16.mxu1 %v2647_v6  ;;  %v2516_v63 = vmul.f32 %v5327_v20, %v6692_v29  ;;  %v6986_v60 = vadd.f32 %v2561_v27, %v6930_v56  ;;  %v5329_v16 = vpop.eup %5328  ;;  %v7811_v6 = vld [vmem:[#allocation31_spill] sm:$0xff] }
 0x5ab   : > { %5344 = vrcp.f32 %v2291_v36  ;;  %4833 = vmatmul.mubr.bf16.vlgmr.msra.gmra.mrb[48].mxu1 %v2648_v23  ;;  %v5331_v39 = vpop.eup %5330  ;;  %v2533_v17 = vmul.f32 %v5329_v16, %v6620_v0 }
 0x5ac   : > { %4865 = vmatmul.mubr.bf16.vlgmr.msra.gmra.mrb[48].mxu0 %v2656_v4  ;;  %4881 = vmatpush3.bf16.msra.mxu1 %v5495_v3  ;;  %v2576_v52 = vadd.f32 %v2516_v63, %v6855_v18  ;;  %v2535_v43 = vmul.f32 %v5331_v39, %v7808_v14 }
 0x5ad   : > { %v5333_v30 = vpop.eup %5332  ;;  %4868 = vmatprep.mubr.bf16.mxu0 %v2657_v37  ;;  %4882 = vmatprep.subr.bf16.mxu1 %v2696_v11  ;;  %v2658_v24 = vpack.c.bf16 %v2533_v17, %v2532_v15 }
 0x5ae   : > { %v5335_v29 = vpop.eup %5334  ;;  %v2293_v56 = vpop.xlane.xlu1 %2292  ;;  %v2517_v26 = vmul.f32 %v5333_v30, %v7807_v5  ;;  %v6994_v62 = vadd.f32 %v2576_v52, %v2532_v15  ;;  %v7812_v15 = vld [vmem:[#allocation26_spill] sm:$0xff]  ;;  %v7813_v30 = vld [vmem:[#allocation32_spill] sm:$0xff] }
 0x5af   : > { %v5337_v25 = vpop.eup %5336  ;;  %5346 = vrcp.f32 %v2293_v56  ;;  %v7000_v48 = vmul.f32 %v5335_v29, %v7809_v42 }
 0x5b0   : > { %4883 = vmatpush3.bf16.msra.mxu1 %v2696_v11  ;;  %v2579_v32 = vadd.f32 %v2517_v26, %v6848_v10  ;;  %5348 = vrcp.f32 %v6946_v53  ;;  %v7003_v27 = vmul.f32 %v5337_v25, %v7810_v28  ;;  %v2698_v53 = vld [vmem:[#allocation4 + $0xd8] sm:$0xff]  ;;  %v2650_v3 = vpack.c.bf16 %v2517_v26, %v2516_v63  ;;  %v7816_v28 = vld [vmem:[#allocation29_spill] sm:$0xff] }
 0x5b1   : > { %v5339_v18 = vpop.eup %5338  ;;  %4884 = vmatprep.subr.bf16.mxu1 %v2697_v21  ;;  %v2659_v10 = vpack.c.bf16 %v2535_v43, %v7000_v48 }
 0x5b2   : > { %v2289_v0 = vpop.xlane.xlu1 %2288  ;;  %v2515_v20 = vmul.f32 %v5339_v18, %v7811_v6  ;;  %v7006_v23 = vadd.f32 %v2579_v32, %v2533_v17  ;;  %v5341_v36 = vpop.eup %5340  ;;  %v2699_v17 = vld [vmem:[#allocation4 + $0xe0] sm:$0xff]  ;;  %v7817_v6 = vld [vmem:[#allocation34_spill] sm:$0xff] }
 0x5b3   : > { %5350 = vrcp.f32 %v2289_v0  ;;  %v5343_v4 = vpop.eup %5342  ;;  %v2537_v52 = vmul.f32 %v5341_v36, %v7812_v15 }
 0x5b4   : > { %4869 = vmatmul.mubr.bf16.gmra.mrb[52].mxu0 %v2658_v24  ;;  %4885 = vmatpush3.bf16.msra.mxu1 %v2697_v21  ;;  %v2573_v16 = vadd.f32 %v2515_v20, %v6845_v31  ;;  %v2649_v37 = vpack.c.bf16 %v2515_v20, %v7003_v27  ;;  %v7814_v31 = vld [vmem:[#allocation25_spill] sm:$0xff] }
 0x5b5   : > { %v5345_v39 = vpop.eup %5344  ;;  %4872 = vmatprep.mubr.bf16.mxu0 %v2659_v10  ;;  %4886 = vmatprep.subr.bf16.mxu1 %v2698_v53  ;;  %v2536_v5 = vmul.f32 %v5343_v4, %v7814_v31  ;;  %v7815_v21 = vld [vmem:[#allocation33_spill] sm:$0xff]  ;;  %v2701_v10 = vld [vmem:[#allocation4 + $0xf0] sm:$0xff] }
 0x5b6   : > { %v7011_v11 = vpop.xlane.xlu1 %2298  ;;  %4836 = vmatprep.mubr.bf16.mxu1 %v2649_v37  ;;  %v2520_v29 = vmul.f32 %v5345_v39, %v7813_v30  ;;  %v7016_v56 = vadd.f32 %v2573_v16, %v6969_v55  ;;  %v2700_v55 = vld [vmem:[#allocation4 + $0xe8] sm:$0xff] }
 0x5b7   : > { %4837 = vmatmul.mubr.bf16.gmra.mrb[52].mxu1 %v2650_v3  ;;  %v2660_v26 = vpack.c.bf16 %v2537_v52, %v2536_v5 }
 0x5b8   : > { %4887 = vmatpush3.bf16.msra.mxu1 %v2698_v53  ;;  %v2588_v25 = vadd.f32 %v2520_v29, %v6899_v44 }
 0x5b9   : > { %v5347_v14 = vpop.eup %5346  ;;  %4888 = vmatprep.subr.bf16.mxu1 %v2699_v17 }
 0x5ba   : > { %v1275_v63 = vpop.permute.xlu1 %1274  ;;  %v2521_v32 = vmul.f32 %v5347_v14, %v7815_v21  ;;  %v7021_v18 = vadd.f32 %v2588_v25, %v2536_v5  ;;  %v5349_v42 = vpop.eup %5348 }
 0x5bb   : > { %1292 = vst.msk [vmem:[#allocation4 + $0xf8] sm:$0xff] %vm1046_vm1, %v1275_v63  ;;  %v2518_v44 = vmul.f32 %v5349_v42, %v7816_v28  ;;  %v7818_v28 = vld [vmem:[#allocation9_spill] sm:$0xff] }
 0x5bc   : > { %4873 = vmatmul.mubr.bf16.gmra.mrb[56].mxu0 %v2660_v26  ;;  %4889 = vmatpush3.bf16.msra.mxu1 %v2699_v17  ;;  %v2591_v0 = vadd.f32 %v2521_v32, %v6883_v1  ;;  %v2652_v16 = vpack.c.bf16 %v2521_v32, %v2520_v29  ;;  %v2570_v29 = vadd.f32 %v7003_v27, %v6842_v61 }
 0x5bd   : > { %v5351_v24 = vpop.eup %5350  ;;  %4890 = vmatprep.subr.bf16.mxu1 %v2700_v55  ;;  %v2582_v25 = vadd.f32 %v2518_v44, %v6890_v50 }
 0x5be   : > { %v2519_v20 = vmul.f32 %v5351_v24, %v7817_v6  ;;  %v7027_v36 = vadd.f32 %v2591_v0, %v2537_v52 }
 0x5bf   : > { %v2583_v50 = vadd.f32 %v2582_v25, %v7000_v48  ;;  %v7821_v25 = vld [vmem:[#allocation14_spill] sm:$0xff] }
 0x5c0   : > { %4891 = vmatpush3.bf16.msra.mxu1 %v2700_v55  ;;  %v2585_v4 = vadd.f32 %v2519_v20, %v6893_v41  ;;  %v2651_v53 = vpack.c.bf16 %v2519_v20, %v2518_v44 }
 0x5c1   : > { %4892 = vmatprep.subr.bf16.mxu1 %v2701_v10 }
 0x5c2   : > { %4840 = vmatprep.mubr.bf16.mxu1 %v2651_v53  ;;  %v2702_v37 = vld [vmem:[#allocation4 + $0xf8] sm:$0xff]  ;;  %v7030_v1 = vadd.f32 %v2585_v4, %v2535_v43 }
 0x5c3   : > { %4841 = vmatmul.mubr.bf16.gmra.mrb[56].mxu1 %v2652_v16 }
 0x5c4   : > { %4893 = vmatpush3.bf16.msra.mxu1 %v2701_v10 }
 0x5c5   : > { %4894 = vmatprep.subr.bf16.mxu1 %v2702_v37 }
 0x5c8   : > { %4895 = vmatpush3.bf16.msra.mxu1 %v2702_v37 }
 0x5d0   : > { %v2335_v39 = vpop.xlane.xlu0 %2334 }
 0x5d1   : > { %5352 = vrcp.f32 %v2335_v39 }
 0x5d4   : > { %v2327_v3 = vpop.xlane.xlu0 %2326 }
 0x5d8   : > { %v2343_v15 = vpop.xlane.xlu0 %2342 }
 0x5d9   : > { %5354 = vrcp.f32 %v2343_v15 }
 0x5db   : > { %v5353_v41 = vpop.eup %5352 }
 0x5dc   : > { %v2351_v52 = vpop.xlane.xlu0 %2350  ;;  %v7036_v30 = vmul.f32 %v5353_v41, %v6748_v40  ;;  %v7819_v41 = vld [vmem:[#allocation10_spill] sm:$0xff] }
 0x5dd   : > { %5356 = vrcp.f32 %v2351_v52 }
 0x5de   : > { %v2560_v43 = vadd.f32 %v6958_v49, %v7036_v30  ;;  %5358 = vrcp.f32 %v2327_v3  ;;  %v2571_v49 = vadd.f32 %v2570_v29, %v6977_v51 }
 0x5df   : > { %5360 = vrcp.f32 %v7011_v11 }
 0x5e0   : > { %v2331_v17 = vpop.xlane.xlu0 %2330  ;;  %v2607_v31 = vmul.f32 0.25, %v2560_v43  ;;  %v7820_v43 = vld [vmem:[#allocation12_spill] sm:$0xff] }
 0x5e1   : > { %5362 = vrcp.f32 %v2331_v17 }
 0x5e2   : > { %2623 = vst [vmem:[%s7042_s28] sm:$0xff] %v2607_v31 }
 0x5e3   : > { %v5355_v5 = vpop.eup %5354 }
 0x5e4   : > { %v7046_v40 = vpop.xlane.xlu0 %2332  ;;  %v7049_v14 = vmul.f32 %v5355_v5, %v6759_v57 }
 0x5e6   : > { %v2572_v61 = vadd.f32 %v2571_v49, %v7049_v14 }
 0x5e7   : > { %v5357_v27 = vpop.eup %5356 }
 0x5e8   : > { %v2359_v63 = vpop.xlane.xlu0 %2358  ;;  %v2611_v26 = vmul.f32 0.25, %v2572_v61  ;;  %v7055_v21 = vmul.f32 %v5357_v27, %v6767_v33  ;;  %v5359_v42 = vpop.eup %5358 }
 0x5e9   : > { %5364 = vrcp.f32 %v2359_v63  ;;  %v5361_v55 = vpop.eup %5360  ;;  %v7062_v24 = vmul.f32 %v5359_v42, %v6755_v58 }
 0x5ea   : > { %2627 = vst [vmem:[%s7042_s28 + $0x20] sm:$0xff] %v2611_v26  ;;  %v2584_v57 = vadd.f32 %v2583_v50, %v7055_v21  ;;  %v2524_v48 = vmul.f32 %v5361_v55, %v7818_v28  ;;  %v7822_v50 = vld [vmem:[#allocation17_spill] sm:$0xff]  ;;  %v7823_v55 = vld [vmem:[#allocation15_spill] sm:$0xff] }
 0x5eb   : > { %v2301_v32 = vpop.xlane.xlu1 %2300  ;;  %v5363_v33 = vpop.eup %5362  ;;  %v2595_v20 = vadd.f32 %v6981_v59, %v7062_v24 }
 0x5ec   : > { %5366 = vrcp.f32 %v2301_v32  ;;  %v2363_v51 = vpop.xlane.xlu0 %2362  ;;  %v2615_v11 = vmul.f32 0.25, %v2584_v57  ;;  %v7068_v10 = vmul.f32 %v5363_v33, %v6772_v13  ;;  %v2600_v58 = vadd.f32 %v2524_v48, %v6933_v35 }
 0x5ed   : > { %5368 = vrcp.f32 %v2363_v51 }
 0x5ee   : > { %2631 = vst [vmem:[%s7042_s28 + $0x40] sm:$0xff] %v2615_v11  ;;  %v2601_v3 = vadd.f32 %v2600_v58, %v7068_v10 }
 0x5ef   : > { %v2297_v0 = vpop.xlane.xlu1 %2296 }
 0x5f0   : > { %5370 = vrcp.f32 %v2297_v0 }
 0x5f3   : > { %v5365_v44 = vpop.eup %5364  ;;  %v2339_v6 = vpop.xlane.xlu1 %2338 }
 0x5f4   : > { %5372 = vrcp.f32 %v2339_v6  ;;  %v7071_v4 = vmul.f32 %v5365_v44, %v6784_v12 }
 0x5f6   : > { %v5367_v53 = vpop.eup %5366  ;;  %v2596_v16 = vadd.f32 %v2595_v20, %v7071_v4 }
 0x5f7   : > { %v5369_v37 = vpop.eup %5368  ;;  %v2341_v39 = vpop.xlane.xlu1 %2340  ;;  %v7080_v52 = vmul.f32 %v5367_v53, %v7819_v41 }
 0x5f8   : > { %5374 = vrcp.f32 %v2341_v39  ;;  %v2619_v15 = vmul.f32 0.25, %v2596_v16  ;;  %v7077_v59 = vmul.f32 %v5369_v37, %v6799_v9 }
 0x5f9   : > { %v2654_v9 = vpack.c.bf16 %v7080_v52, %v2524_v48 }
 0x5fa   : > { %v5371_v13 = vpop.eup %5370  ;;  %2635 = vst [vmem:[%s7042_s28 + $0x60] sm:$0xff] %v2619_v15  ;;  %v2602_v12 = vadd.f32 %v2601_v3, %v7077_v59 }
 0x5fb   : > { %v2337_v35 = vpop.xlane.xlu1 %2336  ;;  %v7085_v29 = vmul.f32 %v5371_v13, %v7820_v43 }
 0x5fc   : > { %5376 = vrcp.f32 %v2337_v35  ;;  %v2621_v17 = vmul.f32 0.25, %v2602_v12 }
 0x5fd   : > { %v2653_v31 = vpack.c.bf16 %v7085_v29, %v6972_v2 }
 0x5fe   : > { %v5373_v5 = vpop.eup %5372  ;;  %2637 = vst [vmem:[%s7042_s28 + $0x70] sm:$0xff] %v2621_v17 }
 0x5ff   : > { %v2544_v49 = vmul.f32 %v5373_v5, %v7821_v25  ;;  %v2347_v61 = vpop.xlane.xlu1 %2346  ;;  %4844 = vmatprep.mubr.bf16.mxu1 %v2653_v31 }
 0x600   : > { %5378 = vrcp.f32 %v2347_v61  ;;  %4845 = vmatmul.mubr.bf16.gmra.mrb[60].mxu1 %v2654_v9 }
 0x601   : > { %v2566_v27 = vadd.f32 %v6953_v22, %v2544_v49 }
 0x602   : > { %v5375_v63 = vpop.eup %5374 }
 0x603   : > { %v2609_v26 = vmul.f32 0.25, %v2566_v27  ;;  %v2545_v57 = vmul.f32 %v5375_v63, %v7822_v50  ;;  %v2349_v32 = vpop.xlane.xlu1 %2348 }
 0x604   : > { %5380 = vrcp.f32 %v2349_v32  ;;  %v2597_v32 = vadd.f32 %v7085_v29, %v6927_v45 }
 0x605   : > { %2625 = vst [vmem:[%s7042_s28 + $0x10] sm:$0xff] %v2609_v26  ;;  %v2569_v2 = vadd.f32 %v6964_v19, %v2545_v57  ;;  %v2664_v48 = vpack.c.bf16 %v2545_v57, %v2544_v49  ;;  %v7826_v26 = vld [vmem:[#allocation11_spill] sm:$0xff] }
 0x606   : > { %v5377_v51 = vpop.eup %5376 }
 0x607   : > { %v2610_v11 = vmul.f32 0.25, %v2569_v2  ;;  %v2345_v42 = vpop.xlane.xlu1 %2344  ;;  %v2543_v0 = vmul.f32 %v5377_v51, %v7823_v55  ;;  %v2603_v51 = vadd.f32 %v7080_v52, %v6920_v34 }
 0x608   : > { %5382 = vrcp.f32 %v2345_v42  ;;  %v7827_v42 = vld [vmem:[#allocation19_spill] sm:$0xff] }
 0x609   : > { %2626 = vst [vmem:[%s7042_s28 + $0x18] sm:$0xff] %v2610_v11  ;;  %v2563_v33 = vadd.f32 %v6986_v60, %v2543_v0  ;;  %v2663_v22 = vpack.c.bf16 %v2543_v0, %v7036_v30 }
 0x60a   : > { %v5379_v28 = vpop.eup %5378 }
 0x60b   : > { %v2355_v44 = vpop.xlane.xlu1 %2354  ;;  %v2608_v6 = vmul.f32 0.25, %v2563_v33  ;;  %4896 = vmatprep.mubr.bf16.mxu1 %v2663_v22  ;;  %v2548_v19 = vmul.f32 %v5379_v28, %v6857_v38 }
 0x60c   : > { %5384 = vrcp.f32 %v2355_v44  ;;  %4897 = vmatmul.mubr.bf16.vlgmr.msra.gmra.mrb[64].mxu1 %v2664_v48 }
 0x60d   : > { %2624 = vst [vmem:[%s7042_s28 + $0x8] sm:$0xff] %v2608_v6  ;;  %v2578_v20 = vadd.f32 %v6994_v62, %v2548_v19 }
 0x60e   : > { %v5381_v53 = vpop.eup %5380 }
 0x60f   : > { %v2357_v58 = vpop.xlane.xlu1 %2356  ;;  %v2549_v60 = vmul.f32 %v5381_v53, %v6868_v54  ;;  %v2613_v16 = vmul.f32 0.25, %v2578_v20 }
 0x610   : > { %5386 = vrcp.f32 %v2357_v58 }
 0x611   : > { %v2581_v30 = vadd.f32 %v7006_v23, %v2549_v60  ;;  %2629 = vst [vmem:[%s7042_s28 + $0x30] sm:$0xff] %v2613_v16  ;;  %v2666_v13 = vpack.c.bf16 %v2549_v60, %v2548_v19 }
 0x612   : > { %v5383_v37 = vpop.eup %5382 }
 0x613   : > { %v2353_v39 = vpop.xlane.xlu1 %2352  ;;  %v2547_v38 = vmul.f32 %v5383_v37, %v6877_v46  ;;  %v2614_v3 = vmul.f32 0.25, %v2581_v30 }
 0x614   : > { %5388 = vrcp.f32 %v2353_v39 }
 0x615   : > { %5390 = vrcp.f32 %v7046_v40  ;;  %v2575_v62 = vadd.f32 %v7016_v56, %v2547_v38  ;;  %v2665_v15 = vpack.c.bf16 %v2547_v38, %v7049_v14  ;;  %2630 = vst [vmem:[%s7042_s28 + $0x38] sm:$0xff] %v2614_v3  ;;  %v7824_v56 = vld [vmem:[#allocation18_spill] sm:$0xff] }
 0x616   : > { %v5385_v54 = vpop.eup %5384 }
 0x617   : > { %v2329_v41 = vpop.xlane.xlu1 %2328  ;;  %v2612_v23 = vmul.f32 0.25, %v2575_v62  ;;  %4900 = vmatprep.mubr.bf16.mxu1 %v2665_v15  ;;  %v2552_v12 = vmul.f32 %v5385_v54, %v6875_v47  ;;  %v7825_v47 = vld [vmem:[#allocation16_spill] sm:$0xff] }
 0x618   : > { %5392 = vrcp.f32 %v2329_v41  ;;  %4901 = vmatmul.mubr.bf16.gmra.mrb[68].mxu1 %v2666_v13 }
 0x619   : > { %2628 = vst [vmem:[%s7042_s28 + $0x28] sm:$0xff] %v2612_v23  ;;  %v2590_v46 = vadd.f32 %v7021_v18, %v2552_v12 }
 0x61a   : > { %v5387_v40 = vpop.eup %5386 }
 0x61b   : > { %v2361_v35 = vpop.xlane.xlu1 %2360  ;;  %v2553_v43 = vmul.f32 %v5387_v40, %v7824_v56  ;;  %v2617_v14 = vmul.f32 0.25, %v2590_v46 }
 0x61c   : > { %5394 = vrcp.f32 %v2361_v35 }
 0x61d   : > { %v2593_v17 = vadd.f32 %v7027_v36, %v2553_v43  ;;  %2633 = vst [vmem:[%s7042_s28 + $0x50] sm:$0xff] %v2617_v14  ;;  %v2668_v63 = vpack.c.bf16 %v2553_v43, %v2552_v12 }
 0x61e   : > { %v5389_v31 = vpop.eup %5388 }
 0x61f   : > { %v5391_v5 = vpop.eup %5390  ;;  %v2365_v9 = vpop.xlane.xlu1 %2364  ;;  %v2551_v25 = vmul.f32 %v5389_v31, %v7825_v47  ;;  %v2618_v49 = vmul.f32 0.25, %v2593_v17 }
 0x620   : > { %5396 = vrcp.f32 %v2365_v9  ;;  %v2541_v50 = vmul.f32 %v5391_v5, %v7826_v26 }
 0x621   : > { %v2587_v18 = vadd.f32 %v7030_v1, %v2551_v25  ;;  %v2667_v61 = vpack.c.bf16 %v2551_v25, %v7055_v21  ;;  %2634 = vst [vmem:[%s7042_s28 + $0x58] sm:$0xff] %v2618_v49 }
 0x622   : > { %v5393_v27 = vpop.eup %5392  ;;  %v2662_v21 = vpack.c.bf16 %v2541_v50, %v7068_v10  ;;  %v2604_v29 = vadd.f32 %v2603_v51, %v2541_v50 }
 0x623   : > { %v2616_v57 = vmul.f32 0.25, %v2587_v18  ;;  %4904 = vmatprep.mubr.bf16.mxu1 %v2667_v61  ;;  %v2539_v36 = vmul.f32 %v5393_v27, %v6910_v7 }
 0x624   : > { %4905 = vmatmul.mubr.bf16.gmra.mrb[72].mxu1 %v2668_v63 }
 0x625   : > { %2632 = vst [vmem:[%s7042_s28 + $0x48] sm:$0xff] %v2616_v57  ;;  %v2661_v2 = vpack.c.bf16 %v2539_v36, %v7062_v24  ;;  %v2598_v11 = vadd.f32 %v2597_v32, %v2539_v36 }
 0x626   : > { %v5395_v1 = vpop.eup %5394 }
 0x627   : > { %4876 = vmatprep.mubr.bf16.mxu0 %v2661_v2  ;;  %v2555_v55 = vmul.f32 %v5395_v1, %v7827_v42 }
 0x628   : > { %4877 = vmatmul.mubr.bf16.gmra.mrb[60].mxu0 %v2662_v21 }
 0x629   : > { %v2599_v7 = vadd.f32 %v2598_v11, %v2555_v55  ;;  %v2669_v0 = vpack.c.bf16 %v2555_v55, %v7071_v4 }
 0x62a   : > { %v5397_v45 = vpop.eup %5396 }
 0x62b   : > { %v2620_v33 = vmul.f32 0.25, %v2599_v7  ;;  %4908 = vmatprep.mubr.bf16.mxu1 %v2669_v0  ;;  %v2557_v24 = vmul.f32 %v5397_v45, %v6938_v8 }
 0x62d   : > { %2636 = vst [vmem:[%s7042_s28 + $0x68] sm:$0xff] %v2620_v33  ;;  %v2605_v10 = vadd.f32 %v2604_v29, %v2557_v24  ;;  %v2670_v22 = vpack.c.bf16 %v2557_v24, %v7077_v59 }
 0x62f   : > { %v2622_v34 = vmul.f32 0.25, %v2605_v10  ;;  %4909 = vmatmul.mubr.bf16.gmra.mrb[76].mxu1 %v2670_v22 }
 0x631   : > { %2638 = vst [vmem:[%s7042_s28 + $0x78] sm:$0xff] %v2622_v34 }
 0x635   : > { %v4802_v52 = vpop.f32.mrb[32].mxu0 }
 0x636   : > { %v2737_v28 = vpop.f32.mrb[33].mxu0 }
 0x637   : > { %v4803_v48 = vpop.f32.mrb[34].mxu0 }
 0x638   : > { %v3092_v44 = vpack.c.bf16 %v4803_v48, %v4802_v52  ;;  %v2740_v6 = vpop.f32.mrb[35].mxu0  ;;  %v5098_v48 = vld [vmem:[%s7828_s5] sm:$0xff]  }
 0x639   : > { %v3091_v19 = vpack.c.bf16 %v2740_v6, %v2737_v28  ;;  %4912 = vmatprep.subr.bf16.mxu0 %v5098_v48 }
 0x63a   : > { %3100 = vst.msk [vmem:[#allocation5 + $0x8] sm:$0xff] %vm1046_vm1, %v3092_v44  ;;  %4913 = vmatpush3.bf16.msra.mxu0 %v5098_v48  ;;  %v5099_v44 = vld [vmem:[%s7828_s5 + $0x8] sm:$0xff]   ;;  %v7209_v48 = vld [vmem:[%s7691_s6] ss:$0 sm:$0xff] }
 0x63b   : > { %3099 = vst.msk [vmem:[#allocation5] sm:$0xff] %vm1046_vm1, %v3091_v19  ;;  %4914 = vmatprep.subr.bf16.mxu0 %v5099_v44 }
 0x63e   : > { %4915 = vmatpush3.bf16.msra.mxu0 %v5099_v44 }
 0x647   : > { %v4806_v4 = vpop.f32.mrb[36].mxu0 }
 0x648   : > { %v2753_v20 = vpop.f32.mrb[37].mxu0 }
 0x649   : > { %v4807_v8 = vpop.f32.mrb[38].mxu0 }
 0x64a   : > { %v3094_v53 = vpack.c.bf16 %v4807_v8, %v4806_v4  ;;  %v2756_v58 = vpop.f32.mrb[39].mxu0 }
 0x64b   : > { %v3093_v60 = vpack.c.bf16 %v2756_v58, %v2753_v20 }
 0x64c   : > { %3102 = vst.msk [vmem:[#allocation5 + $0x18] sm:$0xff] %vm1046_vm1, %v3094_v53 }
 0x64d   : > { %3101 = vst.msk [vmem:[#allocation5 + $0x10] sm:$0xff] %vm1046_vm1, %v3093_v60 }
 0x656   : > { %v4810_v59 = vpop.f32.mrb[40].mxu0 }
 0x657   : > { %v2769_v16 = vpop.f32.mrb[41].mxu0 }
 0x658   : > { %v4811_v30 = vpop.f32.mrb[42].mxu0 }
 0x659   : > { %v3096_v37 = vpack.c.bf16 %v4811_v30, %v4810_v59  ;;  %v2772_v39 = vpop.f32.mrb[43].mxu0 }
 0x65a   : > { %v3095_v38 = vpack.c.bf16 %v2772_v39, %v2769_v16 }
 0x65b   : > { %3104 = vst.msk [vmem:[#allocation5 + $0x28] sm:$0xff] %vm1046_vm1, %v3096_v37 }
 0x65c   : > { %3103 = vst.msk [vmem:[#allocation5 + $0x20] sm:$0xff] %vm1046_vm1, %v3095_v38 }
 0x666   : > { %v4814_v3 = vpop.f32.mrb[44].mxu0 }
 0x667   : > { %v2785_v62 = vpop.f32.mrb[45].mxu0 }
 0x668   : > { %v4815_v15 = vpop.f32.mrb[46].mxu0 }
 0x669   : > { %v3098_v54 = vpack.c.bf16 %v4815_v15, %v4814_v3  ;;  %v2788_v13 = vpop.f32.mrb[47].mxu0 }
 0x66a   : > { %v3097_v41 = vpack.c.bf16 %v2788_v13, %v2785_v62 }
 0x66b   : > { %3106 = vst.msk [vmem:[#allocation5 + $0x38] sm:$0xff] %vm1046_vm1, %v3098_v54 }
 0x66c   : > { %3105 = vst.msk [vmem:[#allocation5 + $0x30] sm:$0xff] %vm1046_vm1, %v3097_v41 }
 0x67e   : > { %v4834_v23 = vpop.f32.mrb[48].mxu1 }
 0x67f   : > { %v4866_v12 = vpop.f32.mrb[48].mxu0  ;;  %v2834_v46 = vpop.f32.mrb[49].mxu1 }
 0x680   : > { %v2931_v40 = vpop.f32.mrb[49].mxu0  ;;  %v4835_v35 = vpop.f32.mrb[50].mxu1 }
 0x681   : > { %v3108_v56 = vpack.c.bf16 %v4835_v35, %v4834_v23  ;;  %v4867_v43 = vpop.f32.mrb[50].mxu0  ;;  %v2837_v14 = vpop.f32.mrb[51].mxu1 }
 0x682   : > { %v3157_v17 = vpack.c.bf16 %v4867_v43, %v4866_v12  ;;  %v3107_v31 = vpack.c.bf16 %v2837_v14, %v2834_v46  ;;  %v2934_v5 = vpop.f32.mrb[51].mxu0 }
 0x683   : > { %v3156_v9 = vpack.c.bf16 %v2934_v5, %v2931_v40  ;;  %3125 = vrot.lane.b32.xlu1 %v3108_v56, %s7741_s22 }
 0x684   : > { %3174 = vrot.lane.b32.xlu0 %v3157_v17, %s7739_s20 }
 0x687   : > { %v4870_v47 = vpop.f32.mrb[52].mxu0  ;;  %3172 = vrot.lane.b32.xlu1 %v3156_v9, %s7739_s20 }
 0x688   : > { %3123 = vrot.lane.b32.xlu0 %v3107_v31, %s7741_s22  ;;  %v2947_v25 = vpop.f32.mrb[53].mxu0 }
 0x689   : > { %v4871_v49 = vpop.f32.mrb[54].mxu0 }
 0x68a   : > { %v3159_v18 = vpack.c.bf16 %v4871_v49, %v4870_v47  ;;  %v2950_v61 = vpop.f32.mrb[55].mxu0  ;;  %v4838_v27 = vpop.f32.mrb[52].mxu1 }
 0x68b   : > { %v3158_v63 = vpack.c.bf16 %v2950_v61, %v2947_v25  ;;  %v2850_v26 = vpop.f32.mrb[53].mxu1 }
 0x68c   : > { %v4839_v50 = vpop.f32.mrb[54].mxu1 }
 0x68d   : > { %v3110_v57 = vpack.c.bf16 %v4839_v50, %v4838_v27  ;;  %v2853_v36 = vpop.f32.mrb[55].mxu1 }
 0x68e   : > { %v3109_v32 = vpack.c.bf16 %v2853_v36, %v2850_v26 }
 0x68f   : > { %v4874_v2 = vpop.f32.mrb[56].mxu0  ;;  %3129 = vrot.lane.b32.xlu0 %v3110_v57, %s7741_s22 }
 0x690   : > { %v2963_v1 = vpop.f32.mrb[57].mxu0  ;;  %3127 = vrot.lane.b32.xlu1 %v3109_v32, %s7741_s22 }
 0x691   : > { %v4875_v21 = vpop.f32.mrb[58].mxu0 }
 0x692   : > { %v3161_v51 = vpack.c.bf16 %v4875_v21, %v4874_v2  ;;  %v2966_v11 = vpop.f32.mrb[59].mxu0 }
 0x693   : > { %v3160_v42 = vpack.c.bf16 %v2966_v11, %v2963_v1  ;;  %3178 = vrot.lane.b32.xlu0 %v3159_v18, %s7739_s20 }
 0x694   : > { %3176 = vrot.lane.b32.xlu1 %v3158_v63, %s7739_s20 }
 0x696   : > { %v4842_v55 = vpop.f32.mrb[56].mxu1 }
 0x697   : > { %v2866_v7 = vpop.f32.mrb[57].mxu1 }
 0x698   : > { %v4843_v0 = vpop.f32.mrb[58].mxu1 }
 0x699   : > { %v3112_v45 = vpack.c.bf16 %v4843_v0, %v4842_v55  ;;  %v2869_v29 = vpop.f32.mrb[59].mxu1 }
 0x69a   : > { %v3111_v33 = vpack.c.bf16 %v2869_v29, %v2866_v7 }
 0x69b   : > { %3133 = vrot.lane.b32.xlu0 %v3112_v45, %s7741_s22 }
 0x69c   : > { %3131 = vrot.lane.b32.xlu1 %v3111_v33, %s7741_s22  ;;  %s5586_s22 = smov 24  }
 0x6d3   : > { %v4846_v24 = vpop.f32.mrb[60].mxu1 }
 0x6d4   : > { %v2882_v10 = vpop.f32.mrb[61].mxu1 }
 0x6d5   : > { %v4847_v22 = vpop.f32.mrb[62].mxu1 }
 0x6d6   : > { %v3114_v34 = vpack.c.bf16 %v4847_v22, %v4846_v24  ;;  %v2885_v52 = vpop.f32.mrb[63].mxu1 }
 0x6d7   : > { %v3113_v28 = vpack.c.bf16 %v2885_v52, %v2882_v10 }
 0x6df   : > { %v4898_v6 = vpop.f32.mrb[64].mxu1 }
 0x6e0   : > { %v3028_v19 = vpop.f32.mrb[65].mxu1 }
 0x6e1   : > { %v4899_v4 = vpop.f32.mrb[66].mxu1 }
 0x6e2   : > { %v3206_v20 = vpack.c.bf16 %v4899_v4, %v4898_v6  ;;  %v3031_v8 = vpop.f32.mrb[67].mxu1  ;;  %v1295_v6 = vld [vmem:[%s5730_s24] sm:$0xff] }
 0x6e3   : > { %v3205_v53 = vpack.c.bf16 %v3031_v8, %v3028_v19  ;;  %v1298_v8 = vld [vmem:[%s5730_s24 + $0x18] sm:$0xff] }
 0x6e4   : > { %3223 = vrot.lane.b32.xlu0 %v3206_v20, %s5586_s22 }
 0x6e5   : > { %3221 = vrot.lane.b32.xlu1 %v3205_v53, %s5586_s22 }
 0x6e8   : > { %3182 = vrot.lane.b32.xlu0 %v3161_v51, %s7829_s0 }
 0x6e9   : > { %3180 = vrot.lane.b32.xlu1 %v3160_v42, %s7829_s0 }
 0x6eb   : > { %v4902_v58 = vpop.f32.mrb[68].mxu1 }
 0x6ec   : > { %v3044_v60 = vpop.f32.mrb[69].mxu1 }
 0x6ed   : > { %v4903_v59 = vpop.f32.mrb[70].mxu1 }
 0x6ee   : > { %v3208_v16 = vpack.c.bf16 %v4903_v59, %v4902_v58  ;;  %v3047_v30 = vpop.f32.mrb[71].mxu1  ;;  %v1296_v58 = vld [vmem:[%s5730_s24 + $0x8] sm:$0xff] }
 0x6ef   : > { %v3207_v37 = vpack.c.bf16 %v3047_v30, %v3044_v60 }
 0x6f0   : > { %3227 = vrot.lane.b32.xlu0 %v3208_v16, %s5586_s22 }
 0x6f1   : > { %3225 = vrot.lane.b32.xlu1 %v3207_v37, %s5586_s22  ;;  %v1297_v37 = vld [vmem:[%s5730_s24 + $0x10] sm:$0xff] }
 0x6f4   : > { %3137 = vrot.lane.b32.xlu0 %v3114_v34, %s7830_s1 }
 0x6f5   : > { %v3126_v39 = vpop.permute.xlu1 %3125  ;;  %3135 = vrot.lane.b32.xlu1 %v3113_v28, %s7830_s1 }
 0x6f6   : > { %3149 = vst.msk [vmem:[#allocation5 + $0x8] sm:$0xff] %vm3147_vm4, %v3126_v39  ;;  %v3175_v38 = vpop.permute.xlu0 %3174 }
 0x6f7   : > { %3198 = vst.msk [vmem:[#allocation5 + $0x8] sm:$0xff] %vm3196_vm5, %v3175_v38  ;;  %v4906_v3 = vpop.f32.mrb[72].mxu1 }
 0x6f8   : > { %v3060_v62 = vpop.f32.mrb[73].mxu1 }
 0x6f9   : > { %v3173_v15 = vpop.permute.xlu1 %3172  ;;  %v4907_v54 = vpop.f32.mrb[74].mxu1 }
 0x6fa   : > { %v3210_v13 = vpack.c.bf16 %v4907_v54, %v4906_v3  ;;  %v3124_v41 = vpop.permute.xlu0 %3123  ;;  %v3063_v23 = vpop.f32.mrb[75].mxu1 }
 0x6fb   : > { %3148 = vst.msk [vmem:[#allocation5] sm:$0xff] %vm3147_vm4, %v3124_v41  ;;  %v3209_v12 = vpack.c.bf16 %v3063_v23, %v3060_v62  ;;  %v4878_v46 = vpop.f32.mrb[60].mxu0  ;;  %v1299_v23 = vld [vmem:[%s5730_s24 + $0x20] sm:$0xff] }
 0x6fc   : > { %3197 = vst.msk [vmem:[#allocation5] sm:$0xff] %vm3196_vm5, %v3173_v15  ;;  %3231 = vrot.lane.b32.xlu0 %v3210_v13, %s5586_s22  ;;  %v2979_v40 = vpop.f32.mrb[61].mxu0 }
 0x6fd   : > { %3229 = vrot.lane.b32.xlu1 %v3209_v12, %s5586_s22  ;;  %v4879_v35 = vpop.f32.mrb[62].mxu0 }
 0x6fe   : > { %v3163_v56 = vpack.c.bf16 %v4879_v35, %v4878_v46  ;;  %v2982_v43 = vpop.f32.mrb[63].mxu0 }
 0x6ff   : > { %v3162_v14 = vpack.c.bf16 %v2982_v43, %v2979_v40  ;;  %v1300_v43 = vld [vmem:[%s5730_s24 + $0x28] sm:$0xff] }
 0x700   : > { %3186 = vrot.lane.b32.xlu0 %v3163_v56, %s7829_s0  ;;  %v1301_v56 = vld [vmem:[%s5730_s24 + $0x30] sm:$0xff] }
 0x701   : > { %3184 = vrot.lane.b32.xlu1 %v3162_v14, %s7829_s0  ;;  %v3130_v17 = vpop.permute.xlu0 %3129 }
 0x702   : > { %3151 = vst.msk [vmem:[#allocation5 + $0x18] sm:$0xff] %vm3147_vm4, %v3130_v17  ;;  %v3128_v31 = vpop.permute.xlu1 %3127  ;;  %v4910_v5 = vpop.f32.mrb[76].mxu1 }
 0x703   : > { %3150 = vst.msk [vmem:[#allocation5 + $0x10] sm:$0xff] %vm3147_vm4, %v3128_v31  ;;  %v3076_v9 = vpop.f32.mrb[77].mxu1 }
 0x704   : > { %v4911_v47 = vpop.f32.mrb[78].mxu1 }
 0x705   : > { %v3212_v25 = vpack.c.bf16 %v4911_v47, %v4910_v5  ;;  %v3079_v49 = vpop.f32.mrb[79].mxu1  ;;  %v3179_v18 = vpop.permute.xlu0 %3178 }
 0x706   : > { %v3211_v61 = vpack.c.bf16 %v3079_v49, %v3076_v9  ;;  %3200 = vst.msk [vmem:[#allocation5 + $0x18] sm:$0xff] %vm3196_vm5, %v3179_v18  ;;  %v3177_v27 = vpop.permute.xlu1 %3176  ;;  %v1302_v9 = vld [vmem:[%s5730_s24 + $0x38] sm:$0xff] }
 0x707   : > { %3199 = vst.msk [vmem:[#allocation5 + $0x10] sm:$0xff] %vm3196_vm5, %v3177_v27  ;;  %3235 = vrot.lane.b32.xlu0 %v3212_v25, %s5586_s22 }
 0x708   : > { %3233 = vrot.lane.b32.xlu1 %v3211_v61, %s5586_s22 }
 0x70d   : > { %v3134_v63 = vpop.permute.xlu0 %3133 }
 0x70e   : > { %3153 = vst.msk [vmem:[#allocation5 + $0x28] sm:$0xff] %vm3147_vm4, %v3134_v63  ;;  %v3132_v26 = vpop.permute.xlu1 %3131 }
 0x70f   : > { %3152 = vst.msk [vmem:[#allocation5 + $0x20] sm:$0xff] %vm3147_vm4, %v3132_v26 }
 0x756   : > { %v3224_v50 = vpop.permute.xlu0 %3223 }
 0x757   : > { %3247 = vst.msk [vmem:[#allocation5 + $0x8] sm:$0xff] %vm3245_vm6, %v3224_v50  ;;  %v3222_v57 = vpop.permute.xlu1 %3221  ;;  %v1303_v50 = vld [vmem:[%s5730_s24 + $0x40] sm:$0xff] }
 0x758   : > { %3246 = vst.msk [vmem:[#allocation5] sm:$0xff] %vm3245_vm6, %v3222_v57 }
 0x75a   : > { %v3183_v36 = vpop.permute.xlu0 %3182 }
 0x75b   : > { %3202 = vst.msk [vmem:[#allocation5 + $0x28] sm:$0xff] %vm3196_vm5, %v3183_v36  ;;  %v3181_v32 = vpop.permute.xlu1 %3180 }
 0x75c   : > { %3201 = vst.msk [vmem:[#allocation5 + $0x20] sm:$0xff] %vm3196_vm5, %v3181_v32 }
 0x75e   : > { %v3255_v1 = vld [vmem:[#allocation5 + $0x8] sm:$0xff] }
 0x75f   : > { %v3254_v2 = vld [vmem:[#allocation5] sm:$0xff] }
 0x760   : > { %4916 = vmatprep.mubr.msk.bf16.mxu0 %vm528_vm0, %v3254_v2 }
 0x761   : > { %4917 = vmatmul.mubr.msk.bf16.vlgmr.msra.gmra.mrb[64].mxu0 %vm528_vm0, %v3255_v1  ;;  %v1305_v1 = vld [vmem:[%s5730_s24 + $0x50] sm:$0xff] }
 0x762   : > { %v3228_v21 = vpop.permute.xlu0 %3227 }
 0x763   : > { %3249 = vst.msk [vmem:[#allocation5 + $0x18] sm:$0xff] %vm3245_vm6, %v3228_v21  ;;  %v3226_v51 = vpop.permute.xlu1 %3225  ;;  %v1304_v21 = vld [vmem:[%s5730_s24 + $0x48] sm:$0xff] }
 0x764   : > { %3248 = vst.msk [vmem:[#allocation5 + $0x10] sm:$0xff] %vm3245_vm6, %v3226_v51 }
 0x766   : > { %v3138_v11 = vpop.permute.xlu0 %3137 }
 0x767   : > { %3155 = vst.msk [vmem:[#allocation5 + $0x38] sm:$0xff] %vm3147_vm4, %v3138_v11  ;;  %v3136_v42 = vpop.permute.xlu1 %3135 }
 0x768   : > { %3154 = vst.msk [vmem:[#allocation5 + $0x30] sm:$0xff] %vm3147_vm4, %v3136_v42 }
 0x76a   : > { %v3257_v7 = vld [vmem:[#allocation5 + $0x18] sm:$0xff] }
 0x76b   : > { %v3256_v55 = vld [vmem:[#allocation5 + $0x10] sm:$0xff] }
 0x76c   : > { %4920 = vmatprep.mubr.msk.bf16.mxu0 %vm528_vm0, %v3256_v55 }
 0x76d   : > { %4921 = vmatmul.mubr.msk.bf16.gmra.mrb[68].mxu0 %vm528_vm0, %v3257_v7  ;;  %v1306_v7 = vld [vmem:[%s5730_s24 + $0x58] sm:$0xff] }
 0x76e   : > { %v3232_v0 = vpop.permute.xlu0 %3231 }
 0x76f   : > { %3251 = vst.msk [vmem:[#allocation5 + $0x28] sm:$0xff] %vm3245_vm6, %v3232_v0  ;;  %v3230_v45 = vpop.permute.xlu1 %3229 }
 0x770   : > { %3250 = vst.msk [vmem:[#allocation5 + $0x20] sm:$0xff] %vm3245_vm6, %v3230_v45 }
 0x772   : > { %v3187_v29 = vpop.permute.xlu0 %3186 }
 0x773   : > { %3204 = vst.msk [vmem:[#allocation5 + $0x38] sm:$0xff] %vm3196_vm5, %v3187_v29  ;;  %v3185_v33 = vpop.permute.xlu1 %3184 }
 0x774   : > { %3203 = vst.msk [vmem:[#allocation5 + $0x30] sm:$0xff] %vm3196_vm5, %v3185_v33 }
 0x776   : > { %v3259_v10 = vld [vmem:[#allocation5 + $0x28] sm:$0xff] }
 0x777   : > { %v3258_v24 = vld [vmem:[#allocation5 + $0x20] sm:$0xff] }
 0x778   : > { %4924 = vmatprep.mubr.msk.bf16.mxu0 %vm528_vm0, %v3258_v24 }
 0x779   : > { %4925 = vmatmul.mubr.msk.bf16.gmra.mrb[72].mxu0 %vm528_vm0, %v3259_v10  ;;  %v3236_v22 = vpop.permute.xlu0 %3235 }
 0x77a   : > { %3253 = vst.msk [vmem:[#allocation5 + $0x38] sm:$0xff] %vm3245_vm6, %v3236_v22  ;;  %v3234_v34 = vpop.permute.xlu1 %3233 }
 0x77b   : > { %3252 = vst.msk [vmem:[#allocation5 + $0x30] sm:$0xff] %vm3245_vm6, %v3234_v34  ;;  %v1307_v34 = vld [vmem:[%s5730_s24 + $0x60] sm:$0xff] }
 0x781   : > { %v3261_v28 = vld [vmem:[#allocation5 + $0x38] sm:$0xff] }
 0x782   : > { %v3260_v52 = vld [vmem:[#allocation5 + $0x30] sm:$0xff] }
 0x783   : > { %4928 = vmatprep.mubr.msk.bf16.mxu0 %vm528_vm0, %v3260_v52 }
 0x784   : > { %4929 = vmatmul.mubr.msk.bf16.gmra.mrb[76].mxu0 %vm528_vm0, %v3261_v28 }
 0x834   : > { %v4918_v44 = vpop.f32.mrb[64].mxu0 }
 0x835   : > { %v3344_v19 = vpop.f32.mrb[65].mxu0  ;;  %v3353_v59 = vadd.f32 %v4918_v44, %v7209_v48 }
 0x836   : > { %v3345_v4 = vadd.f32 %v7209_v48, %v3344_v19  ;;  %v4919_v20 = vpop.f32.mrb[66].mxu0 }
 0x837   : > { %v3356_v53 = vadd.f32 %v4919_v20, %v7209_v48  ;;  %v3347_v60 = vpop.f32.mrb[67].mxu0  ;;  %v7227_v62 = vadd.f32 %v3353_v59, %v1297_v37  ;;  %v1308_v20 = vld [vmem:[%s5730_s24 + $0x68] sm:$0xff]  ;;  %v1310_v59 = vld [vmem:[%s5730_s24 + $0x78] sm:$0xff] }
 0x838   : > { %v7217_v16 = vadd.f32 %v3345_v4, %v1295_v6  ;;  %v3348_v30 = vadd.f32 %v7209_v48, %v3347_v60  ;;  %v1309_v4 = vld [vmem:[%s5730_s24 + $0x70] sm:$0xff]  ;;  %s7831_s24 = sshll.u32 %s5722_s27, 7  ;;  %s4534_s27 = sshll.u32 %s5566_s16, 11 }
 0x839   : > { %v7221_v39 = vadd.f32 %v3356_v53, %v1298_v8  ;;  %v3431_v41 = vsel %vm528_vm0, %v7227_v62, 0.0  ;;  %s7589_s0 = scalar_lea.vmem %s7698_s13, %s7831_s24  ;;  %s7626_s22 = scalar_lea.hbm %s7699_s14, %s4534_s27 }
 0x83a   : > { %v7223_v38 = vadd.f32 %v3348_v30, %v1296_v58  ;;  %v3425_v3 = vsel %vm528_vm0, %v7217_v16, 0.0  ;;  %s7832_s24 = sand.u32 1, %s5558_s30   ;;  %s5588_s16 = smov [#allocation6]  }
 0x83b   : > { %3426 = vadd.xlane.f32.xlu1 %v3425_v3  ;;  %v3434_v54 = vsel %vm528_vm0, %v7221_v39, 0.0  ;;  %s7632_s20 = scalar_lea.sflag [#allocation7], %s7832_s24  ;;  %s5500_s28 = sshll.u32 %s5588_s16, 4  ;;  %s5501_s28 = int_to_ptr.vmem [resolvable:$false] %s5500_s28 }
 0x83c   : > { %v3428_v15 = vsel %vm528_vm0, %v7223_v38, 0.0  ;;  %s5502_s5 = scalar_lea.vmem %s5501_s28, 4096  ;;  %p5503_p1 = scmp.lt.s32.totalorder %s7628_s3, %s5501_s28 }
 0x83d   : > { %3429 = vadd.xlane.f32.xlu0 %v3428_v15  ;;  %p5504_p2 = scmp.lt.s32.totalorder %s5502_s5, %s5496_s2 }
 0x83f   : > { %3435 = vadd.xlane.f32.xlu1 %v3434_v54  ;;  %p5505_p3 = por %p5504_p2, %p5503_p1 }
 0x840   : > { %v4922_v13 = vpop.f32.mrb[68].mxu0 }
 0x841   : > { %3432 = vadd.xlane.f32.xlu0 %v3431_v41  ;;  %v3360_v12 = vpop.f32.mrb[69].mxu0  ;;  %v3369_v46 = vadd.f32 %v4922_v13, %v7209_v48  ;;  %p5506_p5 = pnand %p5505_p3, %p5499_p0 }
 0x842   : > { %v3361_v40 = vadd.f32 %v7209_v48, %v3360_v12  ;;  %v4923_v35 = vpop.f32.mrb[70].mxu0 }
 0x843   : > { %v3363_v14 = vpop.f32.mrb[71].mxu0  ;;  %v3372_v31 = vadd.f32 %v4923_v35, %v7209_v48  ;;  %v7245_v47 = vadd.f32 %v3369_v46, %v1301_v56 }
 0x844   : > { %v7240_v17 = vadd.f32 %v3361_v40, %v1299_v23  ;;  %v3364_v5 = vadd.f32 %v7209_v48, %v3363_v14 }
 0x845   : > { %v7251_v18 = vadd.f32 %v3372_v31, %v1302_v9  ;;  %v3443_v27 = vsel %vm528_vm0, %v7245_v47, 0.0 }
 0x846   : > { %v7247_v25 = vadd.f32 %v3364_v5, %v1300_v43  ;;  %v3437_v49 = vsel %vm528_vm0, %v7240_v17, 0.0 }
 0x847   : > { %3438 = vadd.xlane.f32.xlu0 %v3437_v49  ;;  %v3446_v26 = vsel %vm528_vm0, %v7251_v18, 0.0 }
 0x848   : > { %v3440_v61 = vsel %vm528_vm0, %v7247_v25, 0.0 }
 0x849   : > { %3441 = vadd.xlane.f32.xlu1 %v3440_v61 }
 0x84b   : > { %3444 = vadd.xlane.f32.xlu0 %v3443_v27 }
 0x84c   : > { %v4926_v63 = vpop.f32.mrb[72].mxu0 }
 0x84d   : > { %3447 = vadd.xlane.f32.xlu1 %v3446_v26  ;;  %v3376_v57 = vpop.f32.mrb[73].mxu0  ;;  %v3385_v36 = vadd.f32 %v4926_v63, %v7209_v48 }
 0x84e   : > { %v3377_v32 = vadd.f32 %v7209_v48, %v3376_v57  ;;  %v4927_v2 = vpop.f32.mrb[74].mxu0 }
 0x84f   : > { %v3379_v51 = vpop.f32.mrb[75].mxu0  ;;  %v3388_v42 = vadd.f32 %v4927_v2, %v7209_v48  ;;  %v7269_v0 = vadd.f32 %v3385_v36, %v1305_v1 }
 0x850   : > { %v7264_v11 = vadd.f32 %v3377_v32, %v1303_v50  ;;  %v3380_v55 = vadd.f32 %v7209_v48, %v3379_v51 }
 0x851   : > { %v7275_v33 = vadd.f32 %v3388_v42, %v1306_v7  ;;  %v3455_v10 = vsel %vm528_vm0, %v7269_v0, 0.0 }
 0x852   : > { %v7271_v45 = vadd.f32 %v3380_v55, %v1304_v21  ;;  %v3449_v29 = vsel %vm528_vm0, %v7264_v11, 0.0 }
 0x853   : > { %3450 = vadd.xlane.f32.xlu0 %v3449_v29  ;;  %v3458_v28 = vsel %vm528_vm0, %v7275_v33, 0.0 }
 0x854   : > { %v3452_v24 = vsel %vm528_vm0, %v7271_v45, 0.0 }
 0x855   : > { %3453 = vadd.xlane.f32.xlu1 %v3452_v24 }
 0x857   : > { %3456 = vadd.xlane.f32.xlu0 %v3455_v10  ;;  %v4930_v22 = vpop.f32.mrb[76].mxu0 }
 0x858   : > { %v3392_v52 = vpop.f32.mrb[77].mxu0  ;;  %v3401_v44 = vadd.f32 %v4930_v22, %v7209_v48 }
 0x859   : > { %v3393_v6 = vadd.f32 %v7209_v48, %v3392_v52  ;;  %3459 = vadd.xlane.f32.xlu1 %v3458_v28  ;;  %v4931_v19 = vpop.f32.mrb[78].mxu0 }
 0x85a   : > { %v3395_v8 = vpop.f32.mrb[79].mxu0  ;;  %v3404_v58 = vadd.f32 %v4931_v19, %v7209_v48  ;;  %v7293_v30 = vadd.f32 %v3401_v44, %v1309_v4 }
 0x85b   : > { %v7288_v53 = vadd.f32 %v3393_v6, %v1307_v34  ;;  %v3396_v60 = vadd.f32 %v7209_v48, %v3395_v8 }
 0x85c   : > { %v7299_v15 = vadd.f32 %v3404_v58, %v1310_v59  ;;  %v3467_v13 = vsel %vm528_vm0, %v7293_v30, 0.0 }
 0x85d   : > { %v7295_v37 = vadd.f32 %v3396_v60, %v1308_v20  ;;  %v3461_v3 = vsel %vm528_vm0, %v7288_v53, 0.0 }
 0x85e   : > { %3462 = vadd.xlane.f32.xlu0 %v3461_v3  ;;  %v3470_v48 = vsel %vm528_vm0, %v7299_v15, 0.0 }
 0x85f   : > { %v3464_v54 = vsel %vm528_vm0, %v7295_v37, 0.0 }
 0x860   : > { %3465 = vadd.xlane.f32.xlu1 %v3464_v54 }
 0x862   : > { %3468 = vadd.xlane.f32.xlu0 %v3467_v13 }
 0x864   : > { %3471 = vadd.xlane.f32.xlu1 %v3470_v48 }
 0x8c8   : > { %v3427_v41 = vpop.xlane.xlu1 %3426 }
 0x8c9   : > { %v3474_v23 = vmul.f32 0.03125, %v3427_v41 }
 0x8ca   : > { %v3430_v12 = vpop.xlane.xlu0 %3429 }
 0x8cb   : > { %v7308_v46 = vsub.f32 %v7217_v16, %v3474_v23  ;;  %v3475_v40 = vmul.f32 0.03125, %v3430_v12 }
 0x8cc   : > { %v3436_v35 = vpop.xlane.xlu1 %3435 }
 0x8cd   : > { %v7311_v56 = vsub.f32 %v7223_v38, %v3475_v40  ;;  %v3477_v43 = vmul.f32 0.03125, %v3436_v35  ;;  %v3506_v14 = vmul.f32 %v7308_v46, %v7308_v46 }
 0x8ce   : > { %v3433_v31 = vpop.xlane.xlu0 %3432 }
 0x8cf   : > { %v7316_v5 = vsub.f32 %v7221_v39, %v3477_v43  ;;  %v3476_v9 = vmul.f32 0.03125, %v3433_v31  ;;  %v3522_v49 = vsel %vm528_vm0, %v3506_v14, 0.0  ;;  %v3507_v61 = vmul.f32 %v7311_v56, %v7311_v56 }
 0x8d0   : > { %3523 = vadd.xlane.f32.xlu0 %v3522_v49 }
 0x8d1   : > { %v7322_v27 = vsub.f32 %v7227_v62, %v3476_v9  ;;  %v3525_v38 = vsel %vm528_vm0, %v3507_v61, 0.0  ;;  %v3509_v63 = vmul.f32 %v7316_v5, %v7316_v5 }
 0x8d2   : > { %3526 = vadd.xlane.f32.xlu1 %v3525_v38 }
 0x8d3   : > { %v3508_v39 = vmul.f32 %v7322_v27, %v7322_v27  ;;  %v3531_v57 = vsel %vm528_vm0, %v3509_v63, 0.0 }
 0x8d4   : > { %v3439_v26 = vpop.xlane.xlu0 %3438 }
 0x8d5   : > { %v3478_v50 = vmul.f32 0.03125, %v3439_v26  ;;  %v3528_v36 = vsel %vm528_vm0, %v3508_v39, 0.0 }
 0x8d6   : > { %v3442_v32 = vpop.xlane.xlu1 %3441  ;;  %3532 = vadd.xlane.f32.xlu1 %v3531_v57  ;;  %3529 = vadd.xlane.f32.xlu0 %v3528_v36 }
 0x8d7   : > { %v7332_v62 = vsub.f32 %v7240_v17, %v3478_v50  ;;  %v3479_v2 = vmul.f32 0.03125, %v3442_v32  ;;  %v5101_v32 = vld [vmem:[%s7694_s9 + $0x8] sm:$0xff]  }
 0x8d8   : > { %v3445_v1 = vpop.xlane.xlu0 %3444 }
 0x8d9   : > { %v7335_v21 = vsub.f32 %v7247_v25, %v3479_v2  ;;  %v3480_v51 = vmul.f32 0.03125, %v3445_v1  ;;  %v3510_v42 = vmul.f32 %v7332_v62, %v7332_v62 }
 0x8da   : > { %v3448_v55 = vpop.xlane.xlu1 %3447 }
 0x8db   : > { %v7340_v7 = vsub.f32 %v7245_v47, %v3480_v51  ;;  %v3481_v29 = vmul.f32 0.03125, %v3448_v55  ;;  %v3534_v24 = vsel %vm528_vm0, %v3510_v42, 0.0  ;;  %v3511_v17 = vmul.f32 %v7335_v21, %v7335_v21 }
 0x8dc   : > { %3535 = vadd.xlane.f32.xlu0 %v3534_v24 }
 0x8dd   : > { %v7346_v10 = vsub.f32 %v7251_v18, %v3481_v29  ;;  %v3537_v25 = vsel %vm528_vm0, %v3511_v17, 0.0  ;;  %v3512_v22 = vmul.f32 %v7340_v7, %v7340_v7 }
 0x8de   : > { %3538 = vadd.xlane.f32.xlu1 %v3537_v25 }
 0x8df   : > { %v3540_v34 = vsel %vm528_vm0, %v3512_v22, 0.0  ;;  %v3513_v47 = vmul.f32 %v7346_v10, %v7346_v10 }
 0x8e0   : > { %3541 = vadd.xlane.f32.xlu0 %v3540_v34  ;;  %v3451_v52 = vpop.xlane.xlu0 %3450 }
 0x8e1   : > { %v3482_v28 = vmul.f32 0.03125, %v3451_v52  ;;  %v3543_v44 = vsel %vm528_vm0, %v3513_v47, 0.0 }
 0x8e2   : > { %v3454_v6 = vpop.xlane.xlu1 %3453  ;;  %3544 = vadd.xlane.f32.xlu1 %v3543_v44 }
 0x8e3   : > { %v7356_v18 = vsub.f32 %v7264_v11, %v3482_v28  ;;  %v3483_v19 = vmul.f32 0.03125, %v3454_v6 }
 0x8e4   : > { %v3457_v4 = vpop.xlane.xlu0 %3456 }
 0x8e5   : > { %v7359_v20 = vsub.f32 %v7271_v45, %v3483_v19  ;;  %v3484_v8 = vmul.f32 0.03125, %v3457_v4  ;;  %v3514_v58 = vmul.f32 %v7356_v18, %v7356_v18  ;;  %v7412_v19 = vld [vmem:[%s7692_s7] ss:$0 sm:$0xff] }
 0x8e6   : > { %v3460_v60 = vpop.xlane.xlu1 %3459 }
 0x8e7   : > { %v7364_v59 = vsub.f32 %v7269_v0, %v3484_v8  ;;  %v3485_v3 = vmul.f32 0.03125, %v3460_v60  ;;  %v3546_v54 = vsel %vm528_vm0, %v3514_v58, 0.0  ;;  %v3515_v11 = vmul.f32 %v7359_v20, %v7359_v20 }
 0x8e8   : > { %3547 = vadd.xlane.f32.xlu0 %v3546_v54 }
 0x8e9   : > { %v7370_v13 = vsub.f32 %v7275_v33, %v3485_v3  ;;  %v3549_v45 = vsel %vm528_vm0, %v3515_v11, 0.0  ;;  %v3516_v48 = vmul.f32 %v7364_v59, %v7364_v59 }
 0x8ea   : > { %3550 = vadd.xlane.f32.xlu1 %v3549_v45 }
 0x8eb   : > { %v3463_v41 = vpop.xlane.xlu0 %3462  ;;  %v3552_v0 = vsel %vm528_vm0, %v3516_v48, 0.0  ;;  %v3517_v23 = vmul.f32 %v7370_v13, %v7370_v13 }
 0x8ec   : > { %v3486_v12 = vmul.f32 0.03125, %v3463_v41  ;;  %3553 = vadd.xlane.f32.xlu0 %v3552_v0  ;;  %v7420_v0 = vld [vmem:[%s7693_s8] ss:$0 sm:$0xff] }
 0x8ed   : > { %v3466_v40 = vpop.xlane.xlu1 %3465  ;;  %v3555_v35 = vsel %vm528_vm0, %v3517_v23, 0.0 }
 0x8ee   : > { %v7380_v33 = vsub.f32 %v7288_v53, %v3486_v12  ;;  %v3487_v43 = vmul.f32 0.03125, %v3466_v40  ;;  %3556 = vadd.xlane.f32.xlu1 %v3555_v35 }
 0x8ef   : > { %v3469_v14 = vpop.xlane.xlu0 %3468 }
 0x8f0   : > { %v7383_v31 = vsub.f32 %v7295_v37, %v3487_v43  ;;  %v3488_v9 = vmul.f32 0.03125, %v3469_v14  ;;  %v3518_v49 = vmul.f32 %v7380_v33, %v7380_v33  ;;  %v5100_v37 = vld [vmem:[%s7694_s9] sm:$0xff]  }
 0x8f1   : > { %v3472_v61 = vpop.xlane.xlu1 %3471  ;;  %4932 = vmatprep.subr.bf16.mxu1 %v5100_v37 }
 0x8f2   : > { %v7388_v38 = vsub.f32 %v7293_v30, %v3488_v9  ;;  %v3489_v63 = vmul.f32 0.03125, %v3472_v61  ;;  %v3558_v39 = vsel %vm528_vm0, %v3518_v49, 0.0  ;;  %v3519_v53 = vmul.f32 %v7383_v31, %v7383_v31  ;;  %4933 = vmatpush3.bf16.msra.mxu1 %v5100_v37 }
 0x8f3   : > { %3559 = vadd.xlane.f32.xlu0 %v3558_v39  ;;  %4934 = vmatprep.subr.bf16.mxu1 %v5101_v32 }
 0x8f4   : > { %v7397_v26 = vsub.f32 %v7299_v15, %v3489_v63  ;;  %v3561_v50 = vsel %vm528_vm0, %v3519_v53, 0.0  ;;  %v3520_v30 = vmul.f32 %v7388_v38, %v7388_v38 }
 0x8f5   : > { %3562 = vadd.xlane.f32.xlu1 %v3561_v50 }
 0x8f6   : > { %v3564_v57 = vsel %vm528_vm0, %v3520_v30, 0.0  ;;  %v3521_v36 = vmul.f32 %v7397_v26, %v7397_v26  ;;  %4935 = vmatpush3.bf16.msra.mxu1 %v5101_v32 }
 0x8f7   : > { %3565 = vadd.xlane.f32.xlu0 %v3564_v57 }
 0x8f8   : > { %v3567_v15 = vsel %vm528_vm0, %v3521_v36, 0.0 }
 0x8f9   : > { %3568 = vadd.xlane.f32.xlu1 %v3567_v15 }
 0x95d   : > { %v3524_v2 = vpop.xlane.xlu0 %3523 }
 0x95e   : > { %v3570_v1 = vmul.f32 0.03125, %v3524_v2 }
 0x95f   : > { %v3527_v51 = vpop.xlane.xlu1 %3526 }
 0x960   : > { %v3586_v42 = vadd.f32 1e-05, %v3570_v1  ;;  %v3571_v55 = vmul.f32 0.03125, %v3527_v51 }
 0x962   : > { %5398 = vrsqrt.f32 %v3586_v42  ;;  %v3587_v29 = vadd.f32 1e-05, %v3571_v55 }
 0x963   : > { %v3533_v24 = vpop.xlane.xlu1 %3532  ;;  %v3530_v17 = vpop.xlane.xlu0 %3529 }
 0x964   : > { %5400 = vrsqrt.f32 %v3587_v29  ;;  %v3573_v25 = vmul.f32 0.03125, %v3533_v24  ;;  %v3572_v22 = vmul.f32 0.03125, %v3530_v17 }
 0x966   : > { %v3589_v34 = vadd.f32 1e-05, %v3573_v25  ;;  %v3588_v47 = vadd.f32 1e-05, %v3572_v22 }
 0x968   : > { %5402 = vrsqrt.f32 %v3589_v34 }
 0x969   : > { %5404 = vrsqrt.f32 %v3588_v47  ;;  %v3536_v52 = vpop.xlane.xlu0 %3535 }
 0x96a   : > { %v3574_v28 = vmul.f32 0.03125, %v3536_v52 }
 0x96b   : > { %v3539_v44 = vpop.xlane.xlu1 %3538 }
 0x96c   : > { %v5399_v6 = vpop.eup %5398  ;;  %v3590_v4 = vadd.f32 1e-05, %v3574_v28  ;;  %v3575_v8 = vmul.f32 0.03125, %v3539_v44 }
 0x96d   : > { %v3618_v58 = vmul.f32 %v5399_v6, %v7308_v46  ;;  %v3542_v60 = vpop.xlane.xlu0 %3541 }
 0x96e   : > { %v5401_v3 = vpop.eup %5400  ;;  %5406 = vrsqrt.f32 %v3590_v4  ;;  %v3591_v54 = vadd.f32 1e-05, %v3575_v8  ;;  %v3576_v11 = vmul.f32 0.03125, %v3542_v60 }
 0x96f   : > { %v3619_v45 = vmul.f32 %v5401_v3, %v7311_v56  ;;  %v3545_v48 = vpop.xlane.xlu1 %3544  ;;  %v3640_v41 = vmul.f32 %v7412_v19, %v3618_v58 }
 0x970   : > { %5408 = vrsqrt.f32 %v3591_v54  ;;  %v3592_v23 = vadd.f32 1e-05, %v3576_v11  ;;  %v3577_v12 = vmul.f32 0.03125, %v3545_v48 }
 0x971   : > { %v3641_v46 = vmul.f32 %v7412_v19, %v3619_v45  ;;  %v3662_v56 = vadd.f32 %v7420_v0, %v3640_v41 }
 0x972   : > { %v5403_v40 = vpop.eup %5402  ;;  %5410 = vrsqrt.f32 %v3592_v23  ;;  %v3593_v35 = vadd.f32 1e-05, %v3577_v12 }
 0x973   : > { %v5405_v43 = vpop.eup %5404  ;;  %v3621_v14 = vmul.f32 %v5403_v40, %v7316_v5  ;;  %v3663_v9 = vadd.f32 %v7420_v0, %v3641_v46 }
 0x974   : > { %v3620_v49 = vmul.f32 %v5405_v43, %v7322_v27  ;;  %5412 = vrsqrt.f32 %v3593_v35 }
 0x975   : > { %v3643_v61 = vmul.f32 %v7412_v19, %v3621_v14  ;;  %v3548_v63 = vpop.xlane.xlu0 %3547  ;;  %v3678_v39 = vpack.c.bf16 %v3663_v9, %v3662_v56 }
 0x976   : > { %v3642_v53 = vmul.f32 %v7412_v19, %v3620_v49  ;;  %v3578_v37 = vmul.f32 0.03125, %v3548_v63 }
 0x977   : > { %v3665_v50 = vadd.f32 %v7420_v0, %v3643_v61  ;;  %v3551_v30 = vpop.xlane.xlu1 %3550  ;;  %4936 = vmatprep.mubr.msk.bf16.mxu1 %vm528_vm0, %v3678_v39 }
 0x978   : > { %v5407_v5 = vpop.eup %5406  ;;  %v3664_v57 = vadd.f32 %v7420_v0, %v3642_v53  ;;  %v3594_v36 = vadd.f32 1e-05, %v3578_v37  ;;  %v3579_v32 = vmul.f32 0.03125, %v3551_v30 }
 0x979   : > { %v3622_v27 = vmul.f32 %v5407_v5, %v7332_v62  ;;  %v3554_v15 = vpop.xlane.xlu0 %3553 }
 0x97a   : > { %v5409_v2 = vpop.eup %5408  ;;  %5414 = vrsqrt.f32 %v3594_v36  ;;  %v3595_v1 = vadd.f32 1e-05, %v3579_v32  ;;  %v3580_v51 = vmul.f32 0.03125, %v3554_v15  ;;  %v3679_v42 = vpack.c.bf16 %v3665_v50, %v3664_v57 }
 0x97b   : > { %v3623_v55 = vmul.f32 %v5409_v2, %v7335_v21  ;;  %v3557_v29 = vpop.xlane.xlu1 %3556  ;;  %v3644_v24 = vmul.f32 %v7412_v19, %v3622_v27 }
 0x97c   : > { %v5411_v17 = vpop.eup %5410  ;;  %5416 = vrsqrt.f32 %v3595_v1  ;;  %v3596_v25 = vadd.f32 1e-05, %v3580_v51  ;;  %v3581_v22 = vmul.f32 0.03125, %v3557_v29  ;;  %4937 = vmatmul.mubr.msk.bf16.vlgmr.msra.gmra.mrb[80].mxu1 %vm528_vm0, %v3679_v42 }
 0x97d   : > { %v3624_v34 = vmul.f32 %v5411_v17, %v7340_v7  ;;  %v3645_v62 = vmul.f32 %v7412_v19, %v3623_v55  ;;  %v3666_v21 = vadd.f32 %v7420_v0, %v3644_v24 }
 0x97e   : > { %v5413_v47 = vpop.eup %5412  ;;  %5418 = vrsqrt.f32 %v3596_v25  ;;  %v3597_v52 = vadd.f32 1e-05, %v3581_v22 }
 0x97f   : > { %v3625_v28 = vmul.f32 %v5413_v47, %v7346_v10  ;;  %v3667_v44 = vadd.f32 %v7420_v0, %v3645_v62  ;;  %v3646_v4 = vmul.f32 %v7412_v19, %v3624_v34  ;;  %v5103_v62 = vld [vmem:[%s7696_s11 + $0x8] sm:$0xff]   ;;  %v5106_v47 = vld [vmem:[%s7696_s11 + $0x20] sm:$0xff]  }
 0x980   : > { %5420 = vrsqrt.f32 %v3597_v52  ;;  %v3560_v6 = vpop.xlane.xlu0 %3559  ;;  %v5107_v52 = vld [vmem:[%s7696_s11 + $0x28] sm:$0xff]  }
 0x981   : > { %v3582_v8 = vmul.f32 0.03125, %v3560_v6  ;;  %v3680_v58 = vpack.c.bf16 %v3667_v44, %v3666_v21  ;;  %v3647_v60 = vmul.f32 %v7412_v19, %v3625_v28  ;;  %v3668_v48 = vadd.f32 %v7420_v0, %v3646_v4  ;;  %v5108_v28 = vld [vmem:[%s7696_s11 + $0x30] sm:$0xff]   ;;  %v5109_v21 = vld [vmem:[%s7696_s11 + $0x38] sm:$0xff]   ;;  %v7502_v44 = vld [vmem:[%s7695_s10] ss:$0 sm:$0xff] }
 0x982   : > { %v3563_v7 = vpop.xlane.xlu1 %3562 }
 0x983   : > { %v3598_v3 = vadd.f32 1e-05, %v3582_v8  ;;  %v3583_v54 = vmul.f32 0.03125, %v3563_v7  ;;  %4940 = vmatprep.mubr.msk.bf16.mxu1 %vm528_vm0, %v3680_v58  ;;  %v3669_v11 = vadd.f32 %v7420_v0, %v3647_v60 }
 0x984   : > { %v5415_v10 = vpop.eup %5414  ;;  %v3566_v45 = vpop.xlane.xlu0 %3565 }
 0x985   : > { %v3626_v41 = vmul.f32 %v5415_v10, %v7356_v18  ;;  %5422 = vrsqrt.f32 %v3598_v3  ;;  %v3599_v23 = vadd.f32 1e-05, %v3583_v54  ;;  %v3584_v12 = vmul.f32 0.03125, %v3566_v45 }
 0x986   : > { %v5417_v46 = vpop.eup %5416  ;;  %v3569_v40 = vpop.xlane.xlu1 %3568  ;;  %v3681_v35 = vpack.c.bf16 %v3669_v11, %v3668_v48 }
 0x987   : > { %v3627_v43 = vmul.f32 %v5417_v46, %v7359_v20  ;;  %5424 = vrsqrt.f32 %v3599_v23  ;;  %v3600_v14 = vadd.f32 1e-05, %v3584_v12  ;;  %v3585_v56 = vmul.f32 0.03125, %v3569_v40 }
 0x988   : > { %v5419_v9 = vpop.eup %5418  ;;  %4941 = vmatmul.mubr.msk.bf16.gmra.mrb[84].mxu1 %vm528_vm0, %v3681_v35  ;;  %v3648_v49 = vmul.f32 %v7412_v19, %v3626_v41 }
 0x989   : > { %v3628_v61 = vmul.f32 %v5419_v9, %v7364_v59  ;;  %5426 = vrsqrt.f32 %v3600_v14  ;;  %v3601_v18 = vadd.f32 1e-05, %v3585_v56  ;;  %v3649_v63 = vmul.f32 %v7412_v19, %v3627_v43 }
 0x98a   : > { %v5421_v39 = vpop.eup %5420  ;;  %v3670_v53 = vadd.f32 %v7420_v0, %v3648_v49 }
 0x98b   : > { %v3629_v37 = vmul.f32 %v5421_v39, %v7370_v13  ;;  %5428 = vrsqrt.f32 %v3601_v18  ;;  %v3671_v20 = vadd.f32 %v7420_v0, %v3649_v63  ;;  %v3650_v50 = vmul.f32 %v7412_v19, %v3628_v61 }
 0x98d   : > { %v3682_v30 = vpack.c.bf16 %v3671_v20, %v3670_v53  ;;  %v3651_v5 = vmul.f32 %v7412_v19, %v3629_v37  ;;  %v3672_v59 = vadd.f32 %v7420_v0, %v3650_v50 }
 0x98f   : > { %v5423_v57 = vpop.eup %5422  ;;  %4944 = vmatprep.mubr.msk.bf16.mxu1 %vm528_vm0, %v3682_v30  ;;  %v3673_v36 = vadd.f32 %v7420_v0, %v3651_v5 }
 0x990   : > { %v3630_v32 = vmul.f32 %v5423_v57, %v7380_v33 }
 0x991   : > { %v5425_v27 = vpop.eup %5424  ;;  %v3683_v15 = vpack.c.bf16 %v3673_v36, %v3672_v59 }
 0x992   : > { %v3631_v13 = vmul.f32 %v5425_v27, %v7383_v31  ;;  %v3652_v2 = vmul.f32 %v7412_v19, %v3630_v32 }
 0x993   : > { %v5427_v1 = vpop.eup %5426  ;;  %4945 = vmatmul.mubr.msk.bf16.gmra.mrb[88].mxu1 %vm528_vm0, %v3683_v15 }
 0x994   : > { %v3632_v51 = vmul.f32 %v5427_v1, %v7388_v38  ;;  %v3653_v42 = vmul.f32 %v7412_v19, %v3631_v13  ;;  %v3674_v24 = vadd.f32 %v7420_v0, %v3652_v2 }
 0x995   : > { %v5429_v55 = vpop.eup %5428 }
 0x996   : > { %v3633_v29 = vmul.f32 %v5429_v55, %v7397_v26  ;;  %v3675_v33 = vadd.f32 %v7420_v0, %v3653_v42  ;;  %v3654_v17 = vmul.f32 %v7412_v19, %v3632_v51  ;;  %v5102_v26 = vld [vmem:[%s7696_s11] sm:$0xff]  }
 0x997   : > { %4952 = vmatprep.subr.bf16.mxu0 %v5102_v26 }
 0x998   : > { %v3684_v25 = vpack.c.bf16 %v3675_v33, %v3674_v24  ;;  %v3655_v31 = vmul.f32 %v7412_v19, %v3633_v29  ;;  %v3676_v22 = vadd.f32 %v7420_v0, %v3654_v17  ;;  %4953 = vmatpush3.bf16.msra.mxu0 %v5102_v26  ;;  %v5104_v19 = vld [vmem:[%s7696_s11 + $0x10] sm:$0xff]  }
 0x999   : > { %4954 = vmatprep.subr.bf16.mxu0 %v5103_v62 }
 0x99a   : > { %4948 = vmatprep.mubr.msk.bf16.mxu1 %vm528_vm0, %v3684_v25  ;;  %v3677_v38 = vadd.f32 %v7420_v0, %v3655_v31  ;;  %v5105_v0 = vld [vmem:[%s7696_s11 + $0x18] sm:$0xff]  }
 0x99c   : > { %v3685_v34 = vpack.c.bf16 %v3677_v38, %v3676_v22  ;;  %4955 = vmatpush3.bf16.msra.mxu0 %v5103_v62 }
 0x99d   : > { %4956 = vmatprep.subr.bf16.mxu0 %v5104_v19 }
 0x99e   : > { %4949 = vmatmul.mubr.msk.bf16.gmra.mrb[92].mxu1 %vm528_vm0, %v3685_v34 }
 0x9a0   : > { %4957 = vmatpush3.bf16.msra.mxu0 %v5104_v19 }
 0x9a1   : > { %4958 = vmatprep.subr.bf16.mxu0 %v5105_v0 }
 0x9a4   : > { %4959 = vmatpush3.bf16.msra.mxu0 %v5105_v0 }
 0x9a5   : > { %4960 = vmatprep.subr.bf16.mxu0 %v5106_v47 }
 0x9a8   : > { %4961 = vmatpush3.bf16.msra.mxu0 %v5106_v47 }
 0x9a9   : > { %4962 = vmatprep.subr.bf16.mxu0 %v5107_v52 }
 0x9ac   : > { %4963 = vmatpush3.bf16.msra.mxu0 %v5107_v52 }
 0x9ad   : > { %4964 = vmatprep.subr.bf16.mxu0 %v5108_v28 }
 0x9b0   : > { %4965 = vmatpush3.bf16.msra.mxu0 %v5108_v28 }
 0x9b1   : > { %4966 = vmatprep.subr.bf16.mxu0 %v5109_v21 }
 0x9b4   : > { %4967 = vmatpush3.bf16.msra.mxu0 %v5109_v21 }
 0xa4f   : > { %v4938_v6 = vpop.f32.mrb[80].mxu1 }
 0xa50   : > { %v7505_v4 = vadd.f32 %v4938_v6, %v7502_v44  ;;  %v3767_v8 = vpop.f32.mrb[81].mxu1 }
 0xa51   : > { %v7508_v58 = vadd.f32 %v7502_v44, %v3767_v8  ;;  %v4939_v60 = vpop.f32.mrb[82].mxu1 }
 0xa52   : > { %v4504_v7 = vmul.f32 -1.702, %v7505_v4  ;;  %v7512_v3 = vadd.f32 %v4939_v60, %v7502_v44  ;;  %v3770_v54 = vpop.f32.mrb[83].mxu1 }
 0xa53   : > { %v4502_v11 = vmul.f32 -1.702, %v7508_v58  ;;  %v7516_v10 = vadd.f32 %v7502_v44, %v3770_v54 }
 0xa54   : > { %v3866_v45 = vmul.f32 1.442695, %v4504_v7  ;;  %v4505_v48 = vmul.f32 -1.702, %v7512_v3 }
 0xa55   : > { %v3862_v41 = vmul.f32 1.442695, %v4502_v11  ;;  %v4503_v23 = vmul.f32 -1.702, %v7516_v10 }
 0xa56   : > { %5430 = vpow2.f32 %v3866_v45  ;;  %v3868_v12 = vmul.f32 1.442695, %v4505_v48 }
 0xa57   : > { %5432 = vpow2.f32 %v3862_v41  ;;  %v3864_v46 = vmul.f32 1.442695, %v4503_v23 }
 0xa58   : > { %5434 = vpow2.f32 %v3868_v12 }
 0xa59   : > { %5436 = vpow2.f32 %v3864_v46 }
 0xa5b   : > { %v4942_v40 = vpop.f32.mrb[84].mxu1 }
 0xa5c   : > { %v7521_v35 = vadd.f32 %v4942_v40, %v7502_v44  ;;  %v3783_v43 = vpop.f32.mrb[85].mxu1 }
 0xa5d   : > { %v7524_v14 = vadd.f32 %v7502_v44, %v3783_v43  ;;  %v4943_v56 = vpop.f32.mrb[86].mxu1 }
 0xa5e   : > { %v4508_v9 = vmul.f32 -1.702, %v7521_v35  ;;  %v7528_v49 = vadd.f32 %v4943_v56, %v7502_v44  ;;  %v3786_v61 = vpop.f32.mrb[87].mxu1 }
 0xa5f   : > { %v4506_v18 = vmul.f32 -1.702, %v7524_v14  ;;  %v7532_v63 = vadd.f32 %v7502_v44, %v3786_v61 }
 0xa60   : > { %v5431_v39 = vpop.eup %5430  ;;  %v3874_v53 = vmul.f32 1.442695, %v4508_v9  ;;  %v4509_v37 = vmul.f32 -1.702, %v7528_v49 }
 0xa61   : > { %v5433_v20 = vpop.eup %5432  ;;  %v3896_v50 = vadd.f32 1.0, %v5431_v39  ;;  %v4507_v30 = vmul.f32 -1.702, %v7532_v63  ;;  %v3870_v32 = vmul.f32 1.442695, %v4506_v18 }
 0xa62   : > { %v5435_v5 = vpop.eup %5434  ;;  %v3894_v57 = vadd.f32 1.0, %v5433_v20  ;;  %5438 = vpow2.f32 %v3874_v53  ;;  %v3876_v15 = vmul.f32 1.442695, %v4509_v37 }
 0xa63   : > { %v5437_v59 = vpop.eup %5436  ;;  %5440 = vrcp.f32 %v3896_v50  ;;  %v3897_v36 = vadd.f32 1.0, %v5435_v5  ;;  %v3872_v13 = vmul.f32 1.442695, %v4507_v30 }
 0xa64   : > { %5442 = vrcp.f32 %v3894_v57  ;;  %v3895_v27 = vadd.f32 1.0, %v5437_v59 }
 0xa65   : > { %5444 = vrcp.f32 %v3897_v36 }
 0xa66   : > { %5446 = vrcp.f32 %v3895_v27  ;;  %v4946_v2 = vpop.f32.mrb[88].mxu1 }
 0xa67   : > { %5448 = vpow2.f32 %v3870_v32  ;;  %v7537_v1 = vadd.f32 %v4946_v2, %v7502_v44  ;;  %v3799_v51 = vpop.f32.mrb[89].mxu1 }
 0xa68   : > { %5450 = vpow2.f32 %v3876_v15  ;;  %v7540_v42 = vadd.f32 %v7502_v44, %v3799_v51  ;;  %v4947_v55 = vpop.f32.mrb[90].mxu1 }
 0xa69   : > { %5452 = vpow2.f32 %v3872_v13  ;;  %v4512_v29 = vmul.f32 -1.702, %v7537_v1  ;;  %v7544_v24 = vadd.f32 %v4947_v55, %v7502_v44  ;;  %v3802_v33 = vpop.f32.mrb[91].mxu1 }
 0xa6a   : > { %v4510_v17 = vmul.f32 -1.702, %v7540_v42  ;;  %v7548_v25 = vadd.f32 %v7502_v44, %v3802_v33 }
 0xa6b   : > { %v3882_v31 = vmul.f32 1.442695, %v4512_v29  ;;  %v4513_v22 = vmul.f32 -1.702, %v7544_v24 }
 0xa6c   : > { %v5439_v38 = vpop.eup %5438  ;;  %v3878_v34 = vmul.f32 1.442695, %v4510_v17  ;;  %v4511_v26 = vmul.f32 -1.702, %v7548_v25 }
 0xa6d   : > { %v5441_v62 = vpop.eup %5440  ;;  %5454 = vpow2.f32 %v3882_v31  ;;  %v3884_v19 = vmul.f32 1.442695, %v4513_v22  ;;  %v3900_v28 = vadd.f32 1.0, %v5439_v38 }
 0xa6e   : > { %v5443_v0 = vpop.eup %5442  ;;  %5456 = vpow2.f32 %v3878_v34  ;;  %v3880_v47 = vmul.f32 1.442695, %v4511_v26  ;;  %v3944_v6 = vmul.f32 %v5441_v62, %v7505_v4 }
 0xa6f   : > { %v5445_v52 = vpop.eup %5444  ;;  %5458 = vpow2.f32 %v3884_v19  ;;  %v3942_v7 = vmul.f32 %v5443_v0, %v7508_v58 }
 0xa70   : > { %v5447_v21 = vpop.eup %5446  ;;  %v3945_v8 = vmul.f32 %v5445_v52, %v7512_v3  ;;  %5460 = vpow2.f32 %v3880_v47 }
 0xa71   : > { %v5449_v60 = vpop.eup %5448  ;;  %v3943_v54 = vmul.f32 %v5447_v21, %v7516_v10  ;;  %v4950_v11 = vpop.f32.mrb[92].mxu1  ;;  %5462 = vrcp.f32 %v3900_v28 }
 0xa72   : > { %v5451_v45 = vpop.eup %5450  ;;  %v3959_v48 = vpack.c.bf16 %v3945_v8, %v3944_v6  ;;  %v3898_v41 = vadd.f32 1.0, %v5449_v60  ;;  %v7557_v23 = vadd.f32 %v4950_v11, %v7502_v44  ;;  %v3815_v12 = vpop.f32.mrb[93].mxu1 }
 0xa73   : > { %v5453_v46 = vpop.eup %5452  ;;  %v3901_v4 = vadd.f32 1.0, %v5451_v45  ;;  %v7560_v3 = vadd.f32 %v7502_v44, %v3815_v12  ;;  %v4951_v40 = vpop.f32.mrb[94].mxu1  ;;  %v3958_v43 = vpack.c.bf16 %v3943_v54, %v3942_v7 }
 0xa74   : > { %5464 = vrcp.f32 %v3898_v41  ;;  %v3899_v58 = vadd.f32 1.0, %v5453_v46  ;;  %v4516_v10 = vmul.f32 -1.702, %v7557_v23  ;;  %v7564_v56 = vadd.f32 %v4951_v40, %v7502_v44  ;;  %v3818_v9 = vpop.f32.mrb[95].mxu1 }
 0xa75   : > { %5466 = vrcp.f32 %v3901_v4  ;;  %v4514_v61 = vmul.f32 -1.702, %v7560_v3  ;;  %v7568_v18 = vadd.f32 %v7502_v44, %v3818_v9  ;;  %4968 = vmatprep.mubr.bf16.mxu0 %v3958_v43 }
 0xa76   : > { %5468 = vrcp.f32 %v3899_v58  ;;  %v3890_v39 = vmul.f32 1.442695, %v4516_v10  ;;  %v4517_v53 = vmul.f32 -1.702, %v7564_v56  ;;  %4969 = vmatmul.mubr.bf16.vlgmr.msra.gmra.mrb[80].mxu0 %v3959_v48 }
 0xa77   : > { %v5455_v37 = vpop.eup %5454  ;;  %v3886_v20 = vmul.f32 1.442695, %v4514_v61  ;;  %v4515_v50 = vmul.f32 -1.702, %v7568_v18 }
 0xa78   : > { %v5457_v30 = vpop.eup %5456  ;;  %v3904_v5 = vadd.f32 1.0, %v5455_v37  ;;  %5470 = vpow2.f32 %v3890_v39  ;;  %v3892_v57 = vmul.f32 1.442695, %v4517_v53 }
 0xa79   : > { %v3902_v59 = vadd.f32 1.0, %v5457_v30  ;;  %5472 = vpow2.f32 %v3886_v20  ;;  %v5459_v36 = vpop.eup %5458  ;;  %v3888_v27 = vmul.f32 1.442695, %v4515_v50 }
 0xa7a   : > { %5474 = vrcp.f32 %v3904_v5  ;;  %v5461_v44 = vpop.eup %5460  ;;  %v3905_v32 = vadd.f32 1.0, %v5459_v36 }
 0xa7b   : > { %5476 = vrcp.f32 %v3902_v59  ;;  %v3903_v15 = vadd.f32 1.0, %v5461_v44  ;;  %v5463_v13 = vpop.eup %5462 }
 0xa7c   : > { %5478 = vpow2.f32 %v3892_v57  ;;  %v3948_v29 = vmul.f32 %v5463_v13, %v7521_v35 }
 0xa7d   : > { %5480 = vrcp.f32 %v3905_v32 }
 0xa7e   : > { %v5465_v2 = vpop.eup %5464  ;;  %5482 = vrcp.f32 %v3903_v15 }
 0xa7f   : > { %v5467_v51 = vpop.eup %5466  ;;  %5484 = vpow2.f32 %v3888_v27  ;;  %v3946_v17 = vmul.f32 %v5465_v2, %v7524_v14 }
 0xa80   : > { %v5469_v55 = vpop.eup %5468  ;;  %v3949_v33 = vmul.f32 %v5467_v51, %v7528_v49 }
 0xa81   : > { %v3947_v31 = vmul.f32 %v5469_v55, %v7532_v63 }
 0xa82   : > { %v5471_v22 = vpop.eup %5470  ;;  %v3961_v38 = vpack.c.bf16 %v3949_v33, %v3948_v29 }
 0xa83   : > { %v5473_v34 = vpop.eup %5472  ;;  %v3908_v26 = vadd.f32 1.0, %v5471_v22  ;;  %v3960_v62 = vpack.c.bf16 %v3947_v31, %v3946_v17 }
 0xa84   : > { %v5475_v19 = vpop.eup %5474  ;;  %v3906_v52 = vadd.f32 1.0, %v5473_v34 }
 0xa85   : > { %v5477_v0 = vpop.eup %5476  ;;  %4972 = vmatprep.mubr.bf16.mxu0 %v3960_v62  ;;  %5486 = vrcp.f32 %v3908_v26  ;;  %v3952_v49 = vmul.f32 %v5475_v19, %v7537_v1 }
 0xa86   : > { %v5479_v47 = vpop.eup %5478  ;;  %4973 = vmatmul.mubr.bf16.gmra.mrb[84].mxu0 %v3961_v38  ;;  %v3950_v6 = vmul.f32 %v5477_v0, %v7540_v42 }
 0xa87   : > { %v5481_v28 = vpop.eup %5480  ;;  %v3909_v35 = vadd.f32 1.0, %v5479_v47 }
 0xa88   : > { %v5483_v21 = vpop.eup %5482  ;;  %v3953_v14 = vmul.f32 %v5481_v28, %v7544_v24 }
 0xa89   : > { %v5485_v63 = vpop.eup %5484  ;;  %v3951_v8 = vmul.f32 %v5483_v21, %v7548_v25  ;;  %5488 = vrcp.f32 %v3909_v35 }
 0xa8a   : > { %5490 = vrcp.f32 %v3906_v52  ;;  %v3907_v60 = vadd.f32 1.0, %v5485_v63  ;;  %v3963_v7 = vpack.c.bf16 %v3953_v14, %v3952_v49 }
 0xa8b   : > { %v3962_v54 = vpack.c.bf16 %v3951_v8, %v3950_v6 }
 0xa8c   : > { %5492 = vrcp.f32 %v3907_v60 }
 0xa8d   : > { %4976 = vmatprep.mubr.bf16.mxu0 %v3962_v54 }
 0xa8e   : > { %4977 = vmatmul.mubr.bf16.gmra.mrb[88].mxu0 %v3963_v7 }
 0xa8f   : > { %v5487_v11 = vpop.eup %5486 }
 0xa90   : > { %v3956_v1 = vmul.f32 %v5487_v11, %v7557_v23  ;;  %v5587_v23 = vmov 0.0  }
 0xa91   : > { %4265 = vst.msk [vmem:[%s7589_s0 + $0x8] sm:$0xff] %vm528_vm0, %v5587_v23  ;;  %4266 = vst.msk [vmem:[%s7589_s0 + $0x10] sm:$0xff] %vm528_vm0, %v5587_v23 }
 0xa92   : > { %4267 = vst.msk [vmem:[%s7589_s0 + $0x18] sm:$0xff] %vm528_vm0, %v5587_v23  ;;  %4268 = vst.msk [vmem:[%s7589_s0 + $0x20] sm:$0xff] %vm528_vm0, %v5587_v23 }
 0xa93   : > { %v5489_v45 = vpop.eup %5488  ;;  %4269 = vst.msk [vmem:[%s7589_s0 + $0x28] sm:$0xff] %vm528_vm0, %v5587_v23  ;;  %4270 = vst.msk [vmem:[%s7589_s0 + $0x30] sm:$0xff] %vm528_vm0, %v5587_v23 }
 0xa94   : > { %v5491_v48 = vpop.eup %5490  ;;  %v3957_v24 = vmul.f32 %v5489_v45, %v7564_v56  ;;  %4271 = vst.msk [vmem:[%s7589_s0 + $0x38] sm:$0xff] %vm528_vm0, %v5587_v23  ;;  %4272 = vst.msk [vmem:[%s7589_s0 + $0x40] sm:$0xff] %vm528_vm0, %v5587_v23 }
 0xa95   : > { %v3954_v25 = vmul.f32 %v5491_v48, %v7560_v3  ;;  %4273 = vst.msk [vmem:[%s7589_s0 + $0x48] sm:$0xff] %vm528_vm0, %v5587_v23  ;;  %4274 = vst.msk [vmem:[%s7589_s0 + $0x50] sm:$0xff] %vm528_vm0, %v5587_v23 }
 0xa96   : > { %v5493_v41 = vpop.eup %5492  ;;  %v3965_v42 = vpack.c.bf16 %v3957_v24, %v3956_v1  ;;  %4275 = vst.msk [vmem:[%s7589_s0 + $0x58] sm:$0xff] %vm528_vm0, %v5587_v23  ;;  %4276 = vst.msk [vmem:[%s7589_s0 + $0x60] sm:$0xff] %vm528_vm0, %v5587_v23 }
 0xa97   : > { %v3955_v12 = vmul.f32 %v5493_v41, %v7568_v18  ;;  %4277 = vst.msk [vmem:[%s7589_s0 + $0x68] sm:$0xff] %vm528_vm0, %v5587_v23  ;;  %4278 = vst.msk [vmem:[%s7589_s0 + $0x70] sm:$0xff] %vm528_vm0, %v5587_v23 }
 0xa98   : > { %4279 = vst.msk [vmem:[%s7589_s0 + $0x78] sm:$0xff] %vm528_vm0, %v5587_v23 }
 0xa99   : > { %v3964_v46 = vpack.c.bf16 %v3955_v12, %v3954_v25 }
 0xa9b   : > { %4980 = vmatprep.mubr.bf16.mxu0 %v3964_v46 }
 0xa9c   : > { %4981 = vmatmul.mubr.bf16.gmra.mrb[92].mxu0 %v3965_v42 }
 0xa9d   : > { %5509 = shalt.err (!%p5506_p5)
}
 0xa9e   : > { %s5510_s27 = scalar_lea.hbm %s7626_s22, 2048  ;;  %s5514_s24 = scalar_lea.hbm %s7699_s14, 4096 }
 0xa9f   : > { %p5511_p6 = scmp.ne.s32.totalorder %s7626_s22, %s5510_s27  ;;  %p5515_p10 = scmp.lt.u32.totalorder %s7626_s22, %s7699_s14 }
 0xaa0   : > { %p5516_p11 = scmp.lt.u32.totalorder %s5514_s24, %s5510_s27  ;;  %p5518_p13 = scmp.lt.u32.totalorder %s5510_s27, %s7626_s22 }
 0xaa1   : > { %p5512_p7 = pnand %p5511_p6, %p5705_p4 }
 0xaa2   : > { %p5517_p12 = por %p5516_p11, %p5515_p10 }
 0xaa3   : > { %p5513_p9 = pneg %p5512_p7 }
 0xaa4   : > { %p5519_p0 = por %p5518_p13, %p5517_p12 }
 0xaa6   : > { %p5520_p1 = pnand %p5519_p0, %p5513_p9 }
 0xaa8   : > { %5523 = shalt.err (!%p5520_p1)
}
 0xaa9   : > { %s5589_s5 = smov 128   ;;  %v4526_v40 = vld [vmem:[%s7697_s12] ss:$0 sm:$0xff] }
 0xaaa   : > { %4988 = dma.vmem_to_hbm [thread:$0]  (%p5705_p4), %s7628_s3, 2048, %s7626_s22, %s7632_s20, %s5589_s5, %s5589_s5, %s7830_s1  }
 0xb49   : > { %v4970_v4 = vpop.f32.mrb[80].mxu0 }
 0xb4a   : > { %v4064_v3 = vpop.f32.mrb[81].mxu0 }
 0xb4b   : > { %v4127_v43 = vadd.f32 %v4064_v3, %v7217_v16  ;;  %v4971_v58 = vpop.f32.mrb[82].mxu0 }
 0xb4c   : > { %v4067_v10 = vpop.f32.mrb[83].mxu0 }
 0xb4d   : > { %v4150_v56 = vadd.f32 %v4526_v40, %v4127_v43 }
 0xb4f   : > { %4264 = vst.msk [vmem:[%s7589_s0] sm:$0xff] %vm528_vm0, %v4150_v56 }
 0xb59   : > { %v4974_v9 = vpop.f32.mrb[84].mxu0 }
 0xb5a   : > { %v4080_v61 = vpop.f32.mrb[85].mxu0 }
 0xb5b   : > { %v4975_v18 = vpop.f32.mrb[86].mxu0 }
 0xb5c   : > { %v4083_v39 = vpop.f32.mrb[87].mxu0 }
 0xb61   : > { %v4978_v53 = vpop.f32.mrb[88].mxu0 }
 0xb62   : > { %v4096_v37 = vpop.f32.mrb[89].mxu0 }
 0xb63   : > { %v4979_v20 = vpop.f32.mrb[90].mxu0 }
 0xb64   : > { %v4099_v50 = vpop.f32.mrb[91].mxu0 }
 0xb6f   : > { %v4982_v30 = vpop.f32.mrb[92].mxu0 }
 0xb70   : > { %v4112_v5 = vpop.f32.mrb[93].mxu0 }
 0xb71   : > { %v4983_v57 = vpop.f32.mrb[94].mxu0 }
 0xb72   : > { %v4115_v59 = vpop.f32.mrb[95].mxu0 }
 0xb73 PF: > { %p4994_p4 = scmp.ge.s32.totalorder %s5574_s18, 2  ;;  %s4336_s23 = sand.u32 1, %s5554_s29  }
 0xb74   : > { %s4337_s1 = scalar_lea.sflag [#allocation7], %s4336_s23 }
 0xb75   : > { %p4991_p2 = pnand %p4994_p4, %p5712_p8 }
 0xb77   : > { %5549 = dma.done.wait (!%p4991_p2), %s4337_s1, 2048  }
 0xb78   : > { %5551 = vsyncadd (!%p4991_p2), %s4337_s1, 4294965248  ;;  %s28_s18 = sadd.s32 1, %s5574_s18   ;;  %s7833_s29 = smov %s5558_s30 }
 0xb79   : > { %p25_p3 = scmp.ge.s32.totalorder %s28_s18, 4   ;;  %s7834_s30 = smov %s5562_s15 }
 0xb7a   : > { %s7835_s15 = smov %s5718_s26  ;;  %s7836_s16 = smov %s5570_s17 }
 0xb7b   : > { %s7837_s17 = smov %s7839_s21  ;;  %27 = sbr.rel (!%p25_p3) target bundleno = 11 (0xb), region = 131 }
 0xb82   :  { %4342 = vsyncpa [#allocation7], 1 }
 0xb83   :  { %4344 = vsyncpa [#allocation7 + $0x1], 1 }

// kernel: tpu_custom_call.1
= control target key start
LH: loop header
LB: loop body
LE: loop exit
PB: predicated region body
PF: predicated region fallthrough
CT: control target
= control target key end

     0   :  { %s7857_s0 = inlined_call_operand.vmem [shape: f32[2,128,32], index: 0, kind: input, shape index: {}]   ;;  %s7858_s1 = inlined_call_operand.vmem [shape: f32[1,32], index: 1, kind: input, shape index: {}]   ;;  %s7859_s2 = inlined_call_operand.vmem [shape: f32[1,32], index: 2, kind: input, shape index: {}]   ;;  %s7860_s3 = inlined_call_operand.vmem [shape: bf16[32,96], index: 3, kind: input, shape index: {}]   ;;  %s7861_s4 = inlined_call_operand.vmem [shape: f32[1,96], index: 4, kind: input, shape index: {}]   ;;  %s7862_s5 = inlined_call_operand.vmem [shape: bf16[32,32], index: 5, kind: input, shape index: {}]   ;;  %s7863_s6 = inlined_call_operand.vmem [shape: f32[1,32], index: 6, kind: input, shape index: {}]   ;;  %s7864_s7 = inlined_call_operand.vmem [shape: f32[1,32], index: 7, kind: input, shape index: {}]   ;;  %s7865_s8 = inlined_call_operand.vmem [shape: f32[1,32], index: 8, kind: input, shape index: {}]   ;;  %s7866_s9 = inlined_call_operand.vmem [shape: bf16[32,128], index: 9, kind: input, shape index: {}]   ;;  %s7867_s10 = inlined_call_operand.vmem [shape: f32[1,128], index: 10, kind: input, shape index: {}]   ;;  %s7868_s11 = inlined_call_operand.vmem [shape: bf16[128,32], index: 11, kind: input, shape index: {}]   ;;  %s7869_s12 = inlined_call_operand.vmem [shape: f32[1,32], index: 12, kind: input, shape index: {}]   ;;  %s7870_s13 = inlined_call_operand.vmem [shape: f32[2,128,32], index: 13, kind: output, shape index: {0}]   ;;  %s7871_s14 = inlined_call_operand.hbm [shape: f32[2,128,128], index: 14, kind: output, shape index: {1}]  }
   0x1   :  { %7909 = sst [smem:[#allocation27_spill]] %s7857_s0 }
   0x2   :  { %7910 = sst [smem:[#allocation28_spill]] %s7858_s1 }
   0x3   :  { %7911 = sst [smem:[#allocation29_spill]] %s7859_s2 }
   0x4   :  { %7912 = sst [smem:[#allocation30_spill]] %s7860_s3 }
   0x5   :  { %7913 = sst [smem:[#allocation31_spill]] %s7861_s4 }
   0x6   :  { %7914 = sst [smem:[#allocation32_spill]] %s7862_s5 }
   0x7   :  { %20 = vsyncpa [#allocation7], 0 }
   0x8   :  { %22 = vsyncpa [#allocation7 + $0x1], 0  ;;  %s5886_s29 = smov 0   ;;  %s5888_s30 = smov 0  }
   0x9   :  { %s5890_s15 = smov 0   ;;  %s5892_s16 = smov 0  }
   0xa   :  { %s5894_s17 = smov 0   ;;  %s5896_s18 = smov 0  }
   0xb LB: > { %s4561_s19 = sadd.s32 4294967295, %s5792_s18   ;;  %s4562_s20 = sadd.s32 4294967294, %s5792_s18   ;;  %s5792_s18 = sphi %s5896_s18, %s28_s18   ;;  %s5788_s17 = sphi %s5894_s17, %s7996_s17   ;;  %s5784_s16 = sphi %s5892_s16, %s7995_s16   ;;  %s5780_s15 = sphi %s5890_s15, %s7994_s15   ;;  %s5776_s30 = sphi %s5888_s30, %s7993_s30   ;;  %s5772_s29 = sphi %s5886_s29, %s7992_s29  }
   0xc   : > { %s40_s21 = sadd.s32 1, %s5788_s17  ;;  %s355_s22 = sadd.s32 1, %s5780_s15 }
   0xd   : > { %p42_p0 = scmp.ge.s32.totalorder %s40_s21, 2  ;;  %p365_p1 = scmp.ne.s32.totalorder %s5780_s15, %s5776_s30 }
   0xe   : > { %p366_p2 = scmp.eq.s32.totalorder %s4561_s19, 1  ;;  %p371_p3 = scmp.ne.s32.totalorder %s5776_s30, %s5772_s29 }
   0xf   : > { %s7998_s21 = smov (%p42_p0, %s40_s21), 0  ;;  %p372_p5 = scmp.eq.s32.totalorder %s4562_s20, 1 }
  0x10   : > { %p5926_p4 = por %p366_p2, %p365_p1  ;;  %s350_s24 = ssub.s32 %s5788_s17, %s7998_s21 }
  0x11   : > { %p4565_p6 = scmp.ge.s32.totalorder %s5792_s18, 1  ;;  %p353_p7 = scmp.eq.s32.totalorder %s350_s24, 0 }
  0x12   : > { %p5933_p8 = por %p372_p5, %p371_p3  ;;  %p434_p9 = scmp.lt.s32.totalorder %s5792_s18, 3 }
  0x13   : > { %s5939_s26 = scalar_select %p353_p7, %s5780_s15, %s355_s22  }
  0x14   : > { %p435_p10 = pnand %p4565_p6, %p434_p9 }
  0x16   : > { %438 = sbr.rel (%p435_p10) target bundleno = 2777 (0xad9), region = 72 }
  0x1d   : > { %p489_p11 = scmp.lt.s32.totalorder %s5784_s16, 1  ;;  %vm528_vm0 = vcmask 261120   ;;  %s7917_s0 = sld [smem:[#allocation27_spill]]  ;;  %vm942_vm1 = vcmask 64512   ;;  %vm3285_vm3 = vcmask 130112   ;;  %vm3334_vm4 = vcmask 195712  }
  0x1e   : > { %s7918_s3 = sld [smem:[#allocation30_spill]]  ;;  %s7919_s1 = sld [smem:[#allocation28_spill]]  ;;  %vm3383_vm5 = vcmask 261312  }
  0x1f   : > { %s5943_s27 = scalar_select %p489_p11, %s5784_s16, 1 }
  0x20   : > { %s7920_s2 = sld [smem:[#allocation29_spill]]  ;;  %s7921_s4 = sld [smem:[#allocation31_spill]] }
  0x21   : > { %s7872_s28 = sshll.u32 %s5943_s27, 7  ;;  %s5794_s19 = smov 88  }
  0x22   : > { %s5795_s20 = smov 96   ;;  %s5797_s22 = smov 120  }
  0x23   : > { %s5951_s24 = scalar_lea.vmem %s7917_s0, %s7872_s28  ;;  %s5796_s28 = smov 80  }
  0x24   : > { %v510_v0 = vld [vmem:[%s5951_s24] sm:$0xff]  ;;  %v512_v1 = vld [vmem:[%s5951_s24 + $0x10] sm:$0xff]  ;;  %v511_v2 = vld [vmem:[%s5951_s24 + $0x8] sm:$0xff]  ;;  %s5798_s0 = smov 72   ;;  %s7988_s5 = sld [smem:[#allocation32_spill]] }
  0x25   : > { %v529_v3 = vsel %vm528_vm0, %v510_v0, 0.0  ;;  %v535_v4 = vsel %vm528_vm0, %v512_v1, 0.0  ;;  %v513_v5 = vld [vmem:[%s5951_s24 + $0x18] sm:$0xff]  ;;  %v5960_v6 = vld [vmem:[%s5951_s24 + $0x20] sm:$0xff]  ;;  %v532_v7 = vsel %vm528_vm0, %v511_v2, 0.0  ;;  %v515_v9 = vld [vmem:[%s5951_s24 + $0x28] sm:$0xff] }
  0x26   : > { %530 = vadd.xlane.f32.xlu0 %v529_v3  ;;  %536 = vadd.xlane.f32.xlu1 %v535_v4  ;;  %v538_v8 = vsel %vm528_vm0, %v513_v5, 0.0  ;;  %v541_v10 = vsel %vm528_vm0, %v5960_v6, 0.0  ;;  %v544_v11 = vsel %vm528_vm0, %v515_v9, 0.0  ;;  %v5969_v12 = vld [vmem:[%s5951_s24 + $0x30] sm:$0xff]  ;;  %v5972_v13 = vld [vmem:[%s5951_s24 + $0x38] sm:$0xff]  ;;  %v5979_v16 = vld [vmem:[%s5951_s24 + $0x40] sm:$0xff] }
  0x27   : > { %v547_v14 = vsel %vm528_vm0, %v5969_v12, 0.0  ;;  %v550_v15 = vsel %vm528_vm0, %v5972_v13, 0.0  ;;  %v5982_v17 = vld [vmem:[%s5951_s24 + $0x48] sm:$0xff]  ;;  %v553_v18 = vsel %vm528_vm0, %v5979_v16, 0.0  ;;  %v5989_v20 = vld [vmem:[%s5951_s24 + $0x50] sm:$0xff]  ;;  %v5992_v21 = vld [vmem:[%s5951_s24 + $0x58] sm:$0xff] }
  0x28   : > { %v556_v19 = vsel %vm528_vm0, %v5982_v17, 0.0  ;;  %v559_v22 = vsel %vm528_vm0, %v5989_v20, 0.0  ;;  %v562_v23 = vsel %vm528_vm0, %v5992_v21, 0.0  ;;  %v5999_v24 = vld [vmem:[%s5951_s24 + $0x60] sm:$0xff]  ;;  %v6002_v25 = vld [vmem:[%s5951_s24 + $0x68] sm:$0xff]  ;;  %v6009_v28 = vld [vmem:[%s5951_s24 + $0x70] sm:$0xff] }
  0x29   : > { %v565_v26 = vsel %vm528_vm0, %v5999_v24, 0.0  ;;  %v568_v27 = vsel %vm528_vm0, %v6002_v25, 0.0  ;;  %v6012_v29 = vld [vmem:[%s5951_s24 + $0x78] sm:$0xff]  ;;  %v571_v30 = vsel %vm528_vm0, %v6009_v28, 0.0 }
  0x2a   : > { %533 = vadd.xlane.f32.xlu0 %v532_v7  ;;  %539 = vadd.xlane.f32.xlu1 %v538_v8  ;;  %v574_v31 = vsel %vm528_vm0, %v6012_v29, 0.0 }
  0x2e   : > { %542 = vadd.xlane.f32.xlu0 %v541_v10  ;;  %545 = vadd.xlane.f32.xlu1 %v544_v11 }
  0x32   : > { %548 = vadd.xlane.f32.xlu0 %v547_v14  ;;  %551 = vadd.xlane.f32.xlu1 %v550_v15 }
  0x36   : > { %554 = vadd.xlane.f32.xlu0 %v553_v18  ;;  %557 = vadd.xlane.f32.xlu1 %v556_v19 }
  0x3a   : > { %560 = vadd.xlane.f32.xlu0 %v559_v22  ;;  %563 = vadd.xlane.f32.xlu1 %v562_v23 }
  0x3e   : > { %566 = vadd.xlane.f32.xlu0 %v565_v26  ;;  %569 = vadd.xlane.f32.xlu1 %v568_v27 }
  0x42   : > { %572 = vadd.xlane.f32.xlu0 %v571_v30  ;;  %575 = vadd.xlane.f32.xlu1 %v574_v31 }
  0xb3   : > { %v531_v32 = vpop.xlane.xlu0 %530  ;;  %v537_v33 = vpop.xlane.xlu1 %536 }
  0xb4   : > { %v578_v34 = vmul.f32 0.03125, %v531_v32  ;;  %v580_v35 = vmul.f32 0.03125, %v537_v33 }
  0xb6   : > { %v6018_v36 = vsub.f32 %v510_v0, %v578_v34  ;;  %v6020_v37 = vsub.f32 %v512_v1, %v580_v35 }
  0xb7   : > { %v534_v38 = vpop.xlane.xlu0 %533  ;;  %v540_v39 = vpop.xlane.xlu1 %539 }
  0xb8   : > { %v579_v40 = vmul.f32 0.03125, %v534_v38  ;;  %v581_v41 = vmul.f32 0.03125, %v540_v39  ;;  %v610_v42 = vmul.f32 %v6018_v36, %v6018_v36  ;;  %v612_v43 = vmul.f32 %v6020_v37, %v6020_v37 }
  0xba   : > { %v6026_v44 = vsub.f32 %v511_v2, %v579_v40  ;;  %v6028_v45 = vsub.f32 %v513_v5, %v581_v41  ;;  %v626_v46 = vsel %vm528_vm0, %v610_v42, 0.0  ;;  %v632_v49 = vsel %vm528_vm0, %v612_v43, 0.0 }
  0xbb   : > { %627 = vadd.xlane.f32.xlu0 %v626_v46  ;;  %v543_v47 = vpop.xlane.xlu0 %542  ;;  %v546_v48 = vpop.xlane.xlu1 %545 }
  0xbc   : > { %v582_v50 = vmul.f32 0.03125, %v543_v47  ;;  %v583_v51 = vmul.f32 0.03125, %v546_v48  ;;  %v611_v52 = vmul.f32 %v6026_v44, %v6026_v44  ;;  %v613_v53 = vmul.f32 %v6028_v45, %v6028_v45 }
  0xbe   : > { %v6037_v54 = vsub.f32 %v5960_v6, %v582_v50  ;;  %v6039_v55 = vsub.f32 %v515_v9, %v583_v51  ;;  %v629_v56 = vsel %vm528_vm0, %v611_v52, 0.0  ;;  %v635_v59 = vsel %vm528_vm0, %v613_v53, 0.0  ;;  %v5315_v53 = vld [vmem:[%s7918_s3 + $0x8] sm:$0xff]  }
  0xbf   : > { %633 = vadd.xlane.f32.xlu0 %v632_v49  ;;  %630 = vadd.xlane.f32.xlu1 %v629_v56  ;;  %v549_v57 = vpop.xlane.xlu0 %548  ;;  %v552_v58 = vpop.xlane.xlu1 %551 }
  0xc0   : > { %v584_v60 = vmul.f32 0.03125, %v549_v57  ;;  %v585_v61 = vmul.f32 0.03125, %v552_v58  ;;  %v614_v62 = vmul.f32 %v6037_v54, %v6037_v54  ;;  %v615_v63 = vmul.f32 %v6039_v55, %v6039_v55 }
  0xc2   : > { %v6048_v0 = vsub.f32 %v5969_v12, %v584_v60  ;;  %v6051_v1 = vsub.f32 %v5972_v13, %v585_v61  ;;  %v638_v2 = vsel %vm528_vm0, %v614_v62, 0.0  ;;  %v641_v5 = vsel %vm528_vm0, %v615_v63, 0.0 }
  0xc3   : > { %636 = vadd.xlane.f32.xlu1 %v635_v59  ;;  %639 = vadd.xlane.f32.xlu0 %v638_v2  ;;  %v555_v3 = vpop.xlane.xlu0 %554  ;;  %v558_v4 = vpop.xlane.xlu1 %557 }
  0xc4   : > { %v586_v6 = vmul.f32 0.03125, %v555_v3  ;;  %v587_v7 = vmul.f32 0.03125, %v558_v4  ;;  %v616_v8 = vmul.f32 %v6048_v0, %v6048_v0  ;;  %v617_v9 = vmul.f32 %v6051_v1, %v6051_v1 }
  0xc6   : > { %v6060_v10 = vsub.f32 %v5979_v16, %v586_v6  ;;  %v6063_v11 = vsub.f32 %v5982_v17, %v587_v7  ;;  %v644_v12 = vsel %vm528_vm0, %v616_v8, 0.0  ;;  %v647_v15 = vsel %vm528_vm0, %v617_v9, 0.0 }
  0xc7   : > { %642 = vadd.xlane.f32.xlu1 %v641_v5  ;;  %645 = vadd.xlane.f32.xlu0 %v644_v12  ;;  %v561_v13 = vpop.xlane.xlu0 %560  ;;  %v564_v14 = vpop.xlane.xlu1 %563 }
  0xc8   : > { %v588_v18 = vmul.f32 0.03125, %v561_v13  ;;  %v589_v19 = vmul.f32 0.03125, %v564_v14  ;;  %v618_v22 = vmul.f32 %v6060_v10, %v6060_v10  ;;  %v619_v16 = vmul.f32 %v6063_v11, %v6063_v11 }
  0xca   : > { %v6072_v23 = vsub.f32 %v5989_v20, %v588_v18  ;;  %v6075_v17 = vsub.f32 %v5992_v21, %v589_v19  ;;  %v650_v26 = vsel %vm528_vm0, %v618_v22, 0.0  ;;  %v653_v31 = vsel %vm528_vm0, %v619_v16, 0.0 }
  0xcb   : > { %648 = vadd.xlane.f32.xlu1 %v647_v15  ;;  %651 = vadd.xlane.f32.xlu0 %v650_v26  ;;  %v567_v27 = vpop.xlane.xlu0 %566  ;;  %v570_v30 = vpop.xlane.xlu1 %569 }
  0xcc   : > { %v590_v32 = vmul.f32 0.03125, %v567_v27  ;;  %v591_v33 = vmul.f32 0.03125, %v570_v30  ;;  %v620_v34 = vmul.f32 %v6072_v23, %v6072_v23  ;;  %v621_v20 = vmul.f32 %v6075_v17, %v6075_v17 }
  0xce   : > { %v6084_v35 = vsub.f32 %v5999_v24, %v590_v32  ;;  %v6087_v21 = vsub.f32 %v6002_v25, %v591_v33  ;;  %v656_v38 = vsel %vm528_vm0, %v620_v34, 0.0  ;;  %v659_v41 = vsel %vm528_vm0, %v621_v20, 0.0 }
  0xcf   : > { %654 = vadd.xlane.f32.xlu1 %v653_v31  ;;  %657 = vadd.xlane.f32.xlu0 %v656_v38  ;;  %v573_v39 = vpop.xlane.xlu0 %572  ;;  %v576_v40 = vpop.xlane.xlu1 %575  ;;  %v6119_v31 = vld [vmem:[%s7919_s1] ss:$0 sm:$0xff]  ;;  %s7989_s1 = smov 8  }
  0xd0   : > { %v592_v42 = vmul.f32 0.03125, %v573_v39  ;;  %v593_v43 = vmul.f32 0.03125, %v576_v40  ;;  %v622_v46 = vmul.f32 %v6084_v35, %v6084_v35  ;;  %v623_v24 = vmul.f32 %v6087_v21, %v6087_v21 }
  0xd2   : > { %v6096_v47 = vsub.f32 %v6009_v28, %v592_v42  ;;  %v6099_v25 = vsub.f32 %v6012_v29, %v593_v43  ;;  %v662_v48 = vsel %vm528_vm0, %v622_v46, 0.0  ;;  %v665_v49 = vsel %vm528_vm0, %v623_v24, 0.0  ;;  %v5314_v29 = vld [vmem:[%s7918_s3] sm:$0xff]  }
  0xd3   : > { %660 = vadd.xlane.f32.xlu1 %v659_v41  ;;  %663 = vadd.xlane.f32.xlu0 %v662_v48  ;;  %v6126_v43 = vld [vmem:[%s7920_s2] ss:$0 sm:$0xff] }
  0xd4   : > { %v624_v50 = vmul.f32 %v6096_v47, %v6096_v47  ;;  %v625_v51 = vmul.f32 %v6099_v25, %v6099_v25  ;;  %4847 = vmatprep.subr.bf16.mxu0 %v5314_v29 }
  0xd5   : > { %4848 = vmatpush3.bf16.msra.mxu0 %v5314_v29 }
  0xd6   : > { %v668_v52 = vsel %vm528_vm0, %v624_v50, 0.0  ;;  %v671_v28 = vsel %vm528_vm0, %v625_v51, 0.0  ;;  %4849 = vmatprep.subr.bf16.mxu0 %v5315_v53 }
  0xd7   : > { %666 = vadd.xlane.f32.xlu1 %v665_v49  ;;  %669 = vadd.xlane.f32.xlu0 %v668_v52 }
  0xd9   : > { %4850 = vmatpush3.bf16.msra.mxu0 %v5315_v53 }
  0xdb   : > { %672 = vadd.xlane.f32.xlu1 %v671_v28 }
 0x148   : > { %v628_v56 = vpop.xlane.xlu0 %627 }
 0x149   : > { %v674_v57 = vmul.f32 0.03125, %v628_v56 }
 0x14b   : > { %v690_v58 = vadd.f32 1e-05, %v674_v57 }
 0x14c   : > { %v631_v59 = vpop.xlane.xlu1 %630  ;;  %v634_v60 = vpop.xlane.xlu0 %633 }
 0x14d   : > { %5328 = vrsqrt.f32 %v690_v58  ;;  %v675_v61 = vmul.f32 0.03125, %v631_v59  ;;  %v676_v62 = vmul.f32 0.03125, %v634_v60 }
 0x14f   : > { %v691_v63 = vadd.f32 1e-05, %v675_v61  ;;  %v692_v2 = vadd.f32 1e-05, %v676_v62 }
 0x150   : > { %v637_v3 = vpop.xlane.xlu1 %636  ;;  %v640_v4 = vpop.xlane.xlu0 %639 }
 0x151   : > { %5330 = vrsqrt.f32 %v691_v63  ;;  %v677_v5 = vmul.f32 0.03125, %v637_v3  ;;  %v678_v6 = vmul.f32 0.03125, %v640_v4 }
 0x152   : > { %5332 = vrsqrt.f32 %v692_v2 }
 0x153   : > { %v693_v7 = vadd.f32 1e-05, %v677_v5  ;;  %v694_v8 = vadd.f32 1e-05, %v678_v6 }
 0x154   : > { %v643_v9 = vpop.xlane.xlu1 %642  ;;  %v646_v12 = vpop.xlane.xlu0 %645 }
 0x155   : > { %5334 = vrsqrt.f32 %v693_v7  ;;  %v679_v13 = vmul.f32 0.03125, %v643_v9  ;;  %v680_v14 = vmul.f32 0.03125, %v646_v12 }
 0x156   : > { %5336 = vrsqrt.f32 %v694_v8 }
 0x157   : > { %v5329_v15 = vpop.eup %5328  ;;  %v695_v18 = vadd.f32 1e-05, %v679_v13  ;;  %v696_v19 = vadd.f32 1e-05, %v680_v14 }
 0x158   : > { %v649_v22 = vpop.xlane.xlu1 %648  ;;  %v652_v16 = vpop.xlane.xlu0 %651  ;;  %v722_v26 = vmul.f32 %v5329_v15, %v6018_v36 }
 0x159   : > { %5338 = vrsqrt.f32 %v695_v18  ;;  %v681_v27 = vmul.f32 0.03125, %v649_v22  ;;  %v682_v30 = vmul.f32 0.03125, %v652_v16 }
 0x15a   : > { %5340 = vrsqrt.f32 %v696_v19  ;;  %v744_v41 = vmul.f32 %v6119_v31, %v722_v26 }
 0x15b   : > { %v5331_v32 = vpop.eup %5330  ;;  %v697_v33 = vadd.f32 1e-05, %v681_v27  ;;  %v698_v34 = vadd.f32 1e-05, %v682_v30 }
 0x15c   : > { %v5333_v20 = vpop.eup %5332  ;;  %v655_v38 = vpop.xlane.xlu1 %654  ;;  %v723_v40 = vmul.f32 %v5331_v32, %v6026_v44  ;;  %v766_v28 = vadd.f32 %v6126_v43, %v744_v41 }
 0x15d   : > { %v658_v39 = vpop.xlane.xlu0 %657  ;;  %5342 = vrsqrt.f32 %v697_v33  ;;  %v683_v36 = vmul.f32 0.03125, %v655_v38  ;;  %v724_v46 = vmul.f32 %v5333_v20, %v6020_v37 }
 0x15e   : > { %v684_v42 = vmul.f32 0.03125, %v658_v39  ;;  %5344 = vrsqrt.f32 %v698_v34  ;;  %v745_v24 = vmul.f32 %v6119_v31, %v723_v40 }
 0x15f   : > { %v5335_v48 = vpop.eup %5334  ;;  %v699_v49 = vadd.f32 1e-05, %v683_v36  ;;  %v746_v56 = vmul.f32 %v6119_v31, %v724_v46 }
 0x160   : > { %v700_v50 = vadd.f32 1e-05, %v684_v42  ;;  %v5337_v51 = vpop.eup %5336  ;;  %v661_v44 = vpop.xlane.xlu1 %660  ;;  %v767_v29 = vadd.f32 %v6126_v43, %v745_v24  ;;  %v725_v53 = vmul.f32 %v5335_v48, %v6028_v45 }
 0x161   : > { %v664_v52 = vpop.xlane.xlu0 %663  ;;  %5346 = vrsqrt.f32 %v699_v49  ;;  %v685_v57 = vmul.f32 0.03125, %v661_v44  ;;  %v726_v60 = vmul.f32 %v5337_v51, %v6037_v54  ;;  %v768_v45 = vadd.f32 %v6126_v43, %v746_v56 }
 0x162   : > { %v686_v37 = vmul.f32 0.03125, %v664_v52  ;;  %5348 = vrsqrt.f32 %v700_v50  ;;  %v782_v58 = vpack.c.bf16 %v767_v29, %v766_v28  ;;  %v747_v59 = vmul.f32 %v6119_v31, %v725_v53 }
 0x163   : > { %v5339_v61 = vpop.eup %5338  ;;  %v701_v62 = vadd.f32 1e-05, %v685_v57  ;;  %v748_v7 = vmul.f32 %v6119_v31, %v726_v60 }
 0x164   : > { %v702_v63 = vadd.f32 1e-05, %v686_v37  ;;  %v5341_v2 = vpop.eup %5340  ;;  %v667_v3 = vpop.xlane.xlu1 %666  ;;  %4851 = vmatprep.mubr.msk.bf16.mxu0 %vm528_vm0, %v782_v58  ;;  %v769_v5 = vadd.f32 %v6126_v43, %v747_v59  ;;  %v727_v6 = vmul.f32 %v5339_v61, %v6039_v55 }
 0x165   : > { %v670_v4 = vpop.xlane.xlu0 %669  ;;  %5350 = vrsqrt.f32 %v701_v62  ;;  %v687_v8 = vmul.f32 0.03125, %v667_v3  ;;  %v728_v54 = vmul.f32 %v5341_v2, %v6048_v0  ;;  %v770_v55 = vadd.f32 %v6126_v43, %v748_v7 }
 0x166   : > { %v688_v9 = vmul.f32 0.03125, %v670_v4  ;;  %5352 = vrsqrt.f32 %v702_v63  ;;  %v783_v12 = vpack.c.bf16 %v769_v5, %v768_v45  ;;  %v749_v13 = vmul.f32 %v6119_v31, %v727_v6  ;;  %v4573_v45 = vld [vmem:[%s7921_s4] ss:$0 sm:$0xff] }
 0x167   : > { %v5343_v14 = vpop.eup %5342  ;;  %v703_v15 = vadd.f32 1e-05, %v687_v8  ;;  %v750_v27 = vmul.f32 %v6119_v31, %v728_v54 }
 0x168   : > { %v704_v18 = vadd.f32 1e-05, %v688_v9  ;;  %v5345_v19 = vpop.eup %5344  ;;  %v673_v22 = vpop.xlane.xlu1 %672  ;;  %4852 = vmatmul.mubr.msk.bf16.vlgmr.msra.gmra.mrb[0].mxu0 %vm528_vm0, %v783_v12  ;;  %v771_v16 = vadd.f32 %v6126_v43, %v749_v13  ;;  %v729_v26 = vmul.f32 %v5343_v14, %v6051_v1 }
 0x169   : > { %5354 = vrsqrt.f32 %v703_v15  ;;  %v689_v0 = vmul.f32 0.03125, %v673_v22  ;;  %v730_v30 = vmul.f32 %v5345_v19, %v6060_v10  ;;  %v772_v39 = vadd.f32 %v6126_v43, %v750_v27 }
 0x16a   : > { %5356 = vrsqrt.f32 %v704_v18  ;;  %v784_v32 = vpack.c.bf16 %v771_v16, %v770_v55  ;;  %v751_v33 = vmul.f32 %v6119_v31, %v729_v26 }
 0x16b   : > { %v5347_v34 = vpop.eup %5346  ;;  %v705_v20 = vadd.f32 1e-05, %v689_v0  ;;  %v752_v41 = vmul.f32 %v6119_v31, %v730_v30 }
 0x16c   : > { %v5349_v38 = vpop.eup %5348  ;;  %4855 = vmatprep.mubr.msk.bf16.mxu0 %vm528_vm0, %v784_v32  ;;  %v773_v40 = vadd.f32 %v6126_v43, %v751_v33  ;;  %v731_v1 = vmul.f32 %v5347_v34, %v6063_v11 }
 0x16d   : > { %5358 = vrsqrt.f32 %v705_v20  ;;  %v732_v10 = vmul.f32 %v5349_v38, %v6072_v23  ;;  %v774_v48 = vadd.f32 %v6126_v43, %v752_v41 }
 0x16e   : > { %v785_v36 = vpack.c.bf16 %v773_v40, %v772_v39  ;;  %v753_v42 = vmul.f32 %v6119_v31, %v731_v1 }
 0x16f   : > { %v5351_v46 = vpop.eup %5350  ;;  %v754_v11 = vmul.f32 %v6119_v31, %v732_v10 }
 0x170   : > { %v5353_v24 = vpop.eup %5352  ;;  %4856 = vmatmul.mubr.msk.bf16.gmra.mrb[4].mxu0 %vm528_vm0, %v785_v36  ;;  %v775_v49 = vadd.f32 %v6126_v43, %v753_v42  ;;  %v733_v50 = vmul.f32 %v5351_v46, %v6075_v17 }
 0x171   : > { %v734_v51 = vmul.f32 %v5353_v24, %v6084_v35  ;;  %v776_v29 = vadd.f32 %v6126_v43, %v754_v11 }
 0x172   : > { %v786_v44 = vpack.c.bf16 %v775_v49, %v774_v48  ;;  %v755_v23 = vmul.f32 %v6119_v31, %v733_v50 }
 0x173   : > { %v5355_v52 = vpop.eup %5354  ;;  %v756_v57 = vmul.f32 %v6119_v31, %v734_v51 }
 0x174   : > { %v5357_v28 = vpop.eup %5356  ;;  %4859 = vmatprep.mubr.msk.bf16.mxu0 %vm528_vm0, %v786_v44  ;;  %v777_v53 = vadd.f32 %v6126_v43, %v755_v23  ;;  %v735_v56 = vmul.f32 %v5355_v52, %v6087_v21 }
 0x175   : > { %v736_v17 = vmul.f32 %v5357_v28, %v6096_v47  ;;  %v778_v59 = vadd.f32 %v6126_v43, %v756_v57 }
 0x176   : > { %v787_v37 = vpack.c.bf16 %v777_v53, %v776_v29  ;;  %v757_v35 = vmul.f32 %v6119_v31, %v735_v56 }
 0x177   : > { %v5359_v58 = vpop.eup %5358  ;;  %v758_v62 = vmul.f32 %v6119_v31, %v736_v17 }
 0x178   : > { %4860 = vmatmul.mubr.msk.bf16.gmra.mrb[8].mxu0 %vm528_vm0, %v787_v37  ;;  %v779_v60 = vadd.f32 %v6126_v43, %v757_v35  ;;  %v737_v61 = vmul.f32 %v5359_v58, %v6099_v25 }
 0x179   : > { %v780_v47 = vadd.f32 %v6126_v43, %v758_v62 }
 0x17a   : > { %v788_v63 = vpack.c.bf16 %v779_v60, %v778_v59  ;;  %v759_v21 = vmul.f32 %v6119_v31, %v737_v61 }
 0x17c   : > { %4863 = vmatprep.mubr.msk.bf16.mxu0 %vm528_vm0, %v788_v63  ;;  %v781_v2 = vadd.f32 %v6126_v43, %v759_v21 }
 0x17e   : > { %v789_v3 = vpack.c.bf16 %v781_v2, %v780_v47 }
 0x180   : > { %4864 = vmatmul.mubr.msk.bf16.gmra.mrb[12].mxu0 %vm528_vm0, %v789_v3 }
 0x23b   : > { %v4853_v4 = vpop.f32.mrb[0].mxu0 }
 0x23c   : > { %v871_v25 = vpop.f32.mrb[1].mxu0  ;;  %v880_v6 = vadd.f32 %v4853_v4, %v4573_v45 }
 0x23d   : > { %v4854_v5 = vpop.f32.mrb[2].mxu0  ;;  %v872_v31 = vadd.f32 %v4573_v45, %v871_v25 }
 0x23e   : > { %v883_v7 = vadd.f32 %v4854_v5, %v4573_v45  ;;  %v874_v8 = vpop.f32.mrb[3].mxu0 }
 0x23f   : > { %v875_v9 = vadd.f32 %v4573_v45, %v874_v8 }
 0x240   : > { %v6184_v54 = vpack.c.bf16 %v883_v7, %v880_v6 }
 0x241   : > { %v6186_v12 = vpack.c.bf16 %v875_v9, %v872_v31 }
 0x242   : > { %944 = vst.msk [vmem:[#allocation2 + $0x8] sm:$0xff] %vm942_vm1, %v6184_v54 }
 0x243   : > { %1089 = vrot.lane.b32.xlu1 %v6186_v12, %s5794_s19  ;;  %991 = vrot.lane.b32.xlu0 %v6186_v12, %s5795_s20  ;;  %v4857_v43 = vpop.f32.mrb[4].mxu0  ;;  %943 = vst.msk [vmem:[#allocation2] sm:$0xff] %vm942_vm1, %v6186_v12 }
 0x244   : > { %v887_v13 = vpop.f32.mrb[5].mxu0  ;;  %v896_v15 = vadd.f32 %v4857_v43, %v4573_v45 }
 0x245   : > { %v4858_v14 = vpop.f32.mrb[6].mxu0  ;;  %v888_v22 = vadd.f32 %v4573_v45, %v887_v13 }
 0x246   : > { %v899_v18 = vadd.f32 %v4858_v14, %v4573_v45  ;;  %v890_v19 = vpop.f32.mrb[7].mxu0 }
 0x247   : > { %v891_v55 = vadd.f32 %v4573_v45, %v890_v19  ;;  %993 = vrot.lane.b32.xlu1 %v6184_v54, %s5795_s20 }
 0x248   : > { %v6198_v16 = vpack.c.bf16 %v899_v18, %v896_v15 }
 0x249   : > { %v6200_v26 = vpack.c.bf16 %v891_v55, %v888_v22 }
 0x24a   : > { %v1342_v27 = vld [vmem:[#allocation2] sm:$0xff]  ;;  %946 = vst.msk [vmem:[#allocation2 + $0x18] sm:$0xff] %vm942_vm1, %v6198_v16 }
 0x24b   : > { %1091 = vrot.lane.b32.xlu1 %v6184_v54, %s5794_s19  ;;  %4883 = vmatprep.mubr.msk.bf16.mxu1 %vm942_vm1, %v1342_v27  ;;  %945 = vst.msk [vmem:[#allocation2 + $0x10] sm:$0xff] %vm942_vm1, %v6200_v26  ;;  %v4861_v0 = vpop.f32.mrb[8].mxu0 }
 0x24c   : > { %995 = vrot.lane.b32.xlu0 %v6200_v26, %s5795_s20  ;;  %v903_v30 = vpop.f32.mrb[9].mxu0  ;;  %v912_v33 = vadd.f32 %v4861_v0, %v4573_v45 }
 0x24d   : > { %v4862_v32 = vpop.f32.mrb[10].mxu0  ;;  %v904_v38 = vadd.f32 %v4573_v45, %v903_v30 }
 0x24e   : > { %v915_v34 = vadd.f32 %v4862_v32, %v4573_v45  ;;  %v906_v20 = vpop.f32.mrb[11].mxu0 }
 0x24f   : > { %v907_v39 = vadd.f32 %v4573_v45, %v906_v20  ;;  %1093 = vrot.lane.b32.xlu1 %v6200_v26, %s5794_s19 }
 0x250   : > { %v6213_v40 = vpack.c.bf16 %v915_v34, %v912_v33  ;;  %997 = vrot.lane.b32.xlu0 %v6198_v16, %s5795_s20 }
 0x251   : > { %v6217_v1 = vpack.c.bf16 %v907_v39, %v904_v38 }
 0x252   : > { %948 = vst.msk [vmem:[#allocation2 + $0x28] sm:$0xff] %vm942_vm1, %v6213_v40 }
 0x253   : > { %947 = vst.msk [vmem:[#allocation2 + $0x20] sm:$0xff] %vm942_vm1, %v6217_v1  ;;  %1095 = vrot.lane.b32.xlu1 %v6198_v16, %s5794_s19  ;;  %v4865_v41 = vpop.f32.mrb[12].mxu0 }
 0x254   : > { %999 = vrot.lane.b32.xlu0 %v6217_v1, %s5795_s20  ;;  %v919_v10 = vpop.f32.mrb[13].mxu0  ;;  %v928_v42 = vadd.f32 %v4865_v41, %v4573_v45 }
 0x255   : > { %v4866_v36 = vpop.f32.mrb[14].mxu0  ;;  %v920_v48 = vadd.f32 %v4573_v45, %v919_v10 }
 0x256   : > { %v931_v46 = vadd.f32 %v4866_v36, %v4573_v45  ;;  %v922_v24 = vpop.f32.mrb[15].mxu0 }
 0x257   : > { %v923_v49 = vadd.f32 %v4573_v45, %v922_v24  ;;  %1097 = vrot.lane.b32.xlu1 %v6217_v1, %s5794_s19 }
 0x258   : > { %v6229_v50 = vpack.c.bf16 %v931_v46, %v928_v42  ;;  %1001 = vrot.lane.b32.xlu0 %v6213_v40, %s5795_s20 }
 0x259   : > { %v6233_v11 = vpack.c.bf16 %v923_v49, %v920_v48 }
 0x25a   : > { %950 = vst.msk [vmem:[#allocation2 + $0x38] sm:$0xff] %vm942_vm1, %v6229_v50 }
 0x25b   : > { %949 = vst.msk [vmem:[#allocation2 + $0x30] sm:$0xff] %vm942_vm1, %v6233_v11  ;;  %1099 = vrot.lane.b32.xlu1 %v6213_v40, %s5794_s19 }
 0x25c   : > { %1003 = vrot.lane.b32.xlu0 %v6233_v11, %s5795_s20 }
 0x25f   : > { %1101 = vrot.lane.b32.xlu1 %v6233_v11, %s5794_s19 }
 0x260   : > { %1005 = vrot.lane.b32.xlu0 %v6229_v50, %s5795_s20  ;;  %s5800_s20 = smov 104  }
 0x263   : > { %1103 = vrot.lane.b32.xlu1 %v6229_v50, %s5794_s19  ;;  %s5799_s19 = smov 112  }
 0x264   : > { %1188 = vrot.lane.b32.xlu0 %v6186_v12, %s5796_s28 }
 0x267   : > { %1023 = vrot.lane.b32.xlu1 %v6186_v12, %s5797_s22 }
 0x268   : > { %1287 = vrot.lane.b32.xlu0 %v6186_v12, %s5798_s0 }
 0x26b   : > { %1025 = vrot.lane.b32.xlu1 %v6184_v54, %s5797_s22 }
 0x26c   : > { %1190 = vrot.lane.b32.xlu0 %v6184_v54, %s5796_s28 }
 0x26f   : > { %1289 = vrot.lane.b32.xlu1 %v6184_v54, %s5798_s0 }
 0x270   : > { %1192 = vrot.lane.b32.xlu0 %v6200_v26, %s5796_s28 }
 0x273   : > { %1291 = vrot.lane.b32.xlu1 %v6200_v26, %s5798_s0 }
 0x274   : > { %1194 = vrot.lane.b32.xlu0 %v6198_v16, %s5796_s28 }
 0x277   : > { %1293 = vrot.lane.b32.xlu1 %v6198_v16, %s5798_s0 }
 0x278   : > { %1196 = vrot.lane.b32.xlu0 %v6217_v1, %s5796_s28 }
 0x27b   : > { %1295 = vrot.lane.b32.xlu1 %v6217_v1, %s5798_s0 }
 0x27c   : > { %1027 = vrot.lane.b32.xlu0 %v6200_v26, %s5797_s22 }
 0x27f   : > { %1198 = vrot.lane.b32.xlu1 %v6213_v40, %s5796_s28 }
 0x280   : > { %1029 = vrot.lane.b32.xlu0 %v6198_v16, %s5797_s22 }
 0x283   : > { %1297 = vrot.lane.b32.xlu1 %v6213_v40, %s5798_s0 }
 0x284   : > { %1031 = vrot.lane.b32.xlu0 %v6217_v1, %s5797_s22 }
 0x287   : > { %1200 = vrot.lane.b32.xlu1 %v6233_v11, %s5796_s28 }
 0x288   : > { %1033 = vrot.lane.b32.xlu0 %v6213_v40, %s5797_s22 }
 0x28b   : > { %1299 = vrot.lane.b32.xlu1 %v6233_v11, %s5798_s0 }
 0x28c   : > { %1037 = vrot.lane.b32.xlu0 %v6229_v50, %s5797_s22 }
 0x28f   : > { %1202 = vrot.lane.b32.xlu1 %v6229_v50, %s5796_s28  ;;  %s5802_s28 = smov 56  }
 0x290   : > { %1035 = vrot.lane.b32.xlu0 %v6233_v11, %s5797_s22  ;;  %s5803_s22 = smov 48  }
 0x293   : > { %1301 = vrot.lane.b32.xlu1 %v6229_v50, %s5798_s0  ;;  %s5801_s0 = smov 64  }
 0x294   : > { %1122 = vrot.lane.b32.xlu0 %v6186_v12, %s5799_s19 }
 0x297   : > { %1124 = vrot.lane.b32.xlu1 %v6184_v54, %s5799_s19 }
 0x298   : > { %1221 = vrot.lane.b32.xlu0 %v6186_v12, %s5800_s20 }
 0x29b   : > { %1223 = vrot.lane.b32.xlu1 %v6184_v54, %s5800_s20 }
 0x29c   : > { %1126 = vrot.lane.b32.xlu0 %v6200_v26, %s5799_s19 }
 0x29f   : > { %1128 = vrot.lane.b32.xlu1 %v6198_v16, %s5799_s19 }
 0x2a0   : > { %1225 = vrot.lane.b32.xlu0 %v6200_v26, %s5800_s20 }
 0x2a3   : > { %1227 = vrot.lane.b32.xlu1 %v6198_v16, %s5800_s20 }
 0x2a4   : > { %1130 = vrot.lane.b32.xlu0 %v6217_v1, %s5799_s19 }
 0x2a7   : > { %1132 = vrot.lane.b32.xlu1 %v6213_v40, %s5799_s19 }
 0x2a8   : > { %1229 = vrot.lane.b32.xlu0 %v6217_v1, %s5800_s20 }
 0x2ab   : > { %1231 = vrot.lane.b32.xlu1 %v6213_v40, %s5800_s20 }
 0x2ac   : > { %1134 = vrot.lane.b32.xlu0 %v6233_v11, %s5799_s19 }
 0x2af   : > { %1136 = vrot.lane.b32.xlu1 %v6229_v50, %s5799_s19  ;;  %s5804_s19 = smov 40  }
 0x2b0   : > { %1233 = vrot.lane.b32.xlu0 %v6233_v11, %s5800_s20 }
 0x2b3   : > { %1235 = vrot.lane.b32.xlu1 %v6229_v50, %s5800_s20  ;;  %s7906_s20 = sand.u32 1, %s5776_s30  }
 0x2b4   : > { %959 = vrot.lane.b32.xlu0 %v6186_v12, %s5801_s0 }
 0x2b5   : > { %v1090_v51 = vpop.permute.xlu1 %1089  ;;  %v992_v44 = vpop.permute.xlu0 %991 }
 0x2b6   : > { %1114 = vst.msk [vmem:[#allocation3 + $0x40] sm:$0xff] %vm942_vm1, %v1090_v51  ;;  %1015 = vst.msk [vmem:[#allocation3] sm:$0xff] %vm942_vm1, %v992_v44 }
 0x2b7   : > { %1056 = vrot.lane.b32.xlu1 %v6186_v12, %s5802_s28 }
 0x2b8   : > { %963 = vrot.lane.b32.xlu0 %v6200_v26, %s5801_s0 }
 0x2b9   : > { %v994_v23 = vpop.permute.xlu1 %993 }
 0x2ba   : > { %1016 = vst.msk [vmem:[#allocation3 + $0x8] sm:$0xff] %vm942_vm1, %v994_v23 }
 0x2bb   : > { %961 = vrot.lane.b32.xlu1 %v6184_v54, %s5801_s0 }
 0x2bc   : > { %965 = vrot.lane.b32.xlu0 %v6198_v16, %s5801_s0 }
 0x2bd   : > { %v1092_v52 = vpop.permute.xlu1 %1091  ;;  %v1374_v28 = vld [vmem:[#allocation3] sm:$0xff] }
 0x2be   : > { %v1382_v29 = vld [vmem:[#allocation3 + $0x40] sm:$0xff]  ;;  %1115 = vst.msk [vmem:[#allocation3 + $0x48] sm:$0xff] %vm942_vm1, %v1092_v52  ;;  %v996_v53 = vpop.permute.xlu0 %995  ;;  %5211 = vmatprep.subr.msk.bf16.mxu1 %vm942_vm1, %v1374_v28  ;;  %v1432_v57 = vsel %vm942_vm1, %v1374_v28, 0 }
 0x2bf   : > { %5219 = vmatprep.subr.msk.bf16.mxu0 %vm942_vm1, %v1382_v29  ;;  %v1577_v56 = vsel %vm942_vm1, %v1382_v29, 0  ;;  %1017 = vst.msk [vmem:[#allocation3 + $0x10] sm:$0xff] %vm942_vm1, %v996_v53  ;;  %1058 = vrot.lane.b32.xlu1 %v6184_v54, %s5802_s28 }
 0x2c0   : > { %4900 = vmatpush3.bf16.xpose.msra.mxu0 %v1577_v56  ;;  %967 = vrot.lane.b32.xlu0 %v6217_v1, %s5801_s0 }
 0x2c1   : > { %4868 = vmatpush3.bf16.xpose.msra.mxu1 %v1432_v57  ;;  %v1094_v17 = vpop.permute.xlu1 %1093  ;;  %v1375_v37 = vld [vmem:[#allocation3 + $0x8] sm:$0xff] }
 0x2c2   : > { %1116 = vst.msk [vmem:[#allocation3 + $0x50] sm:$0xff] %vm942_vm1, %v1094_v17  ;;  %v998_v35 = vpop.permute.xlu0 %997  ;;  %5212 = vmatprep.subr.msk.bf16.mxu1 %vm942_vm1, %v1375_v37  ;;  %v1435_v62 = vsel %vm942_vm1, %v1375_v37, 0  ;;  %v1343_v17 = vld [vmem:[#allocation2 + $0x8] sm:$0xff] }
 0x2c3   : > { %1018 = vst.msk [vmem:[#allocation3 + $0x18] sm:$0xff] %vm942_vm1, %v998_v35  ;;  %1060 = vrot.lane.b32.xlu1 %v6200_v26, %s5802_s28  ;;  %v1344_v35 = vld [vmem:[#allocation2 + $0x10] sm:$0xff] }
 0x2c4   : > { %969 = vrot.lane.b32.xlu0 %v6213_v40, %s5801_s0 }
 0x2c5   : > { %v1096_v58 = vpop.permute.xlu1 %1095  ;;  %v1383_v59 = vld [vmem:[#allocation3 + $0x48] sm:$0xff] }
 0x2c6   : > { %1117 = vst.msk [vmem:[#allocation3 + $0x58] sm:$0xff] %vm942_vm1, %v1096_v58  ;;  %v1000_v60 = vpop.permute.xlu0 %999  ;;  %5220 = vmatprep.subr.msk.bf16.mxu0 %vm942_vm1, %v1383_v59  ;;  %v1580_v61 = vsel %vm942_vm1, %v1383_v59, 0  ;;  %v1376_v63 = vld [vmem:[#allocation3 + $0x10] sm:$0xff] }
 0x2c7   : > { %1019 = vst.msk [vmem:[#allocation3 + $0x20] sm:$0xff] %vm942_vm1, %v1000_v60  ;;  %1062 = vrot.lane.b32.xlu1 %v6198_v16, %s5802_s28  ;;  %v1438_v25 = vsel %vm942_vm1, %v1376_v63, 0 }
 0x2c8   : > { %4902 = vmatpush3.bf16.xpose.msra.mxu0 %v1580_v61  ;;  %973 = vrot.lane.b32.xlu0 %v6229_v50, %s5801_s0 }
 0x2c9   : > { %4870 = vmatpush3.bf16.xpose.msra.mxu1 %v1435_v62  ;;  %v1098_v21 = vpop.permute.xlu1 %1097  ;;  %v1384_v47 = vld [vmem:[#allocation3 + $0x50] sm:$0xff] }
 0x2ca   : > { %5213 = vmatprep.subr.msk.bf16.mxu1 %vm942_vm1, %v1376_v63  ;;  %1118 = vst.msk [vmem:[#allocation3 + $0x60] sm:$0xff] %vm942_vm1, %v1098_v21  ;;  %v1002_v2 = vpop.permute.xlu0 %1001  ;;  %5221 = vmatprep.subr.msk.bf16.mxu0 %vm942_vm1, %v1384_v47  ;;  %v1583_v45 = vsel %vm942_vm1, %v1384_v47, 0  ;;  %v1377_v5 = vld [vmem:[#allocation3 + $0x18] sm:$0xff] }
 0x2cb   : > { %1020 = vst.msk [vmem:[#allocation3 + $0x28] sm:$0xff] %vm942_vm1, %v1002_v2  ;;  %1064 = vrot.lane.b32.xlu1 %v6217_v1, %s5802_s28  ;;  %v1441_v13 = vsel %vm942_vm1, %v1377_v5, 0 }
 0x2cc   : > { %1155 = vrot.lane.b32.xlu0 %v6186_v12, %s5803_s22 }
 0x2cd   : > { %v1100_v3 = vpop.permute.xlu1 %1099  ;;  %v1385_v6 = vld [vmem:[#allocation3 + $0x58] sm:$0xff] }
 0x2ce   : > { %1119 = vst.msk [vmem:[#allocation3 + $0x68] sm:$0xff] %vm942_vm1, %v1100_v3  ;;  %v1004_v4 = vpop.permute.xlu0 %1003  ;;  %v1586_v43 = vsel %vm942_vm1, %v1385_v6, 0  ;;  %v1378_v14 = vld [vmem:[#allocation3 + $0x20] sm:$0xff]  ;;  %v1345_v3 = vld [vmem:[#allocation2 + $0x18] sm:$0xff] }
 0x2cf   : > { %1021 = vst.msk [vmem:[#allocation3 + $0x30] sm:$0xff] %vm942_vm1, %v1004_v4  ;;  %1066 = vrot.lane.b32.xlu1 %v6213_v40, %s5802_s28  ;;  %v1444_v27 = vsel %vm942_vm1, %v1378_v14, 0 }
 0x2d0   : > { %4904 = vmatpush3.bf16.xpose.msra.mxu0 %v1583_v45  ;;  %1157 = vrot.lane.b32.xlu0 %v6184_v54, %s5803_s22  ;;  %v1346_v45 = vld [vmem:[#allocation2 + $0x20] sm:$0xff] }
 0x2d1   : > { %4872 = vmatpush3.bf16.xpose.msra.mxu1 %v1438_v25  ;;  %5222 = vmatprep.subr.msk.bf16.mxu0 %vm942_vm1, %v1385_v6  ;;  %v1102_v7 = vpop.permute.xlu1 %1101  ;;  %v1386_v15 = vld [vmem:[#allocation3 + $0x60] sm:$0xff] }
 0x2d2   : > { %5214 = vmatprep.subr.msk.bf16.mxu1 %vm942_vm1, %v1377_v5  ;;  %1120 = vst.msk [vmem:[#allocation3 + $0x70] sm:$0xff] %vm942_vm1, %v1102_v7  ;;  %v1006_v8 = vpop.permute.xlu0 %1005  ;;  %v1589_v55 = vsel %vm942_vm1, %v1386_v15, 0 }
 0x2d3   : > { %1022 = vst.msk [vmem:[#allocation3 + $0x38] sm:$0xff] %vm942_vm1, %v1006_v8  ;;  %1070 = vrot.lane.b32.xlu1 %v6229_v50, %s5802_s28 }
 0x2d4   : > { %1159 = vrot.lane.b32.xlu0 %v6200_v26, %s5803_s22 }
 0x2d5   : > { %v1104_v31 = vpop.permute.xlu1 %1103  ;;  %v1387_v0 = vld [vmem:[#allocation3 + $0x68] sm:$0xff] }
 0x2d6   : > { %1121 = vst.msk [vmem:[#allocation3 + $0x78] sm:$0xff] %vm942_vm1, %v1104_v31  ;;  %v1189_v9 = vpop.permute.xlu0 %1188  ;;  %v1592_v20 = vsel %vm942_vm1, %v1387_v0, 0 }
 0x2d7   : > { %1213 = vst.msk [vmem:[#allocation3 + $0x80] sm:$0xff] %vm942_vm1, %v1189_v9  ;;  %1254 = vrot.lane.b32.xlu1 %v6186_v12, %s5804_s19 }
 0x2d8   : > { %4906 = vmatpush3.bf16.xpose.msra.mxu0 %v1586_v43  ;;  %1161 = vrot.lane.b32.xlu0 %v6198_v16, %s5803_s22 }
 0x2d9   : > { %4874 = vmatpush3.bf16.xpose.msra.mxu1 %v1441_v13  ;;  %5223 = vmatprep.subr.msk.bf16.mxu0 %vm942_vm1, %v1386_v15  ;;  %v1024_v18 = vpop.permute.xlu1 %1023  ;;  %v1388_v39 = vld [vmem:[#allocation3 + $0x70] sm:$0xff] }
 0x2da   : > { %5215 = vmatprep.subr.msk.bf16.mxu1 %vm942_vm1, %v1378_v14  ;;  %1048 = vst.msk [vmem:[#allocation2 + $0x40] sm:$0xff] %vm942_vm1, %v1024_v18  ;;  %v1288_v19 = vpop.permute.xlu0 %1287  ;;  %v1595_v42 = vsel %vm942_vm1, %v1388_v39, 0  ;;  %v1347_v14 = vld [vmem:[#allocation2 + $0x28] sm:$0xff]  ;;  %v1348_v18 = vld [vmem:[#allocation2 + $0x30] sm:$0xff] }
 0x2db   : > { %1312 = vst.msk [vmem:[#allocation3 + $0xc0] sm:$0xff] %vm942_vm1, %v1288_v19  ;;  %1256 = vrot.lane.b32.xlu1 %v6184_v54, %s5804_s19  ;;  %v1379_v54 = vld [vmem:[#allocation3 + $0x28] sm:$0xff] }
 0x2dc   : > { %1163 = vrot.lane.b32.xlu0 %v6217_v1, %s5803_s22  ;;  %v1447_v38 = vsel %vm942_vm1, %v1379_v54, 0 }
 0x2dd   : > { %v1026_v12 = vpop.permute.xlu1 %1025  ;;  %v1389_v24 = vld [vmem:[#allocation3 + $0x78] sm:$0xff] }
 0x2de   : > { %1049 = vst.msk [vmem:[#allocation2 + $0x48] sm:$0xff] %vm942_vm1, %v1026_v12  ;;  %v1191_v22 = vpop.permute.xlu0 %1190  ;;  %v1598_v44 = vsel %vm942_vm1, %v1389_v24, 0  ;;  %v1390_v28 = vld [vmem:[#allocation3 + $0x80] sm:$0xff] }
 0x2df   : > { %1214 = vst.msk [vmem:[#allocation3 + $0x88] sm:$0xff] %vm942_vm1, %v1191_v22  ;;  %1258 = vrot.lane.b32.xlu1 %v6200_v26, %s5804_s19  ;;  %v1722_v58 = vsel %vm942_vm1, %v1390_v28, 0 }
 0x2e0   : > { %4908 = vmatpush3.bf16.xpose.msra.mxu0 %v1589_v55  ;;  %1165 = vrot.lane.b32.xlu0 %v6213_v40, %s5803_s22 }
 0x2e1   : > { %4876 = vmatpush3.bf16.xpose.msra.mxu1 %v1444_v27  ;;  %5224 = vmatprep.subr.msk.bf16.mxu0 %vm942_vm1, %v1387_v0  ;;  %v1290_v30 = vpop.permute.xlu1 %1289  ;;  %v1350_v32 = vld [vmem:[#allocation2 + $0x40] sm:$0xff] }
 0x2e2   : > { %5216 = vmatprep.subr.msk.bf16.mxu1 %vm942_vm1, %v1379_v54  ;;  %1313 = vst.msk [vmem:[#allocation3 + $0xc8] sm:$0xff] %vm942_vm1, %v1290_v30  ;;  %v1193_v33 = vpop.permute.xlu0 %1192  ;;  %4915 = vmatprep.mubr.msk.bf16.mxu0 %vm942_vm1, %v1350_v32  ;;  %v1398_v52 = vld [vmem:[#allocation3 + $0xc0] sm:$0xff] }
 0x2e3   : > { %1215 = vst.msk [vmem:[#allocation3 + $0x90] sm:$0xff] %vm942_vm1, %v1193_v33  ;;  %1260 = vrot.lane.b32.xlu1 %v6198_v16, %s5804_s19  ;;  %v1380_v16 = vld [vmem:[#allocation3 + $0x30] sm:$0xff]  ;;  %v1867_v59 = vsel %vm942_vm1, %v1398_v52, 0  ;;  %v1349_v33 = vld [vmem:[#allocation2 + $0x38] sm:$0xff] }
 0x2e4   : > { %1169 = vrot.lane.b32.xlu0 %v6229_v50, %s5803_s22  ;;  %v1450_v46 = vsel %vm942_vm1, %v1380_v16, 0 }
 0x2e5   : > { %v1292_v26 = vpop.permute.xlu1 %1291  ;;  %v1351_v57 = vld [vmem:[#allocation2 + $0x48] sm:$0xff] }
 0x2e6   : > { %1314 = vst.msk [vmem:[#allocation3 + $0xd0] sm:$0xff] %vm942_vm1, %v1292_v26  ;;  %v1195_v34 = vpop.permute.xlu0 %1194  ;;  %v1391_v60 = vld [vmem:[#allocation3 + $0x88] sm:$0xff] }
 0x2e7   : > { %1216 = vst.msk [vmem:[#allocation3 + $0x98] sm:$0xff] %vm942_vm1, %v1195_v34  ;;  %1262 = vrot.lane.b32.xlu1 %v6217_v1, %s5804_s19  ;;  %v1725_v25 = vsel %vm942_vm1, %v1391_v60, 0 }
 0x2e8   : > { %4910 = vmatpush3.bf16.xpose.msra.mxu0 %v1592_v20  ;;  %971 = vrot.lane.b32.xlu0 %v6233_v11, %s5801_s0  ;;  %s4566_s0 = sshll.u32 %s7906_s20, 7  ;;  %s7990_s20 = sshll.u32 %s5943_s27, 7 }
 0x2e9   : > { %4878 = vmatpush3.bf16.xpose.msra.mxu1 %v1447_v38  ;;  %5225 = vmatprep.subr.msk.bf16.mxu0 %vm942_vm1, %v1388_v39  ;;  %v1294_v41 = vpop.permute.xlu1 %1293  ;;  %v1399_v61 = vld [vmem:[#allocation3 + $0xc8] sm:$0xff]  ;;  %s4672_s27 = sshll.u32 %s5784_s16, 11  ;;  %s5809_s16 = smov [#allocation6]  }
 0x2ea   : > { %5217 = vmatprep.subr.msk.bf16.mxu1 %vm942_vm1, %v1380_v16  ;;  %1315 = vst.msk [vmem:[#allocation3 + $0xd8] sm:$0xff] %vm942_vm1, %v1294_v41  ;;  %v1197_v10 = vpop.permute.xlu0 %1196  ;;  %v1870_v5 = vsel %vm942_vm1, %v1399_v61, 0  ;;  %v1392_v6 = vld [vmem:[#allocation3 + $0x90] sm:$0xff] }
 0x2eb   : > { %1217 = vst.msk [vmem:[#allocation3 + $0xa0] sm:$0xff] %vm942_vm1, %v1197_v10  ;;  %1264 = vrot.lane.b32.xlu1 %v6213_v40, %s5804_s19  ;;  %v1381_v40 = vld [vmem:[#allocation3 + $0x38] sm:$0xff]  ;;  %v1728_v19 = vsel %vm942_vm1, %v1392_v6, 0 }
 0x2ec   : > { %1167 = vrot.lane.b32.xlu0 %v6233_v11, %s5803_s22  ;;  %v1453_v23 = vsel %vm942_vm1, %v1381_v40, 0  ;;  %s7907_s22 = smov 8  }
 0x2ed   : > { %v1296_v1 = vpop.permute.xlu1 %1295  ;;  %v1400_v7 = vld [vmem:[#allocation3 + $0xd0] sm:$0xff] }
 0x2ee   : > { %1316 = vst.msk [vmem:[#allocation3 + $0xe0] sm:$0xff] %vm942_vm1, %v1296_v1  ;;  %v1028_v36 = vpop.permute.xlu0 %1027  ;;  %v1873_v12 = vsel %vm942_vm1, %v1400_v7, 0  ;;  %v1393_v22 = vld [vmem:[#allocation3 + $0x98] sm:$0xff] }
 0x2ef   : > { %1050 = vst.msk [vmem:[#allocation2 + $0x50] sm:$0xff] %vm942_vm1, %v1028_v36  ;;  %1268 = vrot.lane.b32.xlu1 %v6229_v50, %s5804_s19  ;;  %v1731_v34 = vsel %vm942_vm1, %v1393_v22, 0 }
 0x2f0   : > { %4912 = vmatpush3.bf16.xpose.msra.mxu0 %v1595_v42 }
 0x2f1   : > { %4880 = vmatpush3.bf16.xpose.msra.mxu1 %v1450_v46  ;;  %5226 = vmatprep.subr.msk.bf16.mxu0 %vm942_vm1, %v1389_v24  ;;  %v1199_v48 = vpop.permute.xlu1 %1198  ;;  %v1401_v55 = vld [vmem:[#allocation3 + $0xd8] sm:$0xff] }
 0x2f2   : > { %5218 = vmatprep.subr.msk.bf16.mxu1 %vm942_vm1, %v1381_v40  ;;  %1218 = vst.msk [vmem:[#allocation3 + $0xa8] sm:$0xff] %vm942_vm1, %v1199_v48  ;;  %v1030_v49 = vpop.permute.xlu0 %1029  ;;  %v1876_v38 = vsel %vm942_vm1, %v1401_v55, 0  ;;  %v1394_v16 = vld [vmem:[#allocation3 + $0xa0] sm:$0xff] }
 0x2f3   : > { %1051 = vst.msk [vmem:[#allocation2 + $0x58] sm:$0xff] %vm942_vm1, %v1030_v49  ;;  %1068 = vrot.lane.b32.xlu1 %v6233_v11, %s5802_s28  ;;  %v1734_v42 = vsel %vm942_vm1, %v1394_v16, 0  ;;  %s7245_s28 = scalar_lea.vmem [#allocation6], %s4566_s0  ;;  %s5807_s0 = smov 24  }
 0x2f4   : > { %s4447_s2 = sshll.u32 %s7245_s28, 4  ;;  %s7800_s2 = int_to_ptr.vmem [resolvable:$true] %s4447_s2 }
 0x2f5   : > { %v1298_v50 = vpop.permute.xlu1 %1297  ;;  %v1402_v39 = vld [vmem:[#allocation3 + $0xe0] sm:$0xff]  ;;  %s5714_s4 = scalar_lea.vmem %s7800_s2, 2048 }
 0x2f6   : > { %1317 = vst.msk [vmem:[#allocation3 + $0xe8] sm:$0xff] %vm942_vm1, %v1298_v50  ;;  %v1032_v51 = vpop.permute.xlu0 %1031  ;;  %v1352_v37 = vld [vmem:[#allocation2 + $0x50] sm:$0xff]  ;;  %v1879_v46 = vsel %vm942_vm1, %v1402_v39, 0  ;;  %p5715_p12 = scmp.ne.s32.totalorder %s7800_s2, %s5714_s4 }
 0x2f7   : > { %1052 = vst.msk [vmem:[#allocation2 + $0x60] sm:$0xff] %vm942_vm1, %v1032_v51  ;;  %1266 = vrot.lane.b32.xlu1 %v6233_v11, %s5804_s19  ;;  %s5806_s19 = smov 16  }
 0x2f8   : > { %4914 = vmatpush3.bf16.xpose.msra.mxu0 %v1598_v44  ;;  %p5716_p13 = pnand %p5715_p12, %p5926_p4 }
 0x2f9   : > { %4882 = vmatpush3.bf16.xpose.msra.mxu1 %v1453_v23  ;;  %5235 = vmatprep.subr.msk.bf16.mxu0 %vm942_vm1, %v1398_v52  ;;  %v1201_v29 = vpop.permute.xlu1 %1200  ;;  %v1395_v24 = vld [vmem:[#allocation3 + $0xa8] sm:$0xff] }
 0x2fa   : > { %5227 = vmatprep.subr.msk.bf16.mxu1 %vm942_vm1, %v1390_v28  ;;  %1219 = vst.msk [vmem:[#allocation3 + $0xb0] sm:$0xff] %vm942_vm1, %v1201_v29  ;;  %v1034_v53 = vpop.permute.xlu0 %1033  ;;  %v1353_v47 = vld [vmem:[#allocation2 + $0x58] sm:$0xff]  ;;  %v1737_v44 = vsel %vm942_vm1, %v1395_v24, 0  ;;  %p5717_p0 = pneg %p5716_p13 }
 0x2fb   : > { %1053 = vst.msk [vmem:[#allocation2 + $0x68] sm:$0xff] %vm942_vm1, %v1034_v53 }
 0x2fd   : > { %v1300_v56 = vpop.permute.xlu1 %1299  ;;  %v1403_v40 = vld [vmem:[#allocation3 + $0xe8] sm:$0xff] }
 0x2fe   : > { %1318 = vst.msk [vmem:[#allocation3 + $0xf0] sm:$0xff] %vm942_vm1, %v1300_v56  ;;  %v1038_v11 = vpop.permute.xlu0 %1037  ;;  %v1354_v4 = vld [vmem:[#allocation2 + $0x60] sm:$0xff]  ;;  %v1882_v23 = vsel %vm942_vm1, %v1403_v40, 0 }
 0x2ff   : > { %4916 = vmatmul.mubr.msk.bf16.vlgmr.msra.gmra.mrb[16].mxu0 %vm942_vm1, %v1351_v57  ;;  %1055 = vst.msk [vmem:[#allocation2 + $0x78] sm:$0xff] %vm942_vm1, %v1038_v11 }
 0x300   : > { %4884 = vmatmul.mubr.msk.bf16.vlgmr.msra.gmra.mrb[0].mxu1 %vm942_vm1, %v1343_v17  ;;  %4919 = vmatprep.mubr.msk.bf16.mxu0 %vm942_vm1, %v1352_v37 }
 0x301   : > { %4887 = vmatprep.mubr.msk.bf16.mxu1 %vm942_vm1, %v1344_v35  ;;  %4932 = vmatpush3.bf16.xpose.msra.mxu1 %v1722_v58  ;;  %v1203_v62 = vpop.permute.xlu1 %1202  ;;  %v1396_v52 = vld [vmem:[#allocation3 + $0xb0] sm:$0xff] }
 0x302   : > { %4964 = vmatpush3.bf16.xpose.msra.mxu0 %v1867_v59  ;;  %5228 = vmatprep.subr.msk.bf16.mxu1 %vm942_vm1, %v1391_v60  ;;  %1220 = vst.msk [vmem:[#allocation3 + $0xb8] sm:$0xff] %vm942_vm1, %v1203_v62  ;;  %v1036_v63 = vpop.permute.xlu0 %1035  ;;  %v1355_v43 = vld [vmem:[#allocation2 + $0x68] sm:$0xff]  ;;  %v1740_v11 = vsel %vm942_vm1, %v1396_v52, 0 }
 0x303   : > { %5236 = vmatprep.subr.msk.bf16.mxu0 %vm942_vm1, %v1399_v61  ;;  %1054 = vst.msk [vmem:[#allocation2 + $0x70] sm:$0xff] %vm942_vm1, %v1036_v63 }
 0x305   : > { %v1302_v21 = vpop.permute.xlu1 %1301  ;;  %v1404_v28 = vld [vmem:[#allocation3 + $0xf0] sm:$0xff] }
 0x306   : > { %1319 = vst.msk [vmem:[#allocation3 + $0xf8] sm:$0xff] %vm942_vm1, %v1302_v21  ;;  %v1123_v2 = vpop.permute.xlu0 %1122  ;;  %v1357_v30 = vld [vmem:[#allocation2 + $0x78] sm:$0xff]  ;;  %v1885_v17 = vsel %vm942_vm1, %v1404_v28, 0 }
 0x307   : > { %4920 = vmatmul.mubr.msk.bf16.gmra.mrb[20].mxu0 %vm942_vm1, %v1353_v47  ;;  %1147 = vst.msk [vmem:[#allocation2 + $0x80] sm:$0xff] %vm942_vm1, %v1123_v2 }
 0x308   : > { %4888 = vmatmul.mubr.msk.bf16.gmra.mrb[4].mxu1 %vm942_vm1, %v1345_v3  ;;  %4923 = vmatprep.mubr.msk.bf16.mxu0 %vm942_vm1, %v1354_v4 }
 0x309   : > { %4891 = vmatprep.mubr.msk.bf16.mxu1 %vm942_vm1, %v1346_v45  ;;  %4934 = vmatpush3.bf16.xpose.msra.mxu1 %v1725_v25  ;;  %v1125_v8 = vpop.permute.xlu1 %1124  ;;  %v1397_v37 = vld [vmem:[#allocation3 + $0xb8] sm:$0xff] }
 0x30a   : > { %4966 = vmatpush3.bf16.xpose.msra.mxu0 %v1870_v5  ;;  %5229 = vmatprep.subr.msk.bf16.mxu1 %vm942_vm1, %v1392_v6  ;;  %1148 = vst.msk [vmem:[#allocation2 + $0x88] sm:$0xff] %vm942_vm1, %v1125_v8  ;;  %v1222_v31 = vpop.permute.xlu0 %1221  ;;  %v1356_v15 = vld [vmem:[#allocation2 + $0x70] sm:$0xff]  ;;  %v1743_v62 = vsel %vm942_vm1, %v1397_v37, 0 }
 0x30b   : > { %5237 = vmatprep.subr.msk.bf16.mxu0 %vm942_vm1, %v1400_v7  ;;  %1246 = vst.msk [vmem:[#allocation2 + $0xc0] sm:$0xff] %vm942_vm1, %v1222_v31 }
 0x30d   : > { %v1224_v9 = vpop.permute.xlu1 %1223  ;;  %v1405_v35 = vld [vmem:[#allocation3 + $0xf8] sm:$0xff] }
 0x30e   : > { %1247 = vst.msk [vmem:[#allocation2 + $0xc8] sm:$0xff] %vm942_vm1, %v1224_v9  ;;  %v1127_v13 = vpop.permute.xlu0 %1126  ;;  %v1358_v20 = vld [vmem:[#allocation2 + $0x80] sm:$0xff]  ;;  %v1888_v63 = vsel %vm942_vm1, %v1405_v35, 0 }
 0x30f   : > { %4924 = vmatmul.mubr.msk.bf16.gmra.mrb[24].mxu0 %vm942_vm1, %v1355_v43  ;;  %1149 = vst.msk [vmem:[#allocation2 + $0x90] sm:$0xff] %vm942_vm1, %v1127_v13 }
 0x310   : > { %4892 = vmatmul.mubr.msk.bf16.gmra.mrb[8].mxu1 %vm942_vm1, %v1347_v14  ;;  %4927 = vmatprep.mubr.msk.bf16.mxu0 %vm942_vm1, %v1356_v15 }
 0x311   : > { %4895 = vmatprep.mubr.msk.bf16.mxu1 %vm942_vm1, %v1348_v18  ;;  %4936 = vmatpush3.bf16.xpose.msra.mxu1 %v1728_v19  ;;  %v1129_v27 = vpop.permute.xlu1 %1128  ;;  %v1359_v25 = vld [vmem:[#allocation2 + $0x88] sm:$0xff] }
 0x312   : > { %4968 = vmatpush3.bf16.xpose.msra.mxu0 %v1873_v12  ;;  %5230 = vmatprep.subr.msk.bf16.mxu1 %vm942_vm1, %v1393_v22  ;;  %1150 = vst.msk [vmem:[#allocation2 + $0x98] sm:$0xff] %vm942_vm1, %v1129_v27  ;;  %v1226_v54 = vpop.permute.xlu0 %1225  ;;  %v1366_v26 = vld [vmem:[#allocation2 + $0xc0] sm:$0xff] }
 0x313   : > { %5238 = vmatprep.subr.msk.bf16.mxu0 %vm942_vm1, %v1401_v55  ;;  %1248 = vst.msk [vmem:[#allocation2 + $0xd0] sm:$0xff] %vm942_vm1, %v1226_v54 }
 0x315   : > { %v1228_v0 = vpop.permute.xlu1 %1227  ;;  %v1367_v5 = vld [vmem:[#allocation2 + $0xc8] sm:$0xff] }
 0x316   : > { %1249 = vst.msk [vmem:[#allocation2 + $0xd8] sm:$0xff] %vm942_vm1, %v1228_v0  ;;  %v1131_v32 = vpop.permute.xlu0 %1130  ;;  %v1360_v6 = vld [vmem:[#allocation2 + $0x90] sm:$0xff] }
 0x317   : > { %4928 = vmatmul.mubr.msk.bf16.gmra.mrb[28].mxu0 %vm942_vm1, %v1357_v30  ;;  %1151 = vst.msk [vmem:[#allocation2 + $0xa0] sm:$0xff] %vm942_vm1, %v1131_v32 }
 0x318   : > { %4896 = vmatmul.mubr.msk.bf16.gmra.mrb[12].mxu1 %vm942_vm1, %v1349_v33  ;;  %4979 = vmatprep.mubr.msk.bf16.mxu0 %vm942_vm1, %v1366_v26 }
 0x319   : > { %4938 = vmatpush3.bf16.xpose.msra.mxu1 %v1731_v34  ;;  %4947 = vmatprep.mubr.msk.bf16.mxu1 %vm942_vm1, %v1358_v20  ;;  %v1133_v41 = vpop.permute.xlu1 %1132  ;;  %v1361_v19 = vld [vmem:[#allocation2 + $0x98] sm:$0xff] }
 0x31a   : > { %4970 = vmatpush3.bf16.xpose.msra.mxu0 %v1876_v38  ;;  %5231 = vmatprep.subr.msk.bf16.mxu1 %vm942_vm1, %v1394_v16  ;;  %1152 = vst.msk [vmem:[#allocation2 + $0xa8] sm:$0xff] %vm942_vm1, %v1133_v41  ;;  %v1230_v10 = vpop.permute.xlu0 %1229  ;;  %v1368_v7 = vld [vmem:[#allocation2 + $0xd0] sm:$0xff] }
 0x31b   : > { %5239 = vmatprep.subr.msk.bf16.mxu0 %vm942_vm1, %v1402_v39  ;;  %1250 = vst.msk [vmem:[#allocation2 + $0xe0] sm:$0xff] %vm942_vm1, %v1230_v10 }
 0x31d   : > { %v1232_v1 = vpop.permute.xlu1 %1231  ;;  %v1369_v12 = vld [vmem:[#allocation2 + $0xd8] sm:$0xff] }
 0x31e   : > { %1251 = vst.msk [vmem:[#allocation2 + $0xe8] sm:$0xff] %vm942_vm1, %v1232_v1  ;;  %v1135_v36 = vpop.permute.xlu0 %1134  ;;  %v1362_v22 = vld [vmem:[#allocation2 + $0xa0] sm:$0xff] }
 0x31f   : > { %1153 = vst.msk [vmem:[#allocation2 + $0xb0] sm:$0xff] %vm942_vm1, %v1135_v36 }
 0x321   : > { %4940 = vmatpush3.bf16.xpose.msra.mxu1 %v1734_v42  ;;  %v1137_v48 = vpop.permute.xlu1 %1136  ;;  %v1363_v20 = vld [vmem:[#allocation2 + $0xa8] sm:$0xff] }
 0x322   : > { %4972 = vmatpush3.bf16.xpose.msra.mxu0 %v1879_v46  ;;  %5232 = vmatprep.subr.msk.bf16.mxu1 %vm942_vm1, %v1395_v24  ;;  %1154 = vst.msk [vmem:[#allocation2 + $0xb8] sm:$0xff] %vm942_vm1, %v1137_v48  ;;  %v1234_v49 = vpop.permute.xlu0 %1233  ;;  %v1370_v55 = vld [vmem:[#allocation2 + $0xe0] sm:$0xff] }
 0x323   : > { %5240 = vmatprep.subr.msk.bf16.mxu0 %vm942_vm1, %v1403_v40  ;;  %1252 = vst.msk [vmem:[#allocation2 + $0xf0] sm:$0xff] %vm942_vm1, %v1234_v49 }
 0x325   : > { %v1236_v50 = vpop.permute.xlu1 %1235  ;;  %v1371_v38 = vld [vmem:[#allocation2 + $0xe8] sm:$0xff] }
 0x326   : > { %1253 = vst.msk [vmem:[#allocation2 + $0xf8] sm:$0xff] %vm942_vm1, %v1236_v50  ;;  %v960_v51 = vpop.permute.xlu0 %959  ;;  %v1364_v16 = vld [vmem:[#allocation2 + $0xb0] sm:$0xff] }
 0x327   : > { %983 = vst.msk [vmem:[#allocation4] sm:$0xff] %vm942_vm1, %v960_v51 }
 0x329   : > { %4942 = vmatpush3.bf16.xpose.msra.mxu1 %v1737_v44  ;;  %v1057_v29 = vpop.permute.xlu1 %1056  ;;  %v1365_v24 = vld [vmem:[#allocation2 + $0xb8] sm:$0xff] }
 0x32a   : > { %4974 = vmatpush3.bf16.xpose.msra.mxu0 %v1882_v23  ;;  %5233 = vmatprep.subr.msk.bf16.mxu1 %vm942_vm1, %v1396_v52  ;;  %1081 = vst.msk [vmem:[#allocation4 + $0x40] sm:$0xff] %vm942_vm1, %v1057_v29  ;;  %v964_v53 = vpop.permute.xlu0 %963  ;;  %v1372_v39 = vld [vmem:[#allocation2 + $0xf0] sm:$0xff] }
 0x32b   : > { %5241 = vmatprep.subr.msk.bf16.mxu0 %vm942_vm1, %v1404_v28  ;;  %985 = vst.msk [vmem:[#allocation4 + $0x10] sm:$0xff] %vm942_vm1, %v964_v53 }
 0x32d   : > { %v962_v56 = vpop.permute.xlu1 %961  ;;  %v1373_v40 = vld [vmem:[#allocation2 + $0xf8] sm:$0xff] }
 0x32e   : > { %984 = vst.msk [vmem:[#allocation4 + $0x8] sm:$0xff] %vm942_vm1, %v962_v56  ;;  %v966_v57 = vpop.permute.xlu0 %965  ;;  %v2809_v21 = vld [vmem:[#allocation4] sm:$0xff] }
 0x32f   : > { %986 = vst.msk [vmem:[#allocation4 + $0x18] sm:$0xff] %vm942_vm1, %v966_v57 }
 0x331   : > { %4944 = vmatpush3.bf16.xpose.msra.mxu1 %v1740_v11  ;;  %v1059_v58 = vpop.permute.xlu1 %1058  ;;  %v2817_v47 = vld [vmem:[#allocation4 + $0x40] sm:$0xff] }
 0x332   : > { %4976 = vmatpush3.bf16.xpose.msra.mxu0 %v1885_v17  ;;  %5234 = vmatprep.subr.msk.bf16.mxu1 %vm942_vm1, %v1397_v37  ;;  %1082 = vst.msk [vmem:[#allocation4 + $0x48] sm:$0xff] %vm942_vm1, %v1059_v58  ;;  %v968_v59 = vpop.permute.xlu0 %967  ;;  %v2811_v13 = vld [vmem:[#allocation4 + $0x10] sm:$0xff]  ;;  %v1987_v17 = vlaneseq }
 0x333   : > { %5242 = vmatprep.subr.msk.bf16.mxu0 %vm942_vm1, %v1405_v35  ;;  %987 = vst.msk [vmem:[#allocation4 + $0x20] sm:$0xff] %vm942_vm1, %v968_v59 }
 0x334   : > { %v6536_v37 = vand.u32 127, %v1987_v17 }
 0x335   : > { %v1061_v60 = vpop.permute.xlu1 %1060  ;;  %v2810_v8 = vld [vmem:[#allocation4 + $0x8] sm:$0xff] }
 0x336   : > { %1083 = vst.msk [vmem:[#allocation4 + $0x50] sm:$0xff] %vm942_vm1, %v1061_v60  ;;  %v970_v61 = vpop.permute.xlu0 %969  ;;  %v2812_v27 = vld [vmem:[#allocation4 + $0x18] sm:$0xff]  ;;  %vm1989_vm2 = vcmp.lt.s32.totalorder %v6536_v37, 8 }
 0x337   : > { %988 = vst.msk [vmem:[#allocation4 + $0x28] sm:$0xff] %vm942_vm1, %v970_v61 }
 0x339   : > { %4946 = vmatpush3.bf16.xpose.msra.mxu1 %v1743_v62  ;;  %v1063_v2 = vpop.permute.xlu1 %1062  ;;  %v2818_v9 = vld [vmem:[#allocation4 + $0x48] sm:$0xff] }
 0x33a   : > { %4978 = vmatpush3.bf16.xpose.msra.mxu0 %v1888_v63  ;;  %4995 = vmatprep.subr.bf16.mxu1 %v2809_v21  ;;  %1084 = vst.msk [vmem:[#allocation4 + $0x58] sm:$0xff] %vm942_vm1, %v1063_v2  ;;  %v974_v3 = vpop.permute.xlu0 %973  ;;  %v2813_v32 = vld [vmem:[#allocation4 + $0x20] sm:$0xff] }
 0x33b   : > { %5027 = vmatprep.subr.bf16.mxu0 %v2817_v47  ;;  %990 = vst.msk [vmem:[#allocation4 + $0x38] sm:$0xff] %vm942_vm1, %v974_v3 }
 0x33d   : > { %v1065_v4 = vpop.permute.xlu1 %1064  ;;  %v2819_v15 = vld [vmem:[#allocation4 + $0x50] sm:$0xff] }
 0x33e   : > { %1085 = vst.msk [vmem:[#allocation4 + $0x60] sm:$0xff] %vm942_vm1, %v1065_v4  ;;  %v1156_v45 = vpop.permute.xlu0 %1155  ;;  %v2814_v41 = vld [vmem:[#allocation4 + $0x28] sm:$0xff] }
 0x33f   : > { %1180 = vst.msk [vmem:[#allocation4 + $0x80] sm:$0xff] %vm942_vm1, %v1156_v45 }
 0x340   : > { %4948 = vmatmul.mubr.msk.bf16.vlgmr.msra.gmra.mrb[16].mxu1 %vm942_vm1, %v1359_v25 }
 0x341   : > { %4980 = vmatmul.mubr.msk.bf16.vlgmr.msra.gmra.mrb[32].mxu0 %vm942_vm1, %v1367_v5  ;;  %4951 = vmatprep.mubr.msk.bf16.mxu1 %vm942_vm1, %v1360_v6  ;;  %v1067_v31 = vpop.permute.xlu1 %1066  ;;  %v2820_v0 = vld [vmem:[#allocation4 + $0x58] sm:$0xff] }
 0x342   : > { %4983 = vmatprep.mubr.msk.bf16.mxu0 %vm942_vm1, %v1368_v7  ;;  %4996 = vmatpush3.bf16.msra.mxu1 %v2809_v21  ;;  %1086 = vst.msk [vmem:[#allocation4 + $0x68] sm:$0xff] %vm942_vm1, %v1067_v31  ;;  %v1158_v43 = vpop.permute.xlu0 %1157  ;;  %v2816_v52 = vld [vmem:[#allocation4 + $0x38] sm:$0xff] }
 0x343   : > { %5028 = vmatpush3.bf16.msra.mxu0 %v2817_v47  ;;  %4997 = vmatprep.subr.bf16.mxu1 %v2810_v8  ;;  %1181 = vst.msk [vmem:[#allocation4 + $0x88] sm:$0xff] %vm942_vm1, %v1158_v43 }
 0x344   : > { %5029 = vmatprep.subr.bf16.mxu0 %v2818_v9 }
 0x345   : > { %v1071_v14 = vpop.permute.xlu1 %1070  ;;  %v2821_v26 = vld [vmem:[#allocation4 + $0x60] sm:$0xff] }
 0x346   : > { %4998 = vmatpush3.bf16.msra.mxu1 %v2810_v8  ;;  %1088 = vst.msk [vmem:[#allocation4 + $0x78] sm:$0xff] %vm942_vm1, %v1071_v14  ;;  %v1160_v18 = vpop.permute.xlu0 %1159  ;;  %v2825_v29 = vld [vmem:[#allocation4 + $0x80] sm:$0xff] }
 0x347   : > { %5030 = vmatpush3.bf16.msra.mxu0 %v2818_v9  ;;  %4999 = vmatprep.subr.bf16.mxu1 %v2811_v13  ;;  %1182 = vst.msk [vmem:[#allocation4 + $0x90] sm:$0xff] %vm942_vm1, %v1160_v18 }
 0x348   : > { %5031 = vmatprep.subr.bf16.mxu0 %v2819_v15  ;;  %4952 = vmatmul.mubr.msk.bf16.gmra.mrb[20].mxu1 %vm942_vm1, %v1361_v19 }
 0x349   : > { %4984 = vmatmul.mubr.msk.bf16.gmra.mrb[36].mxu0 %vm942_vm1, %v1369_v12  ;;  %4955 = vmatprep.mubr.msk.bf16.mxu1 %vm942_vm1, %v1362_v22  ;;  %v1255_v54 = vpop.permute.xlu1 %1254  ;;  %v2822_v1 = vld [vmem:[#allocation4 + $0x68] sm:$0xff] }
 0x34a   : > { %4987 = vmatprep.mubr.msk.bf16.mxu0 %vm942_vm1, %v1370_v55  ;;  %5000 = vmatpush3.bf16.msra.mxu1 %v2811_v13  ;;  %1279 = vst.msk [vmem:[#allocation4 + $0xc0] sm:$0xff] %vm942_vm1, %v1255_v54  ;;  %v1162_v30 = vpop.permute.xlu0 %1161 }
 0x34b   : > { %5032 = vmatpush3.bf16.msra.mxu0 %v2819_v15  ;;  %5001 = vmatprep.subr.bf16.mxu1 %v2812_v27  ;;  %1183 = vst.msk [vmem:[#allocation4 + $0x98] sm:$0xff] %vm942_vm1, %v1162_v30 }
 0x34c   : > { %5033 = vmatprep.subr.bf16.mxu0 %v2820_v0 }
 0x34d   : > { %v1257_v33 = vpop.permute.xlu1 %1256  ;;  %v2824_v57 = vld [vmem:[#allocation4 + $0x78] sm:$0xff] }
 0x34e   : > { %5002 = vmatpush3.bf16.msra.mxu1 %v2812_v27  ;;  %1280 = vst.msk [vmem:[#allocation4 + $0xc8] sm:$0xff] %vm942_vm1, %v1257_v33  ;;  %v1164_v34 = vpop.permute.xlu0 %1163 }
 0x34f   : > { %5034 = vmatpush3.bf16.msra.mxu0 %v2820_v0  ;;  %5003 = vmatprep.subr.bf16.mxu1 %v2813_v32  ;;  %1184 = vst.msk [vmem:[#allocation4 + $0xa0] sm:$0xff] %vm942_vm1, %v1164_v34 }
 0x350   : > { %5035 = vmatprep.subr.bf16.mxu0 %v2821_v26  ;;  %4956 = vmatmul.mubr.msk.bf16.gmra.mrb[24].mxu1 %vm942_vm1, %v1363_v20 }
 0x351   : > { %4988 = vmatmul.mubr.msk.bf16.gmra.mrb[40].mxu0 %vm942_vm1, %v1371_v38  ;;  %4959 = vmatprep.mubr.msk.bf16.mxu1 %vm942_vm1, %v1364_v16  ;;  %v1259_v10 = vpop.permute.xlu1 %1258  ;;  %v2833_v11 = vld [vmem:[#allocation4 + $0xc0] sm:$0xff] }
 0x352   : > { %4991 = vmatprep.mubr.msk.bf16.mxu0 %vm942_vm1, %v1372_v39  ;;  %5004 = vmatpush3.bf16.msra.mxu1 %v2813_v32  ;;  %1281 = vst.msk [vmem:[#allocation4 + $0xd0] sm:$0xff] %vm942_vm1, %v1259_v10  ;;  %v1166_v36 = vpop.permute.xlu0 %1165 }
 0x353   : > { %5036 = vmatpush3.bf16.msra.mxu0 %v2821_v26  ;;  %5005 = vmatprep.subr.bf16.mxu1 %v2814_v41  ;;  %1185 = vst.msk [vmem:[#allocation4 + $0xa8] sm:$0xff] %vm942_vm1, %v1166_v36 }
 0x354   : > { %5037 = vmatprep.subr.bf16.mxu0 %v2822_v1 }
 0x355   : > { %v1261_v42 = vpop.permute.xlu1 %1260 }
 0x356   : > { %5006 = vmatpush3.bf16.msra.mxu1 %v2814_v41  ;;  %1282 = vst.msk [vmem:[#allocation4 + $0xd8] sm:$0xff] %vm942_vm1, %v1261_v42  ;;  %v1170_v46 = vpop.permute.xlu0 %1169 }
 0x357   : > { %5038 = vmatpush3.bf16.msra.mxu0 %v2822_v1  ;;  %1187 = vst.msk [vmem:[#allocation4 + $0xb8] sm:$0xff] %vm942_vm1, %v1170_v46 }
 0x358   : > { %4960 = vmatmul.mubr.msk.bf16.gmra.mrb[28].mxu1 %vm942_vm1, %v1365_v24 }
 0x359   : > { %4992 = vmatmul.mubr.msk.bf16.gmra.mrb[44].mxu0 %vm942_vm1, %v1373_v40  ;;  %v1263_v48 = vpop.permute.xlu1 %1262 }
 0x35a   : > { %1283 = vst.msk [vmem:[#allocation4 + $0xe0] sm:$0xff] %vm942_vm1, %v1263_v48  ;;  %v972_v49 = vpop.permute.xlu0 %971 }
 0x35b   : > { %989 = vst.msk [vmem:[#allocation4 + $0x30] sm:$0xff] %vm942_vm1, %v972_v49 }
 0x35d   : > { %v1265_v50 = vpop.permute.xlu1 %1264 }
 0x35e   : > { %1284 = vst.msk [vmem:[#allocation4 + $0xe8] sm:$0xff] %vm942_vm1, %v1265_v50  ;;  %v1168_v51 = vpop.permute.xlu0 %1167 }
 0x35f   : > { %1186 = vst.msk [vmem:[#allocation4 + $0xb0] sm:$0xff] %vm942_vm1, %v1168_v51 }
 0x361   : > { %v1269_v44 = vpop.permute.xlu1 %1268 }
 0x362   : > { %1286 = vst.msk [vmem:[#allocation4 + $0xf8] sm:$0xff] %vm942_vm1, %v1269_v44  ;;  %v2815_v23 = vld [vmem:[#allocation4 + $0x30] sm:$0xff] }
 0x363   : > { %5007 = vmatprep.subr.bf16.mxu1 %v2815_v23 }
 0x364   : > { %5008 = vmatpush3.bf16.msra.mxu1 %v2815_v23 }
 0x365   : > { %5009 = vmatprep.subr.bf16.mxu1 %v2816_v52  ;;  %v1069_v28 = vpop.permute.xlu1 %1068 }
 0x366   : > { %1087 = vst.msk [vmem:[#allocation4 + $0x70] sm:$0xff] %vm942_vm1, %v1069_v28 }
 0x368   : > { %5010 = vmatpush3.bf16.msra.mxu1 %v2816_v52 }
 0x369   : > { %5059 = vmatprep.subr.bf16.mxu1 %v2825_v29  ;;  %v1267_v53 = vpop.permute.xlu1 %1266 }
 0x36a   : > { %1285 = vst.msk [vmem:[#allocation4 + $0xf0] sm:$0xff] %vm942_vm1, %v1267_v53 }
 0x36d   : > { %v2823_v56 = vld [vmem:[#allocation4 + $0x70] sm:$0xff] }
 0x36e   : > { %5039 = vmatprep.subr.bf16.mxu0 %v2823_v56 }
 0x36f   : > { %5040 = vmatpush3.bf16.msra.mxu0 %v2823_v56 }
 0x370   : > { %5041 = vmatprep.subr.bf16.mxu0 %v2824_v57 }
 0x373   : > { %5042 = vmatpush3.bf16.msra.mxu0 %v2824_v57 }
 0x374   : > { %5091 = vmatprep.subr.bf16.mxu0 %v2833_v11 }
 0x3d2   : > { %v4917_v35 = vpop.f32.mrb[16].mxu0 }
 0x3d3   : > { %v4885_v58 = vpop.f32.mrb[0].mxu1  ;;  %v1634_v59 = vpop.f32.mrb[17].mxu0  ;;  %v6551_v3 = vsel %vm1989_vm2, %v4917_v35, -1e+30 }
 0x3d4   : > { %v6541_v60 = vsel %vm1989_vm2, %v4885_v58, -1e+30  ;;  %v1489_v61 = vpop.f32.mrb[1].mxu1  ;;  %v4918_v62 = vpop.f32.mrb[18].mxu0  ;;  %v6571_v14 = vsel %vm1989_vm2, %v1634_v59, -1e+30 }
 0x3d5   : > { %v6545_v63 = vsel %vm1989_vm2, %v4918_v62, -1e+30  ;;  %2060 = vmax.xlane.f32.xlu0 %v6541_v60  ;;  %v4886_v21 = vpop.f32.mrb[2].mxu1  ;;  %v1637_v47 = vpop.f32.mrb[19].mxu0  ;;  %v6561_v6 = vsel %vm1989_vm2, %v1489_v61, -1e+30 }
 0x3d6   : > { %v1492_v2 = vpop.f32.mrb[3].mxu1  ;;  %2094 = vmax.xlane.f32.xlu1 %v6545_v63  ;;  %v6565_v31 = vsel %vm1989_vm2, %v1637_v47, -1e+30  ;;  %v6581_v22 = vsel %vm1989_vm2, %v4886_v21, -1e+30 }
 0x3d7   : > { %v6555_v4 = vsel %vm1989_vm2, %v1492_v2, -1e+30 }
 0x3d9   : > { %2092 = vmax.xlane.f32.xlu0 %v6551_v3 }
 0x3da   : > { %2058 = vmax.xlane.f32.xlu1 %v6555_v4  ;;  %v4921_v45 = vpop.f32.mrb[20].mxu0 }
 0x3db   : > { %v4889_v25 = vpop.f32.mrb[4].mxu1  ;;  %v1650_v5 = vpop.f32.mrb[21].mxu0  ;;  %v6601_v16 = vsel %vm1989_vm2, %v4921_v45, -1e+30 }
 0x3dc   : > { %v1505_v7 = vpop.f32.mrb[5].mxu1  ;;  %v4922_v8 = vpop.f32.mrb[22].mxu0  ;;  %v6591_v33 = vsel %vm1989_vm2, %v4889_v25, -1e+30  ;;  %v6621_v40 = vsel %vm1989_vm2, %v1650_v5, -1e+30 }
 0x3dd   : > { %2056 = vmax.xlane.f32.xlu0 %v6561_v6  ;;  %v4890_v9 = vpop.f32.mrb[6].mxu1  ;;  %v1653_v43 = vpop.f32.mrb[23].mxu0  ;;  %v6585_v54 = vsel %vm1989_vm2, %v4922_v8, -1e+30  ;;  %v6611_v46 = vsel %vm1989_vm2, %v1505_v7, -1e+30 }
 0x3de   : > { %v1508_v13 = vpop.f32.mrb[7].mxu1  ;;  %2090 = vmax.xlane.f32.xlu1 %v6565_v31  ;;  %v6575_v15 = vsel %vm1989_vm2, %v4890_v9, -1e+30  ;;  %v6605_v10 = vsel %vm1989_vm2, %v1653_v43, -1e+30 }
 0x3df   : > { %v6595_v26 = vsel %vm1989_vm2, %v1508_v13, -1e+30 }
 0x3e1   : > { %2088 = vmax.xlane.f32.xlu0 %v6571_v14 }
 0x3e2   : > { %2070 = vmax.xlane.f32.xlu1 %v6575_v15  ;;  %v4925_v18 = vpop.f32.mrb[24].mxu0 }
 0x3e3   : > { %v4893_v19 = vpop.f32.mrb[8].mxu1  ;;  %v1666_v12 = vpop.f32.mrb[25].mxu0  ;;  %v6641_v51 = vsel %vm1989_vm2, %v4925_v18, -1e+30 }
 0x3e4   : > { %v1521_v55 = vpop.f32.mrb[9].mxu1  ;;  %v4926_v27 = vpop.f32.mrb[26].mxu0  ;;  %v6631_v49 = vsel %vm1989_vm2, %v4893_v19, -1e+30  ;;  %v6661_v28 = vsel %vm1989_vm2, %v1666_v12, -1e+30 }
 0x3e5   : > { %2062 = vmax.xlane.f32.xlu0 %v6581_v22  ;;  %v4894_v0 = vpop.f32.mrb[10].mxu1  ;;  %v1669_v30 = vpop.f32.mrb[27].mxu0  ;;  %v6625_v48 = vsel %vm1989_vm2, %v4926_v27, -1e+30  ;;  %v6651_v23 = vsel %vm1989_vm2, %v1521_v55, -1e+30 }
 0x3e6   : > { %v1524_v32 = vpop.f32.mrb[11].mxu1  ;;  %2102 = vmax.xlane.f32.xlu1 %v6585_v54  ;;  %v6615_v24 = vsel %vm1989_vm2, %v4894_v0, -1e+30  ;;  %v6645_v44 = vsel %vm1989_vm2, %v1669_v30, -1e+30 }
 0x3e7   : > { %v6635_v50 = vsel %vm1989_vm2, %v1524_v32, -1e+30 }
 0x3e9   : > { %2068 = vmax.xlane.f32.xlu0 %v6591_v33 }
 0x3ea   : > { %2066 = vmax.xlane.f32.xlu1 %v6595_v26  ;;  %v4929_v34 = vpop.f32.mrb[28].mxu0 }
 0x3eb   : > { %v4897_v20 = vpop.f32.mrb[12].mxu1  ;;  %v1682_v38 = vpop.f32.mrb[29].mxu0  ;;  %v6681_v57 = vsel %vm1989_vm2, %v4929_v34, -1e+30 }
 0x3ec   : > { %v1537_v39 = vpop.f32.mrb[13].mxu1  ;;  %v4930_v41 = vpop.f32.mrb[30].mxu0  ;;  %v6671_v53 = vsel %vm1989_vm2, %v4897_v20, -1e+30  ;;  %v6696_v58 = vsel %vm1989_vm2, %v1682_v38, -1e+30 }
 0x3ed   : > { %v4898_v1 = vpop.f32.mrb[14].mxu1  ;;  %2100 = vmax.xlane.f32.xlu0 %v6601_v16  ;;  %v1685_v36 = vpop.f32.mrb[31].mxu0  ;;  %v6665_v29 = vsel %vm1989_vm2, %v4930_v41, -1e+30  ;;  %v6691_v17 = vsel %vm1989_vm2, %v1537_v39, -1e+30 }
 0x3ee   : > { %v1540_v42 = vpop.f32.mrb[15].mxu1  ;;  %2098 = vmax.xlane.f32.xlu1 %v6605_v10  ;;  %v6655_v52 = vsel %vm1989_vm2, %v4898_v1, -1e+30  ;;  %v6685_v11 = vsel %vm1989_vm2, %v1685_v36, -1e+30 }
 0x3ef   : > { %v6675_v56 = vsel %vm1989_vm2, %v1540_v42, -1e+30 }
 0x3f1   : > { %2064 = vmax.xlane.f32.xlu0 %v6611_v46 }
 0x3f2   : > { %2078 = vmax.xlane.f32.xlu1 %v6615_v24 }
 0x3f5   : > { %2096 = vmax.xlane.f32.xlu0 %v6621_v40 }
 0x3f6   : > { %2110 = vmax.xlane.f32.xlu1 %v6625_v48 }
 0x3f9   : > { %2076 = vmax.xlane.f32.xlu0 %v6631_v49 }
 0x3fa   : > { %2074 = vmax.xlane.f32.xlu1 %v6635_v50 }
 0x3fd   : > { %2108 = vmax.xlane.f32.xlu0 %v6641_v51 }
 0x3fe   : > { %2106 = vmax.xlane.f32.xlu1 %v6645_v44 }
 0x401   : > { %2072 = vmax.xlane.f32.xlu0 %v6651_v23 }
 0x402   : > { %2086 = vmax.xlane.f32.xlu1 %v6655_v52 }
 0x405   : > { %2104 = vmax.xlane.f32.xlu0 %v6661_v28 }
 0x406   : > { %2118 = vmax.xlane.f32.xlu1 %v6665_v29 }
 0x409   : > { %2084 = vmax.xlane.f32.xlu0 %v6671_v53 }
 0x40a   : > { %2082 = vmax.xlane.f32.xlu1 %v6675_v56 }
 0x40d   : > { %2116 = vmax.xlane.f32.xlu0 %v6681_v57 }
 0x40e   : > { %2114 = vmax.xlane.f32.xlu1 %v6685_v11 }
 0x411   : > { %2080 = vmax.xlane.f32.xlu0 %v6691_v17 }
 0x413   : > { %v4949_v35 = vpop.f32.mrb[16].mxu1 }
 0x414   : > { %v4981_v59 = vpop.f32.mrb[32].mxu0  ;;  %v1779_v61 = vpop.f32.mrb[17].mxu1  ;;  %v6706_v5 = vsel %vm1989_vm2, %v4949_v35, -1e+30 }
 0x415   : > { %v1924_v62 = vpop.f32.mrb[33].mxu0  ;;  %2112 = vmax.xlane.f32.xlu0 %v6696_v58  ;;  %v4950_v21 = vpop.f32.mrb[18].mxu1  ;;  %v6716_v9 = vsel %vm1989_vm2, %v4981_v59, -1e+30  ;;  %v6726_v30 = vsel %vm1989_vm2, %v1779_v61, -1e+30 }
 0x416   : > { %v6701_v47 = vsel %vm1989_vm2, %v4950_v21, -1e+30  ;;  %v4982_v2 = vpop.f32.mrb[34].mxu0  ;;  %v1782_v45 = vpop.f32.mrb[19].mxu1  ;;  %v6736_v20 = vsel %vm1989_vm2, %v1924_v62, -1e+30 }
 0x417   : > { %v1927_v25 = vpop.f32.mrb[35].mxu0  ;;  %2126 = vmax.xlane.f32.xlu1 %v6701_v47  ;;  %v6711_v7 = vsel %vm1989_vm2, %v4982_v2, -1e+30  ;;  %v6721_v12 = vsel %vm1989_vm2, %v1782_v45, -1e+30  ;;  %7922 = vst [vmem:[#allocation9_spill] sm:$0xff] %v6736_v20 }
 0x418   : > { %v6731_v32 = vsel %vm1989_vm2, %v1927_v25, -1e+30 }
 0x419   : > { %2124 = vmax.xlane.f32.xlu0 %v6706_v5 }
 0x41b   : > { %2158 = vmax.xlane.f32.xlu1 %v6711_v7  ;;  %v4953_v8 = vpop.f32.mrb[20].mxu1 }
 0x41c   : > { %v4985_v43 = vpop.f32.mrb[36].mxu0  ;;  %v1795_v13 = vpop.f32.mrb[21].mxu1  ;;  %v6746_v61 = vsel %vm1989_vm2, %v4953_v8, -1e+30 }
 0x41d   : > { %v1940_v18 = vpop.f32.mrb[37].mxu0  ;;  %2156 = vmax.xlane.f32.xlu0 %v6716_v9  ;;  %v4954_v19 = vpop.f32.mrb[22].mxu1  ;;  %7924 = vst [vmem:[#allocation11_spill] sm:$0xff] %v6746_v61  ;;  %v6756_v2 = vsel %vm1989_vm2, %v4985_v43, -1e+30 }
 0x41e   : > { %v4986_v55 = vpop.f32.mrb[38].mxu0  ;;  %v1798_v27 = vpop.f32.mrb[23].mxu1  ;;  %v6741_v36 = vsel %vm1989_vm2, %v4954_v19, -1e+30 }
 0x41f   : > { %v1943_v0 = vpop.f32.mrb[39].mxu0  ;;  %2122 = vmax.xlane.f32.xlu1 %v6721_v12  ;;  %7923 = vst [vmem:[#allocation10_spill] sm:$0xff] %v6741_v36  ;;  %v6751_v62 = vsel %vm1989_vm2, %v4986_v55, -1e+30 }
 0x420   : > { %7925 = vst [vmem:[#allocation12_spill] sm:$0xff] %v6751_v62  ;;  %v6771_v43 = vsel %vm1989_vm2, %v1943_v0, -1e+30 }
 0x421   : > { %2120 = vmax.xlane.f32.xlu0 %v6726_v30 }
 0x423   : > { %2154 = vmax.xlane.f32.xlu1 %v6731_v32  ;;  %v4957_v34 = vpop.f32.mrb[24].mxu1 }
 0x424   : > { %v4989_v38 = vpop.f32.mrb[40].mxu0  ;;  %v1811_v39 = vpop.f32.mrb[25].mxu1 }
 0x425   : > { %v1956_v41 = vpop.f32.mrb[41].mxu0  ;;  %2152 = vmax.xlane.f32.xlu0 %v6736_v20  ;;  %v4958_v1 = vpop.f32.mrb[26].mxu1 }
 0x426   : > { %v4990_v42 = vpop.f32.mrb[42].mxu0  ;;  %v1814_v35 = vpop.f32.mrb[27].mxu1 }
 0x427   : > { %v1959_v59 = vpop.f32.mrb[43].mxu0  ;;  %2134 = vmax.xlane.f32.xlu1 %v6741_v36  ;;  %v6761_v36 = vsel %vm1989_vm2, %v1798_v27, -1e+30  ;;  %v6776_v27 = vsel %vm1989_vm2, %v1940_v18, -1e+30 }
 0x428   : > { %7926 = vst [vmem:[#allocation13_spill] sm:$0xff] %v6761_v36  ;;  %v6791_v0 = vsel %vm1989_vm2, %v4990_v42, -1e+30  ;;  %v6796_v18 = vsel %vm1989_vm2, %v4989_v38, -1e+30 }
 0x429   : > { %2132 = vmax.xlane.f32.xlu0 %v6746_v61  ;;  %v6811_v42 = vsel %vm1989_vm2, %v1959_v59, -1e+30  ;;  %v6816_v38 = vsel %vm1989_vm2, %v1956_v41, -1e+30 }
 0x42a   : > { %7927 = vst [vmem:[#allocation14_spill] sm:$0xff] %v6811_v42  ;;  %7928 = vst [vmem:[#allocation15_spill] sm:$0xff] %v6816_v38 }
 0x42b   : > { %2166 = vmax.xlane.f32.xlu1 %v6751_v62  ;;  %v4961_v21 = vpop.f32.mrb[28].mxu1  ;;  %v6766_v62 = vsel %vm1989_vm2, %v1795_v13, -1e+30  ;;  %v6786_v13 = vsel %vm1989_vm2, %v4957_v34, -1e+30 }
 0x42c   : > { %v4993_v45 = vpop.f32.mrb[44].mxu0  ;;  %v1827_v25 = vpop.f32.mrb[29].mxu1  ;;  %v6806_v34 = vsel %vm1989_vm2, %v1811_v39, -1e+30  ;;  %v6826_v39 = vsel %vm1989_vm2, %v4961_v21, -1e+30 }
 0x42d   : > { %v1972_v19 = vpop.f32.mrb[45].mxu0  ;;  %2164 = vmax.xlane.f32.xlu0 %v6756_v2  ;;  %v4962_v8 = vpop.f32.mrb[30].mxu1  ;;  %7930 = vst [vmem:[#allocation17_spill] sm:$0xff] %v6826_v39  ;;  %v6836_v41 = vsel %vm1989_vm2, %v4993_v45, -1e+30 }
 0x42e   : > { %v4994_v61 = vpop.f32.mrb[46].mxu0  ;;  %v1830_v55 = vpop.f32.mrb[31].mxu1  ;;  %7932 = vst [vmem:[#allocation19_spill] sm:$0xff] %v6836_v41  ;;  %v6846_v21 = vsel %vm1989_vm2, %v1827_v25, -1e+30 }
 0x42f   : > { %v1975_v20 = vpop.f32.mrb[47].mxu0  ;;  %2130 = vmax.xlane.f32.xlu1 %v6761_v36  ;;  %v6781_v36 = vsel %vm1989_vm2, %v4958_v1, -1e+30  ;;  %v6801_v1 = vsel %vm1989_vm2, %v1814_v35, -1e+30  ;;  %7934 = vst [vmem:[#allocation21_spill] sm:$0xff] %v6846_v21 }
 0x430   : > { %v6821_v35 = vsel %vm1989_vm2, %v4962_v8, -1e+30  ;;  %v6831_v59 = vsel %vm1989_vm2, %v4994_v61, -1e+30  ;;  %v6841_v8 = vsel %vm1989_vm2, %v1830_v55, -1e+30 }
 0x431   : > { %2128 = vmax.xlane.f32.xlu0 %v6766_v62  ;;  %7929 = vst [vmem:[#allocation16_spill] sm:$0xff] %v6821_v35  ;;  %7931 = vst [vmem:[#allocation18_spill] sm:$0xff] %v6831_v59  ;;  %v6851_v61 = vsel %vm1989_vm2, %v1975_v20, -1e+30  ;;  %v6856_v45 = vsel %vm1989_vm2, %v1972_v19, -1e+30 }
 0x432   : > { %7933 = vst [vmem:[#allocation20_spill] sm:$0xff] %v6841_v8  ;;  %7935 = vst [vmem:[#allocation22_spill] sm:$0xff] %v6851_v61 }
 0x433   : > { %2162 = vmax.xlane.f32.xlu1 %v6771_v43  ;;  %7936 = vst [vmem:[#allocation23_spill] sm:$0xff] %v6856_v45 }
 0x435   : > { %2160 = vmax.xlane.f32.xlu0 %v6776_v27 }
 0x437   : > { %2142 = vmax.xlane.f32.xlu1 %v6781_v36 }
 0x439   : > { %2140 = vmax.xlane.f32.xlu0 %v6786_v13 }
 0x43b   : > { %2174 = vmax.xlane.f32.xlu1 %v6791_v0 }
 0x43d   : > { %2172 = vmax.xlane.f32.xlu0 %v6796_v18 }
 0x43f   : > { %2138 = vmax.xlane.f32.xlu1 %v6801_v1 }
 0x441   : > { %2136 = vmax.xlane.f32.xlu0 %v6806_v34 }
 0x443   : > { %2170 = vmax.xlane.f32.xlu1 %v6811_v42 }
 0x445   : > { %2168 = vmax.xlane.f32.xlu0 %v6816_v38 }
 0x447   : > { %2150 = vmax.xlane.f32.xlu1 %v6821_v35 }
 0x449   : > { %2148 = vmax.xlane.f32.xlu0 %v6826_v39 }
 0x44b   : > { %2182 = vmax.xlane.f32.xlu1 %v6831_v59 }
 0x44d   : > { %2180 = vmax.xlane.f32.xlu0 %v6836_v41 }
 0x44f   : > { %2146 = vmax.xlane.f32.xlu1 %v6841_v8 }
 0x451   : > { %2144 = vmax.xlane.f32.xlu0 %v6846_v21 }
 0x453   : > { %2178 = vmax.xlane.f32.xlu1 %v6851_v61 }
 0x455   : > { %2176 = vmax.xlane.f32.xlu0 %v6856_v45 }
 0x462   : > { %v2061_v55 = vpop.xlane.xlu0 %2060 }
 0x463   : > { %v2186_v41 = vsub.f32 %v6541_v60, %v2061_v55  ;;  %v2095_v35 = vpop.xlane.xlu1 %2094 }
 0x464   : > { %v2203_v59 = vsub.f32 %v6545_v63, %v2095_v35 }
 0x465   : > { %v2252_v25 = vmul.f32 1.442695, %v2186_v41 }
 0x466   : > { %v2093_v21 = vpop.xlane.xlu0 %2092  ;;  %v2286_v61 = vmul.f32 1.442695, %v2203_v59 }
 0x467   : > { %5360 = vpow2.f32 %v2252_v25  ;;  %v2202_v20 = vsub.f32 %v6551_v3, %v2093_v21  ;;  %v2059_v8 = vpop.xlane.xlu1 %2058 }
 0x468   : > { %v2185_v37 = vsub.f32 %v6555_v4, %v2059_v8 }
 0x469   : > { %v2284_v39 = vmul.f32 1.442695, %v2202_v20 }
 0x46a   : > { %v2057_v19 = vpop.xlane.xlu0 %2056  ;;  %v2250_v60 = vmul.f32 1.442695, %v2185_v37 }
 0x46b   : > { %5362 = vpow2.f32 %v2284_v39  ;;  %v2184_v45 = vsub.f32 %v6561_v6, %v2057_v19  ;;  %v2091_v38 = vpop.xlane.xlu1 %2090 }
 0x46c   : > { %5364 = vpow2.f32 %v2286_v61  ;;  %v2201_v41 = vsub.f32 %v6565_v31, %v2091_v38 }
 0x46d   : > { %v2248_v42 = vmul.f32 1.442695, %v2184_v45 }
 0x46e   : > { %v2089_v63 = vpop.xlane.xlu0 %2088  ;;  %v2282_v4 = vmul.f32 1.442695, %v2201_v41 }
 0x46f   : > { %5366 = vpow2.f32 %v2248_v42  ;;  %v2200_v35 = vsub.f32 %v6571_v14, %v2089_v63  ;;  %v2071_v3 = vpop.xlane.xlu1 %2070 }
 0x470   : > { %5368 = vpow2.f32 %v2250_v60 }
 0x471   : > { %v6866_v21 = vpop.eup %5360  ;;  %v2280_v59 = vmul.f32 1.442695, %v2200_v35 }
 0x472   : > { %2380 = vadd.xlane.f32.xlu0 %v6866_v21  ;;  %v2063_v39 = vpop.xlane.xlu0 %2062 }
 0x473   : > { %5370 = vpow2.f32 %v2280_v59  ;;  %v2187_v6 = vsub.f32 %v6581_v22, %v2063_v39  ;;  %v2103_v8 = vpop.xlane.xlu1 %2102 }
 0x474   : > { %5372 = vpow2.f32 %v2282_v4  ;;  %v2207_v20 = vsub.f32 %v6585_v54, %v2103_v8  ;;  %v2191_v8 = vsub.f32 %v6575_v15, %v2071_v3 }
 0x475   : > { %v6870_v61 = vpop.eup %5362  ;;  %v2254_v31 = vmul.f32 1.442695, %v2187_v6 }
 0x476   : > { %2412 = vadd.xlane.f32.xlu1 %v6870_v61  ;;  %v2069_v14 = vpop.xlane.xlu0 %2068  ;;  %v6874_v45 = vpop.eup %5364  ;;  %v2294_v63 = vmul.f32 1.442695, %v2207_v20  ;;  %v2262_v20 = vmul.f32 1.442695, %v2191_v8 }
 0x477   : > { %5374 = vpow2.f32 %v2254_v31  ;;  %v2190_v42 = vsub.f32 %v6591_v33, %v2069_v14  ;;  %v2067_v38 = vpop.xlane.xlu1 %2066 }
 0x478   : > { %v2189_v35 = vsub.f32 %v6595_v26, %v2067_v38 }
 0x479   : > { %v6876_v55 = vpop.eup %5366  ;;  %v2260_v25 = vmul.f32 1.442695, %v2190_v42 }
 0x47a   : > { %2414 = vadd.xlane.f32.xlu1 %v6874_v45  ;;  %2376 = vadd.xlane.f32.xlu0 %v6876_v55  ;;  %v2101_v22 = vpop.xlane.xlu0 %2100  ;;  %v6882_v60 = vpop.eup %5368  ;;  %v2258_v31 = vmul.f32 1.442695, %v2189_v35 }
 0x47b   : > { %5376 = vpow2.f32 %v2260_v25  ;;  %v2206_v37 = vsub.f32 %v6601_v16, %v2101_v22  ;;  %v2099_v19 = vpop.xlane.xlu1 %2098 }
 0x47c   : > { %v2205_v14 = vsub.f32 %v6605_v10, %v2099_v19 }
 0x47d   : > { %v6884_v33 = vpop.eup %5370  ;;  %v2292_v41 = vmul.f32 1.442695, %v2206_v37 }
 0x47e   : > { %2378 = vadd.xlane.f32.xlu1 %v6882_v60  ;;  %2408 = vadd.xlane.f32.xlu0 %v6884_v33  ;;  %v2065_v54 = vpop.xlane.xlu0 %2064  ;;  %v6890_v39 = vpop.eup %5372  ;;  %v2290_v3 = vmul.f32 1.442695, %v2205_v14 }
 0x47f   : > { %5378 = vpow2.f32 %v2292_v41  ;;  %v2188_v59 = vsub.f32 %v6611_v46, %v2065_v54  ;;  %v2079_v4 = vpop.xlane.xlu1 %2078 }
 0x480   : > { %5380 = vpow2.f32 %v2294_v63 }
 0x481   : > { %v6892_v16 = vpop.eup %5374  ;;  %v2256_v6 = vmul.f32 1.442695, %v2188_v59 }
 0x482   : > { %2410 = vadd.xlane.f32.xlu1 %v6890_v39  ;;  %2382 = vadd.xlane.f32.xlu0 %v6892_v16  ;;  %v2097_v26 = vpop.xlane.xlu0 %2096 }
 0x483   : > { %5382 = vpow2.f32 %v2256_v6  ;;  %v2204_v46 = vsub.f32 %v6621_v40, %v2097_v26  ;;  %v2111_v42 = vpop.xlane.xlu1 %2110 }
 0x484   : > { %5384 = vpow2.f32 %v2258_v31  ;;  %v2211_v10 = vsub.f32 %v6625_v48, %v2111_v42  ;;  %v2195_v42 = vsub.f32 %v6615_v24, %v2079_v4 }
 0x485   : > { %v6899_v38 = vpop.eup %5376  ;;  %v2288_v25 = vmul.f32 1.442695, %v2204_v46 }
 0x486   : > { %2388 = vadd.xlane.f32.xlu0 %v6899_v38  ;;  %v2077_v15 = vpop.xlane.xlu0 %2076 }
 0x487   : > { %5386 = vpow2.f32 %v2288_v25  ;;  %v2194_v22 = vsub.f32 %v6631_v49, %v2077_v15  ;;  %v2075_v37 = vpop.xlane.xlu1 %2074  ;;  %v2302_v49 = vmul.f32 1.442695, %v2211_v10  ;;  %v2270_v10 = vmul.f32 1.442695, %v2195_v42 }
 0x488   : > { %5388 = vpow2.f32 %v2262_v20  ;;  %v2193_v8 = vsub.f32 %v6635_v50, %v2075_v37 }
 0x489   : > { %v6903_v41 = vpop.eup %5378  ;;  %v2268_v40 = vmul.f32 1.442695, %v2194_v22  ;;  %5390 = vpow2.f32 %v2290_v3 }
 0x48a   : > { %2420 = vadd.xlane.f32.xlu1 %v6903_v41  ;;  %v2109_v19 = vpop.xlane.xlu0 %2108  ;;  %v6908_v54 = vpop.eup %5380  ;;  %v2266_v25 = vmul.f32 1.442695, %v2193_v8 }
 0x48b   : > { %v2210_v63 = vsub.f32 %v6641_v51, %v2109_v19  ;;  %v2107_v35 = vpop.xlane.xlu1 %2106  ;;  %5392 = vpow2.f32 %v2268_v40 }
 0x48c   : > { %v2209_v20 = vsub.f32 %v6645_v44, %v2107_v35 }
 0x48d   : > { %v6910_v59 = vpop.eup %5382  ;;  %v2300_v6 = vmul.f32 1.442695, %v2210_v63 }
 0x48e   : > { %2422 = vadd.xlane.f32.xlu1 %v6908_v54  ;;  %2384 = vadd.xlane.f32.xlu0 %v6910_v59  ;;  %v2073_v48 = vpop.xlane.xlu0 %2072  ;;  %v6918_v51 = vpop.eup %5384  ;;  %v2298_v4 = vmul.f32 1.442695, %v2209_v20 }
 0x48f   : > { %5394 = vpow2.f32 %v2300_v6  ;;  %v2192_v31 = vsub.f32 %v6651_v23, %v2073_v48  ;;  %v6916_v26 = vpop.xlane.xlu1 %2086 }
 0x490   : > { %5396 = vpow2.f32 %v2302_v49 }
 0x491   : > { %v6920_v14 = vpop.eup %5386  ;;  %v2264_v46 = vmul.f32 1.442695, %v2192_v31 }
 0x492   : > { %2386 = vadd.xlane.f32.xlu1 %v6918_v51  ;;  %2416 = vadd.xlane.f32.xlu0 %v6920_v14  ;;  %v2105_v50 = vpop.xlane.xlu0 %2104  ;;  %v6927_v15 = vpop.eup %5388 }
 0x493   : > { %5398 = vpow2.f32 %v2264_v46  ;;  %v2208_v23 = vsub.f32 %v6661_v28, %v2105_v50  ;;  %v2119_v3 = vpop.xlane.xlu1 %2118  ;;  %v6929_v22 = vpop.eup %5390 }
 0x494   : > { %5400 = vpow2.f32 %v2266_v25  ;;  %v2215_v19 = vsub.f32 %v6665_v29, %v2119_v3 }
 0x495   : > { %v2296_v37 = vmul.f32 1.442695, %v2208_v23  ;;  %v6934_v40 = vpop.eup %5392  ;;  %v2199_v23 = vsub.f32 %v6655_v52, %v6916_v26 }
 0x496   : > { %2418 = vadd.xlane.f32.xlu1 %v6929_v22  ;;  %2390 = vadd.xlane.f32.xlu0 %v6927_v15  ;;  %v2085_v24 = vpop.xlane.xlu0 %2084  ;;  %v2310_v31 = vmul.f32 1.442695, %v2215_v19 }
 0x497   : > { %5402 = vpow2.f32 %v2296_v37  ;;  %v2198_v44 = vsub.f32 %v6671_v53, %v2085_v24  ;;  %v2083_v35 = vpop.xlane.xlu1 %2082  ;;  %v2278_v19 = vmul.f32 1.442695, %v2199_v23 }
 0x498   : > { %5404 = vpow2.f32 %v2270_v10  ;;  %v2197_v46 = vsub.f32 %v6675_v56, %v2083_v35 }
 0x499   : > { %v6936_v28 = vpop.eup %5394  ;;  %v2276_v63 = vmul.f32 1.442695, %v2198_v44  ;;  %5406 = vpow2.f32 %v2298_v4 }
 0x49a   : > { %2396 = vadd.xlane.f32.xlu0 %v6934_v40  ;;  %2428 = vadd.xlane.f32.xlu1 %v6936_v28  ;;  %v2117_v6 = vpop.xlane.xlu0 %2116  ;;  %v6942_v8 = vpop.eup %5396  ;;  %v2274_v3 = vmul.f32 1.442695, %v2197_v46 }
 0x49b   : > { %v2214_v49 = vsub.f32 %v6681_v57, %v2117_v6  ;;  %5408 = vpow2.f32 %v2276_v63  ;;  %v2115_v57 = vpop.xlane.xlu1 %2114 }
 0x49c   : > { %v2213_v37 = vsub.f32 %v6685_v11, %v2115_v57 }
 0x49d   : > { %v6944_v53 = vpop.eup %5398  ;;  %v2308_v48 = vmul.f32 1.442695, %v2214_v49 }
 0x49e   : > { %2430 = vadd.xlane.f32.xlu1 %v6942_v8  ;;  %2392 = vadd.xlane.f32.xlu0 %v6944_v53  ;;  %v2081_v29 = vpop.xlane.xlu0 %2080  ;;  %v6950_v25 = vpop.eup %5400  ;;  %v2306_v26 = vmul.f32 1.442695, %v2213_v37 }
 0x49f   : > { %5410 = vpow2.f32 %v2308_v48  ;;  %v2196_v42 = vsub.f32 %v6691_v17, %v2081_v29 }
 0x4a0   : > { %5412 = vpow2.f32 %v2310_v31 }
 0x4a1   : > { %v6952_v50 = vpop.eup %5402  ;;  %v2272_v20 = vmul.f32 1.442695, %v2196_v42 }
 0x4a2   : > { %2394 = vadd.xlane.f32.xlu1 %v6950_v25  ;;  %2424 = vadd.xlane.f32.xlu0 %v6952_v50  ;;  %v2113_v56 = vpop.xlane.xlu0 %2112  ;;  %v6960_v10 = vpop.eup %5404 }
 0x4a3   : > { %5414 = vpow2.f32 %v2272_v20  ;;  %v2212_v17 = vsub.f32 %v6696_v58, %v2113_v56  ;;  %v6962_v4 = vpop.eup %5406 }
 0x4a4   : > { %v2127_v24 = vpop.xlane.xlu1 %2126  ;;  %5416 = vpow2.f32 %v2274_v3 }
 0x4a5   : > { %v2304_v44 = vmul.f32 1.442695, %v2212_v17  ;;  %v6967_v63 = vpop.eup %5408  ;;  %v2219_v17 = vsub.f32 %v6701_v47, %v2127_v24 }
 0x4a6   : > { %2426 = vadd.xlane.f32.xlu1 %v6962_v4  ;;  %2398 = vadd.xlane.f32.xlu0 %v6960_v10  ;;  %v2125_v52 = vpop.xlane.xlu0 %2124 }
 0x4a7   : > { %5418 = vpow2.f32 %v2304_v44  ;;  %v2218_v11 = vsub.f32 %v6706_v5, %v2125_v52  ;;  %v7937_v52 = vld [vmem:[#allocation9_spill] sm:$0xff] }
 0x4a8   : > { %v2159_v58 = vpop.xlane.xlu1 %2158  ;;  %5420 = vpow2.f32 %v2278_v19 }
 0x4a9   : > { %v6969_v35 = vpop.eup %5410  ;;  %v2316_v6 = vmul.f32 1.442695, %v2218_v11  ;;  %v2235_v49 = vsub.f32 %v6711_v7, %v2159_v58  ;;  %5422 = vpow2.f32 %v2306_v26 }
 0x4aa   : > { %2404 = vadd.xlane.f32.xlu0 %v6967_v63  ;;  %2436 = vadd.xlane.f32.xlu1 %v6969_v35  ;;  %v2157_v48 = vpop.xlane.xlu0 %2156  ;;  %v6975_v46 = vpop.eup %5412 }
 0x4ab   : > { %v2234_v31 = vsub.f32 %v6716_v9, %v2157_v48  ;;  %5424 = vpow2.f32 %v2316_v6  ;;  %v2350_v57 = vmul.f32 1.442695, %v2235_v49  ;;  %v2318_v49 = vmul.f32 1.442695, %v2219_v17  ;;  %v7938_v48 = vld [vmem:[#allocation11_spill] sm:$0xff] }
 0x4ac   : > { %v2123_v5 = vpop.xlane.xlu1 %2122 }
 0x4ad   : > { %v6977_v29 = vpop.eup %5414  ;;  %v2348_v42 = vmul.f32 1.442695, %v2234_v31  ;;  %v2217_v20 = vsub.f32 %v6721_v12, %v2123_v5 }
 0x4ae   : > { %2438 = vadd.xlane.f32.xlu1 %v6975_v46  ;;  %2400 = vadd.xlane.f32.xlu0 %v6977_v29  ;;  %v2121_v7 = vpop.xlane.xlu0 %2120  ;;  %v6983_v3 = vpop.eup %5416 }
 0x4af   : > { %5426 = vpow2.f32 %v2348_v42  ;;  %v2216_v23 = vsub.f32 %v6726_v30, %v2121_v7  ;;  %v2314_v44 = vmul.f32 1.442695, %v2217_v20  ;;  %v7939_v20 = vld [vmem:[#allocation12_spill] sm:$0xff] }
 0x4b0   : > { %v2155_v9 = vpop.xlane.xlu1 %2154  ;;  %5428 = vpow2.f32 %v2350_v57 }
 0x4b1   : > { %v6985_v56 = vpop.eup %5418  ;;  %v2312_v37 = vmul.f32 1.442695, %v2216_v23  ;;  %v2233_v19 = vsub.f32 %v6731_v32, %v2155_v9 }
 0x4b2   : > { %2402 = vadd.xlane.f32.xlu1 %v6983_v3  ;;  %2432 = vadd.xlane.f32.xlu0 %v6985_v56  ;;  %v2153_v12 = vpop.xlane.xlu0 %2152  ;;  %v6992_v26 = vpop.eup %5420 }
 0x4b3   : > { %5430 = vpow2.f32 %v2312_v37  ;;  %v2232_v30 = vsub.f32 %v7937_v52, %v2153_v12  ;;  %v6994_v58 = vpop.eup %5422  ;;  %v2346_v24 = vmul.f32 1.442695, %v2233_v19  ;;  %v7940_v52 = vld [vmem:[#allocation13_spill] sm:$0xff] }
 0x4b4   : > { %v2135_v11 = vpop.xlane.xlu1 %2134  ;;  %5432 = vpow2.f32 %v2314_v44 }
 0x4b5   : > { %v2344_v6 = vmul.f32 1.442695, %v2232_v30  ;;  %v6999_v32 = vpop.eup %5424 }
 0x4b6   : > { %2434 = vadd.xlane.f32.xlu1 %v6994_v58  ;;  %2406 = vadd.xlane.f32.xlu0 %v6992_v26  ;;  %v2133_v47 = vpop.xlane.xlu0 %2132 }
 0x4b7   : > { %5434 = vpow2.f32 %v2344_v6  ;;  %v2222_v31 = vsub.f32 %v7938_v48, %v2133_v47 }
 0x4b8   : > { %v2167_v5 = vpop.xlane.xlu1 %2166  ;;  %5436 = vpow2.f32 %v2318_v49 }
 0x4b9   : > { %v7001_v42 = vpop.eup %5426  ;;  %v2324_v57 = vmul.f32 1.442695, %v2222_v31  ;;  %v2239_v7 = vsub.f32 %v7939_v20, %v2167_v5  ;;  %5438 = vpow2.f32 %v2346_v24  ;;  %v7941_v31 = vld [vmem:[#allocation10_spill] sm:$0xff] }
 0x4ba   : > { %2444 = vadd.xlane.f32.xlu0 %v6999_v32  ;;  %2476 = vadd.xlane.f32.xlu1 %v7001_v42  ;;  %v2165_v23 = vpop.xlane.xlu0 %2164  ;;  %v7007_v37 = vpop.eup %5428  ;;  %v2223_v5 = vsub.f32 %v7941_v31, %v2135_v11 }
 0x4bb   : > { %v2238_v9 = vsub.f32 %v6756_v2, %v2165_v23  ;;  %5440 = vpow2.f32 %v2324_v57  ;;  %v2358_v19 = vmul.f32 1.442695, %v2239_v7 }
 0x4bc   : > { %v2131_v17 = vpop.xlane.xlu1 %2130 }
 0x4bd   : > { %v7009_v44 = vpop.eup %5430  ;;  %v2356_v12 = vmul.f32 1.442695, %v2238_v9  ;;  %v2221_v30 = vsub.f32 %v7940_v52, %v2131_v17  ;;  %v2326_v52 = vmul.f32 1.442695, %v2223_v5 }
 0x4be   : > { %2478 = vadd.xlane.f32.xlu1 %v7007_v37  ;;  %2440 = vadd.xlane.f32.xlu0 %v7009_v44  ;;  %v2129_v6 = vpop.xlane.xlu0 %2128  ;;  %v7015_v47 = vpop.eup %5432 }
 0x4bf   : > { %5442 = vpow2.f32 %v2356_v12  ;;  %v2220_v49 = vsub.f32 %v6766_v62, %v2129_v6  ;;  %v2322_v57 = vmul.f32 1.442695, %v2221_v30 }
 0x4c0   : > { %v2163_v2 = vpop.xlane.xlu1 %2162  ;;  %5444 = vpow2.f32 %v2358_v19 }
 0x4c1   : > { %v7017_v24 = vpop.eup %5434  ;;  %v2320_v48 = vmul.f32 1.442695, %v2220_v49  ;;  %v2237_v7 = vsub.f32 %v6771_v43, %v2163_v2 }
 0x4c2   : > { %2442 = vadd.xlane.f32.xlu1 %v7015_v47  ;;  %2472 = vadd.xlane.f32.xlu0 %v7017_v24  ;;  %v2161_v20 = vpop.xlane.xlu0 %2160  ;;  %v7024_v23 = vpop.eup %5436 }
 0x4c3   : > { %5446 = vpow2.f32 %v2320_v48  ;;  %v2236_v62 = vsub.f32 %v6776_v27, %v2161_v20  ;;  %v7026_v17 = vpop.eup %5438  ;;  %v2354_v19 = vmul.f32 1.442695, %v2237_v7 }
 0x4c4   : > { %v2143_v9 = vpop.xlane.xlu1 %2142  ;;  %5448 = vpow2.f32 %v2322_v57 }
 0x4c5   : > { %v2352_v12 = vmul.f32 1.442695, %v2236_v62  ;;  %v7031_v43 = vpop.eup %5440 }
 0x4c6   : > { %2474 = vadd.xlane.f32.xlu1 %v7026_v17  ;;  %2446 = vadd.xlane.f32.xlu0 %v7024_v23  ;;  %v2141_v11 = vpop.xlane.xlu0 %2140 }
 0x4c7   : > { %5450 = vpow2.f32 %v2352_v12  ;;  %v2226_v30 = vsub.f32 %v6786_v13, %v2141_v11 }
 0x4c8   : > { %v2175_v27 = vpop.xlane.xlu1 %2174  ;;  %5452 = vpow2.f32 %v2326_v52 }
 0x4c9   : > { %v7033_v6 = vpop.eup %5442  ;;  %v2332_v49 = vmul.f32 1.442695, %v2226_v30  ;;  %v2243_v2 = vsub.f32 %v6791_v0, %v2175_v27  ;;  %5454 = vpow2.f32 %v2354_v19  ;;  %v2227_v30 = vsub.f32 %v6781_v36, %v2143_v9 }
 0x4ca   : > { %2452 = vadd.xlane.f32.xlu0 %v7031_v43  ;;  %2484 = vadd.xlane.f32.xlu1 %v7033_v6  ;;  %v2173_v48 = vpop.xlane.xlu0 %2172  ;;  %v7039_v5 = vpop.eup %5444 }
 0x4cb   : > { %v2242_v31 = vsub.f32 %v6796_v18, %v2173_v48  ;;  %7942 = vst [vmem:[#allocation9_spill] sm:$0xff] %v7039_v5  ;;  %5456 = vpow2.f32 %v2332_v49  ;;  %v2366_v7 = vmul.f32 1.442695, %v2243_v2  ;;  %v7945_v49 = vld [vmem:[#allocation14_spill] sm:$0xff]  ;;  %v7946_v48 = vld [vmem:[#allocation15_spill] sm:$0xff] }
 0x4cc   : > { %v2139_v13 = vpop.xlane.xlu1 %2138 }
 0x4cd   : > { %v7041_v57 = vpop.eup %5446  ;;  %v2364_v20 = vmul.f32 1.442695, %v2242_v31  ;;  %v2225_v62 = vsub.f32 %v6801_v1, %v2139_v13 }
 0x4ce   : > { %2486 = vadd.xlane.f32.xlu1 %v7039_v5  ;;  %2448 = vadd.xlane.f32.xlu0 %v7041_v57  ;;  %v2137_v0 = vpop.xlane.xlu0 %2136  ;;  %v7047_v52 = vpop.eup %5448 }
 0x4cf   : > { %5458 = vpow2.f32 %v2364_v20  ;;  %v2224_v12 = vsub.f32 %v6806_v34, %v2137_v0  ;;  %7943 = vst [vmem:[#allocation11_spill] sm:$0xff] %v7047_v52  ;;  %v2330_v27 = vmul.f32 1.442695, %v2225_v62 }
 0x4d0   : > { %v2171_v18 = vpop.xlane.xlu1 %2170  ;;  %5460 = vpow2.f32 %v2366_v7  ;;  %v7949_v7 = vld [vmem:[#allocation17_spill] sm:$0xff] }
 0x4d1   : > { %v7049_v11 = vpop.eup %5450  ;;  %v2328_v19 = vmul.f32 1.442695, %v2224_v12  ;;  %v2241_v2 = vsub.f32 %v7945_v49, %v2171_v18  ;;  %v2334_v12 = vmul.f32 1.442695, %v2227_v30 }
 0x4d2   : > { %7944 = vst [vmem:[#allocation12_spill] sm:$0xff] %v7049_v11  ;;  %2450 = vadd.xlane.f32.xlu1 %v7047_v52  ;;  %2480 = vadd.xlane.f32.xlu0 %v7049_v11  ;;  %v2169_v1 = vpop.xlane.xlu0 %2168  ;;  %v7056_v31 = vpop.eup %5452  ;;  %v7957_v11 = vld [vmem:[#allocation22_spill] sm:$0xff] }
 0x4d3   : > { %5462 = vpow2.f32 %v2328_v19  ;;  %v2240_v34 = vsub.f32 %v7946_v48, %v2169_v1  ;;  %7947 = vst [vmem:[#allocation13_spill] sm:$0xff] %v7056_v31  ;;  %v7058_v20 = vpop.eup %5454  ;;  %v2362_v9 = vmul.f32 1.442695, %v2241_v2 }
 0x4d4   : > { %v2151_v13 = vpop.xlane.xlu1 %2150  ;;  %7948 = vst [vmem:[#allocation10_spill] sm:$0xff] %v7058_v20  ;;  %5464 = vpow2.f32 %v2330_v27 }
 0x4d5   : > { %v2360_v0 = vmul.f32 1.442695, %v2240_v34  ;;  %v7063_v18 = vpop.eup %5456  ;;  %v7954_v34 = vld [vmem:[#allocation20_spill] sm:$0xff] }
 0x4d6   : > { %2482 = vadd.xlane.f32.xlu1 %v7058_v20  ;;  %2454 = vadd.xlane.f32.xlu0 %v7056_v31  ;;  %v2149_v36 = vpop.xlane.xlu0 %2148  ;;  %7950 = vst [vmem:[#allocation14_spill] sm:$0xff] %v7063_v18  ;;  %v7956_v31 = vld [vmem:[#allocation18_spill] sm:$0xff] }
 0x4d7   : > { %5466 = vpow2.f32 %v2360_v0  ;;  %v2230_v62 = vsub.f32 %v7949_v7, %v2149_v36  ;;  %v7955_v7 = vld [vmem:[#allocation21_spill] sm:$0xff] }
 0x4d8   : > { %v2183_v19 = vpop.xlane.xlu1 %2182  ;;  %5468 = vpow2.f32 %v2334_v12 }
 0x4d9   : > { %v7065_v1 = vpop.eup %5458  ;;  %5470 = vpow2.f32 %v2362_v9  ;;  %v2340_v27 = vmul.f32 1.442695, %v2230_v62  ;;  %v2247_v20 = vsub.f32 %v7956_v31, %v2183_v19  ;;  %v7961_v19 = vld [vmem:[#allocation19_spill] sm:$0xff] }
 0x4da   : > { %7951 = vst [vmem:[#allocation15_spill] sm:$0xff] %v7065_v1  ;;  %2460 = vadd.xlane.f32.xlu0 %v7063_v18  ;;  %2492 = vadd.xlane.f32.xlu1 %v7065_v1  ;;  %v2181_v30 = vpop.xlane.xlu0 %2180  ;;  %v7069_v49 = vpop.eup %5460 }
 0x4db   : > { %7952 = vst [vmem:[#allocation17_spill] sm:$0xff] %v7069_v49  ;;  %5472 = vpow2.f32 %v2340_v27  ;;  %v7958_v27 = vld [vmem:[#allocation16_spill] sm:$0xff]  ;;  %v2374_v31 = vmul.f32 1.442695, %v2247_v20 }
 0x4dc   : > { %v2147_v48 = vpop.xlane.xlu1 %2146 }
 0x4dd   : > { %v7071_v2 = vpop.eup %5462  ;;  %v2229_v0 = vsub.f32 %v7954_v34, %v2147_v48 }
 0x4de   : > { %7953 = vst [vmem:[#allocation24_spill] sm:$0xff] %v7071_v2  ;;  %2494 = vadd.xlane.f32.xlu1 %v7069_v49  ;;  %2456 = vadd.xlane.f32.xlu0 %v7071_v2  ;;  %v2145_v36 = vpop.xlane.xlu0 %2144  ;;  %v7077_v1 = vpop.eup %5464 }
 0x4df   : > { %v2338_v12 = vmul.f32 1.442695, %v2229_v0  ;;  %v2228_v18 = vsub.f32 %v7955_v7, %v2145_v36  ;;  %v2231_v0 = vsub.f32 %v7958_v27, %v2151_v13  ;;  %v7959_v7 = vld [vmem:[#allocation23_spill] sm:$0xff] }
 0x4e0   : > { %v2179_v9 = vpop.xlane.xlu1 %2178 }
 0x4e1   : > { %v7079_v62 = vpop.eup %5466  ;;  %5474 = vpow2.f32 %v2338_v12  ;;  %v2336_v5 = vmul.f32 1.442695, %v2228_v18  ;;  %v2245_v48 = vsub.f32 %v7957_v11, %v2179_v9  ;;  %v2342_v11 = vmul.f32 1.442695, %v2231_v0 }
 0x4e2   : > { %2458 = vadd.xlane.f32.xlu1 %v7077_v1  ;;  %2488 = vadd.xlane.f32.xlu0 %v7079_v62  ;;  %v2177_v34 = vpop.xlane.xlu0 %2176  ;;  %v7087_v2 = vpop.eup %5468  ;;  %v2246_v12 = vsub.f32 %v7961_v19, %v2181_v30 }
 0x4e3   : > { %5476 = vpow2.f32 %v2336_v5  ;;  %v2370_v36 = vmul.f32 1.442695, %v2245_v48  ;;  %v2244_v49 = vsub.f32 %v7959_v7, %v2177_v34  ;;  %7960 = vst [vmem:[#allocation20_spill] sm:$0xff] %v7087_v2  ;;  %v7089_v52 = vpop.eup %5470 }
 0x4e4   : > { %v2372_v9 = vmul.f32 1.442695, %v2246_v12 }
 0x4e5   : > { %5478 = vpow2.f32 %v2370_v36  ;;  %v2368_v18 = vmul.f32 1.442695, %v2244_v49  ;;  %v7094_v13 = vpop.eup %5472 }
 0x4e6   : > { %2490 = vadd.xlane.f32.xlu1 %v7089_v52  ;;  %2462 = vadd.xlane.f32.xlu0 %v7087_v2  ;;  %7962 = vst [vmem:[#allocation21_spill] sm:$0xff] %v7094_v13 }
 0x4e7   : > { %5480 = vpow2.f32 %v2368_v18 }
 0x4e8   : > { %5482 = vpow2.f32 %v2374_v31 }
 0x4e9   : > { %5484 = vpow2.f32 %v2342_v11 }
 0x4ea   : > { %2468 = vadd.xlane.f32.xlu0 %v7094_v13  ;;  %5486 = vpow2.f32 %v2372_v9 }
 0x4eb   : > { %v7097_v5 = vpop.eup %5474 }
 0x4ec   : > { %7963 = vst [vmem:[#allocation18_spill] sm:$0xff] %v7097_v5  ;;  %2466 = vadd.xlane.f32.xlu1 %v7097_v5 }
 0x4ed   : > { %v7100_v20 = vpop.eup %5476 }
 0x4ee   : > { %7964 = vst [vmem:[#allocation22_spill] sm:$0xff] %v7100_v20  ;;  %2464 = vadd.xlane.f32.xlu0 %v7100_v20 }
 0x4ef   : > { %v7103_v49 = vpop.eup %5478 }
 0x4f0   : > { %7965 = vst [vmem:[#allocation16_spill] sm:$0xff] %v7103_v49  ;;  %2498 = vadd.xlane.f32.xlu1 %v7103_v49 }
 0x4f1   : > { %v7106_v30 = vpop.eup %5480 }
 0x4f2   : > { %7966 = vst [vmem:[#allocation23_spill] sm:$0xff] %v7106_v30  ;;  %2496 = vadd.xlane.f32.xlu0 %v7106_v30  ;;  %v7109_v48 = vpop.eup %5482 }
 0x4f3   : > { %7967 = vst [vmem:[#allocation19_spill] sm:$0xff] %v7109_v48  ;;  %v7112_v34 = vpop.eup %5484 }
 0x4f4   : > { %2502 = vadd.xlane.f32.xlu1 %v7109_v48  ;;  %7968 = vst [vmem:[#allocation25_spill] sm:$0xff] %v7112_v34  ;;  %v7115_v27 = vpop.eup %5486 }
 0x4f5   : > { %7969 = vst [vmem:[#allocation26_spill] sm:$0xff] %v7115_v27 }
 0x4f6   : > { %2470 = vadd.xlane.f32.xlu0 %v7112_v34 }
 0x4fa   : > { %2500 = vadd.xlane.f32.xlu0 %v7115_v27 }
 0x4ff   : > { %v2381_v0 = vpop.xlane.xlu0 %2380 }
 0x503   : > { %v2413_v36 = vpop.xlane.xlu1 %2412 }
 0x507   : > { %v2415_v7 = vpop.xlane.xlu1 %2414  ;;  %v2377_v31 = vpop.xlane.xlu0 %2376 }
 0x508   : > { %5488 = vrcp.f32 %v2377_v31 }
 0x509   : > { %5490 = vrcp.f32 %v2381_v0 }
 0x50b   : > { %v2379_v18 = vpop.xlane.xlu1 %2378  ;;  %v2409_v11 = vpop.xlane.xlu0 %2408 }
 0x50c   : > { %5492 = vrcp.f32 %v2379_v18 }
 0x50d   : > { %5494 = vrcp.f32 %v2415_v7 }
 0x50e   : > { %5496 = vrcp.f32 %v2409_v11 }
 0x50f   : > { %5498 = vrcp.f32 %v2413_v36  ;;  %v2411_v19 = vpop.xlane.xlu1 %2410  ;;  %v2383_v12 = vpop.xlane.xlu0 %2382 }
 0x510   : > { %5500 = vrcp.f32 %v2411_v19 }
 0x511   : > { %5502 = vrcp.f32 %v2383_v12 }
 0x512   : > { %v5489_v9 = vpop.eup %5488 }
 0x513   : > { %v5491_v48 = vpop.eup %5490  ;;  %v2389_v13 = vpop.xlane.xlu0 %2388  ;;  %v7119_v49 = vmul.f32 %v5489_v9, %v6876_v55 }
 0x514   : > { %v7129_v55 = vmul.f32 %v5491_v48, %v6866_v21  ;;  %v5713_v48 = vld [vmem:[#allocation4 + $0xc0] sm:$0xff] }
 0x516   : > { %v5493_v34 = vpop.eup %5492 }
 0x517   : > { %v5495_v27 = vpop.eup %5494  ;;  %v2421_v30 = vpop.xlane.xlu1 %2420  ;;  %v2633_v0 = vmul.f32 %v5493_v34, %v6882_v60 }
 0x518   : > { %v5497_v31 = vpop.eup %5496  ;;  %v2651_v11 = vmul.f32 %v5495_v27, %v6874_v45 }
 0x519   : > { %v5499_v18 = vpop.eup %5498  ;;  %v2777_v7 = vpack.c.bf16 %v2633_v0, %v7119_v49  ;;  %v7125_v5 = vmul.f32 %v5497_v31, %v6884_v33 }
 0x51a   : > { %v5501_v36 = vpop.eup %5500  ;;  %v7132_v60 = vmul.f32 %v5499_v18, %v6870_v61  ;;  %v5712_v61 = vld [vmem:[#allocation4 + $0x80] sm:$0xff]  ;;  %v2835_v18 = vld [vmem:[#allocation4 + $0xd0] sm:$0xff] }
 0x51b   : > { %v5503_v19 = vpop.eup %5502  ;;  %v2423_v12 = vpop.xlane.xlu1 %2422  ;;  %5011 = vmatprep.mubr.bf16.mxu1 %v2777_v7  ;;  %v2649_v2 = vmul.f32 %v5501_v36, %v6890_v39 }
 0x51c   : > { %v2385_v20 = vpop.xlane.xlu0 %2384  ;;  %v2635_v34 = vmul.f32 %v5503_v19, %v6892_v16  ;;  %v2786_v31 = vpack.c.bf16 %v2651_v11, %v7132_v60  ;;  %v2826_v16 = vld [vmem:[#allocation4 + $0x88] sm:$0xff] }
 0x51d   : > { %v7135_v9 = vadd.f32 %v2649_v2, %v2633_v0  ;;  %v2785_v45 = vpack.c.bf16 %v2649_v2, %v7125_v5  ;;  %5504 = vrcp.f32 %v2385_v20  ;;  %v2834_v2 = vld [vmem:[#allocation4 + $0xc8] sm:$0xff] }
 0x51e   : > { %v7138_v27 = vadd.f32 %v2651_v11, %v2635_v34  ;;  %v2778_v33 = vpack.c.bf16 %v2635_v34, %v7129_v55  ;;  %5506 = vrcp.f32 %v2389_v13  ;;  %v2827_v13 = vld [vmem:[#allocation4 + $0x90] sm:$0xff]  ;;  %v2836_v34 = vld [vmem:[#allocation4 + $0xd8] sm:$0xff] }
 0x51f   : > { %v2387_v39 = vpop.xlane.xlu1 %2386  ;;  %5043 = vmatprep.mubr.bf16.mxu0 %v2785_v45 }
 0x520   : > { %v2417_v21 = vpop.xlane.xlu0 %2416  ;;  %5508 = vrcp.f32 %v2387_v39  ;;  %5012 = vmatmul.mubr.bf16.vlgmr.msra.gmra.mrb[32].mxu1 %v2778_v33  ;;  %5044 = vmatmul.mubr.bf16.vlgmr.msra.gmra.mrb[48].mxu0 %v2786_v31 }
 0x521   : > { %5510 = vrcp.f32 %v2423_v12  ;;  %5060 = vmatpush3.bf16.msra.mxu1 %v5712_v61  ;;  %5092 = vmatpush3.bf16.msra.mxu0 %v5713_v48  ;;  %v2828_v12 = vld [vmem:[#allocation4 + $0x98] sm:$0xff]  ;;  %v2829_v48 = vld [vmem:[#allocation4 + $0xa0] sm:$0xff] }
 0x522   : > { %5512 = vrcp.f32 %v2417_v21  ;;  %5061 = vmatprep.subr.bf16.mxu1 %v2826_v16  ;;  %5093 = vmatprep.subr.bf16.mxu0 %v2834_v2 }
 0x523   : > { %5514 = vrcp.f32 %v2421_v30  ;;  %v2419_v20 = vpop.xlane.xlu1 %2418 }
 0x524   : > { %v2391_v0 = vpop.xlane.xlu0 %2390  ;;  %5516 = vrcp.f32 %v2419_v20 }
 0x525   : > { %5062 = vmatpush3.bf16.msra.mxu1 %v2826_v16  ;;  %5518 = vrcp.f32 %v2391_v0  ;;  %5094 = vmatpush3.bf16.msra.mxu0 %v2834_v2  ;;  %v2837_v2 = vld [vmem:[#allocation4 + $0xe0] sm:$0xff] }
 0x526   : > { %5063 = vmatprep.subr.bf16.mxu1 %v2827_v13  ;;  %5095 = vmatprep.subr.bf16.mxu0 %v2835_v18 }
 0x527   : > { %v2429_v7 = vpop.xlane.xlu1 %2428  ;;  %v5505_v11 = vpop.eup %5504 }
 0x528   : > { %v2397_v36 = vpop.xlane.xlu0 %2396  ;;  %v5507_v19 = vpop.eup %5506  ;;  %v7143_v39 = vmul.f32 %v5505_v11, %v6910_v59 }
 0x529   : > { %5064 = vmatpush3.bf16.msra.mxu1 %v2827_v13  ;;  %5096 = vmatpush3.bf16.msra.mxu0 %v2835_v18 }
 0x52a   : > { %v5509_v45 = vpop.eup %5508  ;;  %5065 = vmatprep.subr.bf16.mxu1 %v2828_v12  ;;  %5097 = vmatprep.subr.bf16.mxu0 %v2836_v34 }
 0x52b   : > { %v5511_v30 = vpop.eup %5510  ;;  %v2431_v33 = vpop.xlane.xlu1 %2430  ;;  %v7146_v21 = vmul.f32 %v5509_v45, %v6918_v51 }
 0x52c   : > { %v2393_v31 = vpop.xlane.xlu0 %2392  ;;  %v5513_v61 = vpop.eup %5512  ;;  %v7151_v13 = vmul.f32 %v5511_v30, %v6908_v54  ;;  %v2838_v30 = vld [vmem:[#allocation4 + $0xe8] sm:$0xff] }
 0x52d   : > { %v5515_v16 = vpop.eup %5514  ;;  %5066 = vmatpush3.bf16.msra.mxu1 %v2828_v12  ;;  %5098 = vmatpush3.bf16.msra.mxu0 %v2836_v34  ;;  %v2779_v20 = vpack.c.bf16 %v7146_v21, %v7143_v39  ;;  %5520 = vrcp.f32 %v2393_v31  ;;  %v7154_v11 = vmul.f32 %v5513_v61, %v6920_v14  ;;  %v7160_v34 = vmul.f32 %v5507_v19, %v6899_v38  ;;  %v2831_v19 = vld [vmem:[#allocation4 + $0xb0] sm:$0xff] }
 0x52e   : > { %v5517_v0 = vpop.eup %5516  ;;  %5067 = vmatprep.subr.bf16.mxu1 %v2829_v48  ;;  %5099 = vmatprep.subr.bf16.mxu0 %v2837_v2  ;;  %5522 = vrcp.f32 %v2429_v7  ;;  %v7166_v54 = vmul.f32 %v5515_v16, %v6903_v41  ;;  %v2830_v7 = vld [vmem:[#allocation4 + $0xa8] sm:$0xff] }
 0x52f   : > { %v5519_v59 = vpop.eup %5518  ;;  %v2395_v51 = vpop.xlane.xlu1 %2394  ;;  %5015 = vmatprep.mubr.bf16.mxu1 %v2779_v20  ;;  %v7157_v12 = vmul.f32 %v5517_v0, %v6929_v22 }
 0x530   : > { %v2425_v18 = vpop.xlane.xlu0 %2424  ;;  %5524 = vrcp.f32 %v2395_v51  ;;  %v7163_v45 = vmul.f32 %v5519_v59, %v6927_v15  ;;  %v2788_v15 = vpack.c.bf16 %v7151_v13, %v7166_v54 }
 0x531   : > { %5526 = vrcp.f32 %v2431_v33  ;;  %5068 = vmatpush3.bf16.msra.mxu1 %v2829_v48  ;;  %5100 = vmatpush3.bf16.msra.mxu0 %v2837_v2  ;;  %v2787_v14 = vpack.c.bf16 %v7157_v12, %v7154_v11  ;;  %v2839_v33 = vld [vmem:[#allocation4 + $0xf0] sm:$0xff]  ;;  %v2840_v2 = vld [vmem:[#allocation4 + $0xf8] sm:$0xff] }
 0x532   : > { %5528 = vrcp.f32 %v2425_v18  ;;  %5069 = vmatprep.subr.bf16.mxu1 %v2830_v7  ;;  %5101 = vmatprep.subr.bf16.mxu0 %v2838_v30  ;;  %v2780_v38 = vpack.c.bf16 %v7163_v45, %v7160_v34 }
 0x533   : > { %5530 = vrcp.f32 %v2397_v36  ;;  %v2427_v41 = vpop.xlane.xlu1 %2426  ;;  %5047 = vmatprep.mubr.bf16.mxu0 %v2787_v14  ;;  %v2832_v36 = vld [vmem:[#allocation4 + $0xb8] sm:$0xff] }
 0x534   : > { %v2399_v22 = vpop.xlane.xlu0 %2398  ;;  %5532 = vrcp.f32 %v2427_v41  ;;  %5016 = vmatmul.mubr.bf16.gmra.mrb[36].mxu1 %v2780_v38  ;;  %5048 = vmatmul.mubr.bf16.gmra.mrb[52].mxu0 %v2788_v15 }
 0x535   : > { %5070 = vmatpush3.bf16.msra.mxu1 %v2830_v7  ;;  %5534 = vrcp.f32 %v2399_v22  ;;  %5102 = vmatpush3.bf16.msra.mxu0 %v2838_v30 }
 0x536   : > { %5071 = vmatprep.subr.bf16.mxu1 %v2831_v19  ;;  %5103 = vmatprep.subr.bf16.mxu0 %v2839_v33 }
 0x537   : > { %v2437_v31 = vpop.xlane.xlu1 %2436  ;;  %v5521_v16 = vpop.eup %5520 }
 0x538   : > { %v2405_v61 = vpop.xlane.xlu0 %2404  ;;  %5536 = vrcp.f32 %v2437_v31  ;;  %v5523_v48 = vpop.eup %5522  ;;  %v7175_v18 = vmul.f32 %v5521_v16, %v6944_v53 }
 0x539   : > { %5072 = vmatpush3.bf16.msra.mxu1 %v2831_v19  ;;  %5538 = vrcp.f32 %v2405_v61  ;;  %5104 = vmatpush3.bf16.msra.mxu0 %v2839_v33 }
 0x53a   : > { %v5525_v20 = vpop.eup %5524  ;;  %5073 = vmatprep.subr.bf16.mxu1 %v2832_v36  ;;  %5105 = vmatprep.subr.bf16.mxu0 %v2840_v2 }
 0x53b   : > { %v5527_v0 = vpop.eup %5526  ;;  %v2439_v59 = vpop.xlane.xlu1 %2438  ;;  %v7178_v7 = vmul.f32 %v5525_v20, %v6950_v25 }
 0x53c   : > { %v2401_v51 = vpop.xlane.xlu0 %2400  ;;  %v5529_v30 = vpop.eup %5528  ;;  %v7183_v41 = vmul.f32 %v5527_v0, %v6942_v8  ;;  %v7198_v8 = vmul.f32 %v5523_v48, %v6936_v28 }
 0x53d   : > { %v5531_v14 = vpop.eup %5530  ;;  %5074 = vmatpush3.bf16.msra.mxu1 %v2832_v36  ;;  %5106 = vmatpush3.bf16.msra.mxu0 %v2840_v2  ;;  %v2781_v38 = vpack.c.bf16 %v7178_v7, %v7175_v18  ;;  %5540 = vrcp.f32 %v2401_v51  ;;  %v7186_v33 = vmul.f32 %v5529_v30, %v6952_v50 }
 0x53e   : > { %v5533_v15 = vpop.eup %5532  ;;  %v7192_v31 = vmul.f32 %v5531_v14, %v6934_v40 }
 0x53f   : > { %v5535_v22 = vpop.eup %5534  ;;  %v2403_v19 = vpop.xlane.xlu1 %2402  ;;  %5019 = vmatprep.mubr.bf16.mxu1 %v2781_v38  ;;  %v7189_v25 = vmul.f32 %v5533_v15, %v6962_v4  ;;  %v2790_v4 = vpack.c.bf16 %v7183_v41, %v7198_v8 }
 0x540   : > { %v2433_v53 = vpop.xlane.xlu0 %2432  ;;  %5542 = vrcp.f32 %v2403_v19  ;;  %v7195_v61 = vmul.f32 %v5535_v22, %v6960_v10 }
 0x541   : > { %5544 = vrcp.f32 %v2439_v59  ;;  %v2789_v16 = vpack.c.bf16 %v7189_v25, %v7186_v33 }
 0x542   : > { %v5537_v36 = vpop.eup %5536  ;;  %5546 = vrcp.f32 %v2433_v53  ;;  %v2782_v50 = vpack.c.bf16 %v7195_v61, %v7192_v31 }
 0x543   : > { %v5539_v40 = vpop.eup %5538  ;;  %v2435_v2 = vpop.xlane.xlu1 %2434  ;;  %5051 = vmatprep.mubr.bf16.mxu0 %v2789_v16  ;;  %v2662_v20 = vmul.f32 %v5537_v36, %v6969_v35 }
 0x544   : > { %v2407_v10 = vpop.xlane.xlu0 %2406  ;;  %5548 = vrcp.f32 %v2435_v2  ;;  %5020 = vmatmul.mubr.bf16.gmra.mrb[40].mxu1 %v2782_v50  ;;  %5052 = vmatmul.mubr.bf16.gmra.mrb[56].mxu0 %v2790_v4  ;;  %v2646_v28 = vmul.f32 %v5539_v40, %v6967_v63 }
 0x545   : > { %5550 = vrcp.f32 %v2407_v10 }
 0x546   : > { %v7208_v48 = vadd.f32 %v2662_v20, %v2646_v28 }
 0x547   : > { %v2477_v0 = vpop.xlane.xlu1 %2476  ;;  %v5541_v51 = vpop.eup %5540 }
 0x548   : > { %v2445_v59 = vpop.xlane.xlu0 %2444  ;;  %5552 = vrcp.f32 %v2477_v0  ;;  %v7211_v22 = vmul.f32 %v5541_v51, %v6977_v29  ;;  %v2702_v51 = vadd.f32 %v7132_v60, %v7129_v55 }
 0x549   : > { %5554 = vrcp.f32 %v2445_v59 }
 0x54a   : > { %v5543_v30 = vpop.eup %5542 }
 0x54b   : > { %v5545_v14 = vpop.eup %5544  ;;  %v2479_v38 = vpop.xlane.xlu1 %2478  ;;  %v7214_v35 = vmul.f32 %v5543_v30, %v6983_v3 }
 0x54c   : > { %v2441_v15 = vpop.xlane.xlu0 %2440  ;;  %v5547_v19 = vpop.eup %5546  ;;  %v7219_v16 = vmul.f32 %v5545_v14, %v6975_v46 }
 0x54d   : > { %5556 = vrcp.f32 %v2441_v15  ;;  %v2783_v63 = vpack.c.bf16 %v7214_v35, %v7211_v22  ;;  %v7222_v29 = vmul.f32 %v5547_v19, %v6985_v56 }
 0x54e   : > { %v5549_v53 = vpop.eup %5548  ;;  %5558 = vrcp.f32 %v2479_v38  ;;  %v2792_v0 = vpack.c.bf16 %v7219_v16, %v2662_v20 }
 0x54f   : > { %v5551_v36 = vpop.eup %5550  ;;  %v2443_v50 = vpop.xlane.xlu1 %2442  ;;  %5023 = vmatprep.mubr.bf16.mxu1 %v2783_v63  ;;  %v7225_v3 = vmul.f32 %v5549_v53, %v6994_v58 }
 0x550   : > { %v2473_v4 = vpop.xlane.xlu0 %2472  ;;  %5560 = vrcp.f32 %v2443_v50  ;;  %v7228_v40 = vmul.f32 %v5551_v36, %v6992_v26 }
 0x551   : > { %5562 = vrcp.f32 %v2473_v4  ;;  %v2791_v46 = vpack.c.bf16 %v7225_v3, %v7222_v29 }
 0x552   : > { %v5553_v2 = vpop.eup %5552  ;;  %v2784_v10 = vpack.c.bf16 %v7228_v40, %v2646_v28 }
 0x553   : > { %v5555_v59 = vpop.eup %5554  ;;  %v2475_v56 = vpop.xlane.xlu1 %2474  ;;  %5055 = vmatprep.mubr.bf16.mxu0 %v2791_v46  ;;  %v2682_v30 = vmul.f32 %v5553_v2, %v7001_v42 }
 0x554   : > { %v2447_v58 = vpop.xlane.xlu0 %2446  ;;  %v2666_v26 = vmul.f32 %v5555_v59, %v6999_v32  ;;  %5564 = vrcp.f32 %v2475_v56  ;;  %5024 = vmatmul.mubr.bf16.gmra.mrb[44].mxu1 %v2784_v10  ;;  %5056 = vmatmul.mubr.bf16.gmra.mrb[60].mxu0 %v2792_v0  ;;  %v2696_v32 = vadd.f32 %v7125_v5, %v7119_v49 }
 0x555   : > { %5566 = vrcp.f32 %v2447_v58 }
 0x556   : > { %v2703_v28 = vadd.f32 %v2702_v51, %v2666_v26 }
 0x557   : > { %v5557_v20 = vpop.eup %5556  ;;  %v2485_v14 = vpop.xlane.xlu1 %2484 }
 0x558   : > { %v2453_v38 = vpop.xlane.xlu0 %2452  ;;  %v2704_v15 = vadd.f32 %v2703_v28, %v2682_v30  ;;  %5568 = vrcp.f32 %v2485_v14  ;;  %v2664_v19 = vmul.f32 %v5557_v20, %v7009_v44  ;;  %v5559_v63 = vpop.eup %5558 }
 0x559   : > { %5570 = vrcp.f32 %v2453_v38  ;;  %v2683_v10 = vmul.f32 %v5559_v63, %v7007_v37 }
 0x55a   : > { %v5561_v55 = vpop.eup %5560  ;;  %v2747_v60 = vmul.f32 0.25, %v2704_v15  ;;  %v2697_v4 = vadd.f32 %v2696_v32, %v2664_v19 }
 0x55b   : > { %v5563_v53 = vpop.eup %5562  ;;  %v2487_v36 = vpop.xlane.xlu1 %2486  ;;  %v2665_v50 = vmul.f32 %v5561_v55, %v7015_v47  ;;  %v2802_v38 = vpack.c.bf16 %v2683_v10, %v2682_v30 }
 0x55c   : > { %v2449_v42 = vpop.xlane.xlu0 %2448  ;;  %2763 = vst [vmem:[%s7245_s28 + $0x10] sm:$0xff] %v2747_v60  ;;  %v2680_v46 = vmul.f32 %v5563_v53, %v7017_v24 }
 0x55d   : > { %5572 = vrcp.f32 %v2449_v42  ;;  %v2793_v44 = vpack.c.bf16 %v2665_v50, %v2664_v19  ;;  %v2700_v59 = vadd.f32 %v7135_v9, %v2665_v50 }
 0x55e   : > { %v5565_v2 = vpop.eup %5564  ;;  %v2698_v0 = vadd.f32 %v2697_v4, %v2680_v46  ;;  %5574 = vrcp.f32 %v2487_v36 }
 0x55f   : > { %v5567_v5 = vpop.eup %5566  ;;  %v2451_v49 = vpop.xlane.xlu1 %2450  ;;  %5075 = vmatprep.mubr.bf16.mxu1 %v2793_v44  ;;  %v2681_v56 = vmul.f32 %v5565_v2, %v7026_v17 }
 0x560   : > { %v2481_v47 = vpop.xlane.xlu0 %2480  ;;  %v2667_v58 = vmul.f32 %v5567_v5, %v7024_v23  ;;  %5576 = vrcp.f32 %v2451_v49  ;;  %v2745_v24 = vmul.f32 0.25, %v2698_v0  ;;  %v2714_v23 = vadd.f32 %v7166_v54, %v7160_v34  ;;  %v7971_v0 = vld [vmem:[#allocation12_spill] sm:$0xff] }
 0x561   : > { %5578 = vrcp.f32 %v2481_v47  ;;  %v2701_v51 = vadd.f32 %v2700_v59, %v2681_v56  ;;  %v2801_v28 = vpack.c.bf16 %v2681_v56, %v2680_v46  ;;  %v7972_v56 = vld [vmem:[#allocation9_spill] sm:$0xff] }
 0x562   : > { %v5569_v20 = vpop.eup %5568  ;;  %v2706_v37 = vadd.f32 %v7138_v27, %v2667_v58  ;;  %v2794_v14 = vpack.c.bf16 %v2667_v58, %v2666_v26  ;;  %2761 = vst [vmem:[%s7245_s28] sm:$0xff] %v2745_v24 }
 0x563   : > { %v5571_v15 = vpop.eup %5570  ;;  %v2483_v9 = vpop.xlane.xlu1 %2482  ;;  %v2746_v19 = vmul.f32 0.25, %v2701_v51  ;;  %5107 = vmatprep.mubr.bf16.mxu0 %v2801_v28  ;;  %v2686_v30 = vmul.f32 %v5569_v20, %v7033_v6  ;;  %v7970_v6 = vld [vmem:[#allocation11_spill] sm:$0xff]  ;;  %v7973_v28 = vld [vmem:[#allocation10_spill] sm:$0xff] }
 0x564   : > { %v2455_v17 = vpop.xlane.xlu0 %2454  ;;  %v2707_v63 = vadd.f32 %v2706_v37, %v2683_v10  ;;  %5580 = vrcp.f32 %v2483_v9  ;;  %5076 = vmatmul.mubr.bf16.vlgmr.msra.gmra.mrb[48].mxu1 %v2794_v14  ;;  %5108 = vmatmul.mubr.bf16.vlgmr.msra.gmra.mrb[64].mxu0 %v2802_v38  ;;  %v2670_v55 = vmul.f32 %v5571_v15, %v7031_v43  ;;  %v2708_v43 = vadd.f32 %v7154_v11, %v7143_v39 }
 0x565   : > { %2762 = vst [vmem:[%s7245_s28 + $0x8] sm:$0xff] %v2746_v19  ;;  %5582 = vrcp.f32 %v2455_v17  ;;  %v2717_v37 = vadd.f32 %v7151_v13, %v7163_v45  ;;  %v2726_v13 = vadd.f32 %v7198_v8, %v7192_v31 }
 0x566   : > { %v2748_v27 = vmul.f32 0.25, %v2707_v63  ;;  %v2715_v26 = vadd.f32 %v2714_v23, %v2670_v55 }
 0x567   : > { %v5573_v32 = vpop.eup %5572  ;;  %v2493_v60 = vpop.xlane.xlu1 %2492 }
 0x568   : > { %v2461_v53 = vpop.xlane.xlu0 %2460  ;;  %2764 = vst [vmem:[%s7245_s28 + $0x18] sm:$0xff] %v2748_v27  ;;  %5584 = vrcp.f32 %v2493_v60  ;;  %v2668_v34 = vmul.f32 %v5573_v32, %v7041_v57  ;;  %v2716_v54 = vadd.f32 %v2715_v26, %v2686_v30  ;;  %v5575_v36 = vpop.eup %5574  ;;  %v2711_v57 = vadd.f32 %v7157_v12, %v7146_v21  ;;  %v7974_v21 = vld [vmem:[#allocation13_spill] sm:$0xff]  ;;  %v7975_v60 = vld [vmem:[#allocation14_spill] sm:$0xff] }
 0x569   : > { %5586 = vrcp.f32 %v2461_v53  ;;  %v2687_v58 = vmul.f32 %v5575_v36, %v7972_v56 }
 0x56a   : > { %v5577_v42 = vpop.eup %5576  ;;  %v2751_v50 = vmul.f32 0.25, %v2716_v54  ;;  %v2709_v10 = vadd.f32 %v2708_v43, %v2668_v34  ;;  %v7977_v43 = vld [vmem:[#allocation24_spill] sm:$0xff] }
 0x56b   : > { %v5579_v4 = vpop.eup %5578  ;;  %v2495_v46 = vpop.xlane.xlu1 %2494  ;;  %v2669_v2 = vmul.f32 %v5577_v42, %v7970_v6  ;;  %v2804_v23 = vpack.c.bf16 %v2687_v58, %v2686_v30  ;;  %v7976_v30 = vld [vmem:[#allocation15_spill] sm:$0xff] }
 0x56c   : > { %v2457_v44 = vpop.xlane.xlu0 %2456  ;;  %v2684_v5 = vmul.f32 %v5579_v4, %v7971_v0  ;;  %2767 = vst [vmem:[%s7245_s28 + $0x30] sm:$0xff] %v2751_v50 }
 0x56d   : > { %5588 = vrcp.f32 %v2457_v44  ;;  %v2795_v49 = vpack.c.bf16 %v2669_v2, %v2668_v34  ;;  %v2712_v24 = vadd.f32 %v2711_v57, %v2669_v2  ;;  %v2720_v44 = vadd.f32 %v7186_v33, %v7175_v18  ;;  %v7978_v18 = vld [vmem:[#allocation17_spill] sm:$0xff] }
 0x56e   : > { %v5581_v59 = vpop.eup %5580  ;;  %v2710_v47 = vadd.f32 %v2709_v10, %v2684_v5  ;;  %5590 = vrcp.f32 %v2495_v46 }
 0x56f   : > { %v5583_v39 = vpop.eup %5582  ;;  %v2459_v11 = vpop.xlane.xlu1 %2458  ;;  %5079 = vmatprep.mubr.bf16.mxu1 %v2795_v49  ;;  %v2685_v20 = vmul.f32 %v5581_v59, %v7973_v28  ;;  %v2723_v49 = vadd.f32 %v7189_v25, %v7178_v7 }
 0x570   : > { %v2489_v51 = vpop.xlane.xlu0 %2488  ;;  %5592 = vrcp.f32 %v2459_v11  ;;  %v2671_v12 = vmul.f32 %v5583_v39, %v7974_v21  ;;  %v2749_v14 = vmul.f32 0.25, %v2710_v47 }
 0x571   : > { %5594 = vrcp.f32 %v2489_v51  ;;  %v2713_v38 = vadd.f32 %v2712_v24, %v2685_v20  ;;  %v2803_v15 = vpack.c.bf16 %v2685_v20, %v2684_v5  ;;  %v7979_v51 = vld [vmem:[#allocation20_spill] sm:$0xff] }
 0x572   : > { %v5585_v9 = vpop.eup %5584  ;;  %v2718_v19 = vadd.f32 %v2717_v37, %v2671_v12  ;;  %v2796_v17 = vpack.c.bf16 %v2671_v12, %v2670_v55  ;;  %2765 = vst [vmem:[%s7245_s28 + $0x20] sm:$0xff] %v2749_v14 }
 0x573   : > { %v5587_v63 = vpop.eup %5586  ;;  %v2491_v27 = vpop.xlane.xlu1 %2490  ;;  %v2750_v26 = vmul.f32 0.25, %v2713_v38  ;;  %5111 = vmatprep.mubr.bf16.mxu0 %v2803_v15  ;;  %v2690_v54 = vmul.f32 %v5585_v9, %v7976_v30 }
 0x574   : > { %v2463_v32 = vpop.xlane.xlu0 %2462  ;;  %5596 = vrcp.f32 %v2491_v27  ;;  %5080 = vmatmul.mubr.bf16.gmra.mrb[52].mxu1 %v2796_v17  ;;  %v2719_v45 = vadd.f32 %v2718_v19, %v2687_v58  ;;  %5112 = vmatmul.mubr.bf16.gmra.mrb[68].mxu0 %v2804_v23  ;;  %v2674_v53 = vmul.f32 %v5587_v63, %v7975_v60  ;;  %v2735_v23 = vadd.f32 %v7225_v3, %v7214_v35  ;;  %v7981_v27 = vld [vmem:[#allocation22_spill] sm:$0xff] }
 0x575   : > { %2766 = vst [vmem:[%s7245_s28 + $0x28] sm:$0xff] %v2750_v26  ;;  %5598 = vrcp.f32 %v2463_v32 }
 0x576   : > { %v2752_v55 = vmul.f32 0.25, %v2719_v45  ;;  %v2727_v34 = vadd.f32 %v2726_v13, %v2674_v53  ;;  %v2732_v13 = vadd.f32 %v7222_v29, %v7211_v22  ;;  %v2741_v22 = vadd.f32 %v7219_v16, %v7228_v40 }
 0x577   : > { %v5589_v36 = vpop.eup %5588 }
 0x578   : > { %v2469_v42 = vpop.xlane.xlu0 %2468  ;;  %2768 = vst [vmem:[%s7245_s28 + $0x38] sm:$0xff] %v2752_v55  ;;  %v2672_v50 = vmul.f32 %v5589_v36, %v7977_v43  ;;  %v2728_v4 = vadd.f32 %v2727_v34, %v2690_v54  ;;  %v5591_v31 = vpop.eup %5590 }
 0x579   : > { %v2467_v8 = vpop.xlane.xlu1 %2466  ;;  %v2691_v33 = vmul.f32 %v5591_v31, %v7978_v18 }
 0x57a   : > { %v5593_v46 = vpop.eup %5592  ;;  %5600 = vrcp.f32 %v2467_v8  ;;  %v2755_v6 = vmul.f32 0.25, %v2728_v4  ;;  %v2721_v5 = vadd.f32 %v2720_v44, %v2672_v50  ;;  %v7984_v8 = vld [vmem:[#allocation21_spill] sm:$0xff] }
 0x57b   : > { %v5595_v2 = vpop.eup %5594  ;;  %v2673_v0 = vmul.f32 %v5593_v46, %v7077_v1  ;;  %v2806_v14 = vpack.c.bf16 %v2691_v33, %v2690_v54  ;;  %v7983_v54 = vld [vmem:[#allocation23_spill] sm:$0xff]  ;;  %v7985_v44 = vld [vmem:[#allocation25_spill] sm:$0xff] }
 0x57c   : > { %v2465_v10 = vpop.xlane.xlu0 %2464  ;;  %v2688_v57 = vmul.f32 %v5595_v2, %v7079_v62  ;;  %2771 = vst [vmem:[%s7245_s28 + $0x50] sm:$0xff] %v2755_v6  ;;  %v2729_v62 = vadd.f32 %v7183_v41, %v7195_v61  ;;  %v7980_v61 = vld [vmem:[#allocation18_spill] sm:$0xff] }
 0x57d   : > { %5602 = vrcp.f32 %v2465_v10  ;;  %v2499_v59 = vpop.xlane.xlu1 %2498  ;;  %v2797_v47 = vpack.c.bf16 %v2673_v0, %v2672_v50  ;;  %v2724_v11 = vadd.f32 %v2723_v49, %v2673_v0  ;;  %v7986_v0 = vld [vmem:[#allocation19_spill] sm:$0xff] }
 0x57e   : > { %v5597_v56 = vpop.eup %5596  ;;  %5604 = vrcp.f32 %v2499_v59  ;;  %v2722_v58 = vadd.f32 %v2721_v5, %v2688_v57  ;;  %v7987_v59 = vld [vmem:[#allocation26_spill] sm:$0xff] }
 0x57f   : > { %v5599_v39 = vpop.eup %5598  ;;  %5083 = vmatprep.mubr.bf16.mxu1 %v2797_v47  ;;  %v2689_v24 = vmul.f32 %v5597_v56, %v7089_v52 }
 0x580   : > { %v2497_v1 = vpop.xlane.xlu0 %2496  ;;  %v2675_v7 = vmul.f32 %v5599_v39, %v7979_v51  ;;  %v2753_v25 = vmul.f32 0.25, %v2722_v58 }
 0x581   : > { %5606 = vrcp.f32 %v2497_v1  ;;  %v2503_v28 = vpop.xlane.xlu1 %2502  ;;  %v2725_v20 = vadd.f32 %v2724_v11, %v2689_v24  ;;  %v2805_v37 = vpack.c.bf16 %v2689_v24, %v2688_v57 }
 0x582   : > { %5608 = vrcp.f32 %v2469_v42  ;;  %v2730_v21 = vadd.f32 %v2729_v62, %v2675_v7  ;;  %v2798_v12 = vpack.c.bf16 %v2675_v7, %v2674_v53  ;;  %2769 = vst [vmem:[%s7245_s28 + $0x40] sm:$0xff] %v2753_v25  ;;  %v7982_v53 = vld [vmem:[#allocation16_spill] sm:$0xff] }
 0x583   : > { %5610 = vrcp.f32 %v2503_v28  ;;  %v2754_v38 = vmul.f32 0.25, %v2725_v20  ;;  %5115 = vmatprep.mubr.bf16.mxu0 %v2805_v37 }
 0x584   : > { %v2471_v52 = vpop.xlane.xlu0 %2470  ;;  %v5601_v15 = vpop.eup %5600  ;;  %5084 = vmatmul.mubr.bf16.gmra.mrb[56].mxu1 %v2798_v12  ;;  %v2731_v41 = vadd.f32 %v2730_v21, %v2691_v33  ;;  %5116 = vmatmul.mubr.bf16.gmra.mrb[72].mxu0 %v2806_v14 }
 0x585   : > { %5612 = vrcp.f32 %v2471_v52  ;;  %2770 = vst [vmem:[%s7245_s28 + $0x48] sm:$0xff] %v2754_v38  ;;  %v2677_v9 = vmul.f32 %v5601_v15, %v7980_v61 }
 0x586   : > { %v2756_v17 = vmul.f32 0.25, %v2731_v41 }
 0x587   : > { %v5603_v19 = vpop.eup %5602  ;;  %v2736_v45 = vadd.f32 %v2735_v23, %v2677_v9 }
 0x588   : > { %v2501_v63 = vpop.xlane.xlu0 %2500  ;;  %v2676_v26 = vmul.f32 %v5603_v19, %v7981_v27  ;;  %v5605_v32 = vpop.eup %5604  ;;  %2772 = vst [vmem:[%s7245_s28 + $0x58] sm:$0xff] %v2756_v17 }
 0x589   : > { %5614 = vrcp.f32 %v2501_v63  ;;  %v2693_v55 = vmul.f32 %v5605_v32, %v7982_v53 }
 0x58a   : > { %v2799_v60 = vpack.c.bf16 %v2677_v9, %v2676_v26  ;;  %v2733_v30 = vadd.f32 %v2732_v13, %v2676_v26 }
 0x58b   : > { %v5607_v34 = vpop.eup %5606  ;;  %v2737_v3 = vadd.f32 %v2736_v45, %v2693_v55 }
 0x58c   : > { %5087 = vmatprep.mubr.bf16.mxu1 %v2799_v60  ;;  %v2692_v35 = vmul.f32 %v5607_v34, %v7983_v54  ;;  %v5609_v36 = vpop.eup %5608 }
 0x58d   : > { %v5611_v42 = vpop.eup %5610  ;;  %v2758_v50 = vmul.f32 0.25, %v2737_v3  ;;  %v2678_v46 = vmul.f32 %v5609_v36, %v7984_v8 }
 0x58e   : > { %v2734_v43 = vadd.f32 %v2733_v30, %v2692_v35  ;;  %v2807_v4 = vpack.c.bf16 %v2693_v55, %v2692_v35  ;;  %v2695_v5 = vmul.f32 %v5611_v42, %v7986_v0 }
 0x58f   : > { %v5613_v31 = vpop.eup %5612  ;;  %2774 = vst [vmem:[%s7245_s28 + $0x68] sm:$0xff] %v2758_v50  ;;  %v2739_v49 = vadd.f32 %v7208_v48, %v2678_v46 }
 0x590   : > { %v2757_v29 = vmul.f32 0.25, %v2734_v43  ;;  %5119 = vmatprep.mubr.bf16.mxu0 %v2807_v4  ;;  %v2679_v6 = vmul.f32 %v5613_v31, %v7985_v44 }
 0x592   : > { %2773 = vst [vmem:[%s7245_s28 + $0x60] sm:$0xff] %v2757_v29  ;;  %v2742_v2 = vadd.f32 %v2741_v22, %v2679_v6  ;;  %v2800_v10 = vpack.c.bf16 %v2679_v6, %v2678_v46  ;;  %v5316_v46 = vld [vmem:[%s7988_s5] sm:$0xff]  }
 0x593   : > { %v5615_v57 = vpop.eup %5614  ;;  %5123 = vmatprep.subr.bf16.mxu1 %v5316_v46 }
 0x594   : > { %5088 = vmatmul.mubr.bf16.gmra.mrb[60].mxu1 %v2800_v10  ;;  %v2694_v16 = vmul.f32 %v5615_v57, %v7987_v59  ;;  %v2743_v40 = vadd.f32 %v2742_v2, %v2695_v5 }
 0x595   : > { %5124 = vmatpush3.bf16.msra.mxu1 %v5316_v46 }
 0x596   : > { %v2740_v47 = vadd.f32 %v2739_v49, %v2694_v16  ;;  %v2760_v56 = vmul.f32 0.25, %v2743_v40  ;;  %v2808_v58 = vpack.c.bf16 %v2695_v5, %v2694_v16 }
 0x598   : > { %v2759_v18 = vmul.f32 0.25, %v2740_v47  ;;  %2776 = vst [vmem:[%s7245_s28 + $0x78] sm:$0xff] %v2760_v56  ;;  %5120 = vmatmul.mubr.bf16.gmra.mrb[76].mxu0 %v2808_v58  ;;  %v5317_v56 = vld [vmem:[%s7988_s5 + $0x8] sm:$0xff]  }
 0x599   : > { %5125 = vmatprep.subr.bf16.mxu1 %v5317_v56 }
 0x59a   : > { %2775 = vst [vmem:[%s7245_s28 + $0x70] sm:$0xff] %v2759_v18  ;;  %5126 = vmatpush3.bf16.msra.mxu1 %v5317_v56  ;;  %s5718_s28 = sshll.u32 %s5809_s16, 4  ;;  %s5719_s28 = int_to_ptr.vmem [resolvable:$false] %s5718_s28 }
 0x59b   : > { %s5720_s5 = scalar_lea.vmem %s5719_s28, 4096  ;;  %p5721_p1 = scmp.lt.s32.totalorder %s7800_s2, %s5719_s28 }
 0x59c   : > { %p5722_p2 = scmp.lt.s32.totalorder %s5720_s5, %s5714_s4 }
 0x59e   : > { %p5723_p3 = por %p5722_p2, %p5721_p1 }
 0x5a0   : > { %p5724_p5 = pnand %p5723_p3, %p5717_p0 }
 0x5f3   : > { %v5013_v33 = vpop.f32.mrb[32].mxu1  ;;  %v5045_v39 = vpop.f32.mrb[48].mxu0 }
 0x5f4   : > { %v2875_v11 = vpop.f32.mrb[33].mxu1  ;;  %v2972_v1 = vpop.f32.mrb[49].mxu0 }
 0x5f5   : > { %v5014_v24 = vpop.f32.mrb[34].mxu1  ;;  %v5046_v62 = vpop.f32.mrb[50].mxu0 }
 0x5f6   : > { %v3230_v51 = vpack.c.bf16 %v5014_v24, %v5013_v33  ;;  %v2878_v7 = vpop.f32.mrb[35].mxu1  ;;  %v3246_v48 = vpack.c.bf16 %v5046_v62, %v5045_v39  ;;  %v2975_v25 = vpop.f32.mrb[51].mxu0 }
 0x5f7   : > { %v3229_v28 = vpack.c.bf16 %v2878_v7, %v2875_v11  ;;  %v3245_v20 = vpack.c.bf16 %v2975_v25, %v2972_v1 }
 0x5f8   : > { %3238 = vst.msk [vmem:[#allocation5 + $0x8] sm:$0xff] %vm942_vm1, %v3230_v51  ;;  %3263 = vrot.lane.b32.xlu1 %v3246_v48, %s7907_s22 }
 0x5f9   : > { %3237 = vst.msk [vmem:[#allocation5] sm:$0xff] %vm942_vm1, %v3229_v28  ;;  %3261 = vrot.lane.b32.xlu0 %v3245_v20, %s7907_s22 }
 0x607   : > { %v5017_v37 = vpop.f32.mrb[36].mxu1  ;;  %v5049_v21 = vpop.f32.mrb[52].mxu0 }
 0x608   : > { %v2891_v12 = vpop.f32.mrb[37].mxu1  ;;  %v2988_v14 = vpop.f32.mrb[53].mxu0 }
 0x609   : > { %v5018_v38 = vpop.f32.mrb[38].mxu1  ;;  %v5050_v52 = vpop.f32.mrb[54].mxu0 }
 0x60a   : > { %v3232_v15 = vpack.c.bf16 %v5018_v38, %v5017_v37  ;;  %v2894_v41 = vpop.f32.mrb[39].mxu1  ;;  %v3248_v61 = vpack.c.bf16 %v5050_v52, %v5049_v21  ;;  %v2991_v9 = vpop.f32.mrb[55].mxu0 }
 0x60b   : > { %v3231_v19 = vpack.c.bf16 %v2894_v41, %v2891_v12  ;;  %v3247_v17 = vpack.c.bf16 %v2991_v9, %v2988_v14 }
 0x60c   : > { %3240 = vst.msk [vmem:[#allocation5 + $0x18] sm:$0xff] %vm942_vm1, %v3232_v15  ;;  %3267 = vrot.lane.b32.xlu1 %v3248_v61, %s7907_s22 }
 0x60d   : > { %3239 = vst.msk [vmem:[#allocation5 + $0x10] sm:$0xff] %vm942_vm1, %v3231_v19  ;;  %3265 = vrot.lane.b32.xlu0 %v3247_v17, %s7907_s22 }
 0x617   : > { %v5021_v23 = vpop.f32.mrb[40].mxu1  ;;  %v5053_v63 = vpop.f32.mrb[56].mxu0 }
 0x618   : > { %v2907_v27 = vpop.f32.mrb[41].mxu1  ;;  %v3004_v26 = vpop.f32.mrb[57].mxu0 }
 0x619   : > { %v5022_v32 = vpop.f32.mrb[42].mxu1  ;;  %v5054_v13 = vpop.f32.mrb[58].mxu0 }
 0x61a   : > { %v3234_v45 = vpack.c.bf16 %v5022_v32, %v5021_v23  ;;  %v2910_v60 = vpop.f32.mrb[43].mxu1  ;;  %v3250_v53 = vpack.c.bf16 %v5054_v13, %v5053_v63  ;;  %v3007_v55 = vpop.f32.mrb[59].mxu0 }
 0x61b   : > { %v3233_v34 = vpack.c.bf16 %v2910_v60, %v2907_v27  ;;  %v3249_v30 = vpack.c.bf16 %v3007_v55, %v3004_v26 }
 0x61c   : > { %3242 = vst.msk [vmem:[#allocation5 + $0x28] sm:$0xff] %vm942_vm1, %v3234_v45  ;;  %3271 = vrot.lane.b32.xlu1 %v3250_v53, %s7907_s22 }
 0x61d   : > { %3241 = vst.msk [vmem:[#allocation5 + $0x20] sm:$0xff] %vm942_vm1, %v3233_v34  ;;  %3269 = vrot.lane.b32.xlu0 %v3249_v30, %s7907_s22 }
 0x627   : > { %v5025_v54 = vpop.f32.mrb[44].mxu1  ;;  %v5057_v35 = vpop.f32.mrb[60].mxu0 }
 0x628   : > { %v2923_v3 = vpop.f32.mrb[45].mxu1  ;;  %v3020_v36 = vpop.f32.mrb[61].mxu0 }
 0x629   : > { %v5026_v42 = vpop.f32.mrb[46].mxu1  ;;  %v5058_v43 = vpop.f32.mrb[62].mxu0 }
 0x62a   : > { %v3236_v50 = vpack.c.bf16 %v5026_v42, %v5025_v54  ;;  %v2926_v4 = vpop.f32.mrb[47].mxu1  ;;  %v3252_v31 = vpack.c.bf16 %v5058_v43, %v5057_v35  ;;  %v3023_v22 = vpop.f32.mrb[63].mxu0 }
 0x62b   : > { %v3235_v29 = vpack.c.bf16 %v2926_v4, %v2923_v3  ;;  %v3251_v8 = vpack.c.bf16 %v3023_v22, %v3020_v36 }
 0x62c   : > { %3244 = vst.msk [vmem:[#allocation5 + $0x38] sm:$0xff] %vm942_vm1, %v3236_v50 }
 0x62d   : > { %3243 = vst.msk [vmem:[#allocation5 + $0x30] sm:$0xff] %vm942_vm1, %v3235_v29  ;;  %3273 = vrot.lane.b32.xlu0 %v3251_v8, %s7907_s22  ;;  %s7798_s22 = scalar_lea.hbm %s7871_s14, %s4672_s27 }
 0x637   : > { %v5077_v44 = vpop.f32.mrb[48].mxu1  ;;  %v5109_v6 = vpop.f32.mrb[64].mxu0 }
 0x638   : > { %v3069_v2 = vpop.f32.mrb[49].mxu1  ;;  %v3166_v10 = vpop.f32.mrb[65].mxu0 }
 0x639   : > { %v5078_v0 = vpop.f32.mrb[50].mxu1  ;;  %v5110_v5 = vpop.f32.mrb[66].mxu0 }
 0x63a   : > { %v3295_v57 = vpack.c.bf16 %v5078_v0, %v5077_v44  ;;  %v3072_v49 = vpop.f32.mrb[51].mxu1  ;;  %v3344_v59 = vpack.c.bf16 %v5110_v5, %v5109_v6  ;;  %v3169_v16 = vpop.f32.mrb[67].mxu0 }
 0x63b   : > { %v3294_v40 = vpack.c.bf16 %v3072_v49, %v3069_v2  ;;  %v3343_v47 = vpack.c.bf16 %v3169_v16, %v3166_v10 }
 0x63c   : > { %3312 = vrot.lane.b32.xlu1 %v3295_v57, %s5806_s19 }
 0x63d   : > { %3359 = vrot.lane.b32.xlu0 %v3343_v47, %s5807_s0 }
 0x640   : > { %3361 = vrot.lane.b32.xlu1 %v3344_v59, %s5807_s0 }
 0x644   : > { %3310 = vrot.lane.b32.xlu1 %v3294_v40, %s5806_s19 }
 0x647   : > { %v5081_v58 = vpop.f32.mrb[52].mxu1  ;;  %v5113_v18 = vpop.f32.mrb[68].mxu0 }
 0x648   : > { %3275 = vrot.lane.b32.xlu1 %v3252_v31, %s7989_s1  ;;  %v3085_v33 = vpop.f32.mrb[53].mxu1  ;;  %v3182_v39 = vpop.f32.mrb[69].mxu0 }
 0x649   : > { %v5082_v11 = vpop.f32.mrb[54].mxu1  ;;  %v5114_v1 = vpop.f32.mrb[70].mxu0 }
 0x64a   : > { %v3297_v24 = vpack.c.bf16 %v5082_v11, %v5081_v58  ;;  %v3088_v62 = vpop.f32.mrb[55].mxu1  ;;  %v3346_v51 = vpack.c.bf16 %v5114_v1, %v5113_v18  ;;  %v3185_v7 = vpop.f32.mrb[71].mxu0  ;;  %v7389_v11 = vld [vmem:[%s7863_s6] ss:$0 sm:$0xff] }
 0x64b   : > { %v3296_v48 = vpack.c.bf16 %v3088_v62, %v3085_v33  ;;  %v3345_v25 = vpack.c.bf16 %v3185_v7, %v3182_v39 }
 0x64c   : > { %3316 = vrot.lane.b32.xlu1 %v3297_v24, %s5806_s19  ;;  %v1322_v24 = vld [vmem:[%s5951_s24] sm:$0xff] }
 0x64d   : > { %3314 = vrot.lane.b32.xlu0 %v3296_v48, %s5806_s19 }
 0x650   : > { %3365 = vrot.lane.b32.xlu1 %v3346_v51, %s5807_s0 }
 0x651   : > { %3363 = vrot.lane.b32.xlu0 %v3345_v25, %s5807_s0  ;;  %v1324_v25 = vld [vmem:[%s5951_s24 + $0x10] sm:$0xff] }
 0x657   : > { %v5085_v28 = vpop.f32.mrb[56].mxu1  ;;  %v5117_v20 = vpop.f32.mrb[72].mxu0 }
 0x658   : > { %v3101_v37 = vpop.f32.mrb[57].mxu1  ;;  %v3198_v21 = vpop.f32.mrb[73].mxu0 }
 0x659   : > { %v5086_v12 = vpop.f32.mrb[58].mxu1  ;;  %v5118_v14 = vpop.f32.mrb[74].mxu0 }
 0x65a   : > { %v3299_v38 = vpack.c.bf16 %v5086_v12, %v5085_v28  ;;  %v3104_v52 = vpop.f32.mrb[59].mxu1  ;;  %v3348_v15 = vpack.c.bf16 %v5118_v14, %v5117_v20  ;;  %v3201_v41 = vpop.f32.mrb[75].mxu0  ;;  %v1323_v28 = vld [vmem:[%s5951_s24 + $0x8] sm:$0xff] }
 0x65b   : > { %v3298_v61 = vpack.c.bf16 %v3104_v52, %v3101_v37  ;;  %v3347_v9 = vpack.c.bf16 %v3201_v41, %v3198_v21 }
 0x65c   : > { %3320 = vrot.lane.b32.xlu1 %v3299_v38, %s5806_s19 }
 0x65d   : > { %3318 = vrot.lane.b32.xlu0 %v3298_v61, %s5806_s19 }
 0x660   : > { %3369 = vrot.lane.b32.xlu1 %v3348_v15, %s5807_s0  ;;  %v1325_v15 = vld [vmem:[%s5951_s24 + $0x18] sm:$0xff] }
 0x661   : > { %3367 = vrot.lane.b32.xlu0 %v3347_v9, %s5807_s0 }
 0x667   : > { %v5089_v19 = vpop.f32.mrb[60].mxu1 }
 0x668   : > { %v3117_v17 = vpop.f32.mrb[61].mxu1 }
 0x669   : > { %v5090_v23 = vpop.f32.mrb[62].mxu1 }
 0x66a   : > { %v3301_v63 = vpack.c.bf16 %v5090_v23, %v5089_v19  ;;  %v3120_v27 = vpop.f32.mrb[63].mxu1  ;;  %v3264_v32 = vpop.permute.xlu1 %3263 }
 0x66b   : > { %v3300_v26 = vpack.c.bf16 %v3120_v27, %v3117_v17  ;;  %v5121_v13 = vpop.f32.mrb[76].mxu0  ;;  %3287 = vst.msk [vmem:[#allocation5 + $0x8] sm:$0xff] %vm3285_vm3, %v3264_v32  ;;  %v3262_v60 = vpop.permute.xlu0 %3261  ;;  %v1326_v17 = vld [vmem:[%s5951_s24 + $0x20] sm:$0xff] }
 0x66c   : > { %3324 = vrot.lane.b32.xlu1 %v3301_v63, %s5806_s19  ;;  %v3214_v45 = vpop.f32.mrb[77].mxu0  ;;  %3286 = vst.msk [vmem:[#allocation5] sm:$0xff] %vm3285_vm3, %v3262_v60 }
 0x66d   : > { %3322 = vrot.lane.b32.xlu0 %v3300_v26, %s5806_s19  ;;  %v5122_v53 = vpop.f32.mrb[78].mxu0  ;;  %s7761_s19 = scalar_lea.vmem %s7870_s13, %s7990_s20 }
 0x66e   : > { %v3350_v55 = vpack.c.bf16 %v5122_v53, %v5121_v13  ;;  %v3217_v34 = vpop.f32.mrb[79].mxu0  ;;  %v1328_v13 = vld [vmem:[%s5951_s24 + $0x30] sm:$0xff] }
 0x66f   : > { %v3349_v30 = vpack.c.bf16 %v3217_v34, %v3214_v45  ;;  %v1327_v45 = vld [vmem:[%s5951_s24 + $0x28] sm:$0xff] }
 0x670   : > { %3373 = vrot.lane.b32.xlu1 %v3350_v55, %s5807_s0 }
 0x671   : > { %3371 = vrot.lane.b32.xlu0 %v3349_v30, %s5807_s0  ;;  %v1329_v30 = vld [vmem:[%s5951_s24 + $0x38] sm:$0xff] }
 0x67e   : > { %v3268_v54 = vpop.permute.xlu1 %3267 }
 0x67f   : > { %3289 = vst.msk [vmem:[#allocation5 + $0x18] sm:$0xff] %vm3285_vm3, %v3268_v54  ;;  %v3266_v35 = vpop.permute.xlu0 %3265 }
 0x680   : > { %3288 = vst.msk [vmem:[#allocation5 + $0x10] sm:$0xff] %vm3285_vm3, %v3266_v35 }
 0x68e   : > { %v3272_v3 = vpop.permute.xlu1 %3271 }
 0x68f   : > { %3291 = vst.msk [vmem:[#allocation5 + $0x28] sm:$0xff] %vm3285_vm3, %v3272_v3  ;;  %v3270_v36 = vpop.permute.xlu0 %3269 }
 0x690   : > { %3290 = vst.msk [vmem:[#allocation5 + $0x20] sm:$0xff] %vm3285_vm3, %v3270_v36 }
 0x69f   : > { %v3274_v42 = vpop.permute.xlu0 %3273 }
 0x6a0   : > { %3292 = vst.msk [vmem:[#allocation5 + $0x30] sm:$0xff] %vm3285_vm3, %v3274_v42 }
 0x6ae   : > { %v3313_v43 = vpop.permute.xlu1 %3312 }
 0x6af   : > { %3336 = vst.msk [vmem:[#allocation5 + $0x8] sm:$0xff] %vm3334_vm4, %v3313_v43  ;;  %v3360_v31 = vpop.permute.xlu0 %3359 }
 0x6b2   : > { %v3362_v50 = vpop.permute.xlu1 %3361 }
 0x6b3   : > { %3385 = vst.msk [vmem:[#allocation5 + $0x8] sm:$0xff] %vm3383_vm5, %v3362_v50 }
 0x6b6   : > { %v3311_v4 = vpop.permute.xlu1 %3310 }
 0x6b7   : > { %3335 = vst.msk [vmem:[#allocation5] sm:$0xff] %vm3334_vm4, %v3311_v4 }
 0x6b8   : > { %3384 = vst.msk [vmem:[#allocation5] sm:$0xff] %vm3383_vm5, %v3360_v31  ;;  %v1330_v31 = vld [vmem:[%s5951_s24 + $0x40] sm:$0xff] }
 0x6ba   : > { %v3276_v22 = vpop.permute.xlu1 %3275  ;;  %v3393_v44 = vld [vmem:[#allocation5 + $0x8] sm:$0xff] }
 0x6bb   : > { %3293 = vst.msk [vmem:[#allocation5 + $0x38] sm:$0xff] %vm3285_vm3, %v3276_v22 }
 0x6be   : > { %v3317_v29 = vpop.permute.xlu1 %3316 }
 0x6bf   : > { %3338 = vst.msk [vmem:[#allocation5 + $0x18] sm:$0xff] %vm3334_vm4, %v3317_v29  ;;  %v3315_v8 = vpop.permute.xlu0 %3314  ;;  %v3392_v46 = vld [vmem:[#allocation5] sm:$0xff] }
 0x6c0   : > { %3337 = vst.msk [vmem:[#allocation5 + $0x10] sm:$0xff] %vm3334_vm4, %v3315_v8  ;;  %5127 = vmatprep.mubr.msk.bf16.mxu1 %vm528_vm0, %v3392_v46 }
 0x6c1   : > { %5128 = vmatmul.mubr.msk.bf16.vlgmr.msra.gmra.mrb[64].mxu1 %vm528_vm0, %v3393_v44  ;;  %v1332_v44 = vld [vmem:[%s5951_s24 + $0x50] sm:$0xff] }
 0x6c2   : > { %v3366_v6 = vpop.permute.xlu1 %3365 }
 0x6c3   : > { %3387 = vst.msk [vmem:[#allocation5 + $0x18] sm:$0xff] %vm3383_vm5, %v3366_v6  ;;  %v3364_v2 = vpop.permute.xlu0 %3363  ;;  %v1331_v6 = vld [vmem:[%s5951_s24 + $0x48] sm:$0xff] }
 0x6c4   : > { %3386 = vst.msk [vmem:[#allocation5 + $0x10] sm:$0xff] %vm3383_vm5, %v3364_v2 }
 0x6ca   : > { %v3395_v0 = vld [vmem:[#allocation5 + $0x18] sm:$0xff] }
 0x6cb   : > { %v3394_v10 = vld [vmem:[#allocation5 + $0x10] sm:$0xff] }
 0x6cc   : > { %5131 = vmatprep.mubr.msk.bf16.mxu1 %vm528_vm0, %v3394_v10 }
 0x6cd   : > { %5132 = vmatmul.mubr.msk.bf16.gmra.mrb[68].mxu1 %vm528_vm0, %v3395_v0 }
 0x6ce   : > { %v3321_v5 = vpop.permute.xlu1 %3320 }
 0x6cf   : > { %3340 = vst.msk [vmem:[#allocation5 + $0x28] sm:$0xff] %vm3334_vm4, %v3321_v5  ;;  %v3319_v57 = vpop.permute.xlu0 %3318 }
 0x6d0   : > { %3339 = vst.msk [vmem:[#allocation5 + $0x20] sm:$0xff] %vm3334_vm4, %v3319_v57  ;;  %v1333_v57 = vld [vmem:[%s5951_s24 + $0x58] sm:$0xff] }
 0x6d2   : > { %v3370_v49 = vpop.permute.xlu1 %3369 }
 0x6d3   : > { %3389 = vst.msk [vmem:[#allocation5 + $0x28] sm:$0xff] %vm3383_vm5, %v3370_v49  ;;  %v3368_v59 = vpop.permute.xlu0 %3367 }
 0x6d4   : > { %3388 = vst.msk [vmem:[#allocation5 + $0x20] sm:$0xff] %vm3383_vm5, %v3368_v59 }
 0x6da   : > { %v3397_v40 = vld [vmem:[#allocation5 + $0x28] sm:$0xff] }
 0x6db   : > { %v3396_v16 = vld [vmem:[#allocation5 + $0x20] sm:$0xff] }
 0x6dc   : > { %5135 = vmatprep.mubr.msk.bf16.mxu1 %vm528_vm0, %v3396_v16 }
 0x6dd   : > { %5136 = vmatmul.mubr.msk.bf16.gmra.mrb[72].mxu1 %vm528_vm0, %v3397_v40 }
 0x6de   : > { %v3325_v47 = vpop.permute.xlu1 %3324 }
 0x6df   : > { %3342 = vst.msk [vmem:[#allocation5 + $0x38] sm:$0xff] %vm3334_vm4, %v3325_v47  ;;  %v3323_v56 = vpop.permute.xlu0 %3322 }
 0x6e0   : > { %3341 = vst.msk [vmem:[#allocation5 + $0x30] sm:$0xff] %vm3334_vm4, %v3323_v56 }
 0x6e2   : > { %v3374_v58 = vpop.permute.xlu1 %3373 }
 0x6e3   : > { %3391 = vst.msk [vmem:[#allocation5 + $0x38] sm:$0xff] %vm3383_vm5, %v3374_v58  ;;  %v3372_v18 = vpop.permute.xlu0 %3371 }
 0x6e4   : > { %3390 = vst.msk [vmem:[#allocation5 + $0x30] sm:$0xff] %vm3383_vm5, %v3372_v18 }
 0x6ea   : > { %v3399_v39 = vld [vmem:[#allocation5 + $0x38] sm:$0xff] }
 0x6eb   : > { %v3398_v33 = vld [vmem:[#allocation5 + $0x30] sm:$0xff] }
 0x6ec   : > { %5139 = vmatprep.mubr.msk.bf16.mxu1 %vm528_vm0, %v3398_v33  ;;  %v1334_v33 = vld [vmem:[%s5951_s24 + $0x60] sm:$0xff] }
 0x6ed   : > { %5140 = vmatmul.mubr.msk.bf16.gmra.mrb[76].mxu1 %vm528_vm0, %v3399_v39 }
 0x794   : > { %v5129_v1 = vpop.f32.mrb[64].mxu1 }
 0x795   : > { %v3482_v62 = vpop.f32.mrb[65].mxu1  ;;  %v3491_v51 = vadd.f32 %v5129_v1, %v7389_v11 }
 0x796   : > { %v3483_v7 = vadd.f32 %v7389_v11, %v3482_v62  ;;  %v5130_v48 = vpop.f32.mrb[66].mxu1 }
 0x797   : > { %v3485_v20 = vpop.f32.mrb[67].mxu1  ;;  %v7399_v12 = vadd.f32 %v3491_v51, %v1324_v25  ;;  %v3494_v14 = vadd.f32 %v5130_v48, %v7389_v11  ;;  %v1336_v51 = vld [vmem:[%s5951_s24 + $0x70] sm:$0xff] }
 0x798   : > { %v7396_v37 = vadd.f32 %v3483_v7, %v1322_v24  ;;  %v3486_v21 = vadd.f32 %v7389_v11, %v3485_v20  ;;  %v1335_v7 = vld [vmem:[%s5951_s24 + $0x68] sm:$0xff] }
 0x799   : > { %v7409_v61 = vadd.f32 %v3494_v14, %v1325_v15  ;;  %v3569_v9 = vsel %vm528_vm0, %v7399_v12, 0.0 }
 0x79a   : > { %v7402_v38 = vadd.f32 %v3486_v21, %v1323_v28  ;;  %v3563_v52 = vsel %vm528_vm0, %v7396_v37, 0.0  ;;  %v1337_v21 = vld [vmem:[%s5951_s24 + $0x78] sm:$0xff]  ;;  %s7991_s24 = sand.u32 1, %s5776_s30  }
 0x79b   : > { %3564 = vadd.xlane.f32.xlu0 %v3563_v52  ;;  %v3572_v32 = vsel %vm528_vm0, %v7409_v61, 0.0  ;;  %s7804_s3 = scalar_lea.sflag [#allocation7], %s7991_s24 }
 0x79c   : > { %v3566_v41 = vsel %vm528_vm0, %v7402_v38, 0.0 }
 0x79d   : > { %3567 = vadd.xlane.f32.xlu1 %v3566_v41 }
 0x79f   : > { %3570 = vadd.xlane.f32.xlu0 %v3569_v9 }
 0x7a0   : > { %v5133_v19 = vpop.f32.mrb[68].mxu1 }
 0x7a1   : > { %v3498_v23 = vpop.f32.mrb[69].mxu1  ;;  %v3507_v63 = vadd.f32 %v5133_v19, %v7389_v11 }
 0x7a2   : > { %v3499_v27 = vadd.f32 %v7389_v11, %v3498_v23  ;;  %v5134_v26 = vpop.f32.mrb[70].mxu1 }
 0x7a3   : > { %3573 = vadd.xlane.f32.xlu0 %v3572_v32  ;;  %v3501_v60 = vpop.f32.mrb[71].mxu1  ;;  %v3510_v55 = vadd.f32 %v5134_v26, %v7389_v11  ;;  %v7425_v54 = vadd.f32 %v3507_v63, %v1328_v13 }
 0x7a4   : > { %v7420_v53 = vadd.f32 %v3499_v27, %v1326_v17  ;;  %v3502_v34 = vadd.f32 %v7389_v11, %v3501_v60 }
 0x7a5   : > { %v7431_v36 = vadd.f32 %v3510_v55, %v1329_v30  ;;  %v3581_v43 = vsel %vm528_vm0, %v7425_v54, 0.0 }
 0x7a6   : > { %v7427_v35 = vadd.f32 %v3502_v34, %v1327_v45  ;;  %v3575_v3 = vsel %vm528_vm0, %v7420_v53, 0.0 }
 0x7a7   : > { %3576 = vadd.xlane.f32.xlu0 %v3575_v3  ;;  %v3584_v50 = vsel %vm528_vm0, %v7431_v36, 0.0 }
 0x7a8   : > { %v3578_v42 = vsel %vm528_vm0, %v7427_v35, 0.0 }
 0x7a9   : > { %3579 = vadd.xlane.f32.xlu1 %v3578_v42 }
 0x7ab   : > { %3582 = vadd.xlane.f32.xlu0 %v3581_v43 }
 0x7ad   : > { %3585 = vadd.xlane.f32.xlu1 %v3584_v50 }
 0x7b0   : > { %v5137_v4 = vpop.f32.mrb[72].mxu1 }
 0x7b1   : > { %v3514_v22 = vpop.f32.mrb[73].mxu1  ;;  %v3523_v29 = vadd.f32 %v5137_v4, %v7389_v11 }
 0x7b2   : > { %v3515_v8 = vadd.f32 %v7389_v11, %v3514_v22  ;;  %v5138_v46 = vpop.f32.mrb[74].mxu1 }
 0x7b3   : > { %v3517_v2 = vpop.f32.mrb[75].mxu1  ;;  %v3526_v0 = vadd.f32 %v5138_v46, %v7389_v11  ;;  %v7449_v49 = vadd.f32 %v3523_v29, %v1332_v44 }
 0x7b4   : > { %v7444_v10 = vadd.f32 %v3515_v8, %v1330_v31  ;;  %v3518_v5 = vadd.f32 %v7389_v11, %v3517_v2 }
 0x7b5   : > { %v7455_v40 = vadd.f32 %v3526_v0, %v1333_v57  ;;  %v3593_v56 = vsel %vm528_vm0, %v7449_v49, 0.0 }
 0x7b6   : > { %v7451_v59 = vadd.f32 %v3518_v5, %v1331_v6  ;;  %v3587_v16 = vsel %vm528_vm0, %v7444_v10, 0.0 }
 0x7b7   : > { %3588 = vadd.xlane.f32.xlu0 %v3587_v16  ;;  %v3596_v58 = vsel %vm528_vm0, %v7455_v40, 0.0 }
 0x7b8   : > { %v3590_v47 = vsel %vm528_vm0, %v7451_v59, 0.0 }
 0x7b9   : > { %3591 = vadd.xlane.f32.xlu1 %v3590_v47 }
 0x7bb   : > { %3594 = vadd.xlane.f32.xlu0 %v3593_v56 }
 0x7bd   : > { %3597 = vadd.xlane.f32.xlu1 %v3596_v58 }
 0x7c0   : > { %v5141_v18 = vpop.f32.mrb[76].mxu1 }
 0x7c1   : > { %v3530_v39 = vpop.f32.mrb[77].mxu1  ;;  %v3539_v1 = vadd.f32 %v5141_v18, %v7389_v11 }
 0x7c2   : > { %v3531_v24 = vadd.f32 %v7389_v11, %v3530_v39  ;;  %v5142_v62 = vpop.f32.mrb[78].mxu1 }
 0x7c3   : > { %v3533_v48 = vpop.f32.mrb[79].mxu1  ;;  %v3542_v28 = vadd.f32 %v5142_v62, %v7389_v11  ;;  %v7473_v14 = vadd.f32 %v3539_v1, %v1336_v51 }
 0x7c4   : > { %v7468_v25 = vadd.f32 %v3531_v24, %v1334_v33  ;;  %v3534_v20 = vadd.f32 %v7389_v11, %v3533_v48 }
 0x7c5   : > { %v7479_v41 = vadd.f32 %v3542_v28, %v1337_v21  ;;  %v3605_v19 = vsel %vm528_vm0, %v7473_v14, 0.0 }
 0x7c6   : > { %v7475_v52 = vadd.f32 %v3534_v20, %v1335_v7  ;;  %v3599_v15 = vsel %vm528_vm0, %v7468_v25, 0.0 }
 0x7c7   : > { %3600 = vadd.xlane.f32.xlu0 %v3599_v15  ;;  %v3608_v11 = vsel %vm528_vm0, %v7479_v41, 0.0 }
 0x7c8   : > { %v3602_v9 = vsel %vm528_vm0, %v7475_v52, 0.0 }
 0x7c9   : > { %3603 = vadd.xlane.f32.xlu1 %v3602_v9 }
 0x7cb   : > { %3606 = vadd.xlane.f32.xlu0 %v3605_v19 }
 0x7cd   : > { %3609 = vadd.xlane.f32.xlu1 %v3608_v11 }
 0x828   : > { %v3565_v17 = vpop.xlane.xlu0 %3564 }
 0x829   : > { %v3612_v23 = vmul.f32 0.03125, %v3565_v17 }
 0x82a   : > { %v3568_v63 = vpop.xlane.xlu1 %3567 }
 0x82b   : > { %v7488_v27 = vsub.f32 %v7396_v37, %v3612_v23  ;;  %v3613_v26 = vmul.f32 0.03125, %v3568_v63 }
 0x82c   : > { %v3571_v32 = vpop.xlane.xlu0 %3570 }
 0x82d   : > { %v7491_v13 = vsub.f32 %v7402_v38, %v3613_v26  ;;  %v3614_v45 = vmul.f32 0.03125, %v3571_v32  ;;  %v3644_v60 = vmul.f32 %v7488_v27, %v7488_v27 }
 0x82f   : > { %v7496_v55 = vsub.f32 %v7399_v12, %v3614_v45  ;;  %v3660_v34 = vsel %vm528_vm0, %v3644_v60, 0.0  ;;  %v3645_v30 = vmul.f32 %v7491_v13, %v7491_v13 }
 0x830   : > { %3661 = vadd.xlane.f32.xlu0 %v3660_v34  ;;  %v3574_v3 = vpop.xlane.xlu0 %3573 }
 0x831   : > { %v3615_v42 = vmul.f32 0.03125, %v3574_v3  ;;  %v3663_v43 = vsel %vm528_vm0, %v3645_v30, 0.0  ;;  %v3646_v38 = vmul.f32 %v7496_v55, %v7496_v55 }
 0x832   : > { %3664 = vadd.xlane.f32.xlu1 %v3663_v43  ;;  %v5319_v43 = vld [vmem:[%s7866_s9 + $0x8] sm:$0xff]  }
 0x833   : > { %v7505_v50 = vsub.f32 %v7409_v61, %v3615_v42  ;;  %v3666_v12 = vsel %vm528_vm0, %v3646_v38, 0.0 }
 0x834   : > { %3667 = vadd.xlane.f32.xlu0 %v3666_v12  ;;  %v3577_v4 = vpop.xlane.xlu0 %3576 }
 0x835   : > { %v3616_v31 = vmul.f32 0.03125, %v3577_v4  ;;  %v3647_v22 = vmul.f32 %v7505_v50, %v7505_v50 }
 0x836   : > { %v3580_v29 = vpop.xlane.xlu1 %3579 }
 0x837   : > { %v7511_v8 = vsub.f32 %v7420_v53, %v3616_v31  ;;  %v3617_v46 = vmul.f32 0.03125, %v3580_v29  ;;  %v3669_v44 = vsel %vm528_vm0, %v3647_v22, 0.0 }
 0x838   : > { %3670 = vadd.xlane.f32.xlu1 %v3669_v44  ;;  %v3583_v6 = vpop.xlane.xlu0 %3582 }
 0x839   : > { %v7515_v61 = vsub.f32 %v7427_v35, %v3617_v46  ;;  %v3618_v2 = vmul.f32 0.03125, %v3583_v6  ;;  %v3648_v0 = vmul.f32 %v7511_v8, %v7511_v8 }
 0x83a   : > { %v3586_v5 = vpop.xlane.xlu1 %3585 }
 0x83b   : > { %v7520_v57 = vsub.f32 %v7425_v54, %v3618_v2  ;;  %v3619_v16 = vmul.f32 0.03125, %v3586_v5  ;;  %v3672_v53 = vsel %vm528_vm0, %v3648_v0, 0.0  ;;  %v3649_v47 = vmul.f32 %v7515_v61, %v7515_v61 }
 0x83c   : > { %3673 = vadd.xlane.f32.xlu0 %v3672_v53 }
 0x83d   : > { %v7526_v56 = vsub.f32 %v7431_v36, %v3619_v16  ;;  %v3675_v35 = vsel %vm528_vm0, %v3649_v47, 0.0  ;;  %v3650_v58 = vmul.f32 %v7520_v57, %v7520_v57 }
 0x83e   : > { %3676 = vadd.xlane.f32.xlu1 %v3675_v35 }
 0x83f   : > { %v3678_v18 = vsel %vm528_vm0, %v3650_v58, 0.0  ;;  %v3651_v54 = vmul.f32 %v7526_v56, %v7526_v56 }
 0x840   : > { %3679 = vadd.xlane.f32.xlu0 %v3678_v18 }
 0x841   : > { %v3681_v33 = vsel %vm528_vm0, %v3651_v54, 0.0 }
 0x842   : > { %3682 = vadd.xlane.f32.xlu1 %v3681_v33 }
 0x844   : > { %v3589_v39 = vpop.xlane.xlu0 %3588 }
 0x845   : > { %v3620_v1 = vmul.f32 0.03125, %v3589_v39 }
 0x846   : > { %v3592_v24 = vpop.xlane.xlu1 %3591 }
 0x847   : > { %v7536_v36 = vsub.f32 %v7444_v10, %v3620_v1  ;;  %v3621_v62 = vmul.f32 0.03125, %v3592_v24 }
 0x848   : > { %v3595_v51 = vpop.xlane.xlu0 %3594 }
 0x849   : > { %v7539_v7 = vsub.f32 %v7451_v59, %v3621_v62  ;;  %v3622_v48 = vmul.f32 0.03125, %v3595_v51  ;;  %v3652_v28 = vmul.f32 %v7536_v36, %v7536_v36  ;;  %v7592_v62 = vld [vmem:[%s7864_s7] ss:$0 sm:$0xff] }
 0x84a   : > { %v3598_v20 = vpop.xlane.xlu1 %3597 }
 0x84b   : > { %v7544_v21 = vsub.f32 %v7449_v49, %v3622_v48  ;;  %v3623_v15 = vmul.f32 0.03125, %v3598_v20  ;;  %v3684_v9 = vsel %vm528_vm0, %v3652_v28, 0.0  ;;  %v3653_v10 = vmul.f32 %v7539_v7, %v7539_v7 }
 0x84c   : > { %3685 = vadd.xlane.f32.xlu0 %v3684_v9 }
 0x84d   : > { %v7550_v19 = vsub.f32 %v7455_v40, %v3623_v15  ;;  %v3687_v59 = vsel %vm528_vm0, %v3653_v10, 0.0  ;;  %v3654_v11 = vmul.f32 %v7544_v21, %v7544_v21  ;;  %v5318_v40 = vld [vmem:[%s7866_s9] sm:$0xff]  }
 0x84e   : > { %3688 = vadd.xlane.f32.xlu1 %v3687_v59  ;;  %5143 = vmatprep.subr.bf16.mxu0 %v5318_v40 }
 0x84f   : > { %v3690_v17 = vsel %vm528_vm0, %v3654_v11, 0.0  ;;  %v3655_v49 = vmul.f32 %v7550_v19, %v7550_v19  ;;  %5144 = vmatpush3.bf16.msra.mxu0 %v5318_v40 }
 0x850   : > { %3691 = vadd.xlane.f32.xlu0 %v3690_v17  ;;  %5145 = vmatprep.subr.bf16.mxu0 %v5319_v43 }
 0x851   : > { %v3693_v23 = vsel %vm528_vm0, %v3655_v49, 0.0 }
 0x852   : > { %3694 = vadd.xlane.f32.xlu1 %v3693_v23  ;;  %v7600_v23 = vld [vmem:[%s7865_s8] ss:$0 sm:$0xff] }
 0x853   : > { %5146 = vmatpush3.bf16.msra.mxu0 %v5319_v43 }
 0x854   : > { %v3601_v63 = vpop.xlane.xlu0 %3600 }
 0x855   : > { %v3624_v26 = vmul.f32 0.03125, %v3601_v63 }
 0x856   : > { %v3604_v32 = vpop.xlane.xlu1 %3603 }
 0x857   : > { %v7563_v45 = vsub.f32 %v7468_v25, %v3624_v26  ;;  %v3625_v60 = vmul.f32 0.03125, %v3604_v32 }
 0x858   : > { %v3607_v34 = vpop.xlane.xlu0 %3606 }
 0x859   : > { %v7566_v30 = vsub.f32 %v7475_v52, %v3625_v60  ;;  %v3626_v3 = vmul.f32 0.03125, %v3607_v34  ;;  %v3656_v42 = vmul.f32 %v7563_v45, %v7563_v45 }
 0x85a   : > { %v3610_v38 = vpop.xlane.xlu1 %3609 }
 0x85b   : > { %v7574_v12 = vsub.f32 %v7473_v14, %v3626_v3  ;;  %v3627_v25 = vmul.f32 0.03125, %v3610_v38  ;;  %v3696_v4 = vsel %vm528_vm0, %v3656_v42, 0.0  ;;  %v3657_v31 = vmul.f32 %v7566_v30, %v7566_v30 }
 0x85c   : > { %3697 = vadd.xlane.f32.xlu0 %v3696_v4 }
 0x85d   : > { %v7580_v52 = vsub.f32 %v7479_v41, %v3627_v25  ;;  %v3699_v22 = vsel %vm528_vm0, %v3657_v31, 0.0  ;;  %v3658_v29 = vmul.f32 %v7574_v12, %v7574_v12 }
 0x85e   : > { %3700 = vadd.xlane.f32.xlu1 %v3699_v22 }
 0x85f   : > { %v3702_v14 = vsel %vm528_vm0, %v3658_v29, 0.0  ;;  %v3659_v46 = vmul.f32 %v7580_v52, %v7580_v52 }
 0x860   : > { %3703 = vadd.xlane.f32.xlu0 %v3702_v14 }
 0x861   : > { %v3705_v44 = vsel %vm528_vm0, %v3659_v46, 0.0 }
 0x862   : > { %3706 = vadd.xlane.f32.xlu1 %v3705_v44 }
 0x8bd   : > { %v3662_v6 = vpop.xlane.xlu0 %3661 }
 0x8be   : > { %v3708_v2 = vmul.f32 0.03125, %v3662_v6 }
 0x8bf   : > { %v3665_v0 = vpop.xlane.xlu1 %3664 }
 0x8c0   : > { %v3724_v41 = vadd.f32 1e-05, %v3708_v2  ;;  %v3709_v5 = vmul.f32 0.03125, %v3665_v0 }
 0x8c1   : > { %v3668_v16 = vpop.xlane.xlu0 %3667 }
 0x8c2   : > { %5616 = vrsqrt.f32 %v3724_v41  ;;  %v3725_v53 = vadd.f32 1e-05, %v3709_v5  ;;  %v3710_v47 = vmul.f32 0.03125, %v3668_v16 }
 0x8c4   : > { %5618 = vrsqrt.f32 %v3725_v53  ;;  %v3726_v35 = vadd.f32 1e-05, %v3710_v47 }
 0x8c5   : > { %v3671_v58 = vpop.xlane.xlu1 %3670 }
 0x8c6   : > { %5620 = vrsqrt.f32 %v3726_v35  ;;  %v3711_v18 = vmul.f32 0.03125, %v3671_v58 }
 0x8c8   : > { %v3727_v54 = vadd.f32 1e-05, %v3711_v18 }
 0x8c9   : > { %v3674_v33 = vpop.xlane.xlu0 %3673 }
 0x8ca   : > { %5622 = vrsqrt.f32 %v3727_v54  ;;  %v3712_v39 = vmul.f32 0.03125, %v3674_v33 }
 0x8cb   : > { %v3677_v1 = vpop.xlane.xlu1 %3676 }
 0x8cc   : > { %v5617_v24 = vpop.eup %5616  ;;  %v3728_v51 = vadd.f32 1e-05, %v3712_v39  ;;  %v3713_v48 = vmul.f32 0.03125, %v3677_v1 }
 0x8cd   : > { %v3756_v28 = vmul.f32 %v5617_v24, %v7488_v27  ;;  %v3680_v20 = vpop.xlane.xlu0 %3679 }
 0x8ce   : > { %v5619_v15 = vpop.eup %5618  ;;  %5624 = vrsqrt.f32 %v3728_v51  ;;  %v3729_v9 = vadd.f32 1e-05, %v3713_v48  ;;  %v3714_v10 = vmul.f32 0.03125, %v3680_v20 }
 0x8cf   : > { %v3757_v59 = vmul.f32 %v5619_v15, %v7491_v13  ;;  %v3683_v11 = vpop.xlane.xlu1 %3682  ;;  %v3778_v17 = vmul.f32 %v7592_v62, %v3756_v28 }
 0x8d0   : > { %v5621_v49 = vpop.eup %5620  ;;  %5626 = vrsqrt.f32 %v3729_v9  ;;  %v3730_v63 = vadd.f32 1e-05, %v3714_v10  ;;  %v3715_v26 = vmul.f32 0.03125, %v3683_v11 }
 0x8d1   : > { %v3758_v27 = vmul.f32 %v5621_v49, %v7496_v55  ;;  %v3779_v40 = vmul.f32 %v7592_v62, %v3757_v59  ;;  %v3800_v13 = vadd.f32 %v7600_v23, %v3778_v17 }
 0x8d2   : > { %5628 = vrsqrt.f32 %v3730_v63  ;;  %v3731_v32 = vadd.f32 1e-05, %v3715_v26 }
 0x8d3   : > { %v3801_v60 = vadd.f32 %v7600_v23, %v3779_v40  ;;  %v3780_v3 = vmul.f32 %v7592_v62, %v3758_v27 }
 0x8d4   : > { %v5623_v34 = vpop.eup %5622  ;;  %5630 = vrsqrt.f32 %v3731_v32 }
 0x8d5   : > { %v3759_v42 = vmul.f32 %v5623_v34, %v7505_v50  ;;  %v3816_v43 = vpack.c.bf16 %v3801_v60, %v3800_v13  ;;  %v3802_v25 = vadd.f32 %v7600_v23, %v3780_v3 }
 0x8d7   : > { %v3781_v38 = vmul.f32 %v7592_v62, %v3759_v42  ;;  %5147 = vmatprep.mubr.msk.bf16.mxu0 %vm528_vm0, %v3816_v43 }
 0x8d8   : > { %v5625_v55 = vpop.eup %5624 }
 0x8d9   : > { %v3803_v4 = vadd.f32 %v7600_v23, %v3781_v38  ;;  %v3760_v31 = vmul.f32 %v5625_v55, %v7511_v8  ;;  %v3686_v22 = vpop.xlane.xlu0 %3685 }
 0x8da   : > { %v5627_v29 = vpop.eup %5626  ;;  %v3716_v14 = vmul.f32 0.03125, %v3686_v22 }
 0x8db   : > { %v3761_v46 = vmul.f32 %v5627_v29, %v7515_v61  ;;  %v3689_v44 = vpop.xlane.xlu1 %3688  ;;  %v3817_v6 = vpack.c.bf16 %v3803_v4, %v3802_v25  ;;  %v3782_v50 = vmul.f32 %v7592_v62, %v3760_v31 }
 0x8dc   : > { %v5629_v2 = vpop.eup %5628  ;;  %v3732_v0 = vadd.f32 1e-05, %v3716_v14  ;;  %v3717_v41 = vmul.f32 0.03125, %v3689_v44 }
 0x8dd   : > { %v3762_v5 = vmul.f32 %v5629_v2, %v7520_v57  ;;  %5148 = vmatmul.mubr.msk.bf16.vlgmr.msra.gmra.mrb[80].mxu0 %vm528_vm0, %v3817_v6  ;;  %v3692_v16 = vpop.xlane.xlu0 %3691  ;;  %v3783_v53 = vmul.f32 %v7592_v62, %v3761_v46  ;;  %v3804_v18 = vadd.f32 %v7600_v23, %v3782_v50 }
 0x8de   : > { %v5631_v8 = vpop.eup %5630  ;;  %5632 = vrsqrt.f32 %v3732_v0  ;;  %v3733_v47 = vadd.f32 1e-05, %v3717_v41  ;;  %v3718_v35 = vmul.f32 0.03125, %v3692_v16 }
 0x8df   : > { %v3763_v61 = vmul.f32 %v5631_v8, %v7526_v56  ;;  %v3695_v58 = vpop.xlane.xlu1 %3694  ;;  %v3805_v54 = vadd.f32 %v7600_v23, %v3783_v53  ;;  %v3784_v33 = vmul.f32 %v7592_v62, %v3762_v5 }
 0x8e0   : > { %5634 = vrsqrt.f32 %v3733_v47  ;;  %v3734_v57 = vadd.f32 1e-05, %v3718_v35  ;;  %v3719_v39 = vmul.f32 0.03125, %v3695_v58  ;;  %v5323_v58 = vld [vmem:[%s7868_s11 + $0x18] sm:$0xff]  }
 0x8e1   : > { %v3818_v1 = vpack.c.bf16 %v3805_v54, %v3804_v18  ;;  %v3785_v24 = vmul.f32 %v7592_v62, %v3763_v61  ;;  %v3806_v48 = vadd.f32 %v7600_v23, %v3784_v33  ;;  %v5324_v18 = vld [vmem:[%s7868_s11 + $0x20] sm:$0xff]   ;;  %v5325_v54 = vld [vmem:[%s7868_s11 + $0x28] sm:$0xff]   ;;  %v5326_v33 = vld [vmem:[%s7868_s11 + $0x30] sm:$0xff]  }
 0x8e2   : > { %5636 = vrsqrt.f32 %v3734_v57  ;;  %v3735_v51 = vadd.f32 1e-05, %v3719_v39  ;;  %v5327_v57 = vld [vmem:[%s7868_s11 + $0x38] sm:$0xff]   ;;  %v7682_v39 = vld [vmem:[%s7867_s10] ss:$0 sm:$0xff] }
 0x8e3   : > { %5151 = vmatprep.mubr.msk.bf16.mxu0 %vm528_vm0, %v3818_v1  ;;  %v3807_v56 = vadd.f32 %v7600_v23, %v3785_v24 }
 0x8e4   : > { %5638 = vrsqrt.f32 %v3735_v51 }
 0x8e5   : > { %v3819_v28 = vpack.c.bf16 %v3807_v56, %v3806_v48 }
 0x8e7   : > { %5152 = vmatmul.mubr.msk.bf16.gmra.mrb[84].mxu0 %vm528_vm0, %v3819_v28 }
 0x8e8   : > { %v5633_v20 = vpop.eup %5632 }
 0x8e9   : > { %v3698_v15 = vpop.xlane.xlu0 %3697  ;;  %v3764_v9 = vmul.f32 %v5633_v20, %v7536_v36 }
 0x8ea   : > { %v3720_v10 = vmul.f32 0.03125, %v3698_v15  ;;  %v5635_v59 = vpop.eup %5634 }
 0x8eb   : > { %v3701_v11 = vpop.xlane.xlu1 %3700  ;;  %v3765_v17 = vmul.f32 %v5635_v59, %v7539_v7  ;;  %v3786_v40 = vmul.f32 %v7592_v62, %v3764_v9 }
 0x8ec   : > { %v3736_v49 = vadd.f32 1e-05, %v3720_v10  ;;  %v3721_v63 = vmul.f32 0.03125, %v3701_v11  ;;  %v5637_v26 = vpop.eup %5636 }
 0x8ed   : > { %v3704_v27 = vpop.xlane.xlu0 %3703  ;;  %v3766_v32 = vmul.f32 %v5637_v26, %v7544_v21  ;;  %v3787_v36 = vmul.f32 %v7592_v62, %v3765_v17  ;;  %v3808_v38 = vadd.f32 %v7600_v23, %v3786_v40 }
 0x8ee   : > { %5640 = vrsqrt.f32 %v3736_v49  ;;  %v3737_v13 = vadd.f32 1e-05, %v3721_v63  ;;  %v3722_v60 = vmul.f32 0.03125, %v3704_v27  ;;  %v5639_v34 = vpop.eup %5638 }
 0x8ef   : > { %v3707_v3 = vpop.xlane.xlu1 %3706  ;;  %v3767_v42 = vmul.f32 %v5639_v34, %v7550_v19  ;;  %v3809_v55 = vadd.f32 %v7600_v23, %v3787_v36  ;;  %v3788_v25 = vmul.f32 %v7592_v62, %v3766_v32 }
 0x8f0   : > { %5642 = vrsqrt.f32 %v3737_v13  ;;  %v3738_v43 = vadd.f32 1e-05, %v3722_v60  ;;  %v3723_v7 = vmul.f32 0.03125, %v3707_v3 }
 0x8f1   : > { %v3789_v4 = vmul.f32 %v7592_v62, %v3767_v42  ;;  %v3820_v31 = vpack.c.bf16 %v3809_v55, %v3808_v38  ;;  %v3810_v22 = vadd.f32 %v7600_v23, %v3788_v25 }
 0x8f2   : > { %5644 = vrsqrt.f32 %v3738_v43  ;;  %v3739_v21 = vadd.f32 1e-05, %v3723_v7 }
 0x8f3   : > { %v3811_v29 = vadd.f32 %v7600_v23, %v3789_v4  ;;  %5155 = vmatprep.mubr.msk.bf16.mxu0 %vm528_vm0, %v3820_v31 }
 0x8f4   : > { %5646 = vrsqrt.f32 %v3739_v21 }
 0x8f5   : > { %v3821_v19 = vpack.c.bf16 %v3811_v29, %v3810_v22 }
 0x8f7   : > { %5156 = vmatmul.mubr.msk.bf16.gmra.mrb[88].mxu0 %vm528_vm0, %v3821_v19 }
 0x8f8   : > { %v5641_v14 = vpop.eup %5640 }
 0x8f9   : > { %v3768_v46 = vmul.f32 %v5641_v14, %v7563_v45 }
 0x8fa   : > { %v5643_v44 = vpop.eup %5642 }
 0x8fb   : > { %v3769_v6 = vmul.f32 %v5643_v44, %v7566_v30  ;;  %v3790_v50 = vmul.f32 %v7592_v62, %v3768_v46 }
 0x8fc   : > { %v5645_v2 = vpop.eup %5644 }
 0x8fd   : > { %v3770_v0 = vmul.f32 %v5645_v2, %v7574_v12  ;;  %v3791_v41 = vmul.f32 %v7592_v62, %v3769_v6  ;;  %v3812_v53 = vadd.f32 %v7600_v23, %v3790_v50 }
 0x8fe   : > { %v5647_v5 = vpop.eup %5646 }
 0x8ff   : > { %v3771_v16 = vmul.f32 %v5647_v5, %v7580_v52  ;;  %v3813_v8 = vadd.f32 %v7600_v23, %v3791_v41  ;;  %v3792_v47 = vmul.f32 %v7592_v62, %v3770_v0  ;;  %v5320_v52 = vld [vmem:[%s7868_s11] sm:$0xff]  }
 0x900   : > { %5163 = vmatprep.subr.bf16.mxu0 %v5320_v52  ;;  %5195 = vmatprep.subr.bf16.mxu1 %v5320_v52 }
 0x901   : > { %v3822_v45 = vpack.c.bf16 %v3813_v8, %v3812_v53  ;;  %v3793_v35 = vmul.f32 %v7592_v62, %v3771_v16  ;;  %v3814_v30 = vadd.f32 %v7600_v23, %v3792_v47  ;;  %5164 = vmatpush3.bf16.msra.mxu0 %v5320_v52  ;;  %5203 = vmatpush3.bf16.msra.mxu1 %v5320_v52  ;;  %v5321_v62 = vld [vmem:[%s7868_s11 + $0x8] sm:$0xff]  }
 0x902   : > { %5165 = vmatprep.subr.bf16.mxu0 %v5321_v62  ;;  %5196 = vmatprep.subr.bf16.mxu1 %v5321_v62 }
 0x903   : > { %5159 = vmatprep.mubr.msk.bf16.mxu0 %vm528_vm0, %v3822_v45  ;;  %v3815_v12 = vadd.f32 %v7600_v23, %v3793_v35  ;;  %v5322_v23 = vld [vmem:[%s7868_s11 + $0x10] sm:$0xff]  }
 0x905   : > { %v3823_v61 = vpack.c.bf16 %v3815_v12, %v3814_v30  ;;  %5166 = vmatpush3.bf16.msra.mxu0 %v5321_v62  ;;  %5204 = vmatpush3.bf16.msra.mxu1 %v5321_v62 }
 0x906   : > { %5167 = vmatprep.subr.bf16.mxu0 %v5322_v23  ;;  %5197 = vmatprep.subr.bf16.mxu1 %v5322_v23 }
 0x907   : > { %5160 = vmatmul.mubr.msk.bf16.gmra.mrb[92].mxu0 %vm528_vm0, %v3823_v61 }
 0x909   : > { %5168 = vmatpush3.bf16.msra.mxu0 %v5322_v23  ;;  %5205 = vmatpush3.bf16.msra.mxu1 %v5322_v23 }
 0x90a   : > { %5169 = vmatprep.subr.bf16.mxu0 %v5323_v58  ;;  %5198 = vmatprep.subr.bf16.mxu1 %v5323_v58 }
 0x90d   : > { %5170 = vmatpush3.bf16.msra.mxu0 %v5323_v58  ;;  %5206 = vmatpush3.bf16.msra.mxu1 %v5323_v58 }
 0x90e   : > { %5171 = vmatprep.subr.bf16.mxu0 %v5324_v18  ;;  %5199 = vmatprep.subr.bf16.mxu1 %v5324_v18 }
 0x911   : > { %5172 = vmatpush3.bf16.msra.mxu0 %v5324_v18  ;;  %5207 = vmatpush3.bf16.msra.mxu1 %v5324_v18 }
 0x912   : > { %5173 = vmatprep.subr.bf16.mxu0 %v5325_v54  ;;  %5200 = vmatprep.subr.bf16.mxu1 %v5325_v54 }
 0x915   : > { %5174 = vmatpush3.bf16.msra.mxu0 %v5325_v54  ;;  %5208 = vmatpush3.bf16.msra.mxu1 %v5325_v54 }
 0x916   : > { %5175 = vmatprep.subr.bf16.mxu0 %v5326_v33  ;;  %5201 = vmatprep.subr.bf16.mxu1 %v5326_v33 }
 0x919   : > { %5176 = vmatpush3.bf16.msra.mxu0 %v5326_v33  ;;  %5209 = vmatpush3.bf16.msra.mxu1 %v5326_v33 }
 0x91a   : > { %5177 = vmatprep.subr.bf16.mxu0 %v5327_v57  ;;  %5202 = vmatprep.subr.bf16.mxu1 %v5327_v57 }
 0x91d   : > { %5178 = vmatpush3.bf16.msra.mxu0 %v5327_v57  ;;  %5210 = vmatpush3.bf16.msra.mxu1 %v5327_v57 }
 0x9b0   : > { %v5149_v1 = vpop.f32.mrb[80].mxu0 }
 0x9b1   : > { %v7685_v24 = vadd.f32 %v5149_v1, %v7682_v39  ;;  %v3905_v51 = vpop.f32.mrb[81].mxu0 }
 0x9b2   : > { %v7688_v48 = vadd.f32 %v7682_v39, %v3905_v51  ;;  %v5150_v56 = vpop.f32.mrb[82].mxu0 }
 0x9b3   : > { %v4642_v28 = vmul.f32 -1.702, %v7685_v24  ;;  %v7692_v20 = vadd.f32 %v5150_v56, %v7682_v39  ;;  %v3908_v15 = vpop.f32.mrb[83].mxu0 }
 0x9b4   : > { %v4640_v9 = vmul.f32 -1.702, %v7688_v48  ;;  %v7696_v10 = vadd.f32 %v7682_v39, %v3908_v15 }
 0x9b5   : > { %v4004_v59 = vmul.f32 1.442695, %v4642_v28  ;;  %v4643_v11 = vmul.f32 -1.702, %v7692_v20 }
 0x9b6   : > { %v4000_v17 = vmul.f32 1.442695, %v4640_v9  ;;  %v4641_v49 = vmul.f32 -1.702, %v7696_v10 }
 0x9b7   : > { %5648 = vpow2.f32 %v4004_v59  ;;  %v4006_v63 = vmul.f32 1.442695, %v4643_v11 }
 0x9b8   : > { %5650 = vpow2.f32 %v4000_v17  ;;  %v4002_v26 = vmul.f32 1.442695, %v4641_v49 }
 0x9b9   : > { %5652 = vpow2.f32 %v4006_v63 }
 0x9ba   : > { %5654 = vpow2.f32 %v4002_v26  ;;  %v5153_v27 = vpop.f32.mrb[84].mxu0 }
 0x9bb   : > { %v7701_v40 = vadd.f32 %v5153_v27, %v7682_v39  ;;  %v3921_v32 = vpop.f32.mrb[85].mxu0 }
 0x9bc   : > { %v7704_v13 = vadd.f32 %v7682_v39, %v3921_v32  ;;  %v5154_v60 = vpop.f32.mrb[86].mxu0 }
 0x9bd   : > { %v4646_v34 = vmul.f32 -1.702, %v7701_v40  ;;  %v7708_v3 = vadd.f32 %v5154_v60, %v7682_v39  ;;  %v3924_v36 = vpop.f32.mrb[87].mxu0 }
 0x9be   : > { %v4644_v42 = vmul.f32 -1.702, %v7704_v13  ;;  %v7712_v43 = vadd.f32 %v7682_v39, %v3924_v36 }
 0x9bf   : > { %v4012_v7 = vmul.f32 1.442695, %v4646_v34  ;;  %v4647_v38 = vmul.f32 -1.702, %v7708_v3 }
 0x9c0   : > { %v4008_v55 = vmul.f32 1.442695, %v4644_v42  ;;  %v4645_v25 = vmul.f32 -1.702, %v7712_v43 }
 0x9c1   : > { %v5649_v21 = vpop.eup %5648  ;;  %5656 = vpow2.f32 %v4012_v7  ;;  %v4014_v4 = vmul.f32 1.442695, %v4647_v38 }
 0x9c2   : > { %v5651_v31 = vpop.eup %5650  ;;  %v4034_v22 = vadd.f32 1.0, %v5649_v21  ;;  %5658 = vpow2.f32 %v4008_v55  ;;  %v4010_v44 = vmul.f32 1.442695, %v4645_v25 }
 0x9c3   : > { %v5653_v29 = vpop.eup %5652  ;;  %v4032_v19 = vadd.f32 1.0, %v5651_v31  ;;  %5660 = vpow2.f32 %v4014_v4 }
 0x9c4   : > { %v5655_v14 = vpop.eup %5654  ;;  %5662 = vrcp.f32 %v4034_v22  ;;  %v4035_v46 = vadd.f32 1.0, %v5653_v29 }
 0x9c5   : > { %5664 = vrcp.f32 %v4032_v19  ;;  %v4033_v6 = vadd.f32 1.0, %v5655_v14 }
 0x9c6   : > { %5666 = vrcp.f32 %v4035_v46 }
 0x9c7   : > { %5668 = vrcp.f32 %v4033_v6 }
 0x9c8   : > { %5670 = vpow2.f32 %v4010_v44 }
 0x9ca   : > { %v5157_v50 = vpop.f32.mrb[88].mxu0 }
 0x9cb   : > { %v5657_v2 = vpop.eup %5656  ;;  %v7717_v0 = vadd.f32 %v5157_v50, %v7682_v39  ;;  %v3937_v41 = vpop.f32.mrb[89].mxu0 }
 0x9cc   : > { %v5659_v5 = vpop.eup %5658  ;;  %v4038_v16 = vadd.f32 1.0, %v5657_v2  ;;  %v7720_v53 = vadd.f32 %v7682_v39, %v3937_v41  ;;  %v5158_v8 = vpop.f32.mrb[90].mxu0 }
 0x9cd   : > { %v5661_v47 = vpop.eup %5660  ;;  %v4036_v45 = vadd.f32 1.0, %v5659_v5  ;;  %v4650_v35 = vmul.f32 -1.702, %v7717_v0  ;;  %v7724_v30 = vadd.f32 %v5158_v8, %v7682_v39  ;;  %v3940_v12 = vpop.f32.mrb[91].mxu0 }
 0x9ce   : > { %v5663_v61 = vpop.eup %5662  ;;  %5672 = vrcp.f32 %v4038_v16  ;;  %v4039_v52 = vadd.f32 1.0, %v5661_v47  ;;  %v4648_v62 = vmul.f32 -1.702, %v7720_v53  ;;  %v7728_v23 = vadd.f32 %v7682_v39, %v3940_v12 }
 0x9cf   : > { %v5665_v58 = vpop.eup %5664  ;;  %5674 = vrcp.f32 %v4036_v45  ;;  %v4020_v18 = vmul.f32 1.442695, %v4650_v35  ;;  %v4651_v54 = vmul.f32 -1.702, %v7724_v30  ;;  %v4082_v56 = vmul.f32 %v5663_v61, %v7685_v24 }
 0x9d0   : > { %v5667_v33 = vpop.eup %5666  ;;  %5676 = vrcp.f32 %v4039_v52  ;;  %v4016_v57 = vmul.f32 1.442695, %v4648_v62  ;;  %v4649_v1 = vmul.f32 -1.702, %v7728_v23  ;;  %v4080_v59 = vmul.f32 %v5665_v58, %v7688_v48 }
 0x9d1   : > { %v5669_v51 = vpop.eup %5668  ;;  %v4083_v28 = vmul.f32 %v5667_v33, %v7692_v20  ;;  %5678 = vpow2.f32 %v4020_v18  ;;  %v4022_v15 = vmul.f32 1.442695, %v4651_v54 }
 0x9d2   : > { %v5671_v9 = vpop.eup %5670  ;;  %v4081_v11 = vmul.f32 %v5669_v51, %v7696_v10  ;;  %5680 = vpow2.f32 %v4016_v57  ;;  %v4018_v17 = vmul.f32 1.442695, %v4649_v1 }
 0x9d3   : > { %v4097_v49 = vpack.c.bf16 %v4083_v28, %v4082_v56  ;;  %v4037_v63 = vadd.f32 1.0, %v5671_v9  ;;  %5682 = vpow2.f32 %v4022_v15 }
 0x9d4   : > { %5684 = vpow2.f32 %v4018_v17  ;;  %v4096_v26 = vpack.c.bf16 %v4081_v11, %v4080_v59 }
 0x9d5   : > { %5686 = vrcp.f32 %v4037_v63 }
 0x9d6   : > { %5179 = vmatprep.mubr.bf16.mxu0 %v4096_v26  ;;  %v5808_v26 = vmov 0.0  }
 0x9d7   : > { %5180 = vmatmul.mubr.bf16.vlgmr.msra.gmra.mrb[96].mxu0 %v4097_v49  ;;  %4403 = vst.msk [vmem:[%s7761_s19 + $0x8] sm:$0xff] %vm528_vm0, %v5808_v26  ;;  %4404 = vst.msk [vmem:[%s7761_s19 + $0x10] sm:$0xff] %vm528_vm0, %v5808_v26 }
 0x9d8   : > { %v5673_v24 = vpop.eup %5672  ;;  %4405 = vst.msk [vmem:[%s7761_s19 + $0x18] sm:$0xff] %vm528_vm0, %v5808_v26  ;;  %4406 = vst.msk [vmem:[%s7761_s19 + $0x20] sm:$0xff] %vm528_vm0, %v5808_v26 }
 0x9d9   : > { %v5675_v27 = vpop.eup %5674  ;;  %v4086_v10 = vmul.f32 %v5673_v24, %v7701_v40  ;;  %4407 = vst.msk [vmem:[%s7761_s19 + $0x28] sm:$0xff] %vm528_vm0, %v5808_v26  ;;  %4408 = vst.msk [vmem:[%s7761_s19 + $0x30] sm:$0xff] %vm528_vm0, %v5808_v26 }
 0x9da   : > { %v5161_v20 = vpop.f32.mrb[92].mxu0  ;;  %v5677_v32 = vpop.eup %5676  ;;  %v4084_v5 = vmul.f32 %v5675_v27, %v7704_v13  ;;  %4409 = vst.msk [vmem:[%s7761_s19 + $0x38] sm:$0xff] %vm528_vm0, %v5808_v26  ;;  %4410 = vst.msk [vmem:[%s7761_s19 + $0x40] sm:$0xff] %vm528_vm0, %v5808_v26 }
 0x9db   : > { %v7737_v60 = vadd.f32 %v5161_v20, %v7682_v39  ;;  %v3953_v48 = vpop.f32.mrb[93].mxu0  ;;  %v5679_v34 = vpop.eup %5678  ;;  %v4087_v36 = vmul.f32 %v5677_v32, %v7708_v3  ;;  %4411 = vst.msk [vmem:[%s7761_s19 + $0x48] sm:$0xff] %vm528_vm0, %v5808_v26  ;;  %4412 = vst.msk [vmem:[%s7761_s19 + $0x50] sm:$0xff] %vm528_vm0, %v5808_v26 }
 0x9dc   : > { %v7742_v42 = vadd.f32 %v7682_v39, %v3953_v48  ;;  %v5162_v7 = vpop.f32.mrb[94].mxu0  ;;  %v5681_v38 = vpop.eup %5680  ;;  %v4042_v55 = vadd.f32 1.0, %v5679_v34  ;;  %4413 = vst.msk [vmem:[%s7761_s19 + $0x58] sm:$0xff] %vm528_vm0, %v5808_v26  ;;  %4414 = vst.msk [vmem:[%s7761_s19 + $0x60] sm:$0xff] %vm528_vm0, %v5808_v26 }
 0x9dd   : > { %v4654_v25 = vmul.f32 -1.702, %v7737_v60  ;;  %v3965_v21 = vadd.f32 %v5162_v7, %v7682_v39  ;;  %v3956_v4 = vpop.f32.mrb[95].mxu0  ;;  %v5683_v31 = vpop.eup %5682  ;;  %v4099_v22 = vpack.c.bf16 %v4087_v36, %v4086_v10  ;;  %v4040_v29 = vadd.f32 1.0, %v5681_v38  ;;  %4415 = vst.msk [vmem:[%s7761_s19 + $0x68] sm:$0xff] %vm528_vm0, %v5808_v26  ;;  %4416 = vst.msk [vmem:[%s7761_s19 + $0x70] sm:$0xff] %vm528_vm0, %v5808_v26 }
 0x9de   : > { %v4652_v19 = vmul.f32 -1.702, %v7742_v42  ;;  %v3957_v40 = vadd.f32 %v7682_v39, %v3956_v4  ;;  %v5685_v14 = vpop.eup %5684  ;;  %5688 = vrcp.f32 %v4042_v55  ;;  %v4043_v3 = vadd.f32 1.0, %v5683_v31  ;;  %4417 = vst.msk [vmem:[%s7761_s19 + $0x78] sm:$0xff] %vm528_vm0, %v5808_v26 }
 0x9df   : > { %v4028_v46 = vmul.f32 1.442695, %v4654_v25  ;;  %v4655_v44 = vmul.f32 -1.702, %v3965_v21  ;;  %v5687_v6 = vpop.eup %5686  ;;  %5690 = vrcp.f32 %v4040_v29  ;;  %v4041_v50 = vadd.f32 1.0, %v5685_v14 }
 0x9e0   : > { %v4024_v2 = vmul.f32 1.442695, %v4652_v19  ;;  %v4653_v41 = vmul.f32 -1.702, %v3957_v40  ;;  %v4085_v16 = vmul.f32 %v5687_v6, %v7712_v43  ;;  %5692 = vrcp.f32 %v4043_v3 }
 0x9e1   : > { %v4030_v8 = vmul.f32 1.442695, %v4655_v44  ;;  %5694 = vrcp.f32 %v4041_v50 }
 0x9e2   : > { %v4026_v47 = vmul.f32 1.442695, %v4653_v41  ;;  %5696 = vpow2.f32 %v4028_v46  ;;  %v4098_v39 = vpack.c.bf16 %v4085_v16, %v4084_v5 }
 0x9e3   : > { %5698 = vpow2.f32 %v4024_v2 }
 0x9e4   : > { %5700 = vpow2.f32 %v4030_v8  ;;  %5183 = vmatprep.mubr.bf16.mxu1 %v4098_v39 }
 0x9e5   : > { %5702 = vpow2.f32 %v4026_v47  ;;  %5184 = vmatmul.mubr.bf16.vlgmr.msra.gmra.mrb[80].mxu1 %v4099_v22 }
 0x9e8   : > { %v5689_v45 = vpop.eup %5688 }
 0x9e9   : > { %v5691_v35 = vpop.eup %5690  ;;  %v4090_v52 = vmul.f32 %v5689_v45, %v7717_v0 }
 0x9ea   : > { %v5693_v12 = vpop.eup %5692  ;;  %v4088_v62 = vmul.f32 %v5691_v35, %v7720_v53 }
 0x9eb   : > { %v5695_v61 = vpop.eup %5694  ;;  %v4091_v13 = vmul.f32 %v5693_v12, %v7724_v30 }
 0x9ec   : > { %v5697_v43 = vpop.eup %5696  ;;  %v4089_v58 = vmul.f32 %v5695_v61, %v7728_v23 }
 0x9ed   : > { %v5699_v18 = vpop.eup %5698  ;;  %v4046_v54 = vadd.f32 1.0, %v5697_v43  ;;  %v4101_v33 = vpack.c.bf16 %v4091_v13, %v4090_v52 }
 0x9ee   : > { %v5701_v57 = vpop.eup %5700  ;;  %v4044_v1 = vadd.f32 1.0, %v5699_v18  ;;  %v4100_v51 = vpack.c.bf16 %v4089_v58, %v4088_v62 }
 0x9ef   : > { %v5703_v56 = vpop.eup %5702  ;;  %5704 = vrcp.f32 %v4046_v54  ;;  %v4047_v28 = vadd.f32 1.0, %v5701_v57 }
 0x9f0   : > { %5706 = vrcp.f32 %v4044_v1  ;;  %v4045_v15 = vadd.f32 1.0, %v5703_v56  ;;  %5187 = vmatprep.mubr.bf16.mxu1 %v4100_v51 }
 0x9f1   : > { %5708 = vrcp.f32 %v4047_v28  ;;  %5188 = vmatmul.mubr.bf16.gmra.mrb[84].mxu1 %v4101_v33 }
 0x9f2   : > { %5710 = vrcp.f32 %v4045_v15 }
 0x9f9   : > { %v5705_v0 = vpop.eup %5704 }
 0x9fa   : > { %v5707_v53 = vpop.eup %5706  ;;  %v4094_v9 = vmul.f32 %v5705_v0, %v7737_v60 }
 0x9fb   : > { %v5709_v30 = vpop.eup %5708  ;;  %v4092_v11 = vmul.f32 %v5707_v53, %v7742_v42 }
 0x9fc   : > { %v5711_v23 = vpop.eup %5710  ;;  %v4095_v59 = vmul.f32 %v5709_v30, %v3965_v21 }
 0x9fd   : > { %v4093_v17 = vmul.f32 %v5711_v23, %v3957_v40 }
 0x9fe   : > { %v4103_v49 = vpack.c.bf16 %v4095_v59, %v4094_v9 }
 0x9ff   : > { %v4102_v63 = vpack.c.bf16 %v4093_v17, %v4092_v11 }
 0xa01   : > { %5191 = vmatprep.mubr.bf16.mxu1 %v4102_v63 }
 0xa02   : > { %5192 = vmatmul.mubr.bf16.gmra.mrb[88].mxu1 %v4103_v49 }
 0xa03   : > { %5727 = shalt.err (!%p5724_p5)
}
 0xa04   : > { %s5728_s27 = scalar_lea.hbm %s7798_s22, 2048  ;;  %s5732_s24 = scalar_lea.hbm %s7871_s14, 4096 }
 0xa05   : > { %p5729_p6 = scmp.ne.s32.totalorder %s7798_s22, %s5728_s27  ;;  %p5733_p10 = scmp.lt.u32.totalorder %s7798_s22, %s7871_s14 }
 0xa06   : > { %p5734_p11 = scmp.lt.u32.totalorder %s5732_s24, %s5728_s27  ;;  %p5736_p13 = scmp.lt.u32.totalorder %s5728_s27, %s7798_s22 }
 0xa07   : > { %p5730_p7 = pnand %p5729_p6, %p5926_p4 }
 0xa08   : > { %p5735_p12 = por %p5734_p11, %p5733_p10 }
 0xa09   : > { %p5731_p9 = pneg %p5730_p7 }
 0xa0a   : > { %p5737_p0 = por %p5736_p13, %p5735_p12 }
 0xa0c   : > { %p5738_p1 = pnand %p5737_p0, %p5731_p9 }
 0xa0e   : > { %5741 = shalt.err (!%p5738_p1)
}
 0xa0f   : > { %s5810_s4 = smov 128   ;;  %v4664_v20 = vld [vmem:[%s7869_s12] ss:$0 sm:$0xff] }
 0xa10   : > { %5243 = dma.vmem_to_hbm [thread:$0]  (%p5926_p4), %s7800_s2, 2048, %s7798_s22, %s7804_s3, %s5810_s4, %s5810_s4, %s7989_s1  }
 0xaaa   : > { %v5181_v24 = vpop.f32.mrb[96].mxu0 }
 0xaab   : > { %v4202_v27 = vpop.f32.mrb[97].mxu0 }
 0xaac   : > { %v4265_v32 = vadd.f32 %v4202_v27, %v7396_v37  ;;  %v5182_v60 = vpop.f32.mrb[98].mxu0 }
 0xaad   : > { %v4205_v48 = vpop.f32.mrb[99].mxu0 }
 0xaae   : > { %v4288_v34 = vadd.f32 %v4664_v20, %v4265_v32 }
 0xab0   : > { %4402 = vst.msk [vmem:[%s7761_s19] sm:$0xff] %vm528_vm0, %v4288_v34 }
 0xab8   : > { %v5185_v10 = vpop.f32.mrb[80].mxu1 }
 0xab9   : > { %v4218_v36 = vpop.f32.mrb[81].mxu1 }
 0xaba   : > { %v5186_v42 = vpop.f32.mrb[82].mxu1 }
 0xabb   : > { %v4221_v7 = vpop.f32.mrb[83].mxu1 }
 0xac4   : > { %v5189_v38 = vpop.f32.mrb[84].mxu1 }
 0xac5   : > { %v4234_v55 = vpop.f32.mrb[85].mxu1 }
 0xac6   : > { %v5190_v25 = vpop.f32.mrb[86].mxu1 }
 0xac7   : > { %v4237_v21 = vpop.f32.mrb[87].mxu1 }
 0xad5   : > { %v5193_v4 = vpop.f32.mrb[88].mxu1 }
 0xad6   : > { %v4250_v31 = vpop.f32.mrb[89].mxu1 }
 0xad7   : > { %v5194_v22 = vpop.f32.mrb[90].mxu1 }
 0xad8   : > { %v4253_v29 = vpop.f32.mrb[91].mxu1 }
 0xad9 PF: > { %p5249_p4 = scmp.ge.s32.totalorder %s5792_s18, 2  ;;  %s4474_s1 = sand.u32 1, %s5772_s29  }
 0xada   : > { %s4475_s3 = scalar_lea.sflag [#allocation7], %s4474_s1 }
 0xadb   : > { %p5246_p2 = pnand %p5249_p4, %p5933_p8 }
 0xadd   : > { %5767 = dma.done.wait (!%p5246_p2), %s4475_s3, 2048  }
 0xade   : > { %5769 = vsyncadd (!%p5246_p2), %s4475_s3, 4294965248  ;;  %s28_s18 = sadd.s32 1, %s5792_s18   ;;  %s7992_s29 = smov %s5776_s30 }
 0xadf   : > { %p25_p3 = scmp.ge.s32.totalorder %s28_s18, 4   ;;  %s7993_s30 = smov %s5780_s15 }
 0xae0   : > { %s7994_s15 = smov %s5939_s26  ;;  %s7995_s16 = smov %s5788_s17 }
 0xae1   : > { %s7996_s17 = smov %s7998_s21  ;;  %27 = sbr.rel (!%p25_p3) target bundleno = 11 (0xb), region = 134 }
 0xae8   :  { %4480 = vsyncpa [#allocation7], 1 }
 0xae9   :  { %4482 = vsyncpa [#allocation7 + $0x1], 1 }

</bundles_post_ra>
